<compile_context>
chip_gen: v5e
topology: v5e:2x2
jax: 0.10.0
libtpu: 0.0.40
codegen_flags: <defaults>
</compile_context>

<pallas_src>
import functools

import jax
import jax.numpy as jnp
from jax.experimental import pallas as pl
from jax.experimental.pallas import tpu as pltpu


# ---------------------------------------------------------------------------
# host-side helpers (init, BN folding, zero-padding to TPU-friendly shapes)
# ---------------------------------------------------------------------------
def _pad2(a, rows, cols):
    out = jnp.zeros((rows, cols), a.dtype)
    return out.at[: a.shape[0], : a.shape[1]].set(a)


def _uniform(key, shape, fan_in):
    bound = 1.0 / float(max(fan_in, 1)) ** 0.5
    return jax.random.uniform(key, shape, jnp.float32, -bound, bound)


def _linear(key, d_in, d_out):
    kw, kb = jax.random.split(key)
    return _uniform(kw, (d_in, d_out), d_in), _uniform(kb, (d_out,), d_in)


def _fold_bn(w, b, d):
    # Eval-mode BatchNorm1d with default init (gamma=1, beta=0, mean=0, var=1).
    gamma = jnp.ones((d,), jnp.float32)
    beta = jnp.zeros((d,), jnp.float32)
    mean = jnp.zeros((d,), jnp.float32)
    var = jnp.ones((d,), jnp.float32)
    scale = gamma / jnp.sqrt(var + 1e-5)
    return w * scale[None, :], (b - mean) * scale + beta


def _pad_gate_cols(w, d, d_pad):
    # (rows, 4*d) -> (rows, 4*d_pad): each LSTM gate (i,f,g,o) gets its own
    # lane-aligned 128-wide block.
    blocks = [_pad2(w[:, g * d:(g + 1) * d], w.shape[0], d_pad) for g in range(4)]
    return jnp.concatenate(blocks, axis=1)


def _pad_qstar_rows(w, d, d_pad):
    # rows indexed by q_star = [q(d), r(d)] -> (2*d_pad, cols) block layout.
    return jnp.concatenate(
        [_pad2(w[:d], d_pad, w.shape[1]), _pad2(w[d:], d_pad, w.shape[1])], axis=0)


def init_params(key, edge_features, node_features, dim, num_classes,
                *, d_pad, de_pad, c_pad, num_layers=6):
    keys = jax.random.split(key, 4 * num_layers + 8)
    ki = iter(keys)

    wb1s, bb1s, wb2s, bb2s = [], [], [], []
    wm1s, bm1s, wm2s, bm2s = [], [], [], []
    for layer in range(num_layers):
        d1 = node_features if layer == 0 else dim
        d2 = dim
        # bond_encoder: Lin(edge,d1) BN ReLU Lin(d1,d1) BN ReLU  (BN folded)
        w, b = _linear(next(ki), edge_features, d1)
        w, b = _fold_bn(w, b, d1)
        wb1s.append(_pad2(w, de_pad, d_pad))
        bb1s.append(_pad2(b[None, :], 1, d_pad))
        w, b = _linear(next(ki), d1, d1)
        w, b = _fold_bn(w, b, d1)
        wb2s.append(_pad2(w, d_pad, d_pad))
        bb2s.append(_pad2(b[None, :], 1, d_pad))
        # mlp: Lin(d1,d2) BN ReLU Lin(d2,d2) BN ReLU  (BN folded)
        w, b = _linear(next(ki), d1, d2)
        w, b = _fold_bn(w, b, d2)
        wm1s.append(_pad2(w, d_pad, d_pad))
        bm1s.append(_pad2(b[None, :], 1, d_pad))
        w, b = _linear(next(ki), d2, d2)
        w, b = _fold_bn(w, b, d2)
        wm2s.append(_pad2(w, d_pad, d_pad))
        bm2s.append(_pad2(b[None, :], 1, d_pad))

    params = {
        "wb1": jnp.stack(wb1s).astype(jnp.bfloat16), "bb1": jnp.stack(bb1s),
        "wb2": jnp.stack(wb2s).astype(jnp.bfloat16), "bb2": jnp.stack(bb2s),
        "wm1": jnp.stack(wm1s).astype(jnp.bfloat16), "bm1": jnp.stack(bm1s),
        "wm2": jnp.stack(wm2s).astype(jnp.bfloat16), "bm2": jnp.stack(bm2s),
        "eps": jnp.zeros((num_layers,), jnp.float32),   # eps init = 0 (SMEM)
    }

    # Set2Set LSTM (input 2*dim -> hidden dim), PyTorch gate order (i, f, g, o).
    # Since q == h in Set2Set (the LSTM hidden state equals the first half of
    # q_star), W_hh is folded into the q-rows of W_ih in f32 before bf16 cast.
    k = 1.0 / float(dim) ** 0.5
    def u(kk, shape):
        return jax.random.uniform(kk, shape, jnp.float32, -k, k)
    w_ih = u(next(ki), (2 * dim, 4 * dim))
    w_hh = u(next(ki), (dim, 4 * dim))
    b_sum = u(next(ki), (4 * dim,)) + u(next(ki), (4 * dim,))    # b_ih + b_hh
    w_comb = w_ih.at[:dim].add(w_hh)                             # fold (f32)
    params["w_lstm"] = _pad_gate_cols(
        _pad_qstar_rows(w_comb, dim, d_pad), dim, d_pad).astype(jnp.bfloat16)
    params["b_lstm"] = _pad_gate_cols(b_sum[None, :], dim, d_pad)

    w, b = _linear(next(ki), 2 * dim, dim)           # fc1
    params["wfc1"] = _pad2(_pad_qstar_rows(w, dim, d_pad), 2 * d_pad, d_pad).astype(jnp.bfloat16)
    params["bfc1"] = _pad2(b[None, :], 1, d_pad)
    w, b = _linear(next(ki), dim, num_classes)       # fc4
    params["wfc4"] = _pad2(w, d_pad, c_pad).astype(jnp.bfloat16)
    params["bfc4"] = _pad2(b[None, :], 1, c_pad)
    return params


# ---------------------------------------------------------------------------
# fused kernel: single invocation, unrolled layer loop + Set2Set readout
# ---------------------------------------------------------------------------
def net_gine_kernel(x0_ref, ea_ref, asrc_ref, adst_ref, m_ref,
                    wb1_ref, bb1_ref, wb2_ref, bb2_ref,
                    wm1_ref, bm1_ref, wm2_ref, bm2_ref, eps_ref,
                    wl_ref, bl_ref, wfc1_ref, bfc1_ref, wfc4_ref, bfc4_ref,
                    out_ref, *, num_layers, steps):
    d = x0_ref.shape[1]

    def mm(a, b):  # bf16 MXU matmul, f32 accumulation
        return jnp.dot(a.astype(jnp.bfloat16), b.astype(jnp.bfloat16),
                       preferred_element_type=jnp.float32)

    ea = ea_ref[...]                                 # (E, De) bf16
    a_src = asrc_ref[...]                            # (E, N)  bf16 (0/1 exact)
    a_dst = adst_ref[...]                            # (N, E)  bf16 (0/1 exact)
    h = x0_ref[...].astype(jnp.float32)              # (N, D)  f32 node features

    # ---- 6 GINConv layers (BatchNorm folded into the Linear weights) ----
    for l in range(num_layers):                      # static unroll, weights resident
        e1 = jnp.maximum(mm(ea, wb1_ref[l]) + bb1_ref[l], 0.0)
        edge_emb = jnp.maximum(mm(e1, wb2_ref[l]) + bb2_ref[l], 0.0)   # (E, D)

        x_j = mm(a_src, h)                           # gather       (E, D)
        msg = jnp.maximum(x_j + edge_emb, 0.0)       # message
        agg = mm(a_dst, msg)                         # scatter-add  (N, D)

        z = (1.0 + eps_ref[l]) * h + agg             # eps scalar from SMEM

        h1 = jnp.maximum(mm(z, wm1_ref[l]) + bm1_ref[l], 0.0)
        h = jnp.maximum(mm(h1, wm2_ref[l]) + bm2_ref[l], 0.0)
        # NetGINE's outer F.relu is a no-op here (mlp already ends in ReLU).

    # ---- Set2Set(6 steps) + fc1 + ReLU + fc4 ----
    xb = h.astype(jnp.bfloat16)                      # (N, D)
    xbT = jnp.transpose(h).astype(jnp.bfloat16)      # (D, N), hoisted once
    mask = m_ref[...]                                # (B, N) f32
    b = mask.shape[0]

    wl = wl_ref[...]                                 # (2D, 4D) bf16 (W_hh folded)
    bl = bl_ref[...]                                 # (1, 4D)  f32  (b_ih+b_hh)

    q_star = jnp.zeros((b, 2 * d), jnp.float32)
    c_l = jnp.zeros((b, d), jnp.float32)

    for _ in range(steps):
        # fused LSTM gate matmul: q_star @ (W_ih + [W_hh; 0]) + (b_ih + b_hh)
        gates = mm(q_star, wl) + bl                  # (B, 4D)
        i_g = jax.nn.sigmoid(gates[:, 0 * d:1 * d])
        f_g = jax.nn.sigmoid(gates[:, 1 * d:2 * d])
        g_g = jnp.tanh(gates[:, 2 * d:3 * d])
        o_g = jax.nn.sigmoid(gates[:, 3 * d:4 * d])
        c_l = f_g * c_l + i_g * g_g
        q = o_g * jnp.tanh(c_l)                      # (B, D) == LSTM hidden

        # segment softmax over each graph's nodes (masked dense form)
        scores = mm(q, xbT)                          # (B, N)
        masked = jnp.where(mask > 0.5, scores, -1e30)
        mx = jnp.max(masked, axis=1, keepdims=True)
        ex = jnp.exp(masked - mx) * mask
        denom = jnp.maximum(jnp.sum(ex, axis=1, keepdims=True), 1e-20)
        attn = ex / denom                            # (B, N)

        r = mm(attn, xb)                             # (B, D)
        q_star = jnp.concatenate([q, r], axis=-1)    # (B, 2D)

    hf = jnp.maximum(mm(q_star, wfc1_ref[...]) + bfc1_ref[...], 0.0)
    out_ref[...] = mm(hf, wfc4_ref[...]) + bfc4_ref[...]


# ---------------------------------------------------------------------------
# wrapper
# ---------------------------------------------------------------------------
def net_gine_forward(x0, ea, a_src, a_dst, mask, params, *, steps=6):
    num_layers = params["wb1"].shape[0]
    n_pad, d_pad = x0.shape
    e_pad, de_pad = ea.shape
    b_pad = mask.shape[0]
    c_pad = params["wfc4"].shape[1]

    def vmem():
        return pl.BlockSpec(memory_space=pltpu.MemorySpace.VMEM)

    in_specs = (
        [vmem() for _ in range(5)]                    # x0, ea, a_src, a_dst, mask
        + [vmem() for _ in range(8)]                  # wb1,bb1,wb2,bb2,wm1,bm1,wm2,bm2
        + [pl.BlockSpec(memory_space=pltpu.MemorySpace.SMEM)]   # eps (L,)
        + [vmem() for _ in range(6)]                  # w_lstm,b_lstm,wfc1,bfc1,wfc4,bfc4
    )

    args = (x0, ea, a_src, a_dst, mask,
            params["wb1"], params["bb1"], params["wb2"], params["bb2"],
            params["wm1"], params["bm1"], params["wm2"], params["bm2"],
            params["eps"],
            params["w_lstm"], params["b_lstm"],
            params["wfc1"], params["bfc1"], params["wfc4"], params["bfc4"])

    flops = 2 * num_layers * (e_pad * de_pad * d_pad + e_pad * d_pad * d_pad
                              + 2 * e_pad * n_pad * d_pad + 2 * n_pad * d_pad * d_pad)
    flops += 2 * steps * (b_pad * 2 * d_pad * 4 * d_pad + 2 * b_pad * n_pad * d_pad)
    flops += 2 * (b_pad * 2 * d_pad * d_pad + b_pad * d_pad * c_pad)
    transcendentals = steps * (5 * b_pad * d_pad + b_pad * n_pad)
    bytes_accessed = sum(int(a.size) * a.dtype.itemsize for a in args) + b_pad * c_pad * 4

    kernel = functools.partial(net_gine_kernel, num_layers=num_layers, steps=steps)
    return pl.pallas_call(
        kernel,
        out_shape=jax.ShapeDtypeStruct((b_pad, c_pad), jnp.float32),
        in_specs=in_specs,
        out_specs=pl.BlockSpec(memory_space=pltpu.MemorySpace.VMEM),
        compiler_params=pltpu.CompilerParams(vmem_limit_bytes=32 * 1024 * 1024),
        cost_estimate=pl.CostEstimate(flops=flops,
                                      transcendentals=transcendentals,
                                      bytes_accessed=bytes_accessed),
    )(*args)


# ---------------------------------------------------------------------------
# main
# ---------------------------------------------------------------------------
if __name__ == "__main__":
    # real (unpadded) problem sizes
    N, E, B = 16, 48, 2
    EDGE_FEATURES, NODE_FEATURES, DIM, NUM_CLASSES = 16, 32, 32, 12
    # lane/sublane-aligned padded sizes
    N_PAD, E_PAD, B_PAD = 128, 128, 8
    DE_PAD = D_PAD = C_PAD = 128

    key = jax.random.PRNGKey(0)
    kx, ke, ks, kd, kp = jax.random.split(key, 5)

    x = jax.random.normal(kx, (N, NODE_FEATURES), jnp.float32)
    edge_attr = jax.random.normal(ke, (E, EDGE_FEATURES), jnp.float32)

    # random edge_index; keep edges within each graph half
    src0 = jax.random.randint(ks, (E // 2,), 0, N // 2)
    dst0 = jax.random.randint(kd, (E // 2,), 0, N // 2)
    src = jnp.concatenate([src0, src0 + N // 2])
    dst = jnp.concatenate([dst0, dst0 + N // 2])

    a_src = jax.nn.one_hot(src, N, dtype=jnp.float32)        # (E, N)
    a_dst = jax.nn.one_hot(dst, N, dtype=jnp.float32).T      # (N, E)
    batch = jnp.concatenate([jnp.zeros(N // 2, jnp.int32), jnp.ones(N // 2, jnp.int32)])
    mask = jax.nn.one_hot(batch, B, dtype=jnp.float32).T     # (B, N)

    # zero-pad to TPU-friendly shapes; padding is an exact no-op for real entries
    x_p = _pad2(x, N_PAD, D_PAD)
    ea_p = _pad2(edge_attr, E_PAD, DE_PAD).astype(jnp.bfloat16)
    a_src_p = _pad2(a_src, E_PAD, N_PAD).astype(jnp.bfloat16)
    a_dst_p = _pad2(a_dst, N_PAD, E_PAD).astype(jnp.bfloat16)
    mask_p = _pad2(mask, B_PAD, N_PAD)

    params = init_params(kp, EDGE_FEATURES, NODE_FEATURES, DIM, NUM_CLASSES,
                         d_pad=D_PAD, de_pad=DE_PAD, c_pad=C_PAD, num_layers=6)

    out_padded = net_gine_forward(x_p, ea_p, a_src_p, a_dst_p, mask_p, params, steps=6)
    out_padded = jax.block_until_ready(out_padded)
    out = out_padded[:B, :NUM_CLASSES]

    assert out.shape == (B, NUM_CLASSES), out.shape
    assert bool(jnp.all(jnp.isfinite(out)))
    print("KERNEL_OK")
</pallas_src>

<mosaic_0001>
module attributes {stable_mosaic.version = 11 : i64} {
  func.func @net_gine_kernel(%arg0: memref<128x128xf32, #tpu.memory_space<vmem>>, %arg1: memref<128x128xbf16, #tpu.memory_space<vmem>>, %arg2: memref<128x128xbf16, #tpu.memory_space<vmem>>, %arg3: memref<128x128xbf16, #tpu.memory_space<vmem>>, %arg4: memref<8x128xf32, #tpu.memory_space<vmem>>, %arg5: memref<6x128x128xbf16, #tpu.memory_space<vmem>>, %arg6: memref<6x1x128xf32, #tpu.memory_space<vmem>>, %arg7: memref<6x128x128xbf16, #tpu.memory_space<vmem>>, %arg8: memref<6x1x128xf32, #tpu.memory_space<vmem>>, %arg9: memref<6x128x128xbf16, #tpu.memory_space<vmem>>, %arg10: memref<6x1x128xf32, #tpu.memory_space<vmem>>, %arg11: memref<6x128x128xbf16, #tpu.memory_space<vmem>>, %arg12: memref<6x1x128xf32, #tpu.memory_space<vmem>>, %arg13: memref<6xf32, #tpu.memory_space<smem>>, %arg14: memref<256x512xbf16, #tpu.memory_space<vmem>>, %arg15: memref<1x512xf32, #tpu.memory_space<vmem>>, %arg16: memref<256x128xbf16, #tpu.memory_space<vmem>>, %arg17: memref<1x128xf32, #tpu.memory_space<vmem>>, %arg18: memref<128x128xbf16, #tpu.memory_space<vmem>>, %arg19: memref<1x128xf32, #tpu.memory_space<vmem>>, %arg20: memref<8x128xf32, #tpu.memory_space<vmem>>) attributes {dimension_semantics = [], scalar_prefetch = 0 : i64, scratch_operands = 0 : i64, tpu.core_type = #tpu.core_type<tc>} {
    %c0 = arith.constant 0 : index
    %c0_0 = arith.constant 0 : index
    %0 = vector.load %arg1[%c0, %c0_0] : memref<128x128xbf16, #tpu.memory_space<vmem>>, vector<128x128xbf16>
    %c0_1 = arith.constant 0 : index
    %c0_2 = arith.constant 0 : index
    %1 = vector.load %arg2[%c0_1, %c0_2] : memref<128x128xbf16, #tpu.memory_space<vmem>>, vector<128x128xbf16>
    %c0_3 = arith.constant 0 : index
    %c0_4 = arith.constant 0 : index
    %2 = vector.load %arg3[%c0_3, %c0_4] : memref<128x128xbf16, #tpu.memory_space<vmem>>, vector<128x128xbf16>
    %c0_5 = arith.constant 0 : index
    %c0_6 = arith.constant 0 : index
    %3 = vector.load %arg0[%c0_5, %c0_6] : memref<128x128xf32, #tpu.memory_space<vmem>>, vector<128x128xf32>
    %c0_7 = arith.constant 0 : index
    %c0_8 = arith.constant 0 : index
    %c0_9 = arith.constant 0 : index
    %4 = vector.load %arg5[%c0_7, %c0_8, %c0_9] : memref<6x128x128xbf16, #tpu.memory_space<vmem>>, vector<1x128x128xbf16>
    %5 = vector.shape_cast %4 : vector<1x128x128xbf16> to vector<128x128xbf16>
    %cst = arith.constant dense<0.000000e+00> : vector<128x128xf32>
    %6 = tpu.matmul %0, %5, %cst {dimension_numbers = #tpu.dot_dimension_numbers<[1], [0], [0], [1], [0, 0, 1, 1], [], []>} : vector<128x128xbf16>, vector<128x128xbf16>, vector<128x128xf32> -> vector<128x128xf32>
    %c0_10 = arith.constant 0 : index
    %c0_11 = arith.constant 0 : index
    %c0_12 = arith.constant 0 : index
    %7 = vector.load %arg6[%c0_10, %c0_11, %c0_12] : memref<6x1x128xf32, #tpu.memory_space<vmem>>, vector<1x1x128xf32>
    %8 = vector.shape_cast %7 : vector<1x1x128xf32> to vector<1x128xf32>
    %9 = vector.broadcast %8 : vector<1x128xf32> to vector<128x128xf32>
    %10 = arith.addf %6, %9 : vector<128x128xf32>
    %cst_13 = arith.constant 0.000000e+00 : f32
    %11 = vector.broadcast %cst_13 : f32 to vector<128x128xf32>
    %12 = arith.maximumf %10, %11 : vector<128x128xf32>
    %c0_14 = arith.constant 0 : index
    %c0_15 = arith.constant 0 : index
    %c0_16 = arith.constant 0 : index
    %13 = vector.load %arg7[%c0_14, %c0_15, %c0_16] : memref<6x128x128xbf16, #tpu.memory_space<vmem>>, vector<1x128x128xbf16>
    %14 = vector.shape_cast %13 : vector<1x128x128xbf16> to vector<128x128xbf16>
    %15 = arith.truncf %12 : vector<128x128xf32> to vector<128x128xbf16>
    %cst_17 = arith.constant dense<0.000000e+00> : vector<128x128xf32>
    %16 = tpu.matmul %15, %14, %cst_17 {dimension_numbers = #tpu.dot_dimension_numbers<[1], [0], [0], [1], [0, 0, 1, 1], [], []>} : vector<128x128xbf16>, vector<128x128xbf16>, vector<128x128xf32> -> vector<128x128xf32>
    %c0_18 = arith.constant 0 : index
    %c0_19 = arith.constant 0 : index
    %c0_20 = arith.constant 0 : index
    %17 = vector.load %arg8[%c0_18, %c0_19, %c0_20] : memref<6x1x128xf32, #tpu.memory_space<vmem>>, vector<1x1x128xf32>
    %18 = vector.shape_cast %17 : vector<1x1x128xf32> to vector<1x128xf32>
    %19 = vector.broadcast %18 : vector<1x128xf32> to vector<128x128xf32>
    %20 = arith.addf %16, %19 : vector<128x128xf32>
    %cst_21 = arith.constant 0.000000e+00 : f32
    %21 = vector.broadcast %cst_21 : f32 to vector<128x128xf32>
    %22 = arith.maximumf %20, %21 : vector<128x128xf32>
    %23 = arith.truncf %3 : vector<128x128xf32> to vector<128x128xbf16>
    %cst_22 = arith.constant dense<0.000000e+00> : vector<128x128xf32>
    %24 = tpu.matmul %1, %23, %cst_22 {dimension_numbers = #tpu.dot_dimension_numbers<[1], [0], [0], [1], [0, 0, 1, 1], [], []>} : vector<128x128xbf16>, vector<128x128xbf16>, vector<128x128xf32> -> vector<128x128xf32>
    %25 = arith.addf %24, %22 : vector<128x128xf32>
    %cst_23 = arith.constant 0.000000e+00 : f32
    %26 = vector.broadcast %cst_23 : f32 to vector<128x128xf32>
    %27 = arith.maximumf %25, %26 : vector<128x128xf32>
    %28 = arith.truncf %27 : vector<128x128xf32> to vector<128x128xbf16>
    %cst_24 = arith.constant dense<0.000000e+00> : vector<128x128xf32>
    %29 = tpu.matmul %2, %28, %cst_24 {dimension_numbers = #tpu.dot_dimension_numbers<[1], [0], [0], [1], [0, 0, 1, 1], [], []>} : vector<128x128xbf16>, vector<128x128xbf16>, vector<128x128xf32> -> vector<128x128xf32>
    %c0_25 = arith.constant 0 : index
    %30 = memref.load %arg13[%c0_25] : memref<6xf32, #tpu.memory_space<smem>>
    %cst_26 = arith.constant 1.000000e+00 : f32
    %31 = arith.addf %cst_26, %30 : f32
    %32 = vector.broadcast %31 : f32 to vector<128x128xf32>
    %33 = arith.mulf %32, %3 : vector<128x128xf32>
    %34 = arith.addf %33, %29 : vector<128x128xf32>
    %c0_27 = arith.constant 0 : index
    %c0_28 = arith.constant 0 : index
    %c0_29 = arith.constant 0 : index
    %35 = vector.load %arg9[%c0_27, %c0_28, %c0_29] : memref<6x128x128xbf16, #tpu.memory_space<vmem>>, vector<1x128x128xbf16>
    %36 = vector.shape_cast %35 : vector<1x128x128xbf16> to vector<128x128xbf16>
    %37 = arith.truncf %34 : vector<128x128xf32> to vector<128x128xbf16>
    %cst_30 = arith.constant dense<0.000000e+00> : vector<128x128xf32>
    %38 = tpu.matmul %37, %36, %cst_30 {dimension_numbers = #tpu.dot_dimension_numbers<[1], [0], [0], [1], [0, 0, 1, 1], [], []>} : vector<128x128xbf16>, vector<128x128xbf16>, vector<128x128xf32> -> vector<128x128xf32>
    %c0_31 = arith.constant 0 : index
    %c0_32 = arith.constant 0 : index
    %c0_33 = arith.constant 0 : index
    %39 = vector.load %arg10[%c0_31, %c0_32, %c0_33] : memref<6x1x128xf32, #tpu.memory_space<vmem>>, vector<1x1x128xf32>
    %40 = vector.shape_cast %39 : vector<1x1x128xf32> to vector<1x128xf32>
    %41 = vector.broadcast %40 : vector<1x128xf32> to vector<128x128xf32>
    %42 = arith.addf %38, %41 : vector<128x128xf32>
    %cst_34 = arith.constant 0.000000e+00 : f32
    %43 = vector.broadcast %cst_34 : f32 to vector<128x128xf32>
    %44 = arith.maximumf %42, %43 : vector<128x128xf32>
    %c0_35 = arith.constant 0 : index
    %c0_36 = arith.constant 0 : index
    %c0_37 = arith.constant 0 : index
    %45 = vector.load %arg11[%c0_35, %c0_36, %c0_37] : memref<6x128x128xbf16, #tpu.memory_space<vmem>>, vector<1x128x128xbf16>
    %46 = vector.shape_cast %45 : vector<1x128x128xbf16> to vector<128x128xbf16>
    %47 = arith.truncf %44 : vector<128x128xf32> to vector<128x128xbf16>
    %cst_38 = arith.constant dense<0.000000e+00> : vector<128x128xf32>
    %48 = tpu.matmul %47, %46, %cst_38 {dimension_numbers = #tpu.dot_dimension_numbers<[1], [0], [0], [1], [0, 0, 1, 1], [], []>} : vector<128x128xbf16>, vector<128x128xbf16>, vector<128x128xf32> -> vector<128x128xf32>
    %c0_39 = arith.constant 0 : index
    %c0_40 = arith.constant 0 : index
    %c0_41 = arith.constant 0 : index
    %49 = vector.load %arg12[%c0_39, %c0_40, %c0_41] : memref<6x1x128xf32, #tpu.memory_space<vmem>>, vector<1x1x128xf32>
    %50 = vector.shape_cast %49 : vector<1x1x128xf32> to vector<1x128xf32>
    %51 = vector.broadcast %50 : vector<1x128xf32> to vector<128x128xf32>
    %52 = arith.addf %48, %51 : vector<128x128xf32>
    %cst_42 = arith.constant 0.000000e+00 : f32
    %53 = vector.broadcast %cst_42 : f32 to vector<128x128xf32>
    %54 = arith.maximumf %52, %53 : vector<128x128xf32>
    %c1 = arith.constant 1 : index
    %c0_43 = arith.constant 0 : index
    %c0_44 = arith.constant 0 : index
    %55 = vector.load %arg5[%c1, %c0_43, %c0_44] : memref<6x128x128xbf16, #tpu.memory_space<vmem>>, vector<1x128x128xbf16>
    %56 = vector.shape_cast %55 : vector<1x128x128xbf16> to vector<128x128xbf16>
    %cst_45 = arith.constant dense<0.000000e+00> : vector<128x128xf32>
    %57 = tpu.matmul %0, %56, %cst_45 {dimension_numbers = #tpu.dot_dimension_numbers<[1], [0], [0], [1], [0, 0, 1, 1], [], []>} : vector<128x128xbf16>, vector<128x128xbf16>, vector<128x128xf32> -> vector<128x128xf32>
    %c1_46 = arith.constant 1 : index
    %c0_47 = arith.constant 0 : index
    %c0_48 = arith.constant 0 : index
    %58 = vector.load %arg6[%c1_46, %c0_47, %c0_48] : memref<6x1x128xf32, #tpu.memory_space<vmem>>, vector<1x1x128xf32>
    %59 = vector.shape_cast %58 : vector<1x1x128xf32> to vector<1x128xf32>
    %60 = vector.broadcast %59 : vector<1x128xf32> to vector<128x128xf32>
    %61 = arith.addf %57, %60 : vector<128x128xf32>
    %cst_49 = arith.constant 0.000000e+00 : f32
    %62 = vector.broadcast %cst_49 : f32 to vector<128x128xf32>
    %63 = arith.maximumf %61, %62 : vector<128x128xf32>
    %c1_50 = arith.constant 1 : index
    %c0_51 = arith.constant 0 : index
    %c0_52 = arith.constant 0 : index
    %64 = vector.load %arg7[%c1_50, %c0_51, %c0_52] : memref<6x128x128xbf16, #tpu.memory_space<vmem>>, vector<1x128x128xbf16>
    %65 = vector.shape_cast %64 : vector<1x128x128xbf16> to vector<128x128xbf16>
    %66 = arith.truncf %63 : vector<128x128xf32> to vector<128x128xbf16>
    %cst_53 = arith.constant dense<0.000000e+00> : vector<128x128xf32>
    %67 = tpu.matmul %66, %65, %cst_53 {dimension_numbers = #tpu.dot_dimension_numbers<[1], [0], [0], [1], [0, 0, 1, 1], [], []>} : vector<128x128xbf16>, vector<128x128xbf16>, vector<128x128xf32> -> vector<128x128xf32>
    %c1_54 = arith.constant 1 : index
    %c0_55 = arith.constant 0 : index
    %c0_56 = arith.constant 0 : index
    %68 = vector.load %arg8[%c1_54, %c0_55, %c0_56] : memref<6x1x128xf32, #tpu.memory_space<vmem>>, vector<1x1x128xf32>
    %69 = vector.shape_cast %68 : vector<1x1x128xf32> to vector<1x128xf32>
    %70 = vector.broadcast %69 : vector<1x128xf32> to vector<128x128xf32>
    %71 = arith.addf %67, %70 : vector<128x128xf32>
    %cst_57 = arith.constant 0.000000e+00 : f32
    %72 = vector.broadcast %cst_57 : f32 to vector<128x128xf32>
    %73 = arith.maximumf %71, %72 : vector<128x128xf32>
    %74 = arith.truncf %54 : vector<128x128xf32> to vector<128x128xbf16>
    %cst_58 = arith.constant dense<0.000000e+00> : vector<128x128xf32>
    %75 = tpu.matmul %1, %74, %cst_58 {dimension_numbers = #tpu.dot_dimension_numbers<[1], [0], [0], [1], [0, 0, 1, 1], [], []>} : vector<128x128xbf16>, vector<128x128xbf16>, vector<128x128xf32> -> vector<128x128xf32>
    %76 = arith.addf %75, %73 : vector<128x128xf32>
    %cst_59 = arith.constant 0.000000e+00 : f32
    %77 = vector.broadcast %cst_59 : f32 to vector<128x128xf32>
    %78 = arith.maximumf %76, %77 : vector<128x128xf32>
    %79 = arith.truncf %78 : vector<128x128xf32> to vector<128x128xbf16>
    %cst_60 = arith.constant dense<0.000000e+00> : vector<128x128xf32>
    %80 = tpu.matmul %2, %79, %cst_60 {dimension_numbers = #tpu.dot_dimension_numbers<[1], [0], [0], [1], [0, 0, 1, 1], [], []>} : vector<128x128xbf16>, vector<128x128xbf16>, vector<128x128xf32> -> vector<128x128xf32>
    %c1_61 = arith.constant 1 : index
    %81 = memref.load %arg13[%c1_61] : memref<6xf32, #tpu.memory_space<smem>>
    %cst_62 = arith.constant 1.000000e+00 : f32
    %82 = arith.addf %cst_62, %81 : f32
    %83 = vector.broadcast %82 : f32 to vector<128x128xf32>
    %84 = arith.mulf %83, %54 : vector<128x128xf32>
    %85 = arith.addf %84, %80 : vector<128x128xf32>
    %c1_63 = arith.constant 1 : index
    %c0_64 = arith.constant 0 : index
    %c0_65 = arith.constant 0 : index
    %86 = vector.load %arg9[%c1_63, %c0_64, %c0_65] : memref<6x128x128xbf16, #tpu.memory_space<vmem>>, vector<1x128x128xbf16>
    %87 = vector.shape_cast %86 : vector<1x128x128xbf16> to vector<128x128xbf16>
    %88 = arith.truncf %85 : vector<128x128xf32> to vector<128x128xbf16>
    %cst_66 = arith.constant dense<0.000000e+00> : vector<128x128xf32>
    %89 = tpu.matmul %88, %87, %cst_66 {dimension_numbers = #tpu.dot_dimension_numbers<[1], [0], [0], [1], [0, 0, 1, 1], [], []>} : vector<128x128xbf16>, vector<128x128xbf16>, vector<128x128xf32> -> vector<128x128xf32>
    %c1_67 = arith.constant 1 : index
    %c0_68 = arith.constant 0 : index
    %c0_69 = arith.constant 0 : index
    %90 = vector.load %arg10[%c1_67, %c0_68, %c0_69] : memref<6x1x128xf32, #tpu.memory_space<vmem>>, vector<1x1x128xf32>
    %91 = vector.shape_cast %90 : vector<1x1x128xf32> to vector<1x128xf32>
    %92 = vector.broadcast %91 : vector<1x128xf32> to vector<128x128xf32>
    %93 = arith.addf %89, %92 : vector<128x128xf32>
    %cst_70 = arith.constant 0.000000e+00 : f32
    %94 = vector.broadcast %cst_70 : f32 to vector<128x128xf32>
    %95 = arith.maximumf %93, %94 : vector<128x128xf32>
    %c1_71 = arith.constant 1 : index
    %c0_72 = arith.constant 0 : index
    %c0_73 = arith.constant 0 : index
    %96 = vector.load %arg11[%c1_71, %c0_72, %c0_73] : memref<6x128x128xbf16, #tpu.memory_space<vmem>>, vector<1x128x128xbf16>
    %97 = vector.shape_cast %96 : vector<1x128x128xbf16> to vector<128x128xbf16>
    %98 = arith.truncf %95 : vector<128x128xf32> to vector<128x128xbf16>
    %cst_74 = arith.constant dense<0.000000e+00> : vector<128x128xf32>
    %99 = tpu.matmul %98, %97, %cst_74 {dimension_numbers = #tpu.dot_dimension_numbers<[1], [0], [0], [1], [0, 0, 1, 1], [], []>} : vector<128x128xbf16>, vector<128x128xbf16>, vector<128x128xf32> -> vector<128x128xf32>
    %c1_75 = arith.constant 1 : index
    %c0_76 = arith.constant 0 : index
    %c0_77 = arith.constant 0 : index
    %100 = vector.load %arg12[%c1_75, %c0_76, %c0_77] : memref<6x1x128xf32, #tpu.memory_space<vmem>>, vector<1x1x128xf32>
    %101 = vector.shape_cast %100 : vector<1x1x128xf32> to vector<1x128xf32>
    %102 = vector.broadcast %101 : vector<1x128xf32> to vector<128x128xf32>
    %103 = arith.addf %99, %102 : vector<128x128xf32>
    %cst_78 = arith.constant 0.000000e+00 : f32
    %104 = vector.broadcast %cst_78 : f32 to vector<128x128xf32>
    %105 = arith.maximumf %103, %104 : vector<128x128xf32>
    %c2 = arith.constant 2 : index
    %c0_79 = arith.constant 0 : index
    %c0_80 = arith.constant 0 : index
    %106 = vector.load %arg5[%c2, %c0_79, %c0_80] : memref<6x128x128xbf16, #tpu.memory_space<vmem>>, vector<1x128x128xbf16>
    %107 = vector.shape_cast %106 : vector<1x128x128xbf16> to vector<128x128xbf16>
    %cst_81 = arith.constant dense<0.000000e+00> : vector<128x128xf32>
    %108 = tpu.matmul %0, %107, %cst_81 {dimension_numbers = #tpu.dot_dimension_numbers<[1], [0], [0], [1], [0, 0, 1, 1], [], []>} : vector<128x128xbf16>, vector<128x128xbf16>, vector<128x128xf32> -> vector<128x128xf32>
    %c2_82 = arith.constant 2 : index
    %c0_83 = arith.constant 0 : index
    %c0_84 = arith.constant 0 : index
    %109 = vector.load %arg6[%c2_82, %c0_83, %c0_84] : memref<6x1x128xf32, #tpu.memory_space<vmem>>, vector<1x1x128xf32>
    %110 = vector.shape_cast %109 : vector<1x1x128xf32> to vector<1x128xf32>
    %111 = vector.broadcast %110 : vector<1x128xf32> to vector<128x128xf32>
    %112 = arith.addf %108, %111 : vector<128x128xf32>
    %cst_85 = arith.constant 0.000000e+00 : f32
    %113 = vector.broadcast %cst_85 : f32 to vector<128x128xf32>
    %114 = arith.maximumf %112, %113 : vector<128x128xf32>
    %c2_86 = arith.constant 2 : index
    %c0_87 = arith.constant 0 : index
    %c0_88 = arith.constant 0 : index
    %115 = vector.load %arg7[%c2_86, %c0_87, %c0_88] : memref<6x128x128xbf16, #tpu.memory_space<vmem>>, vector<1x128x128xbf16>
    %116 = vector.shape_cast %115 : vector<1x128x128xbf16> to vector<128x128xbf16>
    %117 = arith.truncf %114 : vector<128x128xf32> to vector<128x128xbf16>
    %cst_89 = arith.constant dense<0.000000e+00> : vector<128x128xf32>
    %118 = tpu.matmul %117, %116, %cst_89 {dimension_numbers = #tpu.dot_dimension_numbers<[1], [0], [0], [1], [0, 0, 1, 1], [], []>} : vector<128x128xbf16>, vector<128x128xbf16>, vector<128x128xf32> -> vector<128x128xf32>
    %c2_90 = arith.constant 2 : index
    %c0_91 = arith.constant 0 : index
    %c0_92 = arith.constant 0 : index
    %119 = vector.load %arg8[%c2_90, %c0_91, %c0_92] : memref<6x1x128xf32, #tpu.memory_space<vmem>>, vector<1x1x128xf32>
    %120 = vector.shape_cast %119 : vector<1x1x128xf32> to vector<1x128xf32>
    %121 = vector.broadcast %120 : vector<1x128xf32> to vector<128x128xf32>
    %122 = arith.addf %118, %121 : vector<128x128xf32>
    %cst_93 = arith.constant 0.000000e+00 : f32
    %123 = vector.broadcast %cst_93 : f32 to vector<128x128xf32>
    %124 = arith.maximumf %122, %123 : vector<128x128xf32>
    %125 = arith.truncf %105 : vector<128x128xf32> to vector<128x128xbf16>
    %cst_94 = arith.constant dense<0.000000e+00> : vector<128x128xf32>
    %126 = tpu.matmul %1, %125, %cst_94 {dimension_numbers = #tpu.dot_dimension_numbers<[1], [0], [0], [1], [0, 0, 1, 1], [], []>} : vector<128x128xbf16>, vector<128x128xbf16>, vector<128x128xf32> -> vector<128x128xf32>
    %127 = arith.addf %126, %124 : vector<128x128xf32>
    %cst_95 = arith.constant 0.000000e+00 : f32
    %128 = vector.broadcast %cst_95 : f32 to vector<128x128xf32>
    %129 = arith.maximumf %127, %128 : vector<128x128xf32>
    %130 = arith.truncf %129 : vector<128x128xf32> to vector<128x128xbf16>
    %cst_96 = arith.constant dense<0.000000e+00> : vector<128x128xf32>
    %131 = tpu.matmul %2, %130, %cst_96 {dimension_numbers = #tpu.dot_dimension_numbers<[1], [0], [0], [1], [0, 0, 1, 1], [], []>} : vector<128x128xbf16>, vector<128x128xbf16>, vector<128x128xf32> -> vector<128x128xf32>
    %c2_97 = arith.constant 2 : index
    %132 = memref.load %arg13[%c2_97] : memref<6xf32, #tpu.memory_space<smem>>
    %cst_98 = arith.constant 1.000000e+00 : f32
    %133 = arith.addf %cst_98, %132 : f32
    %134 = vector.broadcast %133 : f32 to vector<128x128xf32>
    %135 = arith.mulf %134, %105 : vector<128x128xf32>
    %136 = arith.addf %135, %131 : vector<128x128xf32>
    %c2_99 = arith.constant 2 : index
    %c0_100 = arith.constant 0 : index
    %c0_101 = arith.constant 0 : index
    %137 = vector.load %arg9[%c2_99, %c0_100, %c0_101] : memref<6x128x128xbf16, #tpu.memory_space<vmem>>, vector<1x128x128xbf16>
    %138 = vector.shape_cast %137 : vector<1x128x128xbf16> to vector<128x128xbf16>
    %139 = arith.truncf %136 : vector<128x128xf32> to vector<128x128xbf16>
    %cst_102 = arith.constant dense<0.000000e+00> : vector<128x128xf32>
    %140 = tpu.matmul %139, %138, %cst_102 {dimension_numbers = #tpu.dot_dimension_numbers<[1], [0], [0], [1], [0, 0, 1, 1], [], []>} : vector<128x128xbf16>, vector<128x128xbf16>, vector<128x128xf32> -> vector<128x128xf32>
    %c2_103 = arith.constant 2 : index
    %c0_104 = arith.constant 0 : index
    %c0_105 = arith.constant 0 : index
    %141 = vector.load %arg10[%c2_103, %c0_104, %c0_105] : memref<6x1x128xf32, #tpu.memory_space<vmem>>, vector<1x1x128xf32>
    %142 = vector.shape_cast %141 : vector<1x1x128xf32> to vector<1x128xf32>
    %143 = vector.broadcast %142 : vector<1x128xf32> to vector<128x128xf32>
    %144 = arith.addf %140, %143 : vector<128x128xf32>
    %cst_106 = arith.constant 0.000000e+00 : f32
    %145 = vector.broadcast %cst_106 : f32 to vector<128x128xf32>
    %146 = arith.maximumf %144, %145 : vector<128x128xf32>
    %c2_107 = arith.constant 2 : index
    %c0_108 = arith.constant 0 : index
    %c0_109 = arith.constant 0 : index
    %147 = vector.load %arg11[%c2_107, %c0_108, %c0_109] : memref<6x128x128xbf16, #tpu.memory_space<vmem>>, vector<1x128x128xbf16>
    %148 = vector.shape_cast %147 : vector<1x128x128xbf16> to vector<128x128xbf16>
    %149 = arith.truncf %146 : vector<128x128xf32> to vector<128x128xbf16>
    %cst_110 = arith.constant dense<0.000000e+00> : vector<128x128xf32>
    %150 = tpu.matmul %149, %148, %cst_110 {dimension_numbers = #tpu.dot_dimension_numbers<[1], [0], [0], [1], [0, 0, 1, 1], [], []>} : vector<128x128xbf16>, vector<128x128xbf16>, vector<128x128xf32> -> vector<128x128xf32>
    %c2_111 = arith.constant 2 : index
    %c0_112 = arith.constant 0 : index
    %c0_113 = arith.constant 0 : index
    %151 = vector.load %arg12[%c2_111, %c0_112, %c0_113] : memref<6x1x128xf32, #tpu.memory_space<vmem>>, vector<1x1x128xf32>
    %152 = vector.shape_cast %151 : vector<1x1x128xf32> to vector<1x128xf32>
    %153 = vector.broadcast %152 : vector<1x128xf32> to vector<128x128xf32>
    %154 = arith.addf %150, %153 : vector<128x128xf32>
    %cst_114 = arith.constant 0.000000e+00 : f32
    %155 = vector.broadcast %cst_114 : f32 to vector<128x128xf32>
    %156 = arith.maximumf %154, %155 : vector<128x128xf32>
    %c3 = arith.constant 3 : index
    %c0_115 = arith.constant 0 : index
    %c0_116 = arith.constant 0 : index
    %157 = vector.load %arg5[%c3, %c0_115, %c0_116] : memref<6x128x128xbf16, #tpu.memory_space<vmem>>, vector<1x128x128xbf16>
    %158 = vector.shape_cast %157 : vector<1x128x128xbf16> to vector<128x128xbf16>
    %cst_117 = arith.constant dense<0.000000e+00> : vector<128x128xf32>
    %159 = tpu.matmul %0, %158, %cst_117 {dimension_numbers = #tpu.dot_dimension_numbers<[1], [0], [0], [1], [0, 0, 1, 1], [], []>} : vector<128x128xbf16>, vector<128x128xbf16>, vector<128x128xf32> -> vector<128x128xf32>
    %c3_118 = arith.constant 3 : index
    %c0_119 = arith.constant 0 : index
    %c0_120 = arith.constant 0 : index
    %160 = vector.load %arg6[%c3_118, %c0_119, %c0_120] : memref<6x1x128xf32, #tpu.memory_space<vmem>>, vector<1x1x128xf32>
    %161 = vector.shape_cast %160 : vector<1x1x128xf32> to vector<1x128xf32>
    %162 = vector.broadcast %161 : vector<1x128xf32> to vector<128x128xf32>
    %163 = arith.addf %159, %162 : vector<128x128xf32>
    %cst_121 = arith.constant 0.000000e+00 : f32
    %164 = vector.broadcast %cst_121 : f32 to vector<128x128xf32>
    %165 = arith.maximumf %163, %164 : vector<128x128xf32>
    %c3_122 = arith.constant 3 : index
    %c0_123 = arith.constant 0 : index
    %c0_124 = arith.constant 0 : index
    %166 = vector.load %arg7[%c3_122, %c0_123, %c0_124] : memref<6x128x128xbf16, #tpu.memory_space<vmem>>, vector<1x128x128xbf16>
    %167 = vector.shape_cast %166 : vector<1x128x128xbf16> to vector<128x128xbf16>
    %168 = arith.truncf %165 : vector<128x128xf32> to vector<128x128xbf16>
    %cst_125 = arith.constant dense<0.000000e+00> : vector<128x128xf32>
    %169 = tpu.matmul %168, %167, %cst_125 {dimension_numbers = #tpu.dot_dimension_numbers<[1], [0], [0], [1], [0, 0, 1, 1], [], []>} : vector<128x128xbf16>, vector<128x128xbf16>, vector<128x128xf32> -> vector<128x128xf32>
    %c3_126 = arith.constant 3 : index
    %c0_127 = arith.constant 0 : index
    %c0_128 = arith.constant 0 : index
    %170 = vector.load %arg8[%c3_126, %c0_127, %c0_128] : memref<6x1x128xf32, #tpu.memory_space<vmem>>, vector<1x1x128xf32>
    %171 = vector.shape_cast %170 : vector<1x1x128xf32> to vector<1x128xf32>
    %172 = vector.broadcast %171 : vector<1x128xf32> to vector<128x128xf32>
    %173 = arith.addf %169, %172 : vector<128x128xf32>
    %cst_129 = arith.constant 0.000000e+00 : f32
    %174 = vector.broadcast %cst_129 : f32 to vector<128x128xf32>
    %175 = arith.maximumf %173, %174 : vector<128x128xf32>
    %176 = arith.truncf %156 : vector<128x128xf32> to vector<128x128xbf16>
    %cst_130 = arith.constant dense<0.000000e+00> : vector<128x128xf32>
    %177 = tpu.matmul %1, %176, %cst_130 {dimension_numbers = #tpu.dot_dimension_numbers<[1], [0], [0], [1], [0, 0, 1, 1], [], []>} : vector<128x128xbf16>, vector<128x128xbf16>, vector<128x128xf32> -> vector<128x128xf32>
    %178 = arith.addf %177, %175 : vector<128x128xf32>
    %cst_131 = arith.constant 0.000000e+00 : f32
    %179 = vector.broadcast %cst_131 : f32 to vector<128x128xf32>
    %180 = arith.maximumf %178, %179 : vector<128x128xf32>
    %181 = arith.truncf %180 : vector<128x128xf32> to vector<128x128xbf16>
    %cst_132 = arith.constant dense<0.000000e+00> : vector<128x128xf32>
    %182 = tpu.matmul %2, %181, %cst_132 {dimension_numbers = #tpu.dot_dimension_numbers<[1], [0], [0], [1], [0, 0, 1, 1], [], []>} : vector<128x128xbf16>, vector<128x128xbf16>, vector<128x128xf32> -> vector<128x128xf32>
    %c3_133 = arith.constant 3 : index
    %183 = memref.load %arg13[%c3_133] : memref<6xf32, #tpu.memory_space<smem>>
    %cst_134 = arith.constant 1.000000e+00 : f32
    %184 = arith.addf %cst_134, %183 : f32
    %185 = vector.broadcast %184 : f32 to vector<128x128xf32>
    %186 = arith.mulf %185, %156 : vector<128x128xf32>
    %187 = arith.addf %186, %182 : vector<128x128xf32>
    %c3_135 = arith.constant 3 : index
    %c0_136 = arith.constant 0 : index
    %c0_137 = arith.constant 0 : index
    %188 = vector.load %arg9[%c3_135, %c0_136, %c0_137] : memref<6x128x128xbf16, #tpu.memory_space<vmem>>, vector<1x128x128xbf16>
    %189 = vector.shape_cast %188 : vector<1x128x128xbf16> to vector<128x128xbf16>
    %190 = arith.truncf %187 : vector<128x128xf32> to vector<128x128xbf16>
    %cst_138 = arith.constant dense<0.000000e+00> : vector<128x128xf32>
    %191 = tpu.matmul %190, %189, %cst_138 {dimension_numbers = #tpu.dot_dimension_numbers<[1], [0], [0], [1], [0, 0, 1, 1], [], []>} : vector<128x128xbf16>, vector<128x128xbf16>, vector<128x128xf32> -> vector<128x128xf32>
    %c3_139 = arith.constant 3 : index
    %c0_140 = arith.constant 0 : index
    %c0_141 = arith.constant 0 : index
    %192 = vector.load %arg10[%c3_139, %c0_140, %c0_141] : memref<6x1x128xf32, #tpu.memory_space<vmem>>, vector<1x1x128xf32>
    %193 = vector.shape_cast %192 : vector<1x1x128xf32> to vector<1x128xf32>
    %194 = vector.broadcast %193 : vector<1x128xf32> to vector<128x128xf32>
    %195 = arith.addf %191, %194 : vector<128x128xf32>
    %cst_142 = arith.constant 0.000000e+00 : f32
    %196 = vector.broadcast %cst_142 : f32 to vector<128x128xf32>
    %197 = arith.maximumf %195, %196 : vector<128x128xf32>
    %c3_143 = arith.constant 3 : index
    %c0_144 = arith.constant 0 : index
    %c0_145 = arith.constant 0 : index
    %198 = vector.load %arg11[%c3_143, %c0_144, %c0_145] : memref<6x128x128xbf16, #tpu.memory_space<vmem>>, vector<1x128x128xbf16>
    %199 = vector.shape_cast %198 : vector<1x128x128xbf16> to vector<128x128xbf16>
    %200 = arith.truncf %197 : vector<128x128xf32> to vector<128x128xbf16>
    %cst_146 = arith.constant dense<0.000000e+00> : vector<128x128xf32>
    %201 = tpu.matmul %200, %199, %cst_146 {dimension_numbers = #tpu.dot_dimension_numbers<[1], [0], [0], [1], [0, 0, 1, 1], [], []>} : vector<128x128xbf16>, vector<128x128xbf16>, vector<128x128xf32> -> vector<128x128xf32>
    %c3_147 = arith.constant 3 : index
    %c0_148 = arith.constant 0 : index
    %c0_149 = arith.constant 0 : index
    %202 = vector.load %arg12[%c3_147, %c0_148, %c0_149] : memref<6x1x128xf32, #tpu.memory_space<vmem>>, vector<1x1x128xf32>
    %203 = vector.shape_cast %202 : vector<1x1x128xf32> to vector<1x128xf32>
    %204 = vector.broadcast %203 : vector<1x128xf32> to vector<128x128xf32>
    %205 = arith.addf %201, %204 : vector<128x128xf32>
    %cst_150 = arith.constant 0.000000e+00 : f32
    %206 = vector.broadcast %cst_150 : f32 to vector<128x128xf32>
    %207 = arith.maximumf %205, %206 : vector<128x128xf32>
    %c4 = arith.constant 4 : index
    %c0_151 = arith.constant 0 : index
    %c0_152 = arith.constant 0 : index
    %208 = vector.load %arg5[%c4, %c0_151, %c0_152] : memref<6x128x128xbf16, #tpu.memory_space<vmem>>, vector<1x128x128xbf16>
    %209 = vector.shape_cast %208 : vector<1x128x128xbf16> to vector<128x128xbf16>
    %cst_153 = arith.constant dense<0.000000e+00> : vector<128x128xf32>
    %210 = tpu.matmul %0, %209, %cst_153 {dimension_numbers = #tpu.dot_dimension_numbers<[1], [0], [0], [1], [0, 0, 1, 1], [], []>} : vector<128x128xbf16>, vector<128x128xbf16>, vector<128x128xf32> -> vector<128x128xf32>
    %c4_154 = arith.constant 4 : index
    %c0_155 = arith.constant 0 : index
    %c0_156 = arith.constant 0 : index
    %211 = vector.load %arg6[%c4_154, %c0_155, %c0_156] : memref<6x1x128xf32, #tpu.memory_space<vmem>>, vector<1x1x128xf32>
    %212 = vector.shape_cast %211 : vector<1x1x128xf32> to vector<1x128xf32>
    %213 = vector.broadcast %212 : vector<1x128xf32> to vector<128x128xf32>
    %214 = arith.addf %210, %213 : vector<128x128xf32>
    %cst_157 = arith.constant 0.000000e+00 : f32
    %215 = vector.broadcast %cst_157 : f32 to vector<128x128xf32>
    %216 = arith.maximumf %214, %215 : vector<128x128xf32>
    %c4_158 = arith.constant 4 : index
    %c0_159 = arith.constant 0 : index
    %c0_160 = arith.constant 0 : index
    %217 = vector.load %arg7[%c4_158, %c0_159, %c0_160] : memref<6x128x128xbf16, #tpu.memory_space<vmem>>, vector<1x128x128xbf16>
    %218 = vector.shape_cast %217 : vector<1x128x128xbf16> to vector<128x128xbf16>
    %219 = arith.truncf %216 : vector<128x128xf32> to vector<128x128xbf16>
    %cst_161 = arith.constant dense<0.000000e+00> : vector<128x128xf32>
    %220 = tpu.matmul %219, %218, %cst_161 {dimension_numbers = #tpu.dot_dimension_numbers<[1], [0], [0], [1], [0, 0, 1, 1], [], []>} : vector<128x128xbf16>, vector<128x128xbf16>, vector<128x128xf32> -> vector<128x128xf32>
    %c4_162 = arith.constant 4 : index
    %c0_163 = arith.constant 0 : index
    %c0_164 = arith.constant 0 : index
    %221 = vector.load %arg8[%c4_162, %c0_163, %c0_164] : memref<6x1x128xf32, #tpu.memory_space<vmem>>, vector<1x1x128xf32>
    %222 = vector.shape_cast %221 : vector<1x1x128xf32> to vector<1x128xf32>
    %223 = vector.broadcast %222 : vector<1x128xf32> to vector<128x128xf32>
    %224 = arith.addf %220, %223 : vector<128x128xf32>
    %cst_165 = arith.constant 0.000000e+00 : f32
    %225 = vector.broadcast %cst_165 : f32 to vector<128x128xf32>
    %226 = arith.maximumf %224, %225 : vector<128x128xf32>
    %227 = arith.truncf %207 : vector<128x128xf32> to vector<128x128xbf16>
    %cst_166 = arith.constant dense<0.000000e+00> : vector<128x128xf32>
    %228 = tpu.matmul %1, %227, %cst_166 {dimension_numbers = #tpu.dot_dimension_numbers<[1], [0], [0], [1], [0, 0, 1, 1], [], []>} : vector<128x128xbf16>, vector<128x128xbf16>, vector<128x128xf32> -> vector<128x128xf32>
    %229 = arith.addf %228, %226 : vector<128x128xf32>
    %cst_167 = arith.constant 0.000000e+00 : f32
    %230 = vector.broadcast %cst_167 : f32 to vector<128x128xf32>
    %231 = arith.maximumf %229, %230 : vector<128x128xf32>
    %232 = arith.truncf %231 : vector<128x128xf32> to vector<128x128xbf16>
    %cst_168 = arith.constant dense<0.000000e+00> : vector<128x128xf32>
    %233 = tpu.matmul %2, %232, %cst_168 {dimension_numbers = #tpu.dot_dimension_numbers<[1], [0], [0], [1], [0, 0, 1, 1], [], []>} : vector<128x128xbf16>, vector<128x128xbf16>, vector<128x128xf32> -> vector<128x128xf32>
    %c4_169 = arith.constant 4 : index
    %234 = memref.load %arg13[%c4_169] : memref<6xf32, #tpu.memory_space<smem>>
    %cst_170 = arith.constant 1.000000e+00 : f32
    %235 = arith.addf %cst_170, %234 : f32
    %236 = vector.broadcast %235 : f32 to vector<128x128xf32>
    %237 = arith.mulf %236, %207 : vector<128x128xf32>
    %238 = arith.addf %237, %233 : vector<128x128xf32>
    %c4_171 = arith.constant 4 : index
    %c0_172 = arith.constant 0 : index
    %c0_173 = arith.constant 0 : index
    %239 = vector.load %arg9[%c4_171, %c0_172, %c0_173] : memref<6x128x128xbf16, #tpu.memory_space<vmem>>, vector<1x128x128xbf16>
    %240 = vector.shape_cast %239 : vector<1x128x128xbf16> to vector<128x128xbf16>
    %241 = arith.truncf %238 : vector<128x128xf32> to vector<128x128xbf16>
    %cst_174 = arith.constant dense<0.000000e+00> : vector<128x128xf32>
    %242 = tpu.matmul %241, %240, %cst_174 {dimension_numbers = #tpu.dot_dimension_numbers<[1], [0], [0], [1], [0, 0, 1, 1], [], []>} : vector<128x128xbf16>, vector<128x128xbf16>, vector<128x128xf32> -> vector<128x128xf32>
    %c4_175 = arith.constant 4 : index
    %c0_176 = arith.constant 0 : index
    %c0_177 = arith.constant 0 : index
    %243 = vector.load %arg10[%c4_175, %c0_176, %c0_177] : memref<6x1x128xf32, #tpu.memory_space<vmem>>, vector<1x1x128xf32>
    %244 = vector.shape_cast %243 : vector<1x1x128xf32> to vector<1x128xf32>
    %245 = vector.broadcast %244 : vector<1x128xf32> to vector<128x128xf32>
    %246 = arith.addf %242, %245 : vector<128x128xf32>
    %cst_178 = arith.constant 0.000000e+00 : f32
    %247 = vector.broadcast %cst_178 : f32 to vector<128x128xf32>
    %248 = arith.maximumf %246, %247 : vector<128x128xf32>
    %c4_179 = arith.constant 4 : index
    %c0_180 = arith.constant 0 : index
    %c0_181 = arith.constant 0 : index
    %249 = vector.load %arg11[%c4_179, %c0_180, %c0_181] : memref<6x128x128xbf16, #tpu.memory_space<vmem>>, vector<1x128x128xbf16>
    %250 = vector.shape_cast %249 : vector<1x128x128xbf16> to vector<128x128xbf16>
    %251 = arith.truncf %248 : vector<128x128xf32> to vector<128x128xbf16>
    %cst_182 = arith.constant dense<0.000000e+00> : vector<128x128xf32>
    %252 = tpu.matmul %251, %250, %cst_182 {dimension_numbers = #tpu.dot_dimension_numbers<[1], [0], [0], [1], [0, 0, 1, 1], [], []>} : vector<128x128xbf16>, vector<128x128xbf16>, vector<128x128xf32> -> vector<128x128xf32>
    %c4_183 = arith.constant 4 : index
    %c0_184 = arith.constant 0 : index
    %c0_185 = arith.constant 0 : index
    %253 = vector.load %arg12[%c4_183, %c0_184, %c0_185] : memref<6x1x128xf32, #tpu.memory_space<vmem>>, vector<1x1x128xf32>
    %254 = vector.shape_cast %253 : vector<1x1x128xf32> to vector<1x128xf32>
    %255 = vector.broadcast %254 : vector<1x128xf32> to vector<128x128xf32>
    %256 = arith.addf %252, %255 : vector<128x128xf32>
    %cst_186 = arith.constant 0.000000e+00 : f32
    %257 = vector.broadcast %cst_186 : f32 to vector<128x128xf32>
    %258 = arith.maximumf %256, %257 : vector<128x128xf32>
    %c5 = arith.constant 5 : index
    %c0_187 = arith.constant 0 : index
    %c0_188 = arith.constant 0 : index
    %259 = vector.load %arg5[%c5, %c0_187, %c0_188] : memref<6x128x128xbf16, #tpu.memory_space<vmem>>, vector<1x128x128xbf16>
    %260 = vector.shape_cast %259 : vector<1x128x128xbf16> to vector<128x128xbf16>
    %cst_189 = arith.constant dense<0.000000e+00> : vector<128x128xf32>
    %261 = tpu.matmul %0, %260, %cst_189 {dimension_numbers = #tpu.dot_dimension_numbers<[1], [0], [0], [1], [0, 0, 1, 1], [], []>} : vector<128x128xbf16>, vector<128x128xbf16>, vector<128x128xf32> -> vector<128x128xf32>
    %c5_190 = arith.constant 5 : index
    %c0_191 = arith.constant 0 : index
    %c0_192 = arith.constant 0 : index
    %262 = vector.load %arg6[%c5_190, %c0_191, %c0_192] : memref<6x1x128xf32, #tpu.memory_space<vmem>>, vector<1x1x128xf32>
    %263 = vector.shape_cast %262 : vector<1x1x128xf32> to vector<1x128xf32>
    %264 = vector.broadcast %263 : vector<1x128xf32> to vector<128x128xf32>
    %265 = arith.addf %261, %264 : vector<128x128xf32>
    %cst_193 = arith.constant 0.000000e+00 : f32
    %266 = vector.broadcast %cst_193 : f32 to vector<128x128xf32>
    %267 = arith.maximumf %265, %266 : vector<128x128xf32>
    %c5_194 = arith.constant 5 : index
    %c0_195 = arith.constant 0 : index
    %c0_196 = arith.constant 0 : index
    %268 = vector.load %arg7[%c5_194, %c0_195, %c0_196] : memref<6x128x128xbf16, #tpu.memory_space<vmem>>, vector<1x128x128xbf16>
    %269 = vector.shape_cast %268 : vector<1x128x128xbf16> to vector<128x128xbf16>
    %270 = arith.truncf %267 : vector<128x128xf32> to vector<128x128xbf16>
    %cst_197 = arith.constant dense<0.000000e+00> : vector<128x128xf32>
    %271 = tpu.matmul %270, %269, %cst_197 {dimension_numbers = #tpu.dot_dimension_numbers<[1], [0], [0], [1], [0, 0, 1, 1], [], []>} : vector<128x128xbf16>, vector<128x128xbf16>, vector<128x128xf32> -> vector<128x128xf32>
    %c5_198 = arith.constant 5 : index
    %c0_199 = arith.constant 0 : index
    %c0_200 = arith.constant 0 : index
    %272 = vector.load %arg8[%c5_198, %c0_199, %c0_200] : memref<6x1x128xf32, #tpu.memory_space<vmem>>, vector<1x1x128xf32>
    %273 = vector.shape_cast %272 : vector<1x1x128xf32> to vector<1x128xf32>
    %274 = vector.broadcast %273 : vector<1x128xf32> to vector<128x128xf32>
    %275 = arith.addf %271, %274 : vector<128x128xf32>
    %cst_201 = arith.constant 0.000000e+00 : f32
    %276 = vector.broadcast %cst_201 : f32 to vector<128x128xf32>
    %277 = arith.maximumf %275, %276 : vector<128x128xf32>
    %278 = arith.truncf %258 : vector<128x128xf32> to vector<128x128xbf16>
    %cst_202 = arith.constant dense<0.000000e+00> : vector<128x128xf32>
    %279 = tpu.matmul %1, %278, %cst_202 {dimension_numbers = #tpu.dot_dimension_numbers<[1], [0], [0], [1], [0, 0, 1, 1], [], []>} : vector<128x128xbf16>, vector<128x128xbf16>, vector<128x128xf32> -> vector<128x128xf32>
    %280 = arith.addf %279, %277 : vector<128x128xf32>
    %cst_203 = arith.constant 0.000000e+00 : f32
    %281 = vector.broadcast %cst_203 : f32 to vector<128x128xf32>
    %282 = arith.maximumf %280, %281 : vector<128x128xf32>
    %283 = arith.truncf %282 : vector<128x128xf32> to vector<128x128xbf16>
    %cst_204 = arith.constant dense<0.000000e+00> : vector<128x128xf32>
    %284 = tpu.matmul %2, %283, %cst_204 {dimension_numbers = #tpu.dot_dimension_numbers<[1], [0], [0], [1], [0, 0, 1, 1], [], []>} : vector<128x128xbf16>, vector<128x128xbf16>, vector<128x128xf32> -> vector<128x128xf32>
    %c5_205 = arith.constant 5 : index
    %285 = memref.load %arg13[%c5_205] : memref<6xf32, #tpu.memory_space<smem>>
    %cst_206 = arith.constant 1.000000e+00 : f32
    %286 = arith.addf %cst_206, %285 : f32
    %287 = vector.broadcast %286 : f32 to vector<128x128xf32>
    %288 = arith.mulf %287, %258 : vector<128x128xf32>
    %289 = arith.addf %288, %284 : vector<128x128xf32>
    %c5_207 = arith.constant 5 : index
    %c0_208 = arith.constant 0 : index
    %c0_209 = arith.constant 0 : index
    %290 = vector.load %arg9[%c5_207, %c0_208, %c0_209] : memref<6x128x128xbf16, #tpu.memory_space<vmem>>, vector<1x128x128xbf16>
    %291 = vector.shape_cast %290 : vector<1x128x128xbf16> to vector<128x128xbf16>
    %292 = arith.truncf %289 : vector<128x128xf32> to vector<128x128xbf16>
    %cst_210 = arith.constant dense<0.000000e+00> : vector<128x128xf32>
    %293 = tpu.matmul %292, %291, %cst_210 {dimension_numbers = #tpu.dot_dimension_numbers<[1], [0], [0], [1], [0, 0, 1, 1], [], []>} : vector<128x128xbf16>, vector<128x128xbf16>, vector<128x128xf32> -> vector<128x128xf32>
    %c5_211 = arith.constant 5 : index
    %c0_212 = arith.constant 0 : index
    %c0_213 = arith.constant 0 : index
    %294 = vector.load %arg10[%c5_211, %c0_212, %c0_213] : memref<6x1x128xf32, #tpu.memory_space<vmem>>, vector<1x1x128xf32>
    %295 = vector.shape_cast %294 : vector<1x1x128xf32> to vector<1x128xf32>
    %296 = vector.broadcast %295 : vector<1x128xf32> to vector<128x128xf32>
    %297 = arith.addf %293, %296 : vector<128x128xf32>
    %cst_214 = arith.constant 0.000000e+00 : f32
    %298 = vector.broadcast %cst_214 : f32 to vector<128x128xf32>
    %299 = arith.maximumf %297, %298 : vector<128x128xf32>
    %c5_215 = arith.constant 5 : index
    %c0_216 = arith.constant 0 : index
    %c0_217 = arith.constant 0 : index
    %300 = vector.load %arg11[%c5_215, %c0_216, %c0_217] : memref<6x128x128xbf16, #tpu.memory_space<vmem>>, vector<1x128x128xbf16>
    %301 = vector.shape_cast %300 : vector<1x128x128xbf16> to vector<128x128xbf16>
    %302 = arith.truncf %299 : vector<128x128xf32> to vector<128x128xbf16>
    %cst_218 = arith.constant dense<0.000000e+00> : vector<128x128xf32>
    %303 = tpu.matmul %302, %301, %cst_218 {dimension_numbers = #tpu.dot_dimension_numbers<[1], [0], [0], [1], [0, 0, 1, 1], [], []>} : vector<128x128xbf16>, vector<128x128xbf16>, vector<128x128xf32> -> vector<128x128xf32>
    %c5_219 = arith.constant 5 : index
    %c0_220 = arith.constant 0 : index
    %c0_221 = arith.constant 0 : index
    %304 = vector.load %arg12[%c5_219, %c0_220, %c0_221] : memref<6x1x128xf32, #tpu.memory_space<vmem>>, vector<1x1x128xf32>
    %305 = vector.shape_cast %304 : vector<1x1x128xf32> to vector<1x128xf32>
    %306 = vector.broadcast %305 : vector<1x128xf32> to vector<128x128xf32>
    %307 = arith.addf %303, %306 : vector<128x128xf32>
    %cst_222 = arith.constant 0.000000e+00 : f32
    %308 = vector.broadcast %cst_222 : f32 to vector<128x128xf32>
    %309 = arith.maximumf %307, %308 : vector<128x128xf32>
    %310 = arith.truncf %309 : vector<128x128xf32> to vector<128x128xbf16>
    %311 = tpu.transpose %309, [1, 0] : vector<128x128xf32> -> vector<128x128xf32>
    %312 = arith.truncf %311 : vector<128x128xf32> to vector<128x128xbf16>
    %c0_223 = arith.constant 0 : index
    %c0_224 = arith.constant 0 : index
    %313 = vector.load %arg4[%c0_223, %c0_224] : memref<8x128xf32, #tpu.memory_space<vmem>>, vector<8x128xf32>
    %c0_225 = arith.constant 0 : index
    %c0_226 = arith.constant 0 : index
    %314 = vector.load %arg14[%c0_225, %c0_226] : memref<256x512xbf16, #tpu.memory_space<vmem>>, vector<256x512xbf16>
    %c0_227 = arith.constant 0 : index
    %c0_228 = arith.constant 0 : index
    %315 = vector.load %arg15[%c0_227, %c0_228] : memref<1x512xf32, #tpu.memory_space<vmem>>, vector<1x512xf32>
    %cst_229 = arith.constant 0.000000e+00 : f32
    %316 = vector.broadcast %cst_229 : f32 to vector<8x256xf32>
    %cst_230 = arith.constant 0.000000e+00 : f32
    %317 = vector.broadcast %cst_230 : f32 to vector<8x128xf32>
    %318 = arith.truncf %316 : vector<8x256xf32> to vector<8x256xbf16>
    %cst_231 = arith.constant dense<0.000000e+00> : vector<8x512xf32>
    %319 = tpu.matmul %318, %314, %cst_231 {dimension_numbers = #tpu.dot_dimension_numbers<[1], [0], [0], [1], [0, 0, 1, 1], [], []>} : vector<8x256xbf16>, vector<256x512xbf16>, vector<8x512xf32> -> vector<8x512xf32>
    %320 = vector.broadcast %315 : vector<1x512xf32> to vector<8x512xf32>
    %321 = arith.addf %319, %320 : vector<8x512xf32>
    %322 = vector.extract_strided_slice %321 {offsets = [0, 0], sizes = [8, 128], strides = [1, 1]} : vector<8x512xf32> to vector<8x128xf32>
    %323 = arith.negf %322 : vector<8x128xf32>
    %324 = math.exp %323 : vector<8x128xf32>
    %cst_232 = arith.constant 1.000000e+00 : f32
    %325 = vector.broadcast %cst_232 : f32 to vector<8x128xf32>
    %326 = arith.addf %325, %324 : vector<8x128xf32>
    %327 = arith.divf %325, %326 : vector<8x128xf32>
    %328 = vector.extract_strided_slice %321 {offsets = [0, 128], sizes = [8, 128], strides = [1, 1]} : vector<8x512xf32> to vector<8x128xf32>
    %329 = arith.negf %328 : vector<8x128xf32>
    %330 = math.exp %329 : vector<8x128xf32>
    %cst_233 = arith.constant 1.000000e+00 : f32
    %331 = vector.broadcast %cst_233 : f32 to vector<8x128xf32>
    %332 = arith.addf %331, %330 : vector<8x128xf32>
    %333 = arith.divf %331, %332 : vector<8x128xf32>
    %334 = vector.extract_strided_slice %321 {offsets = [0, 256], sizes = [8, 128], strides = [1, 1]} : vector<8x512xf32> to vector<8x128xf32>
    %335 = math.tanh %334 : vector<8x128xf32>
    %336 = vector.extract_strided_slice %321 {offsets = [0, 384], sizes = [8, 128], strides = [1, 1]} : vector<8x512xf32> to vector<8x128xf32>
    %337 = arith.negf %336 : vector<8x128xf32>
    %338 = math.exp %337 : vector<8x128xf32>
    %cst_234 = arith.constant 1.000000e+00 : f32
    %339 = vector.broadcast %cst_234 : f32 to vector<8x128xf32>
    %340 = arith.addf %339, %338 : vector<8x128xf32>
    %341 = arith.divf %339, %340 : vector<8x128xf32>
    %342 = arith.mulf %333, %317 : vector<8x128xf32>
    %343 = arith.mulf %327, %335 : vector<8x128xf32>
    %344 = arith.addf %342, %343 : vector<8x128xf32>
    %345 = math.tanh %344 : vector<8x128xf32>
    %346 = arith.mulf %341, %345 : vector<8x128xf32>
    %347 = arith.truncf %346 : vector<8x128xf32> to vector<8x128xbf16>
    %cst_235 = arith.constant dense<0.000000e+00> : vector<8x128xf32>
    %348 = tpu.matmul %347, %312, %cst_235 {dimension_numbers = #tpu.dot_dimension_numbers<[1], [0], [0], [1], [0, 0, 1, 1], [], []>} : vector<8x128xbf16>, vector<128x128xbf16>, vector<8x128xf32> -> vector<8x128xf32>
    %cst_236 = arith.constant 5.000000e-01 : f32
    %349 = vector.broadcast %cst_236 : f32 to vector<8x128xf32>
    %350 = arith.cmpf ogt, %313, %349 : vector<8x128xf32>
    %cst_237 = arith.constant -1.000000e+30 : f32
    %351 = vector.broadcast %cst_237 : f32 to vector<8x128xf32>
    %352 = arith.select %350, %348, %351 : vector<8x128xi1>, vector<8x128xf32>
    %cst_238 = arith.constant dense<0xFF800000> : vector<8xf32>
    %353 = vector.multi_reduction <maximumf>, %352, %cst_238 [1] : vector<8x128xf32> to vector<8xf32>
    %354 = vector.shape_cast %353 : vector<8xf32> to vector<8x1xf32>
    %355 = vector.broadcast %354 : vector<8x1xf32> to vector<8x128xf32>
    %356 = arith.subf %352, %355 : vector<8x128xf32>
    %357 = math.exp %356 : vector<8x128xf32>
    %358 = arith.mulf %357, %313 : vector<8x128xf32>
    %cst_239 = arith.constant dense<0.000000e+00> : vector<8xf32>
    %359 = vector.multi_reduction <add>, %358, %cst_239 [1] : vector<8x128xf32> to vector<8xf32>
    %360 = vector.shape_cast %359 : vector<8xf32> to vector<8x1xf32>
    %cst_240 = arith.constant 9.99999968E-21 : f32
    %361 = vector.broadcast %cst_240 : f32 to vector<8x1xf32>
    %362 = arith.maximumf %360, %361 : vector<8x1xf32>
    %363 = vector.broadcast %362 : vector<8x1xf32> to vector<8x128xf32>
    %364 = arith.divf %358, %363 : vector<8x128xf32>
    %365 = arith.truncf %364 : vector<8x128xf32> to vector<8x128xbf16>
    %cst_241 = arith.constant dense<0.000000e+00> : vector<8x128xf32>
    %366 = tpu.matmul %365, %310, %cst_241 {dimension_numbers = #tpu.dot_dimension_numbers<[1], [0], [0], [1], [0, 0, 1, 1], [], []>} : vector<8x128xbf16>, vector<128x128xbf16>, vector<8x128xf32> -> vector<8x128xf32>
    %367 = tpu.concatenate %346, %366 in 1 : vector<8x128xf32>, vector<8x128xf32> -> vector<8x256xf32>
    %368 = arith.truncf %367 : vector<8x256xf32> to vector<8x256xbf16>
    %cst_242 = arith.constant dense<0.000000e+00> : vector<8x512xf32>
    %369 = tpu.matmul %368, %314, %cst_242 {dimension_numbers = #tpu.dot_dimension_numbers<[1], [0], [0], [1], [0, 0, 1, 1], [], []>} : vector<8x256xbf16>, vector<256x512xbf16>, vector<8x512xf32> -> vector<8x512xf32>
    %370 = vector.broadcast %315 : vector<1x512xf32> to vector<8x512xf32>
    %371 = arith.addf %369, %370 : vector<8x512xf32>
    %372 = vector.extract_strided_slice %371 {offsets = [0, 0], sizes = [8, 128], strides = [1, 1]} : vector<8x512xf32> to vector<8x128xf32>
    %373 = arith.negf %372 : vector<8x128xf32>
    %374 = math.exp %373 : vector<8x128xf32>
    %cst_243 = arith.constant 1.000000e+00 : f32
    %375 = vector.broadcast %cst_243 : f32 to vector<8x128xf32>
    %376 = arith.addf %375, %374 : vector<8x128xf32>
    %377 = arith.divf %375, %376 : vector<8x128xf32>
    %378 = vector.extract_strided_slice %371 {offsets = [0, 128], sizes = [8, 128], strides = [1, 1]} : vector<8x512xf32> to vector<8x128xf32>
    %379 = arith.negf %378 : vector<8x128xf32>
    %380 = math.exp %379 : vector<8x128xf32>
    %cst_244 = arith.constant 1.000000e+00 : f32
    %381 = vector.broadcast %cst_244 : f32 to vector<8x128xf32>
    %382 = arith.addf %381, %380 : vector<8x128xf32>
    %383 = arith.divf %381, %382 : vector<8x128xf32>
    %384 = vector.extract_strided_slice %371 {offsets = [0, 256], sizes = [8, 128], strides = [1, 1]} : vector<8x512xf32> to vector<8x128xf32>
    %385 = math.tanh %384 : vector<8x128xf32>
    %386 = vector.extract_strided_slice %371 {offsets = [0, 384], sizes = [8, 128], strides = [1, 1]} : vector<8x512xf32> to vector<8x128xf32>
    %387 = arith.negf %386 : vector<8x128xf32>
    %388 = math.exp %387 : vector<8x128xf32>
    %cst_245 = arith.constant 1.000000e+00 : f32
    %389 = vector.broadcast %cst_245 : f32 to vector<8x128xf32>
    %390 = arith.addf %389, %388 : vector<8x128xf32>
    %391 = arith.divf %389, %390 : vector<8x128xf32>
    %392 = arith.mulf %383, %344 : vector<8x128xf32>
    %393 = arith.mulf %377, %385 : vector<8x128xf32>
    %394 = arith.addf %392, %393 : vector<8x128xf32>
    %395 = math.tanh %394 : vector<8x128xf32>
    %396 = arith.mulf %391, %395 : vector<8x128xf32>
    %397 = arith.truncf %396 : vector<8x128xf32> to vector<8x128xbf16>
    %cst_246 = arith.constant dense<0.000000e+00> : vector<8x128xf32>
    %398 = tpu.matmul %397, %312, %cst_246 {dimension_numbers = #tpu.dot_dimension_numbers<[1], [0], [0], [1], [0, 0, 1, 1], [], []>} : vector<8x128xbf16>, vector<128x128xbf16>, vector<8x128xf32> -> vector<8x128xf32>
    %cst_247 = arith.constant 5.000000e-01 : f32
    %399 = vector.broadcast %cst_247 : f32 to vector<8x128xf32>
    %400 = arith.cmpf ogt, %313, %399 : vector<8x128xf32>
    %cst_248 = arith.constant -1.000000e+30 : f32
    %401 = vector.broadcast %cst_248 : f32 to vector<8x128xf32>
    %402 = arith.select %400, %398, %401 : vector<8x128xi1>, vector<8x128xf32>
    %cst_249 = arith.constant dense<0xFF800000> : vector<8xf32>
    %403 = vector.multi_reduction <maximumf>, %402, %cst_249 [1] : vector<8x128xf32> to vector<8xf32>
    %404 = vector.shape_cast %403 : vector<8xf32> to vector<8x1xf32>
    %405 = vector.broadcast %404 : vector<8x1xf32> to vector<8x128xf32>
    %406 = arith.subf %402, %405 : vector<8x128xf32>
    %407 = math.exp %406 : vector<8x128xf32>
    %408 = arith.mulf %407, %313 : vector<8x128xf32>
    %cst_250 = arith.constant dense<0.000000e+00> : vector<8xf32>
    %409 = vector.multi_reduction <add>, %408, %cst_250 [1] : vector<8x128xf32> to vector<8xf32>
    %410 = vector.shape_cast %409 : vector<8xf32> to vector<8x1xf32>
    %cst_251 = arith.constant 9.99999968E-21 : f32
    %411 = vector.broadcast %cst_251 : f32 to vector<8x1xf32>
    %412 = arith.maximumf %410, %411 : vector<8x1xf32>
    %413 = vector.broadcast %412 : vector<8x1xf32> to vector<8x128xf32>
    %414 = arith.divf %408, %413 : vector<8x128xf32>
    %415 = arith.truncf %414 : vector<8x128xf32> to vector<8x128xbf16>
    %cst_252 = arith.constant dense<0.000000e+00> : vector<8x128xf32>
    %416 = tpu.matmul %415, %310, %cst_252 {dimension_numbers = #tpu.dot_dimension_numbers<[1], [0], [0], [1], [0, 0, 1, 1], [], []>} : vector<8x128xbf16>, vector<128x128xbf16>, vector<8x128xf32> -> vector<8x128xf32>
    %417 = tpu.concatenate %396, %416 in 1 : vector<8x128xf32>, vector<8x128xf32> -> vector<8x256xf32>
    %418 = arith.truncf %417 : vector<8x256xf32> to vector<8x256xbf16>
    %cst_253 = arith.constant dense<0.000000e+00> : vector<8x512xf32>
    %419 = tpu.matmul %418, %314, %cst_253 {dimension_numbers = #tpu.dot_dimension_numbers<[1], [0], [0], [1], [0, 0, 1, 1], [], []>} : vector<8x256xbf16>, vector<256x512xbf16>, vector<8x512xf32> -> vector<8x512xf32>
    %420 = vector.broadcast %315 : vector<1x512xf32> to vector<8x512xf32>
    %421 = arith.addf %419, %420 : vector<8x512xf32>
    %422 = vector.extract_strided_slice %421 {offsets = [0, 0], sizes = [8, 128], strides = [1, 1]} : vector<8x512xf32> to vector<8x128xf32>
    %423 = arith.negf %422 : vector<8x128xf32>
    %424 = math.exp %423 : vector<8x128xf32>
    %cst_254 = arith.constant 1.000000e+00 : f32
    %425 = vector.broadcast %cst_254 : f32 to vector<8x128xf32>
    %426 = arith.addf %425, %424 : vector<8x128xf32>
    %427 = arith.divf %425, %426 : vector<8x128xf32>
    %428 = vector.extract_strided_slice %421 {offsets = [0, 128], sizes = [8, 128], strides = [1, 1]} : vector<8x512xf32> to vector<8x128xf32>
    %429 = arith.negf %428 : vector<8x128xf32>
    %430 = math.exp %429 : vector<8x128xf32>
    %cst_255 = arith.constant 1.000000e+00 : f32
    %431 = vector.broadcast %cst_255 : f32 to vector<8x128xf32>
    %432 = arith.addf %431, %430 : vector<8x128xf32>
    %433 = arith.divf %431, %432 : vector<8x128xf32>
    %434 = vector.extract_strided_slice %421 {offsets = [0, 256], sizes = [8, 128], strides = [1, 1]} : vector<8x512xf32> to vector<8x128xf32>
    %435 = math.tanh %434 : vector<8x128xf32>
    %436 = vector.extract_strided_slice %421 {offsets = [0, 384], sizes = [8, 128], strides = [1, 1]} : vector<8x512xf32> to vector<8x128xf32>
    %437 = arith.negf %436 : vector<8x128xf32>
    %438 = math.exp %437 : vector<8x128xf32>
    %cst_256 = arith.constant 1.000000e+00 : f32
    %439 = vector.broadcast %cst_256 : f32 to vector<8x128xf32>
    %440 = arith.addf %439, %438 : vector<8x128xf32>
    %441 = arith.divf %439, %440 : vector<8x128xf32>
    %442 = arith.mulf %433, %394 : vector<8x128xf32>
    %443 = arith.mulf %427, %435 : vector<8x128xf32>
    %444 = arith.addf %442, %443 : vector<8x128xf32>
    %445 = math.tanh %444 : vector<8x128xf32>
    %446 = arith.mulf %441, %445 : vector<8x128xf32>
    %447 = arith.truncf %446 : vector<8x128xf32> to vector<8x128xbf16>
    %cst_257 = arith.constant dense<0.000000e+00> : vector<8x128xf32>
    %448 = tpu.matmul %447, %312, %cst_257 {dimension_numbers = #tpu.dot_dimension_numbers<[1], [0], [0], [1], [0, 0, 1, 1], [], []>} : vector<8x128xbf16>, vector<128x128xbf16>, vector<8x128xf32> -> vector<8x128xf32>
    %cst_258 = arith.constant 5.000000e-01 : f32
    %449 = vector.broadcast %cst_258 : f32 to vector<8x128xf32>
    %450 = arith.cmpf ogt, %313, %449 : vector<8x128xf32>
    %cst_259 = arith.constant -1.000000e+30 : f32
    %451 = vector.broadcast %cst_259 : f32 to vector<8x128xf32>
    %452 = arith.select %450, %448, %451 : vector<8x128xi1>, vector<8x128xf32>
    %cst_260 = arith.constant dense<0xFF800000> : vector<8xf32>
    %453 = vector.multi_reduction <maximumf>, %452, %cst_260 [1] : vector<8x128xf32> to vector<8xf32>
    %454 = vector.shape_cast %453 : vector<8xf32> to vector<8x1xf32>
    %455 = vector.broadcast %454 : vector<8x1xf32> to vector<8x128xf32>
    %456 = arith.subf %452, %455 : vector<8x128xf32>
    %457 = math.exp %456 : vector<8x128xf32>
    %458 = arith.mulf %457, %313 : vector<8x128xf32>
    %cst_261 = arith.constant dense<0.000000e+00> : vector<8xf32>
    %459 = vector.multi_reduction <add>, %458, %cst_261 [1] : vector<8x128xf32> to vector<8xf32>
    %460 = vector.shape_cast %459 : vector<8xf32> to vector<8x1xf32>
    %cst_262 = arith.constant 9.99999968E-21 : f32
    %461 = vector.broadcast %cst_262 : f32 to vector<8x1xf32>
    %462 = arith.maximumf %460, %461 : vector<8x1xf32>
    %463 = vector.broadcast %462 : vector<8x1xf32> to vector<8x128xf32>
    %464 = arith.divf %458, %463 : vector<8x128xf32>
    %465 = arith.truncf %464 : vector<8x128xf32> to vector<8x128xbf16>
    %cst_263 = arith.constant dense<0.000000e+00> : vector<8x128xf32>
    %466 = tpu.matmul %465, %310, %cst_263 {dimension_numbers = #tpu.dot_dimension_numbers<[1], [0], [0], [1], [0, 0, 1, 1], [], []>} : vector<8x128xbf16>, vector<128x128xbf16>, vector<8x128xf32> -> vector<8x128xf32>
    %467 = tpu.concatenate %446, %466 in 1 : vector<8x128xf32>, vector<8x128xf32> -> vector<8x256xf32>
    %468 = arith.truncf %467 : vector<8x256xf32> to vector<8x256xbf16>
    %cst_264 = arith.constant dense<0.000000e+00> : vector<8x512xf32>
    %469 = tpu.matmul %468, %314, %cst_264 {dimension_numbers = #tpu.dot_dimension_numbers<[1], [0], [0], [1], [0, 0, 1, 1], [], []>} : vector<8x256xbf16>, vector<256x512xbf16>, vector<8x512xf32> -> vector<8x512xf32>
    %470 = vector.broadcast %315 : vector<1x512xf32> to vector<8x512xf32>
    %471 = arith.addf %469, %470 : vector<8x512xf32>
    %472 = vector.extract_strided_slice %471 {offsets = [0, 0], sizes = [8, 128], strides = [1, 1]} : vector<8x512xf32> to vector<8x128xf32>
    %473 = arith.negf %472 : vector<8x128xf32>
    %474 = math.exp %473 : vector<8x128xf32>
    %cst_265 = arith.constant 1.000000e+00 : f32
    %475 = vector.broadcast %cst_265 : f32 to vector<8x128xf32>
    %476 = arith.addf %475, %474 : vector<8x128xf32>
    %477 = arith.divf %475, %476 : vector<8x128xf32>
    %478 = vector.extract_strided_slice %471 {offsets = [0, 128], sizes = [8, 128], strides = [1, 1]} : vector<8x512xf32> to vector<8x128xf32>
    %479 = arith.negf %478 : vector<8x128xf32>
    %480 = math.exp %479 : vector<8x128xf32>
    %cst_266 = arith.constant 1.000000e+00 : f32
    %481 = vector.broadcast %cst_266 : f32 to vector<8x128xf32>
    %482 = arith.addf %481, %480 : vector<8x128xf32>
    %483 = arith.divf %481, %482 : vector<8x128xf32>
    %484 = vector.extract_strided_slice %471 {offsets = [0, 256], sizes = [8, 128], strides = [1, 1]} : vector<8x512xf32> to vector<8x128xf32>
    %485 = math.tanh %484 : vector<8x128xf32>
    %486 = vector.extract_strided_slice %471 {offsets = [0, 384], sizes = [8, 128], strides = [1, 1]} : vector<8x512xf32> to vector<8x128xf32>
    %487 = arith.negf %486 : vector<8x128xf32>
    %488 = math.exp %487 : vector<8x128xf32>
    %cst_267 = arith.constant 1.000000e+00 : f32
    %489 = vector.broadcast %cst_267 : f32 to vector<8x128xf32>
    %490 = arith.addf %489, %488 : vector<8x128xf32>
    %491 = arith.divf %489, %490 : vector<8x128xf32>
    %492 = arith.mulf %483, %444 : vector<8x128xf32>
    %493 = arith.mulf %477, %485 : vector<8x128xf32>
    %494 = arith.addf %492, %493 : vector<8x128xf32>
    %495 = math.tanh %494 : vector<8x128xf32>
    %496 = arith.mulf %491, %495 : vector<8x128xf32>
    %497 = arith.truncf %496 : vector<8x128xf32> to vector<8x128xbf16>
    %cst_268 = arith.constant dense<0.000000e+00> : vector<8x128xf32>
    %498 = tpu.matmul %497, %312, %cst_268 {dimension_numbers = #tpu.dot_dimension_numbers<[1], [0], [0], [1], [0, 0, 1, 1], [], []>} : vector<8x128xbf16>, vector<128x128xbf16>, vector<8x128xf32> -> vector<8x128xf32>
    %cst_269 = arith.constant 5.000000e-01 : f32
    %499 = vector.broadcast %cst_269 : f32 to vector<8x128xf32>
    %500 = arith.cmpf ogt, %313, %499 : vector<8x128xf32>
    %cst_270 = arith.constant -1.000000e+30 : f32
    %501 = vector.broadcast %cst_270 : f32 to vector<8x128xf32>
    %502 = arith.select %500, %498, %501 : vector<8x128xi1>, vector<8x128xf32>
    %cst_271 = arith.constant dense<0xFF800000> : vector<8xf32>
    %503 = vector.multi_reduction <maximumf>, %502, %cst_271 [1] : vector<8x128xf32> to vector<8xf32>
    %504 = vector.shape_cast %503 : vector<8xf32> to vector<8x1xf32>
    %505 = vector.broadcast %504 : vector<8x1xf32> to vector<8x128xf32>
    %506 = arith.subf %502, %505 : vector<8x128xf32>
    %507 = math.exp %506 : vector<8x128xf32>
    %508 = arith.mulf %507, %313 : vector<8x128xf32>
    %cst_272 = arith.constant dense<0.000000e+00> : vector<8xf32>
    %509 = vector.multi_reduction <add>, %508, %cst_272 [1] : vector<8x128xf32> to vector<8xf32>
    %510 = vector.shape_cast %509 : vector<8xf32> to vector<8x1xf32>
    %cst_273 = arith.constant 9.99999968E-21 : f32
    %511 = vector.broadcast %cst_273 : f32 to vector<8x1xf32>
    %512 = arith.maximumf %510, %511 : vector<8x1xf32>
    %513 = vector.broadcast %512 : vector<8x1xf32> to vector<8x128xf32>
    %514 = arith.divf %508, %513 : vector<8x128xf32>
    %515 = arith.truncf %514 : vector<8x128xf32> to vector<8x128xbf16>
    %cst_274 = arith.constant dense<0.000000e+00> : vector<8x128xf32>
    %516 = tpu.matmul %515, %310, %cst_274 {dimension_numbers = #tpu.dot_dimension_numbers<[1], [0], [0], [1], [0, 0, 1, 1], [], []>} : vector<8x128xbf16>, vector<128x128xbf16>, vector<8x128xf32> -> vector<8x128xf32>
    %517 = tpu.concatenate %496, %516 in 1 : vector<8x128xf32>, vector<8x128xf32> -> vector<8x256xf32>
    %518 = arith.truncf %517 : vector<8x256xf32> to vector<8x256xbf16>
    %cst_275 = arith.constant dense<0.000000e+00> : vector<8x512xf32>
    %519 = tpu.matmul %518, %314, %cst_275 {dimension_numbers = #tpu.dot_dimension_numbers<[1], [0], [0], [1], [0, 0, 1, 1], [], []>} : vector<8x256xbf16>, vector<256x512xbf16>, vector<8x512xf32> -> vector<8x512xf32>
    %520 = vector.broadcast %315 : vector<1x512xf32> to vector<8x512xf32>
    %521 = arith.addf %519, %520 : vector<8x512xf32>
    %522 = vector.extract_strided_slice %521 {offsets = [0, 0], sizes = [8, 128], strides = [1, 1]} : vector<8x512xf32> to vector<8x128xf32>
    %523 = arith.negf %522 : vector<8x128xf32>
    %524 = math.exp %523 : vector<8x128xf32>
    %cst_276 = arith.constant 1.000000e+00 : f32
    %525 = vector.broadcast %cst_276 : f32 to vector<8x128xf32>
    %526 = arith.addf %525, %524 : vector<8x128xf32>
    %527 = arith.divf %525, %526 : vector<8x128xf32>
    %528 = vector.extract_strided_slice %521 {offsets = [0, 128], sizes = [8, 128], strides = [1, 1]} : vector<8x512xf32> to vector<8x128xf32>
    %529 = arith.negf %528 : vector<8x128xf32>
    %530 = math.exp %529 : vector<8x128xf32>
    %cst_277 = arith.constant 1.000000e+00 : f32
    %531 = vector.broadcast %cst_277 : f32 to vector<8x128xf32>
    %532 = arith.addf %531, %530 : vector<8x128xf32>
    %533 = arith.divf %531, %532 : vector<8x128xf32>
    %534 = vector.extract_strided_slice %521 {offsets = [0, 256], sizes = [8, 128], strides = [1, 1]} : vector<8x512xf32> to vector<8x128xf32>
    %535 = math.tanh %534 : vector<8x128xf32>
    %536 = vector.extract_strided_slice %521 {offsets = [0, 384], sizes = [8, 128], strides = [1, 1]} : vector<8x512xf32> to vector<8x128xf32>
    %537 = arith.negf %536 : vector<8x128xf32>
    %538 = math.exp %537 : vector<8x128xf32>
    %cst_278 = arith.constant 1.000000e+00 : f32
    %539 = vector.broadcast %cst_278 : f32 to vector<8x128xf32>
    %540 = arith.addf %539, %538 : vector<8x128xf32>
    %541 = arith.divf %539, %540 : vector<8x128xf32>
    %542 = arith.mulf %533, %494 : vector<8x128xf32>
    %543 = arith.mulf %527, %535 : vector<8x128xf32>
    %544 = arith.addf %542, %543 : vector<8x128xf32>
    %545 = math.tanh %544 : vector<8x128xf32>
    %546 = arith.mulf %541, %545 : vector<8x128xf32>
    %547 = arith.truncf %546 : vector<8x128xf32> to vector<8x128xbf16>
    %cst_279 = arith.constant dense<0.000000e+00> : vector<8x128xf32>
    %548 = tpu.matmul %547, %312, %cst_279 {dimension_numbers = #tpu.dot_dimension_numbers<[1], [0], [0], [1], [0, 0, 1, 1], [], []>} : vector<8x128xbf16>, vector<128x128xbf16>, vector<8x128xf32> -> vector<8x128xf32>
    %cst_280 = arith.constant 5.000000e-01 : f32
    %549 = vector.broadcast %cst_280 : f32 to vector<8x128xf32>
    %550 = arith.cmpf ogt, %313, %549 : vector<8x128xf32>
    %cst_281 = arith.constant -1.000000e+30 : f32
    %551 = vector.broadcast %cst_281 : f32 to vector<8x128xf32>
    %552 = arith.select %550, %548, %551 : vector<8x128xi1>, vector<8x128xf32>
    %cst_282 = arith.constant dense<0xFF800000> : vector<8xf32>
    %553 = vector.multi_reduction <maximumf>, %552, %cst_282 [1] : vector<8x128xf32> to vector<8xf32>
    %554 = vector.shape_cast %553 : vector<8xf32> to vector<8x1xf32>
    %555 = vector.broadcast %554 : vector<8x1xf32> to vector<8x128xf32>
    %556 = arith.subf %552, %555 : vector<8x128xf32>
    %557 = math.exp %556 : vector<8x128xf32>
    %558 = arith.mulf %557, %313 : vector<8x128xf32>
    %cst_283 = arith.constant dense<0.000000e+00> : vector<8xf32>
    %559 = vector.multi_reduction <add>, %558, %cst_283 [1] : vector<8x128xf32> to vector<8xf32>
    %560 = vector.shape_cast %559 : vector<8xf32> to vector<8x1xf32>
    %cst_284 = arith.constant 9.99999968E-21 : f32
    %561 = vector.broadcast %cst_284 : f32 to vector<8x1xf32>
    %562 = arith.maximumf %560, %561 : vector<8x1xf32>
    %563 = vector.broadcast %562 : vector<8x1xf32> to vector<8x128xf32>
    %564 = arith.divf %558, %563 : vector<8x128xf32>
    %565 = arith.truncf %564 : vector<8x128xf32> to vector<8x128xbf16>
    %cst_285 = arith.constant dense<0.000000e+00> : vector<8x128xf32>
    %566 = tpu.matmul %565, %310, %cst_285 {dimension_numbers = #tpu.dot_dimension_numbers<[1], [0], [0], [1], [0, 0, 1, 1], [], []>} : vector<8x128xbf16>, vector<128x128xbf16>, vector<8x128xf32> -> vector<8x128xf32>
    %567 = tpu.concatenate %546, %566 in 1 : vector<8x128xf32>, vector<8x128xf32> -> vector<8x256xf32>
    %568 = arith.truncf %567 : vector<8x256xf32> to vector<8x256xbf16>
    %cst_286 = arith.constant dense<0.000000e+00> : vector<8x512xf32>
    %569 = tpu.matmul %568, %314, %cst_286 {dimension_numbers = #tpu.dot_dimension_numbers<[1], [0], [0], [1], [0, 0, 1, 1], [], []>} : vector<8x256xbf16>, vector<256x512xbf16>, vector<8x512xf32> -> vector<8x512xf32>
    %570 = vector.broadcast %315 : vector<1x512xf32> to vector<8x512xf32>
    %571 = arith.addf %569, %570 : vector<8x512xf32>
    %572 = vector.extract_strided_slice %571 {offsets = [0, 0], sizes = [8, 128], strides = [1, 1]} : vector<8x512xf32> to vector<8x128xf32>
    %573 = arith.negf %572 : vector<8x128xf32>
    %574 = math.exp %573 : vector<8x128xf32>
    %cst_287 = arith.constant 1.000000e+00 : f32
    %575 = vector.broadcast %cst_287 : f32 to vector<8x128xf32>
    %576 = arith.addf %575, %574 : vector<8x128xf32>
    %577 = arith.divf %575, %576 : vector<8x128xf32>
    %578 = vector.extract_strided_slice %571 {offsets = [0, 128], sizes = [8, 128], strides = [1, 1]} : vector<8x512xf32> to vector<8x128xf32>
    %579 = arith.negf %578 : vector<8x128xf32>
    %580 = math.exp %579 : vector<8x128xf32>
    %cst_288 = arith.constant 1.000000e+00 : f32
    %581 = vector.broadcast %cst_288 : f32 to vector<8x128xf32>
    %582 = arith.addf %581, %580 : vector<8x128xf32>
    %583 = arith.divf %581, %582 : vector<8x128xf32>
    %584 = vector.extract_strided_slice %571 {offsets = [0, 256], sizes = [8, 128], strides = [1, 1]} : vector<8x512xf32> to vector<8x128xf32>
    %585 = math.tanh %584 : vector<8x128xf32>
    %586 = vector.extract_strided_slice %571 {offsets = [0, 384], sizes = [8, 128], strides = [1, 1]} : vector<8x512xf32> to vector<8x128xf32>
    %587 = arith.negf %586 : vector<8x128xf32>
    %588 = math.exp %587 : vector<8x128xf32>
    %cst_289 = arith.constant 1.000000e+00 : f32
    %589 = vector.broadcast %cst_289 : f32 to vector<8x128xf32>
    %590 = arith.addf %589, %588 : vector<8x128xf32>
    %591 = arith.divf %589, %590 : vector<8x128xf32>
    %592 = arith.mulf %583, %544 : vector<8x128xf32>
    %593 = arith.mulf %577, %585 : vector<8x128xf32>
    %594 = arith.addf %592, %593 : vector<8x128xf32>
    %595 = math.tanh %594 : vector<8x128xf32>
    %596 = arith.mulf %591, %595 : vector<8x128xf32>
    %597 = arith.truncf %596 : vector<8x128xf32> to vector<8x128xbf16>
    %cst_290 = arith.constant dense<0.000000e+00> : vector<8x128xf32>
    %598 = tpu.matmul %597, %312, %cst_290 {dimension_numbers = #tpu.dot_dimension_numbers<[1], [0], [0], [1], [0, 0, 1, 1], [], []>} : vector<8x128xbf16>, vector<128x128xbf16>, vector<8x128xf32> -> vector<8x128xf32>
    %cst_291 = arith.constant 5.000000e-01 : f32
    %599 = vector.broadcast %cst_291 : f32 to vector<8x128xf32>
    %600 = arith.cmpf ogt, %313, %599 : vector<8x128xf32>
    %cst_292 = arith.constant -1.000000e+30 : f32
    %601 = vector.broadcast %cst_292 : f32 to vector<8x128xf32>
    %602 = arith.select %600, %598, %601 : vector<8x128xi1>, vector<8x128xf32>
    %cst_293 = arith.constant dense<0xFF800000> : vector<8xf32>
    %603 = vector.multi_reduction <maximumf>, %602, %cst_293 [1] : vector<8x128xf32> to vector<8xf32>
    %604 = vector.shape_cast %603 : vector<8xf32> to vector<8x1xf32>
    %605 = vector.broadcast %604 : vector<8x1xf32> to vector<8x128xf32>
    %606 = arith.subf %602, %605 : vector<8x128xf32>
    %607 = math.exp %606 : vector<8x128xf32>
    %608 = arith.mulf %607, %313 : vector<8x128xf32>
    %cst_294 = arith.constant dense<0.000000e+00> : vector<8xf32>
    %609 = vector.multi_reduction <add>, %608, %cst_294 [1] : vector<8x128xf32> to vector<8xf32>
    %610 = vector.shape_cast %609 : vector<8xf32> to vector<8x1xf32>
    %cst_295 = arith.constant 9.99999968E-21 : f32
    %611 = vector.broadcast %cst_295 : f32 to vector<8x1xf32>
    %612 = arith.maximumf %610, %611 : vector<8x1xf32>
    %613 = vector.broadcast %612 : vector<8x1xf32> to vector<8x128xf32>
    %614 = arith.divf %608, %613 : vector<8x128xf32>
    %615 = arith.truncf %614 : vector<8x128xf32> to vector<8x128xbf16>
    %cst_296 = arith.constant dense<0.000000e+00> : vector<8x128xf32>
    %616 = tpu.matmul %615, %310, %cst_296 {dimension_numbers = #tpu.dot_dimension_numbers<[1], [0], [0], [1], [0, 0, 1, 1], [], []>} : vector<8x128xbf16>, vector<128x128xbf16>, vector<8x128xf32> -> vector<8x128xf32>
    %617 = tpu.concatenate %596, %616 in 1 : vector<8x128xf32>, vector<8x128xf32> -> vector<8x256xf32>
    %c0_297 = arith.constant 0 : index
    %c0_298 = arith.constant 0 : index
    %618 = vector.load %arg16[%c0_297, %c0_298] : memref<256x128xbf16, #tpu.memory_space<vmem>>, vector<256x128xbf16>
    %619 = arith.truncf %617 : vector<8x256xf32> to vector<8x256xbf16>
    %cst_299 = arith.constant dense<0.000000e+00> : vector<8x128xf32>
    %620 = tpu.matmul %619, %618, %cst_299 {dimension_numbers = #tpu.dot_dimension_numbers<[1], [0], [0], [1], [0, 0, 1, 1], [], []>} : vector<8x256xbf16>, vector<256x128xbf16>, vector<8x128xf32> -> vector<8x128xf32>
    %c0_300 = arith.constant 0 : index
    %c0_301 = arith.constant 0 : index
    %621 = vector.load %arg17[%c0_300, %c0_301] : memref<1x128xf32, #tpu.memory_space<vmem>>, vector<1x128xf32>
    %622 = vector.broadcast %621 : vector<1x128xf32> to vector<8x128xf32>
    %623 = arith.addf %620, %622 : vector<8x128xf32>
    %cst_302 = arith.constant 0.000000e+00 : f32
    %624 = vector.broadcast %cst_302 : f32 to vector<8x128xf32>
    %625 = arith.maximumf %623, %624 : vector<8x128xf32>
    %c0_303 = arith.constant 0 : index
    %c0_304 = arith.constant 0 : index
    %626 = vector.load %arg18[%c0_303, %c0_304] : memref<128x128xbf16, #tpu.memory_space<vmem>>, vector<128x128xbf16>
    %627 = arith.truncf %625 : vector<8x128xf32> to vector<8x128xbf16>
    %cst_305 = arith.constant dense<0.000000e+00> : vector<8x128xf32>
    %628 = tpu.matmul %627, %626, %cst_305 {dimension_numbers = #tpu.dot_dimension_numbers<[1], [0], [0], [1], [0, 0, 1, 1], [], []>} : vector<8x128xbf16>, vector<128x128xbf16>, vector<8x128xf32> -> vector<8x128xf32>
    %c0_306 = arith.constant 0 : index
    %c0_307 = arith.constant 0 : index
    %629 = vector.load %arg19[%c0_306, %c0_307] : memref<1x128xf32, #tpu.memory_space<vmem>>, vector<1x128xf32>
    %630 = vector.broadcast %629 : vector<1x128xf32> to vector<8x128xf32>
    %631 = arith.addf %628, %630 : vector<8x128xf32>
    %c0_308 = arith.constant 0 : index
    %c0_309 = arith.constant 0 : index
    %632 = vector.load %arg20[%c0_308, %c0_309] : memref<8x128xf32, #tpu.memory_space<vmem>>, vector<8x128xf32>
    tpu.vector_store %arg20[%c0_308, %c0_309], %631 {strides = array<i32>} : memref<8x128xf32, #tpu.memory_space<vmem>>, vector<8x128xf32>,
    return
  }
}

</mosaic_0001>

<bundles_post_ra>
// kernel: tpu_custom_call.1
= control target key start
LH: loop header
LB: loop body
LE: loop exit
PB: predicated region body
PF: predicated region fallthrough
CT: control target
= control target key end

     0   :  { %s11793_s0 = inlined_call_operand.hbm [shape: f32[128,128], index: 0, kind: input, shape index: {}]   ;;  %s11794_s1 = inlined_call_operand.hbm [shape: bf16[128,128], index: 1, kind: input, shape index: {}]   ;;  %s11795_s2 = inlined_call_operand.hbm [shape: bf16[128,128], index: 2, kind: input, shape index: {}]   ;;  %s11796_s3 = inlined_call_operand.hbm [shape: bf16[128,128], index: 3, kind: input, shape index: {}]   ;;  %s11797_s4 = inlined_call_operand.hbm [shape: f32[8,128], index: 4, kind: input, shape index: {}]   ;;  %s11798_s5 = inlined_call_operand.hbm [shape: bf16[6,128,128], index: 5, kind: input, shape index: {}]   ;;  %s11799_s6 = inlined_call_operand.hbm [shape: f32[6,1,128], index: 6, kind: input, shape index: {}]   ;;  %s11800_s7 = inlined_call_operand.hbm [shape: bf16[6,128,128], index: 7, kind: input, shape index: {}]   ;;  %s11801_s8 = inlined_call_operand.vmem [shape: f32[6,1,128], index: 8, kind: input, shape index: {}]   ;;  %s11802_s9 = inlined_call_operand.hbm [shape: bf16[6,128,128], index: 9, kind: input, shape index: {}]   ;;  %s11803_s10 = inlined_call_operand.hbm [shape: f32[6,1,128], index: 10, kind: input, shape index: {}]   ;;  %s11804_s11 = inlined_call_operand.hbm [shape: bf16[6,128,128], index: 11, kind: input, shape index: {}]   ;;  %s11805_s12 = inlined_call_operand.hbm [shape: f32[6,1,128], index: 12, kind: input, shape index: {}]   ;;  %s11806_s13 = inlined_call_operand.vmem [shape: f32[6], index: 13, kind: input, shape index: {}]   ;;  %s11807_s14 = inlined_call_operand.hbm [shape: bf16[256,512], index: 14, kind: input, shape index: {}]   ;;  %s11808_s15 = inlined_call_operand.vmem [shape: f32[1,512], index: 15, kind: input, shape index: {}]   ;;  %s11809_s16 = inlined_call_operand.hbm [shape: bf16[256,128], index: 16, kind: input, shape index: {}]   ;;  %s11810_s17 = inlined_call_operand.vmem [shape: f32[1,128], index: 17, kind: input, shape index: {}]   ;;  %s11811_s18 = inlined_call_operand.hbm [shape: bf16[128,128], index: 18, kind: input, shape index: {}]   ;;  %s11812_s19 = inlined_call_operand.vmem [shape: f32[1,128], index: 19, kind: input, shape index: {}]   ;;  %s11813_s20 = inlined_call_operand.hbm [shape: f32[8,128], index: 20, kind: output, shape index: {}]  }
   0x1   :  { %12080 = sst [smem:[#allocation102_spill]] %s11793_s0 }
   0x2   :  { %12081 = sst [smem:[#allocation103_spill]] %s11794_s1 }
   0x3   :  { %12082 = sst [smem:[#allocation104_spill]] %s11795_s2 }
   0x4   :  { %12083 = sst [smem:[#allocation105_spill]] %s11796_s3 }
   0x5   :  { %12084 = sst [smem:[#allocation106_spill]] %s11797_s4 }
   0x6   :  { %25 = vsyncpa [#allocation3], 0 }
   0x7   :  { %26 = vsyncpa [#allocation7], 0 }
   0x8   :  { %27 = vsyncpa [#allocation10], 0 }
   0x9   :  { %28 = vsyncpa [#allocation13], 0 }
   0xa   :  { %29 = vsyncpa [#allocation16], 0 }
   0xb   :  { %30 = vsyncpa [#allocation19], 0 }
   0xc   :  { %31 = vsyncpa [#allocation22], 0 }
   0xd   :  { %32 = vsyncpa [#allocation5], 0 }
   0xe   :  { %33 = vsyncpa [#allocation26], 0  ;;  %s12085_s23 = sld [smem:[#allocation103_spill]] }
  0x14   :  { %s52_s24 = sshll.u32 %s12085_s23, 4  ;;  %s53_s24 = int_to_ptr.hbm [resolvable:$true] %s52_s24 }
  0x15   :  { %34 = vsyncpa [#allocation4], 0  ;;  %s9114_s2 = smov [#allocation6]   ;;  %s12086_s27 = sld [smem:[#allocation105_spill]] }
  0x16   :  { %s54_s25 = sshll.u32 %s9114_s2, 4  ;;  %s9115_s4 = smov 64   ;;  %s55_s25 = int_to_ptr.vmem [resolvable:$true] %s54_s25 }
  0x17   :  { %s9116_s29 = smov 4   ;;  %s9117_s30 = smov [#allocation9]  }
  0x18   :  { %60 = dma.hbm_to_vmem [thread:$0]  %s53_s24, 1024, %s55_s25, [#allocation7], %s9115_s4, %s9115_s4, %s9116_s29  }
  0x19   :  { %s80_s0 = sshll.u32 %s9117_s30, 4  ;;  %s102_s22 = sshll.u32 %s11798_s5, 4  ;;  %s81_s0 = int_to_ptr.vmem [resolvable:$true] %s80_s0  ;;  %s103_s22 = int_to_ptr.hbm [resolvable:$true] %s102_s22 }
  0x1a   :  { %s128_s3 = sshll.u32 %s11800_s7, 4  ;;  %s9118_s26 = smov [#allocation12]   ;;  %s129_s3 = int_to_ptr.hbm [resolvable:$true] %s128_s3 }
  0x1b   :  { %s78_s28 = sshll.u32 %s12086_s27, 4  ;;  %s104_s27 = sshll.u32 %s9118_s26, 4  ;;  %s79_s28 = int_to_ptr.hbm [resolvable:$true] %s78_s28  ;;  %s105_s27 = int_to_ptr.vmem [resolvable:$true] %s104_s27 }
  0x1c   :  { %86 = dma.hbm_to_vmem [thread:$0]  %s79_s28, 1024, %s81_s0, [#allocation10], %s9115_s4, %s9115_s4, %s9116_s29  }
  0x1d   :  { %110 = dma.hbm_to_vmem [thread:$0]  %s103_s22, 6144, %s105_s27, [#allocation13], %s9115_s4, %s9115_s4, %s9116_s29  }
  0x1e   :  { %s9119_s24 = smov [#allocation15]   ;;  %s156_s30 = sshll.u32 %s11803_s10, 4  ;;  %s157_s30 = int_to_ptr.hbm [resolvable:$true] %s156_s30 }
  0x1f   :  { %s130_s5 = sshll.u32 %s9119_s24, 4  ;;  %s9120_s7 = smov [#allocation18]   ;;  %s131_s5 = int_to_ptr.vmem [resolvable:$true] %s130_s5 }
  0x20   :  { %136 = dma.hbm_to_vmem [thread:$0]  %s129_s3, 6144, %s131_s5, [#allocation16], %s9115_s4, %s9115_s4, %s9116_s29  }
  0x21   :  { %s158_s0 = sshll.u32 %s9120_s7, 4  ;;  %s182_s23 = sshll.u32 %s11805_s12, 4  ;;  %s159_s0 = int_to_ptr.vmem [resolvable:$true] %s158_s0  ;;  %s183_s23 = int_to_ptr.hbm [resolvable:$true] %s182_s23 }
  0x22   :  { %s11814_s22 = smov 16   ;;  %s9122_s2 = smov 1  }
  0x23   :  { %164 = dma.hbm_to_vmem [thread:$0]  %s157_s30, 96, %s159_s0, [#allocation19], %s11814_s22, %s11814_s22, %s9122_s2  }
  0x24   :  { %s9123_s3 = smov [#allocation21]   ;;  %s219_s10 = sshll.u32 %s11809_s16, 4  ;;  %s220_s10 = int_to_ptr.hbm [resolvable:$true] %s219_s10 }
  0x25   :  { %s184_s26 = sshll.u32 %s9123_s3, 4  ;;  %s12087_s25 = sld [smem:[#allocation102_spill]]  ;;  %s185_s26 = int_to_ptr.vmem [resolvable:$true] %s184_s26 }
  0x26   :  { %190 = dma.hbm_to_vmem [thread:$0]  %s183_s23, 96, %s185_s26, [#allocation22], %s11814_s22, %s11814_s22, %s9122_s2  }
  0x27   :  { %s9124_s7 = smov [#allocation25]   ;;  %s9125_s30 = smov [#allocation2]  }
  0x28   :  { %s221_s21 = sshll.u32 %s9124_s7, 4  ;;  %s41_s16 = sshll.u32 %s9125_s30, 4  ;;  %s222_s21 = int_to_ptr.vmem [resolvable:$true] %s221_s21  ;;  %s42_s16 = int_to_ptr.vmem [resolvable:$true] %s41_s16 }
  0x29   :  { %227 = dma.hbm_to_vmem [thread:$0]  %s220_s10, 2048, %s222_s21, [#allocation26], %s9115_s4, %s9115_s4, %s9116_s29  }
  0x2a   :  { %s9126_s0 = smov 128   ;;  %s9127_s1 = smov 8  }
  0x2b   :  { %s39_s28 = sshll.u32 %s12087_s25, 4  ;;  %s12088_s26 = sld [smem:[#allocation104_spill]]  ;;  %s40_s28 = int_to_ptr.hbm [resolvable:$true] %s39_s28 }
  0x2c   :  { %47 = dma.hbm_to_vmem [thread:$0]  %s40_s28, 2048, %s42_s16, [#allocation3], %s9126_s0, %s9126_s0, %s9127_s1  }
  0x2d   :  { %s9128_s24 = smov [#allocation8]   ;;  %s12089_s7 = sld [smem:[#allocation106_spill]] }
  0x2e   :  { %s67_s12 = sshll.u32 %s9128_s24, 4  ;;  %s9129_s10 = smov [#allocation11]   ;;  %s68_s12 = int_to_ptr.vmem [resolvable:$true] %s67_s12 }
  0x2f   :  { %s94_s21 = sshll.u32 %s9129_s10, 4  ;;  %s115_s16 = sshll.u32 %s11799_s6, 4  ;;  %s95_s21 = int_to_ptr.vmem [resolvable:$true] %s94_s21  ;;  %s116_s16 = int_to_ptr.hbm [resolvable:$true] %s115_s16 }
  0x30   :  { %s143_s3 = sshll.u32 %s11802_s9, 4  ;;  %s9130_s23 = smov [#allocation14]   ;;  %s144_s3 = int_to_ptr.hbm [resolvable:$true] %s143_s3 }
  0x31   :  { %s65_s27 = sshll.u32 %s12088_s26, 4  ;;  %s117_s26 = sshll.u32 %s9130_s23, 4  ;;  %s66_s27 = int_to_ptr.hbm [resolvable:$true] %s65_s27  ;;  %s118_s26 = int_to_ptr.vmem [resolvable:$true] %s117_s26 }
  0x32   :  { %73 = dma.hbm_to_vmem [thread:$0]  %s66_s27, 1024, %s68_s12, [#allocation7], %s9115_s4, %s9115_s4, %s9116_s29  }
  0x33   :  { %s92_s22 = sshll.u32 %s12089_s7, 4  ;;  %s12090_s27 = smov 16   ;;  %s93_s22 = int_to_ptr.hbm [resolvable:$true] %s92_s22 }
  0x34   :  { %97 = dma.hbm_to_vmem [thread:$0]  %s93_s22, 128, %s95_s21, [#allocation10]  }
  0x35   :  { %123 = dma.hbm_to_vmem [thread:$0]  %s116_s16, 96, %s118_s26, [#allocation13], %s12090_s27, %s12090_s27, %s9122_s2  }
  0x36   :  { %s9131_s24 = smov [#allocation17]   ;;  %s169_s6 = sshll.u32 %s11804_s11, 4  ;;  %s170_s6 = int_to_ptr.hbm [resolvable:$true] %s169_s6 }
  0x37   :  { %s145_s12 = sshll.u32 %s9131_s24, 4  ;;  %s196_s7 = sshll.u32 %s11806_s13, 4  ;;  %s146_s12 = int_to_ptr.vmem [resolvable:$true] %s145_s12  ;;  %s197_s7 = int_to_ptr.vmem [resolvable:$true] %s196_s7 }
  0x38   :  { %151 = dma.hbm_to_vmem [thread:$0]  %s144_s3, 6144, %s146_s12, [#allocation16], %s9115_s4, %s9115_s4, %s9116_s29  }
  0x39   :  { %s9132_s10 = smov [#allocation20]   ;;  %s9133_s2 = smov [#allocation23]  }
  0x3a   :  { %s171_s21 = sshll.u32 %s9132_s10, 4  ;;  %s204_s30 = sshll.u32 %s11807_s14, 4  ;;  %s172_s21 = int_to_ptr.vmem [resolvable:$true] %s171_s21  ;;  %s205_s30 = int_to_ptr.hbm [resolvable:$true] %s204_s30 }
  0x3b   :  { %177 = dma.hbm_to_vmem [thread:$0]  %s170_s6, 6144, %s172_s21, [#allocation19], %s9115_s4, %s9115_s4, %s9116_s29  }
  0x3c   :  { %199 = dma.vmem_to_smem %s197_s7, 16, %s9133_s2, [#allocation5]  }
  0x3d   :  { %s9134_s16 = smov [#allocation24]   ;;  %s9135_s1 = smov 256  }
  0x3e   :  { %s206_s0 = sshll.u32 %s9134_s16, 4  ;;  %s234_s23 = sshll.u32 %s11811_s18, 4  ;;  %s207_s0 = int_to_ptr.vmem [resolvable:$true] %s206_s0  ;;  %s235_s23 = int_to_ptr.hbm [resolvable:$true] %s234_s23 }
  0x3f   :  { %212 = dma.hbm_to_vmem [thread:$0]  %s205_s30, 8192, %s207_s0, [#allocation22], %s9135_s1, %s9135_s1, %s12090_s27  }
  0x40   :  { %s9136_s26 = smov [#allocation27]  }
  0x41   :  { %s236_s24 = sshll.u32 %s9136_s26, 4  ;;  %s237_s24 = int_to_ptr.vmem [resolvable:$true] %s236_s24 }
  0x42   :  { %242 = dma.hbm_to_vmem [thread:$0]  %s235_s23, 1024, %s237_s24, [#allocation26], %s9115_s4, %s9115_s4, %s9116_s29  }
  0x43   :  { %9092 = dma.done.wait [#allocation3], 2048  }
  0x44   :  { %9093 = vsyncadd [#allocation3], 4294965248 }
  0x45   :  { %9094 = dma.done.wait [#allocation7], 2048  }
  0x46   :  { %9095 = vsyncadd [#allocation7], 4294965248 }
  0x47   :  { %9096 = dma.done.wait [#allocation10], 1152  }
  0x48   :  { %9097 = vsyncadd [#allocation10], 4294966144 }
  0x49   :  { %9098 = dma.done.wait [#allocation13], 6240  }
  0x4a   :  { %9099 = vsyncadd [#allocation13], 4294961056 }
  0x4b   :  { %9100 = dma.done.wait [#allocation16], 12288  }
  0x4c   :  { %9101 = vsyncadd [#allocation16], 4294955008 }
  0x4d   :  { %9102 = dma.done.wait [#allocation19], 6240  }
  0x4e   :  { %9103 = vsyncadd [#allocation19], 4294961056 }
  0x4f   :  { %9104 = dma.done.wait [#allocation22], 96  }
  0x50   :  { %9105 = vsyncadd [#allocation22], 4294967200 }
  0x51   :  { %9106 = dma.done.wait [#allocation5], 16  }
  0x52   :  { %9107 = vsyncadd [#allocation5], 4294967280 }
  0x53   :  { %9108 = dma.done.wait [#allocation22], 8192  }
  0x54   :  { %9109 = vsyncadd [#allocation22], 4294959104 }
  0x55   :  { %9110 = dma.done.wait [#allocation26], 3072  }
  0x56   :  { %9111 = vsyncadd [#allocation26], 4294964224 }
  0x57   :  { %309 = sfence }
  0x58   :  { %v8197_v0 = vld [vmem:[#allocation12 + $0x38] sm:$0xff]  ;;  %v8196_v1 = vld [vmem:[#allocation12 + $0x30] sm:$0xff]  ;;  %v8195_v2 = vld [vmem:[#allocation12 + $0x28] sm:$0xff]  ;;  %s923_s4 = sld [smem:[#allocation23]] }
  0x59   :  { %491 = vmatpush.bf16.msra.mxu0 %v8197_v0  ;;  %v8194_v3 = vld [vmem:[#allocation12 + $0x20] sm:$0xff]  ;;  %v8193_v4 = vld [vmem:[#allocation12 + $0x18] sm:$0xff]  ;;  %v8192_v5 = vld [vmem:[#allocation12 + $0x10] sm:$0xff]  ;;  %s7211_s5 = sld [smem:[#allocation23 + $0x1]] }
  0x5a   :  { %v8191_v6 = vld [vmem:[#allocation12 + $0x8] sm:$0xff]  ;;  %v8190_v7 = vld [vmem:[#allocation12] sm:$0xff]  ;;  %v9329_v8 = vld [vmem:[#allocation6] sm:$0xff]  ;;  %s7341_s22 = sld [smem:[#allocation23 + $0x2]] }
  0x5b   :  { %v9332_v9 = vld [vmem:[#allocation6 + $0x8] sm:$0xff]  ;;  %v9335_v10 = vld [vmem:[#allocation6 + $0x10] sm:$0xff]  ;;  %v9338_v11 = vld [vmem:[#allocation6 + $0x18] sm:$0xff]  ;;  %s7471_s2 = sld [smem:[#allocation23 + $0x3]] }
  0x5c   :  { %12091 = vst [vmem:[#allocation40_spill] sm:$0xff] %v9338_v11  ;;  %v9341_v12 = vld [vmem:[#allocation6 + $0x20] sm:$0xff]  ;;  %v9344_v13 = vld [vmem:[#allocation2 + $0x70] sm:$0xff]  ;;  %v9346_v14 = vld [vmem:[#allocation2 + $0x78] sm:$0xff]  ;;  %s7601_s16 = sld [smem:[#allocation23 + $0x4]] }
  0x5d   :  { %492 = vmatpush.bf16.msra.mxu0 %v8196_v1  ;;  %12092 = vst [vmem:[#allocation41_spill] sm:$0xff] %v9341_v12  ;;  %v9348_v15 = vld [vmem:[#allocation2 + $0x60] sm:$0xff]  ;;  %v704_v16 = vpack.c.bf16 %v9346_v14, %v9344_v13  ;;  %v9352_v17 = vld [vmem:[#allocation2 + $0x68] sm:$0xff]  ;;  %v9356_v20 = vld [vmem:[#allocation2 + $0x50] sm:$0xff] }
  0x5e   :  { %v8205_v18 = vld [vmem:[#allocation15 + $0x38] sm:$0xff]  ;;  %v703_v19 = vpack.c.bf16 %v9352_v17, %v9348_v15  ;;  %v9358_v21 = vld [vmem:[#allocation2 + $0x58] sm:$0xff]  ;;  %v9371_v28 = vld [vmem:[#allocation2 + $0x30] sm:$0xff]  ;;  %s924_s29 = sadd.f32 1.0, %s923_s4  ;;  %s9138_s4 = smov [#allocation28]  }
  0x5f   :  { %753 = vmatpush.bf16.msra.mxu2 %v704_v16  ;;  %632 = vmatpush.bf16.msra.mxu1 %v8205_v18  ;;  %v702_v22 = vpack.c.bf16 %v9358_v21, %v9356_v20  ;;  %v9362_v23 = vld [vmem:[#allocation2 + $0x40] sm:$0xff]  ;;  %v9364_v24 = vld [vmem:[#allocation2 + $0x48] sm:$0xff]  ;;  %v9373_v29 = vld [vmem:[#allocation2 + $0x38] sm:$0xff]  ;;  %s1649_s25 = sadd.f32 1.0, %s7211_s5  ;;  %s6904_s5 = sshll.u32 %s11813_s20, 4  ;;  %s6905_s5 = int_to_ptr.hbm [resolvable:$true] %s6904_s5 }
  0x60   :  { %v701_v25 = vpack.c.bf16 %v9364_v24, %v9362_v23  ;;  %v9368_v26 = vld [vmem:[#allocation6 + $0x28] sm:$0xff]  ;;  %v8204_v27 = vld [vmem:[#allocation15 + $0x30] sm:$0xff]  ;;  %v700_v30 = vpack.c.bf16 %v9373_v29, %v9371_v28  ;;  %v8203_v31 = vld [vmem:[#allocation15 + $0x28] sm:$0xff]  ;;  %s2378_s7 = sadd.f32 1.0, %s7341_s22 }
  0x61   :  { %493 = vmatpush.bf16.msra.mxu0 %v8195_v2  ;;  %12093 = vst [vmem:[#allocation42_spill] sm:$0xff] %v9368_v26  ;;  %v9377_v32 = vld [vmem:[#allocation2 + $0x20] sm:$0xff]  ;;  %v9379_v33 = vld [vmem:[#allocation2 + $0x28] sm:$0xff]  ;;  %v9383_v35 = vld [vmem:[#allocation2 + $0x10] sm:$0xff]  ;;  %s3107_s11 = sadd.f32 1.0, %s7471_s2 }
  0x62   :  { %v699_v34 = vpack.c.bf16 %v9379_v33, %v9377_v32  ;;  %v9385_v36 = vld [vmem:[#allocation2 + $0x18] sm:$0xff]  ;;  %v8202_v37 = vld [vmem:[#allocation15 + $0x20] sm:$0xff]  ;;  %v8201_v39 = vld [vmem:[#allocation15 + $0x18] sm:$0xff]  ;;  %s3836_s0 = sadd.f32 1.0, %s7601_s16 }
  0x63   :  { %754 = vmatpush.bf16.msra.mxu2 %v703_v19  ;;  %633 = vmatpush.bf16.msra.mxu1 %v8204_v27  ;;  %v698_v38 = vpack.c.bf16 %v9385_v36, %v9383_v35  ;;  %v9389_v40 = vld [vmem:[#allocation6 + $0x30] sm:$0xff]  ;;  %v9391_v41 = vld [vmem:[#allocation2] sm:$0xff]  ;;  %v9393_v42 = vld [vmem:[#allocation2 + $0x8] sm:$0xff] }
  0x64   :  { %12094 = vst [vmem:[#allocation43_spill] sm:$0xff] %v9389_v40  ;;  %v697_v43 = vpack.c.bf16 %v9393_v42, %v9391_v41  ;;  %v8200_v44 = vld [vmem:[#allocation15 + $0x10] sm:$0xff]  ;;  %v8199_v46 = vld [vmem:[#allocation15 + $0x8] sm:$0xff]  ;;  %v8198_v47 = vld [vmem:[#allocation15] sm:$0xff] }
  0x65   :  { %494 = vmatpush.bf16.msra.mxu0 %v8194_v3  ;;  %v8174_v45 = vld [vmem:[#allocation8] sm:$0xff]  ;;  %v9398_v48 = vld [vmem:[#allocation6 + $0x38] sm:$0xff]  ;;  %v8175_v49 = vld [vmem:[#allocation8 + $0x8] sm:$0xff] }
  0x66   :  { %12095 = vst [vmem:[#allocation44_spill] sm:$0xff] %v9398_v48  ;;  %v9401_v51 = vld [vmem:[#allocation14] ss:$0 sm:$0xff]  ;;  %v8176_v52 = vld [vmem:[#allocation8 + $0x10] sm:$0xff]  ;;  %v8177_v60 = vld [vmem:[#allocation8 + $0x18] sm:$0xff] }
  0x67   :  { %755 = vmatpush.bf16.msra.mxu2 %v702_v22  ;;  %634 = vmatpush.bf16.msra.mxu1 %v8203_v31 }
  0x69   :  { %495 = vmatpush.bf16.msra.mxu0 %v8193_v4  ;;  %v8178_v4 = vld [vmem:[#allocation8 + $0x20] sm:$0xff] }
  0x6b   :  { %756 = vmatpush.bf16.msra.mxu2 %v701_v25  ;;  %635 = vmatpush.bf16.msra.mxu1 %v8202_v37  ;;  %v8179_v25 = vld [vmem:[#allocation8 + $0x28] sm:$0xff] }
  0x6d   :  { %496 = vmatpush.bf16.msra.mxu0 %v8192_v5 }
  0x6f   :  { %757 = vmatpush.bf16.msra.mxu2 %v700_v30  ;;  %636 = vmatpush.bf16.msra.mxu1 %v8201_v39 }
  0x71   :  { %497 = vmatpush.bf16.msra.mxu0 %v8191_v6 }
  0x73   :  { %758 = vmatpush.bf16.msra.mxu2 %v699_v34  ;;  %637 = vmatpush.bf16.msra.mxu1 %v8200_v44 }
  0x75   :  { %498 = vmatpush.bf16.msra.mxu0 %v8190_v7 }
  0x77   :  { %759 = vmatpush.bf16.msra.mxu2 %v698_v38  ;;  %638 = vmatpush.bf16.msra.mxu1 %v8199_v46 }
  0x78   :  { %499 = vmatmul.bf16.vlgmr.msra.gmra.mxu0 %v9329_v8 }
  0x7b   :  { %760 = vmatpush.bf16.msra.mxu2 %v697_v43  ;;  %639 = vmatpush.bf16.msra.mxu1 %v8198_v47  ;;  %v9411_v43 = vld [vmem:[#allocation8 + $0x30] sm:$0xff] }
  0x7c   :  { %12096 = vst [vmem:[#allocation45_spill] sm:$0xff] %v9411_v43 }
  0x7e   :  { %761 = vmatmul.bf16.vlgmr.msra.gmra.mxu2 %v8174_v45 }
  0x88   :  { %504 = vmatmul.bf16.gmra.mxu0 %v9332_v9 }
  0x8e   :  { %766 = vmatmul.bf16.gmra.mxu2 %v8175_v49 }
  0x98   :  { %509 = vmatmul.bf16.gmra.mxu0 %v9335_v10 }
  0x9e   :  { %771 = vmatmul.bf16.gmra.mxu2 %v8176_v52 }
  0xa8   :  { %514 = vmatmul.bf16.gmra.mxu0 %v9338_v11 }
  0xae   :  { %776 = vmatmul.bf16.gmra.mxu2 %v8177_v60 }
  0xb8   :  { %519 = vmatmul.bf16.gmra.mxu0 %v9341_v12 }
  0xbe   :  { %781 = vmatmul.bf16.gmra.mxu2 %v8178_v4 }
  0xc8   :  { %524 = vmatmul.bf16.gmra.mxu0 %v9368_v26 }
  0xce   :  { %786 = vmatmul.bf16.gmra.mxu2 %v8179_v25 }
  0xd8   :  { %529 = vmatmul.bf16.gmra.mxu0 %v9389_v40 }
  0xde   :  { %791 = vmatmul.bf16.gmra.mxu2 %v9411_v43 }
  0xe8   :  { %534 = vmatmul.bf16.gmra.mxu0 %v9398_v48 }
  0xf5   :  { %v500_v50 = vpop.f32.mrf.mxu0 }
  0xf6   :  { %v501_v53 = vadd.f32 %v9401_v51, %v500_v50 }
  0xf8   :  { %v540_v56 = vmax.f32 %v501_v53, 0.0  ;;  %v9416_v53 = vld [vmem:[#allocation8 + $0x38] sm:$0xff] }
  0xf9   :  { %12097 = vst [vmem:[#allocation46_spill] sm:$0xff] %v9416_v53  ;;  %796 = vmatmul.bf16.gmra.mxu2 %v9416_v53 }
  0xfd   :  { %v502_v54 = vpop.f32.mrf.mxu0 }
  0xfe   :  { %v503_v55 = vadd.f32 %v9401_v51, %v502_v54 }
 0x100   :  { %v541_v57 = vmax.f32 %v503_v55, 0.0 }
 0x101   :  { %v762_v4 = vpop.f32.mrf.mxu2 }
 0x102   :  { %v572_v58 = vpack.c.bf16 %v541_v57, %v540_v56 }
 0x104   :  { %640 = vmatmul.bf16.vlgmr.msra.gmra.mxu1 %v572_v58 }
 0x105   :  { %v505_v59 = vpop.f32.mrf.mxu0 }
 0x106   :  { %v506_v61 = vadd.f32 %v9401_v51, %v505_v59 }
 0x108   :  { %v542_v0 = vmax.f32 %v506_v61, 0.0 }
 0x10d   :  { %v507_v62 = vpop.f32.mrf.mxu0 }
 0x10e   :  { %v508_v63 = vadd.f32 %v9401_v51, %v507_v62 }
 0x110   :  { %v543_v1 = vmax.f32 %v508_v63, 0.0 }
 0x112   :  { %v573_v2 = vpack.c.bf16 %v543_v1, %v542_v0 }
 0x114   :  { %645 = vmatmul.bf16.gmra.mxu1 %v573_v2 }
 0x115   :  { %v510_v3 = vpop.f32.mrf.mxu0 }
 0x116   :  { %v511_v5 = vadd.f32 %v9401_v51, %v510_v3 }
 0x118   :  { %v544_v16 = vmax.f32 %v511_v5, 0.0 }
 0x11d   :  { %v512_v6 = vpop.f32.mrf.mxu0 }
 0x11e   :  { %v513_v7 = vadd.f32 %v9401_v51, %v512_v6 }
 0x120   :  { %v545_v18 = vmax.f32 %v513_v7, 0.0 }
 0x122   :  { %v574_v19 = vpack.c.bf16 %v545_v18, %v544_v16 }
 0x124   :  { %650 = vmatmul.bf16.gmra.mxu1 %v574_v19  ;;  %v9425_v19 = vpop.f32.mrf.mxu2 }
 0x125   :  { %v515_v22 = vpop.f32.mrf.mxu0 }
 0x126   :  { %v516_v27 = vadd.f32 %v9401_v51, %v515_v22 }
 0x128   :  { %v546_v34 = vmax.f32 %v516_v27, 0.0  ;;  %v9430_v27 = vld [vmem:[%s11801_s8] ss:$0 sm:$0xff] }
 0x12c   :  { %v767_v25 = vpop.f32.mrf.mxu2 }
 0x12d   :  { %v517_v30 = vpop.f32.mrf.mxu0 }
 0x12e   :  { %v518_v31 = vadd.f32 %v9401_v51, %v517_v30 }
 0x130   :  { %v547_v37 = vmax.f32 %v518_v31, 0.0 }
 0x132   :  { %v575_v38 = vpack.c.bf16 %v547_v37, %v546_v34 }
 0x134   :  { %655 = vmatmul.bf16.gmra.mxu1 %v575_v38  ;;  %v9433_v37 = vpop.f32.mrf.mxu2 }
 0x135   :  { %v520_v39 = vpop.f32.mrf.mxu0 }
 0x136   :  { %v521_v44 = vadd.f32 %v9401_v51, %v520_v39 }
 0x138   :  { %v548_v47 = vmax.f32 %v521_v44, 0.0 }
 0x13c   :  { %v772_v39 = vpop.f32.mrf.mxu2 }
 0x13d   :  { %v522_v45 = vpop.f32.mrf.mxu0 }
 0x13e   :  { %v523_v46 = vadd.f32 %v9401_v51, %v522_v45 }
 0x140   :  { %v549_v49 = vmax.f32 %v523_v46, 0.0 }
 0x142   :  { %v576_v50 = vpack.c.bf16 %v549_v49, %v548_v47 }
 0x144   :  { %660 = vmatmul.bf16.gmra.mxu1 %v576_v50  ;;  %v9444_v50 = vpop.f32.mrf.mxu2 }
 0x145   :  { %v525_v52 = vpop.f32.mrf.mxu0 }
 0x146   :  { %v526_v54 = vadd.f32 %v9401_v51, %v525_v52 }
 0x148   :  { %v550_v57 = vmax.f32 %v526_v54, 0.0 }
 0x14d   :  { %v527_v55 = vpop.f32.mrf.mxu0 }
 0x14e   :  { %v528_v56 = vadd.f32 %v9401_v51, %v527_v55  ;;  %v777_v55 = vpop.f32.mrf.mxu2 }
 0x150   :  { %v551_v58 = vmax.f32 %v528_v56, 0.0 }
 0x152   :  { %v577_v59 = vpack.c.bf16 %v551_v58, %v550_v57 }
 0x154   :  { %665 = vmatmul.bf16.gmra.mxu1 %v577_v59 }
 0x155   :  { %v530_v60 = vpop.f32.mrf.mxu0 }
 0x156   :  { %v531_v61 = vadd.f32 %v9401_v51, %v530_v60  ;;  %v9449_v59 = vpop.f32.mrf.mxu2 }
 0x158   :  { %v552_v0 = vmax.f32 %v531_v61, 0.0 }
 0x15d   :  { %v532_v62 = vpop.f32.mrf.mxu0 }
 0x15e   :  { %v533_v63 = vadd.f32 %v9401_v51, %v532_v62 }
 0x160   :  { %v553_v1 = vmax.f32 %v533_v63, 0.0 }
 0x162   :  { %v578_v2 = vpack.c.bf16 %v553_v1, %v552_v0  ;;  %v782_v0 = vpop.f32.mrf.mxu2 }
 0x164   :  { %670 = vmatmul.bf16.gmra.mxu1 %v578_v2 }
 0x165   :  { %v535_v3 = vpop.f32.mrf.mxu0 }
 0x166   :  { %v536_v5 = vadd.f32 %v9401_v51, %v535_v3 }
 0x168   :  { %v554_v16 = vmax.f32 %v536_v5, 0.0 }
 0x16a   :  { %v784_v3 = vpop.f32.mrf.mxu2 }
 0x16d   :  { %v537_v6 = vpop.f32.mrf.mxu0 }
 0x16e   :  { %v538_v7 = vadd.f32 %v9401_v51, %v537_v6 }
 0x170   :  { %v555_v18 = vmax.f32 %v538_v7, 0.0 }
 0x172   :  { %v579_v22 = vpack.c.bf16 %v555_v18, %v554_v16  ;;  %v787_v16 = vpop.f32.mrf.mxu2 }
 0x174   :  { %675 = vmatmul.bf16.gmra.mxu1 %v579_v22 }
 0x17a   :  { %v789_v22 = vpop.f32.mrf.mxu2 }
 0x181   :  { %v641_v30 = vpop.f32.mrf.mxu1 }
 0x182   :  { %v642_v31 = vadd.f32 %v9430_v27, %v641_v30  ;;  %v792_v30 = vpop.f32.mrf.mxu2 }
 0x184   :  { %v681_v34 = vmax.f32 %v642_v31, 0.0 }
 0x186   :  { %v9435_v38 = vadd.f32 %v762_v4, %v681_v34 }
 0x189   :  { %v9437_v51 = vpop.f32.mrf.mxu1 }
 0x18a   :  { %v794_v34 = vpop.f32.mrf.mxu2 }
 0x191   :  { %v646_v44 = vpop.f32.mrf.mxu1 }
 0x192   :  { %v647_v45 = vadd.f32 %v9430_v27, %v646_v44 }
 0x194   :  { %v683_v46 = vmax.f32 %v647_v45, 0.0  ;;  %v797_v45 = vpop.f32.mrf.mxu2 }
 0x196   :  { %v9440_v47 = vadd.f32 %v767_v25, %v683_v46 }
 0x199   :  { %v9442_v49 = vpop.f32.mrf.mxu1 }
 0x19c   :  { %v799_v53 = vpop.f32.mrf.mxu2 }
 0x1a1   :  { %v651_v52 = vpop.f32.mrf.mxu1 }
 0x1a2   :  { %v652_v54 = vadd.f32 %v9430_v27, %v651_v52 }
 0x1a4   :  { %v685_v56 = vmax.f32 %v652_v54, 0.0 }
 0x1a6   :  { %v9447_v57 = vadd.f32 %v772_v39, %v685_v56 }
 0x1a9   :  { %v653_v58 = vpop.f32.mrf.mxu1 }
 0x1b1   :  { %v656_v60 = vpop.f32.mrf.mxu1 }
 0x1b2   :  { %v657_v61 = vadd.f32 %v9430_v27, %v656_v60 }
 0x1b4   :  { %v687_v62 = vmax.f32 %v657_v61, 0.0 }
 0x1b6   :  { %v9452_v63 = vadd.f32 %v777_v55, %v687_v62 }
 0x1b9   :  { %v658_v1 = vpop.f32.mrf.mxu1 }
 0x1c1   :  { %v661_v2 = vpop.f32.mrf.mxu1 }
 0x1c2   :  { %v662_v4 = vadd.f32 %v9430_v27, %v661_v2 }
 0x1c4   :  { %v689_v5 = vmax.f32 %v662_v4, 0.0 }
 0x1c6   :  { %v783_v6 = vadd.f32 %v782_v0, %v689_v5 }
 0x1c9   :  { %v663_v7 = vpop.f32.mrf.mxu1 }
 0x1ca   :  { %v664_v43 = vadd.f32 %v9430_v27, %v663_v7 }
 0x1d1   :  { %v666_v18 = vpop.f32.mrf.mxu1 }
 0x1d2   :  { %v667_v0 = vadd.f32 %v9430_v27, %v666_v18 }
 0x1d4   :  { %v691_v40 = vmax.f32 %v667_v0, 0.0 }
 0x1d6   :  { %v788_v18 = vadd.f32 %v787_v16, %v691_v40  ;;  %v810_v40 = vmax.f32 %v783_v6, 0.0 }
 0x1d9   :  { %v668_v25 = vpop.f32.mrf.mxu1 }
 0x1da   :  { %v669_v60 = vadd.f32 %v9430_v27, %v668_v25  ;;  %v659_v25 = vadd.f32 %v9430_v27, %v658_v1 }
 0x1e1   :  { %v671_v31 = vpop.f32.mrf.mxu1 }
 0x1e2   :  { %v672_v54 = vadd.f32 %v9430_v27, %v671_v31 }
 0x1e4   :  { %v693_v2 = vmax.f32 %v672_v54, 0.0 }
 0x1e6   :  { %v793_v31 = vadd.f32 %v792_v30, %v693_v2 }
 0x1e8   :  { %v814_v54 = vmax.f32 %v793_v31, 0.0  ;;  %v8212_v31 = vld [vmem:[#allocation17 + $0x30] sm:$0xff] }
 0x1e9   :  { %v673_v39 = vpop.f32.mrf.mxu1 }
 0x1ea   :  { %v674_v52 = vadd.f32 %v9430_v27, %v673_v39 }
 0x1ec   :  { %v694_v61 = vmax.f32 %v674_v52, 0.0  ;;  %v690_v52 = vmax.f32 %v664_v43, 0.0 }
 0x1ee   :  { %v795_v39 = vadd.f32 %v794_v34, %v694_v61  ;;  %v812_v34 = vmax.f32 %v788_v18, 0.0  ;;  %v8208_v18 = vld [vmem:[#allocation17 + $0x10] sm:$0xff] }
 0x1f1   :  { %v676_v44 = vpop.f32.mrf.mxu1 }
 0x1f2   :  { %v677_v46 = vadd.f32 %v9430_v27, %v676_v44  ;;  %v692_v44 = vmax.f32 %v669_v60, 0.0 }
 0x1f4   :  { %v695_v55 = vmax.f32 %v677_v46, 0.0  ;;  %v790_v11 = vadd.f32 %v789_v22, %v692_v44  ;;  %v9476_v44 = vld [vmem:[#allocation9] sm:$0xff] }
 0x1f6   :  { %v798_v5 = vadd.f32 %v797_v45, %v695_v55  ;;  %v654_v45 = vadd.f32 %v9430_v27, %v653_v58  ;;  %v688_v55 = vmax.f32 %v659_v25, 0.0  ;;  %v813_v60 = vmax.f32 %v790_v11, 0.0  ;;  %v8210_v25 = vld [vmem:[#allocation17 + $0x20] sm:$0xff] }
 0x1f8   :  { %v816_v46 = vmax.f32 %v798_v5, 0.0  ;;  %v686_v30 = vmax.f32 %v654_v45, 0.0  ;;  %v823_v1 = vpack.c.bf16 %v813_v60, %v812_v34  ;;  %v8206_v45 = vld [vmem:[#allocation17] sm:$0xff]  ;;  %v9500_v60 = vstv %s924_s29  ;;  %s6902_s29 = sshll.u32 %s9138_s4, 4  ;;  %s6903_s29 = int_to_ptr.vmem [resolvable:$true] %s6902_s29 }
 0x1f9   :  { %v678_v56 = vpop.f32.mrf.mxu1  ;;  %v926_v34 = vmul.f32 %v9500_v60, %v9391_v41  ;;  %v931_v41 = vmul.f32 %v9500_v60, %v9379_v33 }
 0x1fa   :  { %v679_v62 = vadd.f32 %v9430_v27, %v678_v56  ;;  %v815_v56 = vmax.f32 %v795_v39, 0.0  ;;  %v775_v11 = vadd.f32 %v9444_v50, %v686_v30  ;;  %v8213_v39 = vld [vmem:[#allocation17 + $0x38] sm:$0xff] }
 0x1fb   :  { %1034 = vmatpush.bf16.msrb.mxu0 %v8213_v39 }
 0x1fc   :  { %v696_v4 = vmax.f32 %v679_v62, 0.0  ;;  %v824_v7 = vpack.c.bf16 %v815_v56, %v814_v54  ;;  %v807_v62 = vmax.f32 %v775_v11, 0.0  ;;  %v8209_v56 = vld [vmem:[#allocation17 + $0x18] sm:$0xff]  ;;  %v8207_v54 = vld [vmem:[#allocation17 + $0x8] sm:$0xff] }
 0x1fe   :  { %v800_v48 = vadd.f32 %v799_v53, %v696_v4  ;;  %v785_v53 = vadd.f32 %v784_v3, %v690_v52  ;;  %v808_v3 = vmax.f32 %v9452_v63, 0.0  ;;  %v802_v63 = vmax.f32 %v9435_v38, 0.0  ;;  %v9491_v38 = vld [vmem:[#allocation9 + $0x28] sm:$0xff]  ;;  %v9494_v52 = vld [vmem:[#allocation9 + $0x30] sm:$0xff] }
 0x1ff   :  { %1035 = vmatpush.bf16.msrb.mxu0 %v8212_v31  ;;  %v936_v31 = vmul.f32 %v9500_v60, %v9356_v20 }
 0x200   :  { %v817_v26 = vmax.f32 %v800_v48, 0.0  ;;  %v649_v48 = vadd.f32 %v9430_v27, %v9442_v49  ;;  %v811_v43 = vmax.f32 %v785_v53, 0.0  ;;  %v927_v53 = vmul.f32 %v9500_v60, %v9393_v42 }
 0x202   :  { %v825_v12 = vpack.c.bf16 %v817_v26, %v816_v46  ;;  %v780_v26 = vadd.f32 %v9449_v59, %v688_v55  ;;  %v684_v58 = vmax.f32 %v649_v48, 0.0  ;;  %v822_v16 = vpack.c.bf16 %v811_v43, %v810_v40  ;;  %v8211_v46 = vld [vmem:[#allocation17 + $0x28] sm:$0xff] }
 0x203   :  { %v806_v59 = vmax.f32 %v9447_v57, 0.0  ;;  %v9482_v57 = vld [vmem:[#allocation9 + $0x10] sm:$0xff]  ;;  %1036 = vmatpush.bf16.msrb.mxu0 %v8211_v46  ;;  %v9497_v55 = vld [vmem:[#allocation9 + $0x38] sm:$0xff]  ;;  %v929_v40 = vmul.f32 %v9500_v60, %v9385_v36 }
 0x204   :  { %874 = vmatpush.bf16.msra.mxu3 %v825_v12  ;;  %v644_v12 = vadd.f32 %v9430_v27, %v9437_v51  ;;  %v809_v22 = vmax.f32 %v780_v26, 0.0  ;;  %v770_v0 = vadd.f32 %v9433_v37, %v684_v58  ;;  %v804_v51 = vmax.f32 %v9440_v47, 0.0  ;;  %v9479_v37 = vld [vmem:[#allocation9 + $0x8] sm:$0xff]  ;;  %v9488_v47 = vld [vmem:[#allocation9 + $0x20] sm:$0xff] }
 0x205   :  { %v820_v6 = vpack.c.bf16 %v807_v62, %v806_v59  ;;  %v932_v59 = vmul.f32 %v9500_v60, %v9371_v28  ;;  %v937_v28 = vmul.f32 %v9500_v60, %v9358_v21  ;;  %v938_v21 = vmul.f32 %v9500_v60, %v9348_v15 }
 0x206   :  { %v682_v61 = vmax.f32 %v644_v12, 0.0  ;;  %v821_v49 = vpack.c.bf16 %v809_v22, %v808_v3  ;;  %v805_v2 = vmax.f32 %v770_v0, 0.0  ;;  %v928_v12 = vmul.f32 %v9500_v60, %v9383_v35 }
 0x207   :  { %1037 = vmatpush.bf16.msrb.mxu0 %v8210_v25  ;;  %v930_v3 = vmul.f32 %v9500_v60, %v9377_v32  ;;  %v933_v35 = vmul.f32 %v9500_v60, %v9373_v29  ;;  %v935_v32 = vmul.f32 %v9500_v60, %v9364_v24  ;;  %v8221_v25 = vld [vmem:[#allocation20 + $0x38] sm:$0xff]  ;;  %v941_v15 = vmul.f32 %v9500_v60, %v9346_v14 }
 0x208   :  { %875 = vmatpush.bf16.msra.mxu3 %v824_v7  ;;  %v765_v27 = vadd.f32 %v9425_v19, %v682_v61  ;;  %v819_v4 = vpack.c.bf16 %v805_v2, %v804_v51  ;;  %v9485_v19 = vld [vmem:[#allocation9 + $0x18] sm:$0xff]  ;;  %1175 = vmatpush.bf16.msrb.mxu1 %v8221_v25 }
 0x20a   :  { %v803_v50 = vmax.f32 %v765_v27, 0.0 }
 0x20b   :  { %1038 = vmatpush.bf16.msrb.mxu0 %v8209_v56 }
 0x20c   :  { %876 = vmatpush.bf16.msra.mxu3 %v823_v1  ;;  %v818_v5 = vpack.c.bf16 %v803_v50, %v802_v63 }
 0x20f   :  { %1039 = vmatpush.bf16.msrb.mxu0 %v8208_v18 }
 0x210   :  { %877 = vmatpush.bf16.msra.mxu3 %v822_v16 }
 0x213   :  { %1040 = vmatpush.bf16.msrb.mxu0 %v8207_v54  ;;  %v8220_v54 = vld [vmem:[#allocation20 + $0x30] sm:$0xff] }
 0x214   :  { %878 = vmatpush.bf16.msra.mxu3 %v821_v49  ;;  %1176 = vmatpush.bf16.msrb.mxu1 %v8220_v54  ;;  %v8227_v54 = vld [vmem:[#allocation12 + $0x68] sm:$0xff] }
 0x217   :  { %1041 = vmatpush.bf16.msrb.mxu0 %v8206_v45 }
 0x218   :  { %879 = vmatpush.bf16.msra.mxu3 %v820_v6 }
 0x21c   :  { %880 = vmatpush.bf16.msra.mxu3 %v819_v4  ;;  %v934_v4 = vmul.f32 %v9500_v60, %v9362_v23  ;;  %v8219_v23 = vld [vmem:[#allocation20 + $0x28] sm:$0xff] }
 0x21d   :  { %1177 = vmatpush.bf16.msrb.mxu1 %v8219_v23 }
 0x220   :  { %881 = vmatpush.bf16.msra.mxu3 %v818_v5 }
 0x223   :  { %882 = vmatmul.bf16.vlgmr.msra.gmra.mxu3 %v9476_v44 }
 0x233   :  { %887 = vmatmul.bf16.gmra.mxu3 %v9479_v37 }
 0x243   :  { %892 = vmatmul.bf16.gmra.mxu3 %v9482_v57 }
 0x253   :  { %897 = vmatmul.bf16.gmra.mxu3 %v9485_v19 }
 0x263   :  { %902 = vmatmul.bf16.gmra.mxu3 %v9488_v47 }
 0x273   :  { %907 = vmatmul.bf16.gmra.mxu3 %v9491_v38 }
 0x283   :  { %912 = vmatmul.bf16.gmra.mxu3 %v9494_v52 }
 0x293   :  { %917 = vmatmul.bf16.gmra.mxu3 %v9497_v55 }
 0x2a6   :  { %v883_v7 = vpop.f32.mrf.mxu3 }
 0x2a7   :  { %v942_v30 = vadd.f32 %v926_v34, %v883_v7  ;;  %v8218_v7 = vld [vmem:[#allocation20 + $0x20] sm:$0xff]  ;;  %v8217_v34 = vld [vmem:[#allocation20 + $0x18] sm:$0xff] }
 0x2a8   :  { %1178 = vmatpush.bf16.msrb.mxu1 %v8218_v7 }
 0x2ac   :  { %1179 = vmatpush.bf16.msrb.mxu1 %v8217_v34 }
 0x2ae   :  { %v885_v48 = vpop.f32.mrf.mxu3 }
 0x2af   :  { %v943_v1 = vadd.f32 %v927_v53, %v885_v48  ;;  %v939_v53 = vmul.f32 %v9500_v60, %v9352_v17  ;;  %v940_v17 = vmul.f32 %v9500_v60, %v9344_v13 }
 0x2b1   :  { %v974_v43 = vpack.c.bf16 %v943_v1, %v942_v30 }
 0x2b3   :  { %1042 = vmatmul.bf16.vlgmr.msrb.gmra.mxu0 %v974_v43  ;;  %v8216_v43 = vld [vmem:[#allocation20 + $0x10] sm:$0xff] }
 0x2b4   :  { %1180 = vmatpush.bf16.msrb.mxu1 %v8216_v43  ;;  %v8223_v43 = vld [vmem:[#allocation12 + $0x48] sm:$0xff] }
 0x2b6   :  { %v888_v26 = vpop.f32.mrf.mxu3 }
 0x2b7   :  { %v944_v16 = vadd.f32 %v928_v12, %v888_v26  ;;  %v8214_v12 = vld [vmem:[#allocation20] sm:$0xff] }
 0x2be   :  { %v890_v58 = vpop.f32.mrf.mxu3 }
 0x2bf   :  { %v945_v22 = vadd.f32 %v929_v40, %v890_v58  ;;  %v8215_v40 = vld [vmem:[#allocation20 + $0x8] sm:$0xff] }
 0x2c0   :  { %1181 = vmatpush.bf16.msrb.mxu1 %v8215_v40 }
 0x2c1   :  { %v975_v11 = vpack.c.bf16 %v945_v22, %v944_v16 }
 0x2c3   :  { %1047 = vmatmul.bf16.gmra.mxu0 %v975_v11 }
 0x2c4   :  { %1182 = vmatpush.bf16.msrb.mxu1 %v8214_v12 }
 0x2c6   :  { %v893_v42 = vpop.f32.mrf.mxu3 }
 0x2c7   :  { %v946_v49 = vadd.f32 %v930_v3, %v893_v42 }
 0x2ce   :  { %v895_v61 = vpop.f32.mrf.mxu3 }
 0x2cf   :  { %v947_v62 = vadd.f32 %v931_v41, %v895_v61  ;;  %v9534_v41 = vld [vmem:[#allocation18] ss:$0 sm:$0xff] }
 0x2d1   :  { %v976_v0 = vpack.c.bf16 %v947_v62, %v946_v49 }
 0x2d3   :  { %1052 = vmatmul.bf16.gmra.mxu0 %v976_v0 }
 0x2d6   :  { %v898_v36 = vpop.f32.mrf.mxu3 }
 0x2d7   :  { %v948_v2 = vadd.f32 %v932_v59, %v898_v36 }
 0x2de   :  { %v900_v6 = vpop.f32.mrf.mxu3 }
 0x2df   :  { %v949_v27 = vadd.f32 %v933_v35, %v900_v6 }
 0x2e1   :  { %v977_v51 = vpack.c.bf16 %v949_v27, %v948_v2 }
 0x2e3   :  { %1057 = vmatmul.bf16.gmra.mxu0 %v977_v51 }
 0x2e6   :  { %v903_v33 = vpop.f32.mrf.mxu3 }
 0x2e7   :  { %v950_v63 = vadd.f32 %v934_v4, %v903_v33 }
 0x2ee   :  { %v905_v50 = vpop.f32.mrf.mxu3 }
 0x2ef   :  { %v951_v5 = vadd.f32 %v935_v32, %v905_v50 }
 0x2f1   :  { %v978_v39 = vpack.c.bf16 %v951_v5, %v950_v63 }
 0x2f3   :  { %1062 = vmatmul.bf16.gmra.mxu0 %v978_v39 }
 0x2f6   :  { %v908_v29 = vpop.f32.mrf.mxu3 }
 0x2f7   :  { %v952_v56 = vadd.f32 %v936_v31, %v908_v29 }
 0x2fe   :  { %v910_v46 = vpop.f32.mrf.mxu3 }
 0x2ff   :  { %v953_v18 = vadd.f32 %v937_v28, %v910_v46 }
 0x301   :  { %v979_v24 = vpack.c.bf16 %v953_v18, %v952_v56  ;;  %v8229_v56 = vld [vmem:[#allocation12 + $0x78] sm:$0xff] }
 0x302   :  { %1310 = vmatpush.bf16.msrb.mxu2 %v8229_v56  ;;  %v8233_v56 = vld [vmem:[#allocation15 + $0x58] sm:$0xff] }
 0x303   :  { %1067 = vmatmul.bf16.gmra.mxu0 %v979_v24  ;;  %v8228_v24 = vld [vmem:[#allocation12 + $0x70] sm:$0xff] }
 0x306   :  { %v913_v45 = vpop.f32.mrf.mxu3  ;;  %1311 = vmatpush.bf16.msrb.mxu2 %v8228_v24  ;;  %v9578_v24 = vld [vmem:[#allocation14 + $0x1] ss:$0 sm:$0xff] }
 0x307   :  { %v954_v48 = vadd.f32 %v938_v21, %v913_v45 }
 0x30a   :  { %1312 = vmatpush.bf16.msrb.mxu2 %v8227_v54  ;;  %v8232_v54 = vld [vmem:[#allocation15 + $0x50] sm:$0xff] }
 0x30e   :  { %v915_v20 = vpop.f32.mrf.mxu3 }
 0x30f   :  { %v955_v30 = vadd.f32 %v939_v53, %v915_v20  ;;  %v8226_v53 = vld [vmem:[#allocation12 + $0x60] sm:$0xff] }
 0x310   :  { %1313 = vmatpush.bf16.msrb.mxu2 %v8226_v53 }
 0x311   :  { %v980_v1 = vpack.c.bf16 %v955_v30, %v954_v48  ;;  %v8225_v48 = vld [vmem:[#allocation12 + $0x58] sm:$0xff] }
 0x313   :  { %1072 = vmatmul.bf16.gmra.mxu0 %v980_v1  ;;  %v8224_v1 = vld [vmem:[#allocation12 + $0x50] sm:$0xff] }
 0x314   :  { %1314 = vmatpush.bf16.msrb.mxu2 %v8225_v48 }
 0x316   :  { %v918_v26 = vpop.f32.mrf.mxu3 }
 0x317   :  { %v956_v16 = vadd.f32 %v940_v17, %v918_v26  ;;  %v8222_v17 = vld [vmem:[#allocation12 + $0x40] sm:$0xff] }
 0x318   :  { %1315 = vmatpush.bf16.msrb.mxu2 %v8224_v1 }
 0x31c   :  { %1316 = vmatpush.bf16.msrb.mxu2 %v8223_v43 }
 0x31e   :  { %v920_v58 = vpop.f32.mrf.mxu3 }
 0x31f   :  { %v957_v22 = vadd.f32 %v941_v15, %v920_v58 }
 0x320   :  { %1317 = vmatpush.bf16.msrb.mxu2 %v8222_v17 }
 0x321   :  { %v981_v11 = vpack.c.bf16 %v957_v22, %v956_v16 }
 0x323   :  { %1077 = vmatmul.bf16.gmra.mxu0 %v981_v11  ;;  %1318 = vmatmul.bf16.vlgmr.msrb.gmra.mxu2 %v9329_v8 }
 0x330   :  { %v1043_v42 = vpop.f32.mrf.mxu0 }
 0x331   :  { %v1044_v3 = vadd.f32 %v9534_v41, %v1043_v42 }
 0x333   :  { %v1083_v62 = vmax.f32 %v1044_v3, 0.0  ;;  %1323 = vmatmul.bf16.gmra.mxu2 %v9332_v9 }
 0x338   :  { %v1045_v61 = vpop.f32.mrf.mxu0 }
 0x339   :  { %v1046_v49 = vadd.f32 %v9534_v41, %v1045_v61 }
 0x33b   :  { %v1084_v0 = vmax.f32 %v1046_v49, 0.0 }
 0x33d   :  { %v1115_v13 = vpack.c.bf16 %v1084_v0, %v1083_v62 }
 0x33f   :  { %1183 = vmatmul.bf16.vlgmr.msrb.gmra.mxu1 %v1115_v13 }
 0x340   :  { %v1048_v36 = vpop.f32.mrf.mxu0 }
 0x341   :  { %v1049_v14 = vadd.f32 %v9534_v41, %v1048_v36 }
 0x343   :  { %v1085_v59 = vmax.f32 %v1049_v14, 0.0  ;;  %1328 = vmatmul.bf16.gmra.mxu2 %v9335_v10 }
 0x348   :  { %v1050_v60 = vpop.f32.mrf.mxu0 }
 0x349   :  { %v1051_v35 = vadd.f32 %v9534_v41, %v1050_v60 }
 0x34b   :  { %v1086_v6 = vmax.f32 %v1051_v35, 0.0 }
 0x34d   :  { %v1116_v2 = vpack.c.bf16 %v1086_v6, %v1085_v59  ;;  %v12098_v6 = vld [vmem:[#allocation40_spill] sm:$0xff] }
 0x34f   :  { %1188 = vmatmul.bf16.gmra.mxu1 %v1116_v2 }
 0x350   :  { %v1053_v27 = vpop.f32.mrf.mxu0 }
 0x351   :  { %v1054_v51 = vadd.f32 %v9534_v41, %v1053_v27  ;;  %v12099_v27 = vld [vmem:[#allocation41_spill] sm:$0xff] }
 0x353   :  { %v1087_v4 = vmax.f32 %v1054_v51, 0.0  ;;  %1333 = vmatmul.bf16.gmra.mxu2 %v12098_v6 }
 0x358   :  { %v1055_v33 = vpop.f32.mrf.mxu0 }
 0x359   :  { %v1056_v32 = vadd.f32 %v9534_v41, %v1055_v33 }
 0x35b   :  { %v1088_v50 = vmax.f32 %v1056_v32, 0.0 }
 0x35d   :  { %v1117_v63 = vpack.c.bf16 %v1088_v50, %v1087_v4  ;;  %v12101_v4 = vld [vmem:[#allocation43_spill] sm:$0xff] }
 0x35f   :  { %1193 = vmatmul.bf16.gmra.mxu1 %v1117_v63 }
 0x360   :  { %v1058_v5 = vpop.f32.mrf.mxu0 }
 0x361   :  { %v1059_v39 = vadd.f32 %v9534_v41, %v1058_v5  ;;  %v12102_v5 = vld [vmem:[#allocation44_spill] sm:$0xff] }
 0x363   :  { %v1089_v31 = vmax.f32 %v1059_v39, 0.0  ;;  %1338 = vmatmul.bf16.gmra.mxu2 %v12099_v27  ;;  %v8237_v39 = vld [vmem:[#allocation15 + $0x78] sm:$0xff] }
 0x364   :  { %1453 = vmatpush.bf16.msrb.mxu3 %v8237_v39 }
 0x368   :  { %v1060_v29 = vpop.f32.mrf.mxu0 }
 0x369   :  { %v1061_v28 = vadd.f32 %v9534_v41, %v1060_v29  ;;  %v8236_v29 = vld [vmem:[#allocation15 + $0x70] sm:$0xff] }
 0x36a   :  { %1454 = vmatpush.bf16.msrb.mxu3 %v8236_v29 }
 0x36b   :  { %v1090_v46 = vmax.f32 %v1061_v28, 0.0 }
 0x36d   :  { %v1118_v25 = vpack.c.bf16 %v1090_v46, %v1089_v31  ;;  %v8235_v31 = vld [vmem:[#allocation15 + $0x68] sm:$0xff]  ;;  %v8234_v46 = vld [vmem:[#allocation15 + $0x60] sm:$0xff] }
 0x36e   :  { %1455 = vmatpush.bf16.msrb.mxu3 %v8235_v31 }
 0x36f   :  { %1198 = vmatmul.bf16.gmra.mxu1 %v1118_v25 }
 0x370   :  { %v1063_v18 = vpop.f32.mrf.mxu0 }
 0x371   :  { %v1064_v23 = vadd.f32 %v9534_v41, %v1063_v18 }
 0x372   :  { %1456 = vmatpush.bf16.msrb.mxu3 %v8234_v46 }
 0x373   :  { %v1091_v21 = vmax.f32 %v1064_v23, 0.0 }
 0x376   :  { %1457 = vmatpush.bf16.msrb.mxu3 %v8233_v56 }
 0x378   :  { %v1065_v45 = vpop.f32.mrf.mxu0 }
 0x379   :  { %v1066_v7 = vadd.f32 %v9534_v41, %v1065_v45 }
 0x37a   :  { %1458 = vmatpush.bf16.msrb.mxu3 %v8232_v54 }
 0x37b   :  { %v1092_v20 = vmax.f32 %v1066_v7, 0.0  ;;  %v8231_v7 = vld [vmem:[#allocation15 + $0x48] sm:$0xff] }
 0x37d   :  { %v1119_v34 = vpack.c.bf16 %v1092_v20, %v1091_v21 }
 0x37e   :  { %1459 = vmatpush.bf16.msrb.mxu3 %v8231_v7 }
 0x37f   :  { %1203 = vmatmul.bf16.gmra.mxu1 %v1119_v34  ;;  %v8230_v34 = vld [vmem:[#allocation15 + $0x40] sm:$0xff] }
 0x380   :  { %v1068_v30 = vpop.f32.mrf.mxu0 }
 0x381   :  { %v1069_v26 = vadd.f32 %v9534_v41, %v1068_v30 }
 0x382   :  { %1460 = vmatpush.bf16.msrb.mxu3 %v8230_v34 }
 0x383   :  { %v1093_v15 = vmax.f32 %v1069_v26, 0.0 }
 0x388   :  { %v1070_v40 = vpop.f32.mrf.mxu0 }
 0x389   :  { %v1071_v12 = vadd.f32 %v9534_v41, %v1070_v40 }
 0x38b   :  { %v1094_v58 = vmax.f32 %v1071_v12, 0.0 }
 0x38d   :  { %v1120_v16 = vpack.c.bf16 %v1094_v58, %v1093_v15 }
 0x38f   :  { %1208 = vmatmul.bf16.gmra.mxu1 %v1120_v16 }
 0x390   :  { %v1073_v22 = vpop.f32.mrf.mxu0 }
 0x391   :  { %v1074_v11 = vadd.f32 %v9534_v41, %v1073_v22 }
 0x393   :  { %v1095_v61 = vmax.f32 %v1074_v11, 0.0  ;;  %v8498_v11 = vld [vmem:[#allocation21] ss:$0 sm:$0xff] }
 0x398   :  { %v1075_v42 = vpop.f32.mrf.mxu0 }
 0x399   :  { %v1076_v3 = vadd.f32 %v9534_v41, %v1075_v42 }
 0x39b   :  { %v1096_v49 = vmax.f32 %v1076_v3, 0.0 }
 0x39d   :  { %v1121_v62 = vpack.c.bf16 %v1096_v49, %v1095_v61 }
 0x39f   :  { %1213 = vmatmul.bf16.gmra.mxu1 %v1121_v62 }
 0x3a0   :  { %v1078_v0 = vpop.f32.mrf.mxu0 }
 0x3a1   :  { %v1079_v13 = vadd.f32 %v9534_v41, %v1078_v0 }
 0x3a3   :  { %v1097_v8 = vmax.f32 %v1079_v13, 0.0 }
 0x3a6   :  { %v1319_v18 = vpop.f32.mrf.mxu2 }
 0x3a7   :  { %v1320_v45 = vadd.f32 %v9578_v24, %v1319_v18 }
 0x3a8   :  { %v1080_v36 = vpop.f32.mrf.mxu0 }
 0x3a9   :  { %v1081_v14 = vadd.f32 %v9534_v41, %v1080_v36  ;;  %v12100_v41 = vld [vmem:[#allocation42_spill] sm:$0xff]  ;;  %v1359_v21 = vmax.f32 %v1320_v45, 0.0 }
 0x3aa   :  { %1343 = vmatmul.bf16.gmra.mxu2 %v12100_v41 }
 0x3ab   :  { %v1098_v60 = vmax.f32 %v1081_v14, 0.0 }
 0x3ad   :  { %v1122_v35 = vpack.c.bf16 %v1098_v60, %v1097_v8 }
 0x3ae   :  { %v1321_v53 = vpop.f32.mrf.mxu2 }
 0x3af   :  { %1218 = vmatmul.bf16.gmra.mxu1 %v1122_v35  ;;  %v1322_v20 = vadd.f32 %v9578_v24, %v1321_v53 }
 0x3b1   :  { %v1360_v30 = vmax.f32 %v1322_v20, 0.0 }
 0x3b3   :  { %v1392_v1 = vpack.c.bf16 %v1360_v30, %v1359_v21 }
 0x3b5   :  { %1461 = vmatmul.bf16.vlgmr.msrb.gmra.mxu3 %v1392_v1 }
 0x3b6   :  { %v1324_v43 = vpop.f32.mrf.mxu2 }
 0x3b7   :  { %v1325_v40 = vadd.f32 %v9578_v24, %v1324_v43 }
 0x3b9   :  { %v1361_v17 = vmax.f32 %v1325_v40, 0.0 }
 0x3ba   :  { %1348 = vmatmul.bf16.gmra.mxu2 %v12101_v4 }
 0x3bc   :  { %v9555_v59 = vpop.f32.mrf.mxu1 }
 0x3be   :  { %v1326_v12 = vpop.f32.mrf.mxu2 }
 0x3bf   :  { %v1327_v15 = vadd.f32 %v9578_v24, %v1326_v12 }
 0x3c1   :  { %v1362_v16 = vmax.f32 %v1327_v15, 0.0 }
 0x3c3   :  { %v1393_v22 = vpack.c.bf16 %v1362_v16, %v1361_v17  ;;  %v9664_v16 = vadd.f32 %v8498_v11, %v9555_v59 }
 0x3c4   :  { %v9558_v2 = vpop.f32.mrf.mxu1 }
 0x3c5   :  { %1466 = vmatmul.bf16.gmra.mxu3 %v1393_v22 }
 0x3c6   :  { %v1329_v42 = vpop.f32.mrf.mxu2 }
 0x3c7   :  { %v1330_v0 = vadd.f32 %v9578_v24, %v1329_v42 }
 0x3c9   :  { %v1363_v27 = vmax.f32 %v1330_v0, 0.0 }
 0x3ca   :  { %1353 = vmatmul.bf16.gmra.mxu2 %v12102_v5 }
 0x3cc   :  { %v9560_v9 = vpop.f32.mrf.mxu1 }
 0x3ce   :  { %v1331_v6 = vpop.f32.mrf.mxu2 }
 0x3cf   :  { %v1332_v41 = vadd.f32 %v9578_v24, %v1331_v6 }
 0x3d1   :  { %v1364_v39 = vmax.f32 %v1332_v41, 0.0 }
 0x3d3   :  { %v1394_v56 = vpack.c.bf16 %v1364_v39, %v1363_v27 }
 0x3d4   :  { %v9563_v51 = vpop.f32.mrf.mxu1 }
 0x3d5   :  { %1471 = vmatmul.bf16.gmra.mxu3 %v1394_v56 }
 0x3d6   :  { %v1334_v45 = vpop.f32.mrf.mxu2 }
 0x3d7   :  { %v1335_v20 = vadd.f32 %v9578_v24, %v1334_v45  ;;  %v9683_v45 = vld [vmem:[#allocation8 + $0x8] sm:$0xff] }
 0x3d8   :  { %12109 = vst [vmem:[#allocation48_spill] sm:$0xff] %v9683_v45 }
 0x3d9   :  { %v1365_v43 = vmax.f32 %v1335_v20, 0.0 }
 0x3dc   :  { %v9565_v33 = vpop.f32.mrf.mxu1 }
 0x3dd   :  { %v9639_v34 = vadd.f32 %v8498_v11, %v9565_v33  ;;  %v9652_v33 = vadd.f32 %v8498_v11, %v9560_v9 }
 0x3de   :  { %v1336_v1 = vpop.f32.mrf.mxu2 }
 0x3df   :  { %v11834_v40 = vmax.f32 %v9639_v34, 0.0  ;;  %v11836_v9 = vmax.f32 %v9652_v33, 0.0 }
 0x3e4   :  { %v9568_v32 = vpop.f32.mrf.mxu1 }
 0x3e5   :  { %v9630_v53 = vadd.f32 %v8498_v11, %v9568_v32 }
 0x3e6   :  { %v1339_v42 = vpop.f32.mrf.mxu2 }
 0x3e7   :  { %v11833_v32 = vmax.f32 %v9630_v53, 0.0 }
 0x3e9   :  { %v1520_v15 = vpack.c.bf16 %v11833_v32, %v11834_v40 }
 0x3ec   :  { %v9570_v10 = vpop.f32.mrf.mxu1 }
 0x3ed   :  { %v9626_v7 = vadd.f32 %v8498_v11, %v9570_v10 }
 0x3ee   :  { %v1341_v0 = vpop.f32.mrf.mxu2 }
 0x3ef   :  { %v11832_v10 = vmax.f32 %v9626_v7, 0.0  ;;  %v1342_v27 = vadd.f32 %v9578_v24, %v1341_v0 }
 0x3f1   :  { %v1368_v41 = vmax.f32 %v1342_v27, 0.0  ;;  %v9693_v27 = vld [vmem:[#allocation8 + $0x18] sm:$0xff] }
 0x3f2   :  { %12111 = vst [vmem:[#allocation50_spill] sm:$0xff] %v9693_v27 }
 0x3f4   :  { %v9573_v50 = vpop.f32.mrf.mxu1 }
 0x3f5   :  { %v9618_v54 = vadd.f32 %v8498_v11, %v9573_v50 }
 0x3f7   :  { %v11831_v50 = vmax.f32 %v9618_v54, 0.0 }
 0x3f9   :  { %v1521_v30 = vpack.c.bf16 %v11831_v50, %v11832_v10 }
 0x3fc   :  { %v9575_v63 = vpop.f32.mrf.mxu1 }
 0x3fd   :  { %v9614_v18 = vadd.f32 %v8498_v11, %v9575_v63 }
 0x3ff   :  { %v11830_v63 = vmax.f32 %v9614_v18, 0.0 }
 0x404   :  { %v1206_v28 = vpop.f32.mrf.mxu1 }
 0x405   :  { %v9606_v29 = vadd.f32 %v8498_v11, %v1206_v28 }
 0x407   :  { %v11829_v28 = vmax.f32 %v9606_v29, 0.0 }
 0x409   :  { %v1522_v21 = vpack.c.bf16 %v11829_v28, %v11830_v63 }
 0x40c   :  { %v1209_v25 = vpop.f32.mrf.mxu1 }
 0x40d   :  { %v9603_v4 = vadd.f32 %v8498_v11, %v1209_v25 }
 0x40f   :  { %v11828_v25 = vmax.f32 %v9603_v4, 0.0 }
 0x414   :  { %v1211_v23 = vpop.f32.mrf.mxu1 }
 0x415   :  { %v9595_v8 = vadd.f32 %v8498_v11, %v1211_v23 }
 0x417   :  { %12107 = vst [vmem:[#allocation44_spill] sm:$0xff] %v9595_v8  ;;  %v11827_v31 = vmax.f32 %v9595_v8, 0.0 }
 0x419   :  { %v1523_v23 = vpack.c.bf16 %v11827_v31, %v11828_v25 }
 0x41c   :  { %v1214_v48 = vpop.f32.mrf.mxu1 }
 0x41d   :  { %v9591_v13 = vadd.f32 %v8498_v11, %v1214_v48  ;;  %v9643_v48 = vadd.f32 %v8498_v11, %v9563_v51  ;;  %v9656_v51 = vadd.f32 %v8498_v11, %v9558_v2 }
 0x41f   :  { %12106 = vst [vmem:[#allocation43_spill] sm:$0xff] %v9591_v13  ;;  %v11826_v5 = vmax.f32 %v9591_v13, 0.0  ;;  %v11835_v17 = vmax.f32 %v9643_v48, 0.0  ;;  %v11837_v22 = vmax.f32 %v9656_v51, 0.0 }
 0x421   :  { %v1519_v2 = vpack.c.bf16 %v11835_v17, %v11836_v9 }
 0x424   :  { %v1216_v26 = vpop.f32.mrf.mxu1 }
 0x425   :  { %v9586_v49 = vadd.f32 %v8498_v11, %v1216_v26  ;;  %v1337_v26 = vadd.f32 %v9578_v24, %v1336_v1 }
 0x427   :  { %12104 = vst [vmem:[#allocation41_spill] sm:$0xff] %v9586_v49  ;;  %v11825_v60 = vmax.f32 %v9586_v49, 0.0  ;;  %v1366_v12 = vmax.f32 %v1337_v26, 0.0 }
 0x429   :  { %v1524_v46 = vpack.c.bf16 %v11825_v60, %v11826_v5 }
 0x42c   :  { %v1219_v58 = vpop.f32.mrf.mxu1 }
 0x42d   :  { %v9584_v3 = vadd.f32 %v8498_v11, %v1219_v58  ;;  %v1395_v58 = vpack.c.bf16 %v1366_v12, %v1365_v43 }
 0x42f   :  { %12103 = vst [vmem:[#allocation40_spill] sm:$0xff] %v9584_v3  ;;  %v11824_v36 = vmax.f32 %v9584_v3, 0.0  ;;  %1476 = vmatmul.bf16.gmra.mxu3 %v1395_v58 }
 0x434   :  { %v1221_v61 = vpop.f32.mrf.mxu1 }
 0x435   :  { %v9588_v62 = vadd.f32 %v8498_v11, %v1221_v61  ;;  %v11838_v61 = vmax.f32 %v9664_v16, 0.0  ;;  %v1340_v11 = vadd.f32 %v9578_v24, %v1339_v42 }
 0x437   :  { %12105 = vst [vmem:[#allocation42_spill] sm:$0xff] %v9588_v62  ;;  %v11823_v14 = vmax.f32 %v9588_v62, 0.0  ;;  %v1518_v59 = vpack.c.bf16 %v11837_v22, %v11838_v61  ;;  %v1367_v6 = vmax.f32 %v1340_v11, 0.0 }
 0x439   :  { %v1525_v35 = vpack.c.bf16 %v11823_v14, %v11824_v36  ;;  %v1396_v39 = vpack.c.bf16 %v1368_v41, %v1367_v6 }
 0x43b   :  { %1526 = vmatpush.bf16.msra.mxu0 %v1525_v35  ;;  %v9678_v35 = vld [vmem:[#allocation8] sm:$0xff] }
 0x43c   :  { %12108 = vst [vmem:[#allocation47_spill] sm:$0xff] %v9678_v35 }
 0x43f   :  { %1527 = vmatpush.bf16.msra.mxu0 %v1524_v46  ;;  %1481 = vmatmul.bf16.gmra.mxu3 %v1396_v39  ;;  %v1344_v46 = vpop.f32.mrf.mxu2 }
 0x440   :  { %v1345_v56 = vadd.f32 %v9578_v24, %v1344_v46 }
 0x443   :  { %1528 = vmatpush.bf16.msra.mxu0 %v1523_v23 }
 0x447   :  { %1529 = vmatpush.bf16.msra.mxu0 %v1522_v21  ;;  %v1346_v23 = vpop.f32.mrf.mxu2  ;;  %v1369_v21 = vmax.f32 %v1345_v56, 0.0 }
 0x448   :  { %v1347_v20 = vadd.f32 %v9578_v24, %v1346_v23  ;;  %v9697_v23 = vld [vmem:[#allocation8 + $0x20] sm:$0xff] }
 0x449   :  { %12112 = vst [vmem:[#allocation51_spill] sm:$0xff] %v9697_v23 }
 0x44b   :  { %1530 = vmatpush.bf16.msra.mxu0 %v1521_v30  ;;  %v1370_v30 = vmax.f32 %v1347_v20, 0.0  ;;  %v1462_v20 = vpop.f32.mrf.mxu3 }
 0x44d   :  { %v1397_v1 = vpack.c.bf16 %v1370_v30, %v1369_v21  ;;  %v9700_v21 = vld [vmem:[#allocation8 + $0x28] sm:$0xff] }
 0x44e   :  { %12113 = vst [vmem:[#allocation52_spill] sm:$0xff] %v9700_v21  ;;  %v12114_v30 = vld [vmem:[#allocation45_spill] sm:$0xff] }
 0x44f   :  { %1531 = vmatpush.bf16.msra.mxu0 %v1520_v15  ;;  %1486 = vmatmul.bf16.gmra.mxu3 %v1397_v1  ;;  %v1349_v43 = vpop.f32.mrf.mxu2  ;;  %v9688_v15 = vld [vmem:[#allocation8 + $0x10] sm:$0xff] }
 0x450   :  { %v1350_v26 = vadd.f32 %v9578_v24, %v1349_v43  ;;  %12110 = vst [vmem:[#allocation49_spill] sm:$0xff] %v9688_v15 }
 0x452   :  { %v1371_v58 = vmax.f32 %v1350_v26, 0.0  ;;  %v12115_v26 = vld [vmem:[#allocation46_spill] sm:$0xff] }
 0x453   :  { %1532 = vmatpush.bf16.msra.mxu0 %v1519_v2  ;;  %v9704_v1 = vpop.f32.mrf.mxu3 }
 0x457   :  { %1533 = vmatpush.bf16.msra.mxu0 %v1518_v59  ;;  %v1351_v12 = vpop.f32.mrf.mxu2 }
 0x458   :  { %v1352_v2 = vadd.f32 %v9578_v24, %v1351_v12 }
 0x45a   :  { %1534 = vmatmul.bf16.vlgmr.msra.gmra.mxu0 %v9678_v35  ;;  %v1372_v42 = vmax.f32 %v1352_v2, 0.0 }
 0x45b   :  { %v1467_v43 = vpop.f32.mrf.mxu3 }
 0x45c   :  { %v1398_v59 = vpack.c.bf16 %v1372_v42, %v1371_v58 }
 0x45f   :  { %1491 = vmatmul.bf16.gmra.mxu3 %v1398_v59  ;;  %v1354_v11 = vpop.f32.mrf.mxu2 }
 0x460   :  { %v1355_v0 = vadd.f32 %v9578_v24, %v1354_v11 }
 0x462   :  { %v1373_v41 = vmax.f32 %v1355_v0, 0.0 }
 0x463   :  { %v9712_v12 = vpop.f32.mrf.mxu3 }
 0x467   :  { %v1356_v6 = vpop.f32.mrf.mxu2 }
 0x468   :  { %v1357_v39 = vadd.f32 %v9578_v24, %v1356_v6  ;;  %v9710_v24 = vld [vmem:[%s11801_s8 + $0x1] ss:$0 sm:$0xff] }
 0x469   :  { %v1463_v58 = vadd.f32 %v9710_v24, %v1462_v20  ;;  %v1468_v6 = vadd.f32 %v9710_v24, %v1467_v43 }
 0x46a   :  { %1539 = vmatmul.bf16.gmra.mxu0 %v9683_v45  ;;  %v1374_v46 = vmax.f32 %v1357_v39, 0.0 }
 0x46b   :  { %v1502_v2 = vmax.f32 %v1463_v58, 0.0  ;;  %v1472_v11 = vpop.f32.mrf.mxu3  ;;  %v1504_v39 = vmax.f32 %v1468_v6, 0.0 }
 0x46c   :  { %v1399_v56 = vpack.c.bf16 %v1374_v46, %v1373_v41  ;;  %v1473_v20 = vadd.f32 %v9710_v24, %v1472_v11 }
 0x46e   :  { %v1506_v58 = vmax.f32 %v1473_v20, 0.0 }
 0x46f   :  { %1496 = vmatmul.bf16.gmra.mxu3 %v1399_v56 }
 0x473   :  { %v9720_v41 = vpop.f32.mrf.mxu3 }
 0x47a   :  { %1544 = vmatmul.bf16.gmra.mxu0 %v9688_v15 }
 0x48a   :  { %1549 = vmatmul.bf16.gmra.mxu0 %v9693_v27 }
 0x49a   :  { %1554 = vmatmul.bf16.gmra.mxu0 %v9697_v23 }
 0x4aa   :  { %1559 = vmatmul.bf16.gmra.mxu0 %v9700_v21 }
 0x4ba   :  { %1564 = vmatmul.bf16.gmra.mxu0 %v12114_v30  ;;  %v1477_v30 = vpop.f32.mrf.mxu3 }
 0x4bb   :  { %v1478_v43 = vadd.f32 %v9710_v24, %v1477_v30 }
 0x4bd   :  { %v1508_v5 = vmax.f32 %v1478_v43, 0.0 }
 0x4ca   :  { %1569 = vmatmul.bf16.gmra.mxu0 %v12115_v26 }
 0x4d7   :  { %v1535_v42 = vpop.f32.mrf.mxu0 }
 0x4d8   :  { %v9715_v59 = vadd.f32 %v1535_v42, %v1502_v2  ;;  %v1479_v2 = vpop.f32.mrf.mxu3 }
 0x4df   :  { %v9717_v0 = vpop.f32.mrf.mxu0 }
 0x4e0   :  { %v1482_v60 = vpop.f32.mrf.mxu3 }
 0x4e1   :  { %v1483_v25 = vadd.f32 %v9710_v24, %v1482_v60 }
 0x4e3   :  { %v1510_v11 = vmax.f32 %v1483_v25, 0.0 }
 0x4e7   :  { %v1540_v46 = vpop.f32.mrf.mxu0 }
 0x4e8   :  { %v9722_v56 = vadd.f32 %v1540_v46, %v1504_v39  ;;  %v1484_v39 = vpop.f32.mrf.mxu3 }
 0x4ef   :  { %v9724_v26 = vpop.f32.mrf.mxu0 }
 0x4f0   :  { %v1487_v28 = vpop.f32.mrf.mxu3 }
 0x4f1   :  { %v1488_v15 = vadd.f32 %v9710_v24, %v1487_v28 }
 0x4f3   :  { %v1512_v13 = vmax.f32 %v1488_v15, 0.0 }
 0x4f7   :  { %v1545_v14 = vpop.f32.mrf.mxu0 }
 0x4f8   :  { %v9727_v42 = vadd.f32 %v1545_v14, %v1506_v58  ;;  %v1489_v50 = vpop.f32.mrf.mxu3 }
 0x4ff   :  { %v9729_v36 = vpop.f32.mrf.mxu0 }
 0x500   :  { %v1492_v10 = vpop.f32.mrf.mxu3 }
 0x501   :  { %v1493_v25 = vadd.f32 %v9710_v24, %v1492_v10 }
 0x503   :  { %v1514_v45 = vmax.f32 %v1493_v25, 0.0 }
 0x507   :  { %v1550_v6 = vpop.f32.mrf.mxu0 }
 0x508   :  { %v9732_v31 = vadd.f32 %v1550_v6, %v1508_v5  ;;  %v1494_v40 = vpop.f32.mrf.mxu3 }
 0x509   :  { %v1495_v22 = vadd.f32 %v9710_v24, %v1494_v40 }
 0x50b   :  { %v1515_v61 = vmax.f32 %v1495_v22, 0.0 }
 0x50f   :  { %v1552_v46 = vpop.f32.mrf.mxu0 }
 0x510   :  { %v1497_v30 = vpop.f32.mrf.mxu3 }
 0x511   :  { %v1498_v6 = vadd.f32 %v9710_v24, %v1497_v30  ;;  %v1485_v30 = vadd.f32 %v9710_v24, %v1484_v39 }
 0x513   :  { %v1511_v22 = vmax.f32 %v1485_v30, 0.0 }
 0x517   :  { %v1555_v20 = vpop.f32.mrf.mxu0 }
 0x518   :  { %v1556_v63 = vadd.f32 %v1555_v20, %v1510_v11  ;;  %v1499_v9 = vpop.f32.mrf.mxu3  ;;  %v1516_v11 = vmax.f32 %v1498_v6, 0.0  ;;  %v1490_v20 = vadd.f32 %v9710_v24, %v1489_v50  ;;  %v1480_v50 = vadd.f32 %v9710_v24, %v1479_v2 }
 0x519   :  { %v1500_v60 = vadd.f32 %v9710_v24, %v1499_v9  ;;  %v1581_v2 = vmax.f32 %v9732_v31, 0.0  ;;  %v1575_v31 = vmax.f32 %v9715_v59, 0.0  ;;  %v8243_v59 = vld [vmem:[#allocation17 + $0x68] sm:$0xff] }
 0x51a   :  { %v1513_v3 = vmax.f32 %v1490_v20, 0.0 }
 0x51b   :  { %v1517_v21 = vmax.f32 %v1500_v60, 0.0 }
 0x51f   :  { %v1557_v14 = vpop.f32.mrf.mxu0 }
 0x520   :  { %v1558_v28 = vadd.f32 %v1557_v14, %v1511_v22 }
 0x527   :  { %v1560_v58 = vpop.f32.mrf.mxu0 }
 0x52f   :  { %v1562_v32 = vpop.f32.mrf.mxu0 }
 0x530   :  { %v1563_v10 = vadd.f32 %v1562_v32, %v1513_v3 }
 0x532   :  { %v1586_v25 = vmax.f32 %v1563_v10, 0.0 }
 0x537   :  { %v1565_v17 = vpop.f32.mrf.mxu0 }
 0x538   :  { %v1566_v40 = vadd.f32 %v1565_v17, %v1514_v45  ;;  %v1584_v45 = vmax.f32 %v1558_v28, 0.0 }
 0x53a   :  { %v1587_v60 = vmax.f32 %v1566_v40, 0.0  ;;  %v12117_v40 = vmax.f32 %v9656_v51, 0.0 }
 0x53f   :  { %v1567_v43 = vpop.f32.mrf.mxu0 }
 0x540   :  { %v1568_v35 = vadd.f32 %v1567_v43, %v1515_v61 }
 0x542   :  { %v1588_v6 = vmax.f32 %v1568_v35, 0.0  ;;  %v1583_v35 = vmax.f32 %v1556_v63, 0.0 }
 0x544   :  { %v1597_v61 = vpack.c.bf16 %v1588_v6, %v1587_v60  ;;  %v1595_v15 = vpack.c.bf16 %v1584_v45, %v1583_v35  ;;  %v12119_v60 = vmax.f32 %v9643_v48, 0.0  ;;  %v12122_v35 = vmax.f32 %v9626_v7, 0.0 }
 0x547   :  { %v1570_v5 = vpop.f32.mrf.mxu0 }
 0x548   :  { %v1571_v23 = vadd.f32 %v1570_v5, %v1516_v11  ;;  %v1561_v5 = vadd.f32 %v1560_v58, %v1512_v13  ;;  %v1577_v11 = vmax.f32 %v9722_v56, 0.0  ;;  %v8244_v56 = vld [vmem:[#allocation17 + $0x70] sm:$0xff] }
 0x54a   :  { %v1589_v49 = vmax.f32 %v1571_v23, 0.0  ;;  %v1585_v17 = vmax.f32 %v1561_v5, 0.0  ;;  %v1465_v23 = vadd.f32 %v9710_v24, %v9704_v1 }
 0x54c   :  { %v1596_v3 = vpack.c.bf16 %v1586_v25, %v1585_v17  ;;  %v1503_v58 = vmax.f32 %v1465_v23, 0.0 }
 0x54e   :  { %v1538_v63 = vadd.f32 %v9717_v0, %v1503_v58  ;;  %v8245_v0 = vld [vmem:[#allocation17 + $0x78] sm:$0xff] }
 0x54f   :  { %v1572_v27 = vpop.f32.mrf.mxu0  ;;  %1761 = vmatpush.bf16.msra.mxu2 %v8245_v0 }
 0x550   :  { %v1573_v62 = vadd.f32 %v1572_v27, %v1517_v21  ;;  %v1475_v27 = vadd.f32 %v9710_v24, %v9720_v41  ;;  %v1509_v21 = vmax.f32 %v1480_v50, 0.0  ;;  %v1576_v1 = vmax.f32 %v1538_v63, 0.0 }
 0x552   :  { %v1590_v9 = vmax.f32 %v1573_v62, 0.0  ;;  %v1553_v62 = vadd.f32 %v1552_v46, %v1509_v21  ;;  %v1507_v32 = vmax.f32 %v1475_v27, 0.0  ;;  %v1591_v20 = vpack.c.bf16 %v1576_v1, %v1575_v31  ;;  %v12127_v1 = vld [vmem:[#allocation44_spill] sm:$0xff] }
 0x553   :  { %1762 = vmatpush.bf16.msra.mxu2 %v8244_v56  ;;  %v12120_v21 = vmax.f32 %v9639_v34, 0.0  ;;  %v8253_v56 = vld [vmem:[#allocation20 + $0x78] sm:$0xff] }
 0x554   :  { %v1598_v8 = vpack.c.bf16 %v1590_v9, %v1589_v49  ;;  %v1470_v49 = vadd.f32 %v9710_v24, %v9712_v12  ;;  %v1548_v13 = vadd.f32 %v9729_v36, %v1507_v32  ;;  %v1579_v12 = vmax.f32 %v9727_v42, 0.0  ;;  %v8241_v42 = vld [vmem:[#allocation17 + $0x58] sm:$0xff]  ;;  %1904 = vmatpush.bf16.msra.mxu3 %v8253_v56 }
 0x556   :  { %1599 = vmatpush.bf16.msra.mxu1 %v1598_v8  ;;  %v1582_v8 = vmax.f32 %v1553_v62, 0.0  ;;  %v1505_v41 = vmax.f32 %v1470_v49, 0.0  ;;  %v1580_v46 = vmax.f32 %v1548_v13, 0.0  ;;  %v12121_v62 = vmax.f32 %v9630_v53, 0.0 }
 0x557   :  { %1763 = vmatpush.bf16.msra.mxu2 %v8243_v59  ;;  %v8252_v59 = vld [vmem:[#allocation20 + $0x70] sm:$0xff] }
 0x558   :  { %v1543_v39 = vadd.f32 %v9724_v26, %v1505_v41  ;;  %v1594_v14 = vpack.c.bf16 %v1582_v8, %v1581_v2  ;;  %v1593_v43 = vpack.c.bf16 %v1580_v46, %v1579_v12  ;;  %v8242_v26 = vld [vmem:[#allocation17 + $0x60] sm:$0xff]  ;;  %v12123_v8 = vmax.f32 %v9618_v54, 0.0  ;;  %1905 = vmatpush.bf16.msra.mxu3 %v8252_v59 }
 0x55a   :  { %1600 = vmatpush.bf16.msra.mxu1 %v1597_v61  ;;  %v1578_v36 = vmax.f32 %v1543_v39, 0.0  ;;  %v12124_v39 = vmax.f32 %v9614_v18, 0.0 }
 0x55b   :  { %1764 = vmatpush.bf16.msra.mxu2 %v8242_v26 }
 0x55c   :  { %v1592_v24 = vpack.c.bf16 %v1578_v36, %v1577_v11 }
 0x55e   :  { %1601 = vmatpush.bf16.msra.mxu1 %v1596_v3 }
 0x55f   :  { %1765 = vmatpush.bf16.msra.mxu2 %v8241_v42  ;;  %v8251_v42 = vld [vmem:[#allocation20 + $0x68] sm:$0xff] }
 0x560   :  { %1906 = vmatpush.bf16.msra.mxu3 %v8251_v42  ;;  %v8261_v42 = vld [vmem:[#allocation12 + $0xb8] sm:$0xff] }
 0x561   :  { %2039 = vmatpush.bf16.msrb.mxu0 %v8261_v42 }
 0x562   :  { %1602 = vmatpush.bf16.msra.mxu1 %v1595_v15 }
 0x566   :  { %1603 = vmatpush.bf16.msra.mxu1 %v1594_v14  ;;  %v12125_v14 = vmax.f32 %v9606_v29, 0.0 }
 0x56a   :  { %1604 = vmatpush.bf16.msra.mxu1 %v1593_v43  ;;  %v12126_v43 = vmax.f32 %v9603_v4, 0.0 }
 0x56e   :  { %1605 = vmatpush.bf16.msra.mxu1 %v1592_v24  ;;  %v12128_v24 = vmax.f32 %v12127_v1, 0.0 }
 0x572   :  { %1606 = vmatpush.bf16.msra.mxu1 %v1591_v20 }
 0x575   :  { %1607 = vmatmul.bf16.vlgmr.msra.gmra.mxu1 %v9476_v44  ;;  %v8240_v44 = vld [vmem:[#allocation17 + $0x50] sm:$0xff] }
 0x576   :  { %1766 = vmatpush.bf16.msra.mxu2 %v8240_v44  ;;  %v12129_v44 = vld [vmem:[#allocation43_spill] sm:$0xff] }
 0x585   :  { %1612 = vmatmul.bf16.gmra.mxu1 %v9479_v37  ;;  %v8239_v37 = vld [vmem:[#allocation17 + $0x48] sm:$0xff] }
 0x586   :  { %1767 = vmatpush.bf16.msra.mxu2 %v8239_v37  ;;  %v12130_v37 = vmax.f32 %v12129_v44, 0.0 }
 0x595   :  { %1617 = vmatmul.bf16.gmra.mxu1 %v9482_v57  ;;  %v8238_v57 = vld [vmem:[#allocation17 + $0x40] sm:$0xff] }
 0x596   :  { %1768 = vmatpush.bf16.msra.mxu2 %v8238_v57  ;;  %v12131_v57 = vld [vmem:[#allocation41_spill] sm:$0xff] }
 0x5a5   :  { %1622 = vmatmul.bf16.gmra.mxu1 %v9485_v19 }
 0x5b5   :  { %1627 = vmatmul.bf16.gmra.mxu1 %v9488_v47  ;;  %v9764_v47 = vstv %s1649_s25 }
 0x5b6   :  { %v1652_v9 = vmul.f32 %v9764_v47, %v12117_v40  ;;  %v1655_v17 = vmul.f32 %v9764_v47, %v12120_v21  ;;  %v1657_v13 = vmul.f32 %v9764_v47, %v12122_v35  ;;  %v1658_v34 = vmul.f32 %v9764_v47, %v12123_v8 }
 0x5b7   :  { %v1659_v46 = vmul.f32 %v9764_v47, %v12124_v39  ;;  %v1660_v7 = vmul.f32 %v9764_v47, %v12125_v14  ;;  %v1661_v11 = vmul.f32 %v9764_v47, %v12126_v43  ;;  %v1662_v18 = vmul.f32 %v9764_v47, %v12128_v24 }
 0x5b8   :  { %v1663_v4 = vmul.f32 %v9764_v47, %v12130_v37 }
 0x5c5   :  { %1632 = vmatmul.bf16.gmra.mxu1 %v9491_v38  ;;  %v12116_v38 = vmax.f32 %v9664_v16, 0.0  ;;  %v1654_v16 = vmul.f32 %v9764_v47, %v12119_v60 }
 0x5c7   :  { %v1651_v30 = vmul.f32 %v9764_v47, %v12116_v38 }
 0x5d5   :  { %1637 = vmatmul.bf16.gmra.mxu1 %v9494_v52 }
 0x5e5   :  { %1642 = vmatmul.bf16.gmra.mxu1 %v9497_v55  ;;  %v12118_v55 = vmax.f32 %v9652_v33, 0.0  ;;  %v1656_v33 = vmul.f32 %v9764_v47, %v12121_v62 }
 0x5e7   :  { %v1653_v5 = vmul.f32 %v9764_v47, %v12118_v55  ;;  %v8247_v55 = vld [vmem:[#allocation20 + $0x48] sm:$0xff] }
 0x5f2   :  { %v1608_v19 = vpop.f32.mrf.mxu1 }
 0x5f3   :  { %v1667_v52 = vadd.f32 %v1651_v30, %v1608_v19  ;;  %v12132_v19 = vmax.f32 %v12131_v57, 0.0  ;;  %v8250_v30 = vld [vmem:[#allocation20 + $0x60] sm:$0xff] }
 0x5f4   :  { %1907 = vmatpush.bf16.msra.mxu3 %v8250_v30  ;;  %v8260_v57 = vld [vmem:[#allocation12 + $0xb0] sm:$0xff] }
 0x5f5   :  { %v1664_v38 = vmul.f32 %v9764_v47, %v12132_v19  ;;  %2040 = vmatpush.bf16.msrb.mxu0 %v8260_v57  ;;  %v8502_v57 = vld [vmem:[#allocation21 + $0x1] ss:$0 sm:$0xff] }
 0x5fa   :  { %v1610_v10 = vpop.f32.mrf.mxu1 }
 0x5fb   :  { %v1668_v6 = vadd.f32 %v1652_v9, %v1610_v10 }
 0x5fd   :  { %v1700_v50 = vpack.c.bf16 %v1668_v6, %v1667_v52  ;;  %v8249_v6 = vld [vmem:[#allocation20 + $0x58] sm:$0xff] }
 0x5fe   :  { %1908 = vmatpush.bf16.msra.mxu3 %v8249_v6 }
 0x5ff   :  { %1769 = vmatmul.bf16.vlgmr.msra.gmra.mxu2 %v1700_v50 }
 0x602   :  { %v1613_v22 = vpop.f32.mrf.mxu1 }
 0x603   :  { %v1669_v25 = vadd.f32 %v1653_v5, %v1613_v22  ;;  %v8248_v22 = vld [vmem:[#allocation20 + $0x50] sm:$0xff] }
 0x604   :  { %1909 = vmatpush.bf16.msra.mxu3 %v8248_v22  ;;  %v12133_v5 = vld [vmem:[#allocation40_spill] sm:$0xff] }
 0x605   :  { %v12134_v60 = vmax.f32 %v12133_v5, 0.0 }
 0x608   :  { %1910 = vmatpush.bf16.msra.mxu3 %v8247_v55 }
 0x60a   :  { %v1615_v28 = vpop.f32.mrf.mxu1 }
 0x60b   :  { %v1670_v61 = vadd.f32 %v1654_v16, %v1615_v28  ;;  %v1665_v16 = vmul.f32 %v9764_v47, %v12134_v60  ;;  %v12135_v28 = vld [vmem:[#allocation42_spill] sm:$0xff] }
 0x60d   :  { %v1701_v51 = vpack.c.bf16 %v1670_v61, %v1669_v25  ;;  %v12136_v25 = vmax.f32 %v12135_v28, 0.0 }
 0x60f   :  { %1774 = vmatmul.bf16.gmra.mxu2 %v1701_v51  ;;  %v1666_v61 = vmul.f32 %v9764_v47, %v12136_v25 }
 0x612   :  { %v1618_v27 = vpop.f32.mrf.mxu1 }
 0x613   :  { %v1671_v3 = vadd.f32 %v1655_v17, %v1618_v27  ;;  %v8246_v17 = vld [vmem:[#allocation20 + $0x40] sm:$0xff] }
 0x614   :  { %1911 = vmatpush.bf16.msra.mxu3 %v8246_v17 }
 0x61a   :  { %v1620_v45 = vpop.f32.mrf.mxu1 }
 0x61b   :  { %v1672_v49 = vadd.f32 %v1656_v33, %v1620_v45  ;;  %v9814_v45 = vld [vmem:[#allocation18 + $0x1] ss:$0 sm:$0xff] }
 0x61d   :  { %v1702_v48 = vpack.c.bf16 %v1672_v49, %v1671_v3 }
 0x61f   :  { %1779 = vmatmul.bf16.gmra.mxu2 %v1702_v48 }
 0x622   :  { %v1623_v32 = vpop.f32.mrf.mxu1 }
 0x623   :  { %v1673_v23 = vadd.f32 %v1657_v13, %v1623_v32 }
 0x62a   :  { %v1625_v15 = vpop.f32.mrf.mxu1 }
 0x62b   :  { %v1674_v41 = vadd.f32 %v1658_v34, %v1625_v15 }
 0x62d   :  { %v1703_v53 = vpack.c.bf16 %v1674_v41, %v1673_v23 }
 0x62f   :  { %1784 = vmatmul.bf16.gmra.mxu2 %v1703_v53 }
 0x632   :  { %v1628_v2 = vpop.f32.mrf.mxu1 }
 0x633   :  { %v1675_v12 = vadd.f32 %v1659_v46, %v1628_v2 }
 0x63a   :  { %v1630_v58 = vpop.f32.mrf.mxu1 }
 0x63b   :  { %v1676_v63 = vadd.f32 %v1660_v7, %v1630_v58 }
 0x63d   :  { %v1704_v54 = vpack.c.bf16 %v1676_v63, %v1675_v12 }
 0x63f   :  { %1789 = vmatmul.bf16.gmra.mxu2 %v1704_v54 }
 0x642   :  { %v1633_v36 = vpop.f32.mrf.mxu1 }
 0x643   :  { %v1677_v20 = vadd.f32 %v1661_v11, %v1633_v36 }
 0x64a   :  { %v1635_v31 = vpop.f32.mrf.mxu1 }
 0x64b   :  { %v1678_v0 = vadd.f32 %v1662_v18, %v1635_v31 }
 0x64d   :  { %v1705_v29 = vpack.c.bf16 %v1678_v0, %v1677_v20 }
 0x64f   :  { %1794 = vmatmul.bf16.gmra.mxu2 %v1705_v29 }
 0x652   :  { %v1638_v26 = vpop.f32.mrf.mxu1 }
 0x653   :  { %v1679_v9 = vadd.f32 %v1663_v4, %v1638_v26 }
 0x65a   :  { %v1640_v40 = vpop.f32.mrf.mxu1 }
 0x65b   :  { %v1680_v10 = vadd.f32 %v1664_v38, %v1640_v40  ;;  %v8259_v40 = vld [vmem:[#allocation12 + $0xa8] sm:$0xff] }
 0x65c   :  { %2041 = vmatpush.bf16.msrb.mxu0 %v8259_v40 }
 0x65d   :  { %v1706_v52 = vpack.c.bf16 %v1680_v10, %v1679_v9  ;;  %v8258_v9 = vld [vmem:[#allocation12 + $0xa0] sm:$0xff] }
 0x65f   :  { %1799 = vmatmul.bf16.gmra.mxu2 %v1706_v52  ;;  %v8257_v52 = vld [vmem:[#allocation12 + $0x98] sm:$0xff] }
 0x660   :  { %2042 = vmatpush.bf16.msrb.mxu0 %v8258_v9 }
 0x662   :  { %v1643_v50 = vpop.f32.mrf.mxu1 }
 0x663   :  { %v1681_v27 = vadd.f32 %v1665_v16, %v1643_v50  ;;  %v8256_v50 = vld [vmem:[#allocation12 + $0x90] sm:$0xff]  ;;  %v8255_v16 = vld [vmem:[#allocation12 + $0x88] sm:$0xff] }
 0x664   :  { %2043 = vmatpush.bf16.msrb.mxu0 %v8257_v52 }
 0x668   :  { %2044 = vmatpush.bf16.msrb.mxu0 %v8256_v50 }
 0x66a   :  { %v1645_v51 = vpop.f32.mrf.mxu1 }
 0x66b   :  { %v1682_v21 = vadd.f32 %v1666_v61, %v1645_v51  ;;  %v8254_v61 = vld [vmem:[#allocation12 + $0x80] sm:$0xff]  ;;  %v9830_v51 = vld [vmem:[#allocation6] sm:$0xff] }
 0x66c   :  { %2045 = vmatpush.bf16.msrb.mxu0 %v8255_v16 }
 0x66d   :  { %v1707_v62 = vpack.c.bf16 %v1682_v21, %v1681_v27 }
 0x66f   :  { %1804 = vmatmul.bf16.gmra.mxu2 %v1707_v62 }
 0x670   :  { %2046 = vmatpush.bf16.msrb.mxu0 %v8254_v61 }
 0x673   :  { %2047 = vmatmul.bf16.vlgmr.msrb.gmra.mxu0 %v9830_v51 }
 0x682   :  { %v1770_v33 = vpop.f32.mrf.mxu2 }
 0x683   :  { %v1771_v3 = vadd.f32 %v9814_v45, %v1770_v33 }
 0x685   :  { %v1810_v32 = vmax.f32 %v1771_v3, 0.0 }
 0x68a   :  { %v1772_v49 = vpop.f32.mrf.mxu2 }
 0x68b   :  { %v1773_v48 = vadd.f32 %v9814_v45, %v1772_v49  ;;  %v9835_v49 = vld [vmem:[#allocation6 + $0x8] sm:$0xff] }
 0x68c   :  { %2052 = vmatmul.bf16.gmra.mxu0 %v9835_v49 }
 0x68d   :  { %v1811_v35 = vmax.f32 %v1773_v48, 0.0 }
 0x68f   :  { %v1843_v13 = vpack.c.bf16 %v1811_v35, %v1810_v32  ;;  %v9840_v32 = vld [vmem:[#allocation6 + $0x10] sm:$0xff] }
 0x691   :  { %1912 = vmatmul.bf16.vlgmr.msra.gmra.mxu3 %v1843_v13 }
 0x692   :  { %v1775_v47 = vpop.f32.mrf.mxu2 }
 0x693   :  { %v1776_v8 = vadd.f32 %v9814_v45, %v1775_v47  ;;  %v9847_v47 = vld [vmem:[#allocation6 + $0x18] sm:$0xff] }
 0x694   :  { %12137 = vst [vmem:[#allocation45_spill] sm:$0xff] %v9847_v47 }
 0x695   :  { %v1812_v23 = vmax.f32 %v1776_v8, 0.0 }
 0x69a   :  { %v1777_v34 = vpop.f32.mrf.mxu2 }
 0x69b   :  { %v1778_v15 = vadd.f32 %v9814_v45, %v1777_v34  ;;  %v9854_v34 = vld [vmem:[#allocation6 + $0x20] sm:$0xff] }
 0x69c   :  { %2057 = vmatmul.bf16.gmra.mxu0 %v9840_v32  ;;  %12138 = vst [vmem:[#allocation46_spill] sm:$0xff] %v9854_v34 }
 0x69d   :  { %v1813_v41 = vmax.f32 %v1778_v15, 0.0 }
 0x69f   :  { %v1844_v53 = vpack.c.bf16 %v1813_v41, %v1812_v23  ;;  %v9861_v41 = vld [vmem:[#allocation6 + $0x28] sm:$0xff] }
 0x6a0   :  { %12139 = vst [vmem:[#allocation44_spill] sm:$0xff] %v9861_v41 }
 0x6a1   :  { %1917 = vmatmul.bf16.gmra.mxu3 %v1844_v53 }
 0x6a2   :  { %v1780_v2 = vpop.f32.mrf.mxu2 }
 0x6a3   :  { %v1781_v39 = vadd.f32 %v9814_v45, %v1780_v2 }
 0x6a5   :  { %v1814_v7 = vmax.f32 %v1781_v39, 0.0  ;;  %v9866_v39 = vld [vmem:[#allocation6 + $0x30] sm:$0xff] }
 0x6a6   :  { %12140 = vst [vmem:[#allocation43_spill] sm:$0xff] %v9866_v39 }
 0x6aa   :  { %v1782_v46 = vpop.f32.mrf.mxu2 }
 0x6ab   :  { %v1783_v14 = vadd.f32 %v9814_v45, %v1782_v46 }
 0x6ac   :  { %2062 = vmatmul.bf16.gmra.mxu0 %v9847_v47 }
 0x6ad   :  { %v1815_v58 = vmax.f32 %v1783_v14, 0.0  ;;  %v8269_v14 = vld [vmem:[#allocation15 + $0xb8] sm:$0xff] }
 0x6ae   :  { %2182 = vmatpush.bf16.msrb.mxu1 %v8269_v14 }
 0x6af   :  { %v1845_v12 = vpack.c.bf16 %v1815_v58, %v1814_v7  ;;  %v8268_v58 = vld [vmem:[#allocation15 + $0xb0] sm:$0xff] }
 0x6b1   :  { %1922 = vmatmul.bf16.gmra.mxu3 %v1845_v12  ;;  %v9869_v12 = vld [vmem:[#allocation6 + $0x38] sm:$0xff] }
 0x6b2   :  { %v1785_v63 = vpop.f32.mrf.mxu2  ;;  %12141 = vst [vmem:[#allocation41_spill] sm:$0xff] %v9869_v12  ;;  %2183 = vmatpush.bf16.msrb.mxu1 %v8268_v58 }
 0x6b3   :  { %v1786_v54 = vadd.f32 %v9814_v45, %v1785_v63  ;;  %v8267_v63 = vld [vmem:[#allocation15 + $0xa8] sm:$0xff] }
 0x6b5   :  { %v1816_v11 = vmax.f32 %v1786_v54, 0.0 }
 0x6b6   :  { %2184 = vmatpush.bf16.msrb.mxu1 %v8267_v63 }
 0x6ba   :  { %v1787_v36 = vpop.f32.mrf.mxu2 }
 0x6bb   :  { %v1788_v43 = vadd.f32 %v9814_v45, %v1787_v36  ;;  %v8266_v36 = vld [vmem:[#allocation15 + $0xa0] sm:$0xff] }
 0x6bc   :  { %2067 = vmatmul.bf16.gmra.mxu0 %v9854_v34  ;;  %2185 = vmatpush.bf16.msrb.mxu1 %v8266_v36 }
 0x6bd   :  { %v1817_v1 = vmax.f32 %v1788_v43, 0.0  ;;  %v8265_v43 = vld [vmem:[#allocation15 + $0x98] sm:$0xff] }
 0x6bf   :  { %v1846_v24 = vpack.c.bf16 %v1817_v1, %v1816_v11 }
 0x6c0   :  { %2186 = vmatpush.bf16.msrb.mxu1 %v8265_v43 }
 0x6c1   :  { %1927 = vmatmul.bf16.gmra.mxu3 %v1846_v24  ;;  %v9872_v24 = vld [vmem:[#allocation14 + $0x2] ss:$0 sm:$0xff] }
 0x6c2   :  { %v1790_v18 = vpop.f32.mrf.mxu2 }
 0x6c3   :  { %v1791_v31 = vadd.f32 %v9814_v45, %v1790_v18  ;;  %v8264_v18 = vld [vmem:[#allocation15 + $0x90] sm:$0xff] }
 0x6c4   :  { %2187 = vmatpush.bf16.msrb.mxu1 %v8264_v18 }
 0x6c5   :  { %v1818_v29 = vmax.f32 %v1791_v31, 0.0 }
 0x6ca   :  { %v1792_v20 = vpop.f32.mrf.mxu2 }
 0x6cb   :  { %v1793_v0 = vadd.f32 %v9814_v45, %v1792_v20  ;;  %v8263_v20 = vld [vmem:[#allocation15 + $0x88] sm:$0xff] }
 0x6cc   :  { %2072 = vmatmul.bf16.gmra.mxu0 %v9861_v41  ;;  %2188 = vmatpush.bf16.msrb.mxu1 %v8263_v20 }
 0x6cd   :  { %v1819_v56 = vmax.f32 %v1793_v0, 0.0 }
 0x6cf   :  { %v1847_v59 = vpack.c.bf16 %v1819_v56, %v1818_v29 }
 0x6d1   :  { %1932 = vmatmul.bf16.gmra.mxu3 %v1847_v59 }
 0x6d2   :  { %v1795_v26 = vpop.f32.mrf.mxu2 }
 0x6d3   :  { %v1796_v44 = vadd.f32 %v9814_v45, %v1795_v26  ;;  %v8262_v26 = vld [vmem:[#allocation15 + $0x80] sm:$0xff] }
 0x6d4   :  { %2189 = vmatpush.bf16.msrb.mxu1 %v8262_v26 }
 0x6d5   :  { %v1820_v19 = vmax.f32 %v1796_v44, 0.0 }
 0x6da   :  { %v1797_v37 = vpop.f32.mrf.mxu2 }
 0x6db   :  { %v1798_v4 = vadd.f32 %v9814_v45, %v1797_v37 }
 0x6dc   :  { %2077 = vmatmul.bf16.gmra.mxu0 %v9866_v39 }
 0x6dd   :  { %v1821_v38 = vmax.f32 %v1798_v4, 0.0 }
 0x6df   :  { %v1848_v30 = vpack.c.bf16 %v1821_v38, %v1820_v19 }
 0x6e1   :  { %1937 = vmatmul.bf16.gmra.mxu3 %v1848_v30 }
 0x6e2   :  { %v1800_v10 = vpop.f32.mrf.mxu2 }
 0x6e3   :  { %v1801_v6 = vadd.f32 %v9814_v45, %v1800_v10 }
 0x6e5   :  { %v1822_v5 = vmax.f32 %v1801_v6, 0.0 }
 0x6ea   :  { %v1802_v22 = vpop.f32.mrf.mxu2 }
 0x6eb   :  { %v1803_v55 = vadd.f32 %v9814_v45, %v1802_v22 }
 0x6ec   :  { %2082 = vmatmul.bf16.gmra.mxu0 %v9869_v12 }
 0x6ed   :  { %v1823_v60 = vmax.f32 %v1803_v55, 0.0 }
 0x6ef   :  { %v1849_v28 = vpack.c.bf16 %v1823_v60, %v1822_v5 }
 0x6f0   :  { %v2048_v1 = vpop.f32.mrf.mxu0 }
 0x6f1   :  { %1942 = vmatmul.bf16.gmra.mxu3 %v1849_v28  ;;  %v2049_v31 = vadd.f32 %v9872_v24, %v2048_v1 }
 0x6f2   :  { %v1805_v25 = vpop.f32.mrf.mxu2 }
 0x6f3   :  { %v1806_v27 = vadd.f32 %v9814_v45, %v1805_v25  ;;  %v2088_v56 = vmax.f32 %v2049_v31, 0.0 }
 0x6f5   :  { %v1824_v62 = vmax.f32 %v1806_v27, 0.0 }
 0x6f8   :  { %v2050_v29 = vpop.f32.mrf.mxu0 }
 0x6f9   :  { %v2051_v59 = vadd.f32 %v9872_v24, %v2050_v29 }
 0x6fa   :  { %v1807_v21 = vpop.f32.mrf.mxu2 }
 0x6fb   :  { %v1808_v17 = vadd.f32 %v9814_v45, %v1807_v21  ;;  %v2089_v42 = vmax.f32 %v2051_v59, 0.0 }
 0x6fd   :  { %v1825_v33 = vmax.f32 %v1808_v17, 0.0  ;;  %v2121_v44 = vpack.c.bf16 %v2089_v42, %v2088_v56 }
 0x6ff   :  { %v1850_v3 = vpack.c.bf16 %v1825_v33, %v1824_v62  ;;  %2190 = vmatmul.bf16.vlgmr.msrb.gmra.mxu1 %v2121_v44 }
 0x701   :  { %1947 = vmatmul.bf16.gmra.mxu3 %v1850_v3 }
 0x709   :  { %v2053_v4 = vpop.f32.mrf.mxu0 }
 0x70a   :  { %v2054_v19 = vadd.f32 %v9872_v24, %v2053_v4 }
 0x70c   :  { %v2090_v52 = vmax.f32 %v2054_v19, 0.0 }
 0x711   :  { %v2055_v10 = vpop.f32.mrf.mxu0 }
 0x712   :  { %v2056_v6 = vadd.f32 %v9872_v24, %v2055_v10 }
 0x714   :  { %v9838_v48 = vpop.f32.mrf.mxu3  ;;  %v2091_v5 = vmax.f32 %v2056_v6, 0.0 }
 0x716   :  { %v2122_v25 = vpack.c.bf16 %v2091_v5, %v2090_v52  ;;  %v12142_v5 = vld [vmem:[#allocation47_spill] sm:$0xff] }
 0x718   :  { %2195 = vmatmul.bf16.gmra.mxu1 %v2122_v25 }
 0x719   :  { %v2058_v33 = vpop.f32.mrf.mxu0 }
 0x71a   :  { %v2059_v63 = vadd.f32 %v9872_v24, %v2058_v33 }
 0x71c   :  { %v9843_v35 = vpop.f32.mrf.mxu3  ;;  %v2092_v1 = vmax.f32 %v2059_v63, 0.0 }
 0x71d   :  { %v9947_v26 = vadd.f32 %v8502_v57, %v9843_v35 }
 0x71f   :  { %v11864_v4 = vmax.f32 %v9947_v26, 0.0 }
 0x724   :  { %v9845_v13 = vpop.f32.mrf.mxu3 }
 0x725   :  { %v9943_v59 = vadd.f32 %v8502_v57, %v9845_v13 }
 0x727   :  { %v11863_v13 = vmax.f32 %v9943_v59, 0.0 }
 0x72c   :  { %v9850_v45 = vpop.f32.mrf.mxu3 }
 0x734   :  { %v9852_v8 = vpop.f32.mrf.mxu3 }
 0x73c   :  { %v9857_v15 = vpop.f32.mrf.mxu3 }
 0x73d   :  { %v9922_v36 = vadd.f32 %v8502_v57, %v9857_v15  ;;  %v9935_v15 = vadd.f32 %v8502_v57, %v9850_v45 }
 0x73f   :  { %v11862_v45 = vmax.f32 %v9935_v15, 0.0 }
 0x741   :  { %v2248_v35 = vpack.c.bf16 %v11862_v45, %v11863_v13 }
 0x744   :  { %v9859_v23 = vpop.f32.mrf.mxu3 }
 0x74c   :  { %v9864_v53 = vpop.f32.mrf.mxu3 }
 0x754   :  { %v1933_v2 = vpop.f32.mrf.mxu3 }
 0x755   :  { %v9905_v3 = vadd.f32 %v8502_v57, %v1933_v2 }
 0x757   :  { %v11857_v2 = vmax.f32 %v9905_v3, 0.0 }
 0x75c   :  { %v1935_v46 = vpop.f32.mrf.mxu3 }
 0x75d   :  { %v9898_v21 = vadd.f32 %v8502_v57, %v1935_v46 }
 0x75f   :  { %v11856_v58 = vmax.f32 %v9898_v21, 0.0 }
 0x761   :  { %v2251_v43 = vpack.c.bf16 %v11856_v58, %v11857_v2 }
 0x764   :  { %v1938_v7 = vpop.f32.mrf.mxu3 }
 0x765   :  { %v9895_v61 = vadd.f32 %v8502_v57, %v1938_v7  ;;  %v9909_v7 = vadd.f32 %v8502_v57, %v9864_v53 }
 0x767   :  { %v11855_v14 = vmax.f32 %v9895_v61, 0.0  ;;  %v11858_v53 = vmax.f32 %v9909_v7, 0.0 }
 0x76c   :  { %v1940_v54 = vpop.f32.mrf.mxu3 }
 0x76d   :  { %v9888_v60 = vadd.f32 %v8502_v57, %v1940_v54  ;;  %v9918_v54 = vadd.f32 %v8502_v57, %v9859_v23  ;;  %v9931_v23 = vadd.f32 %v8502_v57, %v9852_v8 }
 0x76f   :  { %v11854_v17 = vmax.f32 %v9888_v60, 0.0  ;;  %v11859_v31 = vmax.f32 %v9918_v54, 0.0  ;;  %v11861_v8 = vmax.f32 %v9931_v23, 0.0 }
 0x771   :  { %v2252_v46 = vpack.c.bf16 %v11854_v17, %v11855_v14  ;;  %v2250_v29 = vpack.c.bf16 %v11858_v53, %v11859_v31 }
 0x774   :  { %v1943_v11 = vpop.f32.mrf.mxu3 }
 0x775   :  { %v9884_v50 = vadd.f32 %v8502_v57, %v1943_v11  ;;  %v2060_v11 = vpop.f32.mrf.mxu0 }
 0x776   :  { %v2061_v18 = vadd.f32 %v9872_v24, %v2060_v11  ;;  %v12143_v11 = vld [vmem:[#allocation48_spill] sm:$0xff] }
 0x777   :  { %v11853_v27 = vmax.f32 %v9884_v50, 0.0 }
 0x778   :  { %v2093_v20 = vmax.f32 %v2061_v18, 0.0 }
 0x77a   :  { %v2123_v56 = vpack.c.bf16 %v2093_v20, %v2092_v1 }
 0x77c   :  { %v1945_v0 = vpop.f32.mrf.mxu3  ;;  %2200 = vmatmul.bf16.gmra.mxu1 %v2123_v56 }
 0x77d   :  { %v9879_v40 = vadd.f32 %v8502_v57, %v1945_v0  ;;  %v11860_v0 = vmax.f32 %v9922_v36, 0.0  ;;  %v2063_v44 = vpop.f32.mrf.mxu0 }
 0x77e   :  { %v2064_v19 = vadd.f32 %v9872_v24, %v2063_v44 }
 0x77f   :  { %v11852_v16 = vmax.f32 %v9879_v40, 0.0  ;;  %v2249_v42 = vpack.c.bf16 %v11860_v0, %v11861_v8 }
 0x780   :  { %v2094_v10 = vmax.f32 %v2064_v19, 0.0 }
 0x781   :  { %v2253_v62 = vpack.c.bf16 %v11852_v16, %v11853_v27 }
 0x784   :  { %v1948_v37 = vpop.f32.mrf.mxu3 }
 0x785   :  { %v9877_v38 = vadd.f32 %v8502_v57, %v1948_v37  ;;  %v9955_v37 = vadd.f32 %v8502_v57, %v9838_v48 }
 0x787   :  { %v11851_v22 = vmax.f32 %v9877_v38, 0.0 }
 0x78c   :  { %v1950_v30 = vpop.f32.mrf.mxu3 }
 0x78d   :  { %v9881_v9 = vadd.f32 %v8502_v57, %v1950_v30  ;;  %v11865_v30 = vmax.f32 %v9955_v37, 0.0  ;;  %v2065_v57 = vpop.f32.mrf.mxu0 }
 0x78e   :  { %v2066_v52 = vadd.f32 %v9872_v24, %v2065_v57 }
 0x78f   :  { %v11850_v55 = vmax.f32 %v9881_v9, 0.0  ;;  %v2247_v48 = vpack.c.bf16 %v11864_v4, %v11865_v30 }
 0x790   :  { %v2095_v6 = vmax.f32 %v2066_v52, 0.0 }
 0x791   :  { %v2254_v28 = vpack.c.bf16 %v11850_v55, %v11851_v22 }
 0x793   :  { %2255 = vmatpush.bf16.msrb.mxu2 %v2254_v28  ;;  %v2124_v28 = vpack.c.bf16 %v2095_v6, %v2094_v10 }
 0x795   :  { %2205 = vmatmul.bf16.gmra.mxu1 %v2124_v28  ;;  %v2068_v25 = vpop.f32.mrf.mxu0  ;;  %v12145_v28 = vld [vmem:[#allocation50_spill] sm:$0xff] }
 0x797   :  { %2256 = vmatpush.bf16.msrb.mxu2 %v2253_v62  ;;  %v2069_v62 = vadd.f32 %v9872_v24, %v2068_v25 }
 0x79b   :  { %2257 = vmatpush.bf16.msrb.mxu2 %v2252_v46  ;;  %v2096_v46 = vmax.f32 %v2069_v62, 0.0 }
 0x79d   :  { %v2070_v33 = vpop.f32.mrf.mxu0 }
 0x79e   :  { %v2071_v63 = vadd.f32 %v9872_v24, %v2070_v33 }
 0x79f   :  { %2258 = vmatpush.bf16.msrb.mxu2 %v2251_v43 }
 0x7a0   :  { %v2097_v43 = vmax.f32 %v2071_v63, 0.0 }
 0x7a2   :  { %v2125_v1 = vpack.c.bf16 %v2097_v43, %v2096_v46 }
 0x7a3   :  { %2259 = vmatpush.bf16.msrb.mxu2 %v2250_v29 }
 0x7a5   :  { %2210 = vmatmul.bf16.gmra.mxu1 %v2125_v1  ;;  %v2073_v18 = vpop.f32.mrf.mxu0  ;;  %v12146_v1 = vld [vmem:[#allocation51_spill] sm:$0xff] }
 0x7a6   :  { %v2074_v20 = vadd.f32 %v9872_v24, %v2073_v18 }
 0x7a7   :  { %2260 = vmatpush.bf16.msrb.mxu2 %v2249_v42 }
 0x7a8   :  { %v2098_v56 = vmax.f32 %v2074_v20, 0.0  ;;  %v12147_v20 = vld [vmem:[#allocation52_spill] sm:$0xff] }
 0x7ab   :  { %2261 = vmatpush.bf16.msrb.mxu2 %v2248_v35  ;;  %v12144_v35 = vld [vmem:[#allocation49_spill] sm:$0xff] }
 0x7ad   :  { %v2075_v29 = vpop.f32.mrf.mxu0 }
 0x7ae   :  { %v2076_v42 = vadd.f32 %v9872_v24, %v2075_v29  ;;  %v2191_v29 = vpop.f32.mrf.mxu1 }
 0x7af   :  { %2262 = vmatpush.bf16.msrb.mxu2 %v2247_v48 }
 0x7b0   :  { %v2099_v44 = vmax.f32 %v2076_v42, 0.0 }
 0x7b2   :  { %2263 = vmatmul.bf16.vlgmr.msrb.gmra.mxu2 %v12142_v5  ;;  %v2126_v19 = vpack.c.bf16 %v2099_v44, %v2098_v56  ;;  %v9984_v56 = vld [vmem:[#allocation8 + $0x30] sm:$0xff]  ;;  %v9989_v44 = vld [vmem:[#allocation8 + $0x38] sm:$0xff] }
 0x7b3   :  { %12148 = vst [vmem:[#allocation40_spill] sm:$0xff] %v9984_v56 }
 0x7b4   :  { %12149 = vst [vmem:[#allocation42_spill] sm:$0xff] %v9989_v44 }
 0x7b5   :  { %2215 = vmatmul.bf16.gmra.mxu1 %v2126_v19  ;;  %v2078_v48 = vpop.f32.mrf.mxu0 }
 0x7b6   :  { %v2079_v57 = vadd.f32 %v9872_v24, %v2078_v48  ;;  %v9987_v42 = vpop.f32.mrf.mxu1 }
 0x7b8   :  { %v2100_v52 = vmax.f32 %v2079_v57, 0.0 }
 0x7bd   :  { %v2080_v10 = vpop.f32.mrf.mxu0 }
 0x7be   :  { %v2081_v6 = vadd.f32 %v9872_v24, %v2080_v10 }
 0x7c0   :  { %v2101_v5 = vmax.f32 %v2081_v6, 0.0 }
 0x7c2   :  { %2268 = vmatmul.bf16.gmra.mxu2 %v12143_v11  ;;  %v2127_v25 = vpack.c.bf16 %v2101_v5, %v2100_v52 }
 0x7c5   :  { %2220 = vmatmul.bf16.gmra.mxu1 %v2127_v25  ;;  %v2083_v62 = vpop.f32.mrf.mxu0 }
 0x7c6   :  { %v2084_v33 = vadd.f32 %v9872_v24, %v2083_v62 }
 0x7c8   :  { %v2102_v63 = vmax.f32 %v2084_v33, 0.0 }
 0x7cd   :  { %v2085_v46 = vpop.f32.mrf.mxu0 }
 0x7ce   :  { %v2086_v43 = vadd.f32 %v9872_v24, %v2085_v46  ;;  %v9995_v24 = vld [vmem:[%s11801_s8 + $0x2] ss:$0 sm:$0xff] }
 0x7cf   :  { %v2192_v48 = vadd.f32 %v9995_v24, %v2191_v29 }
 0x7d0   :  { %v2103_v11 = vmax.f32 %v2086_v43, 0.0 }
 0x7d1   :  { %v2231_v57 = vmax.f32 %v2192_v48, 0.0 }
 0x7d2   :  { %2273 = vmatmul.bf16.gmra.mxu2 %v12144_v35  ;;  %v2128_v18 = vpack.c.bf16 %v2103_v11, %v2102_v63  ;;  %v2196_v35 = vpop.f32.mrf.mxu1 }
 0x7d5   :  { %2225 = vmatmul.bf16.gmra.mxu1 %v2128_v18 }
 0x7da   :  { %v9997_v19 = vpop.f32.mrf.mxu1 }
 0x7e2   :  { %2278 = vmatmul.bf16.gmra.mxu2 %v12145_v28  ;;  %v2197_v28 = vadd.f32 %v9995_v24, %v2196_v35 }
 0x7e4   :  { %v2233_v62 = vmax.f32 %v2197_v28, 0.0 }
 0x7f2   :  { %2283 = vmatmul.bf16.gmra.mxu2 %v12146_v1 }
 0x7f9   :  { %v2201_v6 = vpop.f32.mrf.mxu1 }
 0x7fa   :  { %v2202_v11 = vadd.f32 %v9995_v24, %v2201_v6 }
 0x7fc   :  { %v2235_v1 = vmax.f32 %v2202_v11, 0.0 }
 0x801   :  { %v10005_v25 = vpop.f32.mrf.mxu1 }
 0x802   :  { %2288 = vmatmul.bf16.gmra.mxu2 %v12147_v20 }
 0x812   :  { %2293 = vmatmul.bf16.gmra.mxu2 %v9984_v56  ;;  %v2206_v63 = vpop.f32.mrf.mxu1 }
 0x813   :  { %v2207_v35 = vadd.f32 %v9995_v24, %v2206_v63 }
 0x81a   :  { %v2208_v20 = vpop.f32.mrf.mxu1 }
 0x822   :  { %2298 = vmatmul.bf16.gmra.mxu2 %v9989_v44 }
 0x835   :  { %v2264_v10 = vpop.f32.mrf.mxu2 }
 0x836   :  { %v10000_v52 = vadd.f32 %v2264_v10, %v2231_v57  ;;  %v2211_v57 = vpop.f32.mrf.mxu1  ;;  %v2237_v10 = vmax.f32 %v2207_v35, 0.0 }
 0x837   :  { %v2212_v22 = vadd.f32 %v9995_v24, %v2211_v57 }
 0x839   :  { %v2239_v6 = vmax.f32 %v2212_v22, 0.0 }
 0x83d   :  { %v10002_v5 = vpop.f32.mrf.mxu2 }
 0x845   :  { %v2269_v33 = vpop.f32.mrf.mxu2 }
 0x846   :  { %v10007_v46 = vadd.f32 %v2269_v33, %v2233_v62  ;;  %v2213_v62 = vpop.f32.mrf.mxu1 }
 0x84d   :  { %v10009_v43 = vpop.f32.mrf.mxu2 }
 0x84e   :  { %v2216_v16 = vpop.f32.mrf.mxu1 }
 0x84f   :  { %v2217_v30 = vadd.f32 %v9995_v24, %v2216_v16 }
 0x851   :  { %v2241_v34 = vmax.f32 %v2217_v30, 0.0 }
 0x855   :  { %v2274_v18 = vpop.f32.mrf.mxu2 }
 0x856   :  { %v10012_v29 = vadd.f32 %v2274_v18, %v2235_v1  ;;  %v2218_v17 = vpop.f32.mrf.mxu1 }
 0x85d   :  { %v10014_v48 = vpop.f32.mrf.mxu2 }
 0x85e   :  { %v2221_v14 = vpop.f32.mrf.mxu1 }
 0x85f   :  { %v2222_v22 = vadd.f32 %v9995_v24, %v2221_v14 }
 0x861   :  { %v2243_v44 = vmax.f32 %v2222_v22, 0.0 }
 0x865   :  { %v2279_v28 = vpop.f32.mrf.mxu2 }
 0x866   :  { %v10017_v55 = vadd.f32 %v2279_v28, %v2237_v10  ;;  %v2223_v2 = vpop.f32.mrf.mxu1 }
 0x867   :  { %v2224_v0 = vadd.f32 %v9995_v24, %v2223_v2 }
 0x869   :  { %v2244_v8 = vmax.f32 %v2224_v0, 0.0 }
 0x86d   :  { %v2281_v33 = vpop.f32.mrf.mxu2 }
 0x86e   :  { %v2226_v63 = vpop.f32.mrf.mxu1 }
 0x86f   :  { %v2227_v28 = vadd.f32 %v9995_v24, %v2226_v63  ;;  %v2214_v63 = vadd.f32 %v9995_v24, %v2213_v62 }
 0x871   :  { %v2240_v0 = vmax.f32 %v2214_v63, 0.0  ;;  %v8277_v63 = vld [vmem:[#allocation17 + $0xb8] sm:$0xff] }
 0x872   :  { %2490 = vmatpush.bf16.msra.mxu0 %v8277_v63 }
 0x875   :  { %v2284_v11 = vpop.f32.mrf.mxu2 }
 0x876   :  { %v2285_v27 = vadd.f32 %v2284_v11, %v2239_v6  ;;  %v2228_v31 = vpop.f32.mrf.mxu1  ;;  %v2245_v6 = vmax.f32 %v2227_v28, 0.0  ;;  %v2219_v11 = vadd.f32 %v9995_v24, %v2218_v17  ;;  %v2209_v17 = vadd.f32 %v9995_v24, %v2208_v20 }
 0x877   :  { %v2229_v57 = vadd.f32 %v9995_v24, %v2228_v31  ;;  %v2310_v20 = vmax.f32 %v10017_v55, 0.0  ;;  %v2304_v55 = vmax.f32 %v10000_v52, 0.0  ;;  %v10053_v52 = vld [vmem:[#allocation9 + $0x20] sm:$0xff] }
 0x878   :  { %v2242_v39 = vmax.f32 %v2219_v11, 0.0  ;;  %v2312_v30 = vmax.f32 %v2285_v27, 0.0 }
 0x879   :  { %v2246_v45 = vmax.f32 %v2229_v57, 0.0 }
 0x87d   :  { %v2286_v1 = vpop.f32.mrf.mxu2 }
 0x87e   :  { %v2287_v16 = vadd.f32 %v2286_v1, %v2240_v0  ;;  %v10059_v0 = vld [vmem:[#allocation9 + $0x30] sm:$0xff] }
 0x885   :  { %v2289_v18 = vpop.f32.mrf.mxu2 }
 0x88d   :  { %v2291_v58 = vpop.f32.mrf.mxu2 }
 0x88e   :  { %v2292_v14 = vadd.f32 %v2291_v58, %v2242_v39 }
 0x890   :  { %v2315_v22 = vmax.f32 %v2292_v14, 0.0  ;;  %v8275_v14 = vld [vmem:[#allocation17 + $0xa8] sm:$0xff] }
 0x895   :  { %v2294_v53 = vpop.f32.mrf.mxu2 }
 0x896   :  { %v2295_v2 = vadd.f32 %v2294_v53, %v2243_v44  ;;  %v2194_v44 = vadd.f32 %v9995_v24, %v9987_v42 }
 0x898   :  { %v2316_v57 = vmax.f32 %v2295_v2, 0.0  ;;  %v10056_v2 = vld [vmem:[#allocation9 + $0x28] sm:$0xff] }
 0x89d   :  { %v2296_v35 = vpop.f32.mrf.mxu2 }
 0x89e   :  { %v2297_v56 = vadd.f32 %v2296_v35, %v2244_v8 }
 0x8a0   :  { %v2317_v28 = vmax.f32 %v2297_v56, 0.0 }
 0x8a2   :  { %v2326_v8 = vpack.c.bf16 %v2317_v28, %v2316_v57  ;;  %v8274_v28 = vld [vmem:[#allocation17 + $0xa0] sm:$0xff]  ;;  %v8271_v57 = vld [vmem:[#allocation17 + $0x88] sm:$0xff] }
 0x8a5   :  { %v2299_v10 = vpop.f32.mrf.mxu2 }
 0x8a6   :  { %v2300_v13 = vadd.f32 %v2299_v10, %v2245_v6  ;;  %v2290_v10 = vadd.f32 %v2289_v18, %v2241_v34  ;;  %v2232_v18 = vmax.f32 %v2194_v44, 0.0  ;;  %v2306_v6 = vmax.f32 %v10007_v46, 0.0  ;;  %v10050_v46 = vld [vmem:[#allocation9 + $0x18] sm:$0xff] }
 0x8a7   :  { %v12153_v44 = vmax.f32 %v9935_v15, 0.0 }
 0x8a8   :  { %v2318_v41 = vmax.f32 %v2300_v13, 0.0  ;;  %v2314_v53 = vmax.f32 %v2290_v10, 0.0  ;;  %v2313_v13 = vmax.f32 %v2287_v16, 0.0  ;;  %v2267_v27 = vadd.f32 %v10002_v5, %v2232_v18  ;;  %v10047_v5 = vld [vmem:[#allocation9 + $0x10] sm:$0xff]  ;;  %v8272_v10 = vld [vmem:[#allocation17 + $0x90] sm:$0xff] }
 0x8a9   :  { %v8270_v16 = vld [vmem:[#allocation17 + $0x80] sm:$0xff] }
 0x8aa   :  { %v2325_v39 = vpack.c.bf16 %v2315_v22, %v2314_v53  ;;  %v2324_v56 = vpack.c.bf16 %v2313_v13, %v2312_v30  ;;  %v2305_v42 = vmax.f32 %v2267_v27, 0.0  ;;  %v10062_v22 = vld [vmem:[#allocation9 + $0x38] sm:$0xff] }
 0x8ac   :  { %v2320_v11 = vpack.c.bf16 %v2305_v42, %v2304_v55  ;;  %v12156_v42 = vmax.f32 %v9918_v54, 0.0  ;;  %v12157_v55 = vmax.f32 %v9909_v7, 0.0 }
 0x8ad   :  { %v2301_v4 = vpop.f32.mrf.mxu2 }
 0x8ae   :  { %v2302_v12 = vadd.f32 %v2301_v4, %v2246_v45  ;;  %v2204_v45 = vadd.f32 %v9995_v24, %v10005_v25  ;;  %v2238_v4 = vmax.f32 %v2209_v17, 0.0  ;;  %v8273_v17 = vld [vmem:[#allocation17 + $0x98] sm:$0xff] }
 0x8b0   :  { %v2319_v31 = vmax.f32 %v2302_v12, 0.0  ;;  %v2282_v12 = vadd.f32 %v2281_v33, %v2238_v4  ;;  %v2236_v58 = vmax.f32 %v2204_v45, 0.0  ;;  %v10065_v45 = vstv %s2378_s7 }
 0x8b1   :  { %v12150_v4 = vmax.f32 %v9955_v37, 0.0  ;;  %v2383_v37 = vmul.f32 %v10065_v45, %v12153_v44  ;;  %v8282_v44 = vld [vmem:[#allocation20 + $0xa0] sm:$0xff] }
 0x8b2   :  { %v2327_v47 = vpack.c.bf16 %v2319_v31, %v2318_v41  ;;  %v2199_v41 = vadd.f32 %v9995_v24, %v9997_v19  ;;  %v2311_v34 = vmax.f32 %v2282_v12, 0.0  ;;  %v2308_v19 = vmax.f32 %v10012_v29, 0.0  ;;  %v10044_v29 = vld [vmem:[#allocation9 + $0x8] sm:$0xff]  ;;  %v8276_v31 = vld [vmem:[#allocation17 + $0xb0] sm:$0xff] }
 0x8b3   :  { %2491 = vmatpush.bf16.msra.mxu0 %v8276_v31  ;;  %v2380_v53 = vmul.f32 %v10065_v45, %v12150_v4  ;;  %v12151_v12 = vmax.f32 %v9947_v26, 0.0 }
 0x8b4   :  { %2328 = vmatpush.bf16.msrb.mxu3 %v2327_v47  ;;  %v2277_v47 = vadd.f32 %v10014_v48, %v2236_v58  ;;  %v2234_v25 = vmax.f32 %v2199_v41, 0.0  ;;  %v2323_v1 = vpack.c.bf16 %v2311_v34, %v2310_v20  ;;  %v12152_v34 = vmax.f32 %v9943_v59, 0.0 }
 0x8b5   :  { %v2381_v13 = vmul.f32 %v10065_v45, %v12151_v12 }
 0x8b6   :  { %v2272_v62 = vadd.f32 %v10009_v43, %v2234_v25  ;;  %v2309_v33 = vmax.f32 %v2277_v47, 0.0  ;;  %v10041_v43 = vld [vmem:[#allocation9] sm:$0xff] }
 0x8b7   :  { %2492 = vmatpush.bf16.msra.mxu0 %v8275_v14 }
 0x8b8   :  { %2329 = vmatpush.bf16.msrb.mxu3 %v2326_v8  ;;  %v2307_v48 = vmax.f32 %v2272_v62, 0.0  ;;  %v2322_v35 = vpack.c.bf16 %v2309_v33, %v2308_v19  ;;  %v12155_v19 = vmax.f32 %v9922_v36, 0.0 }
 0x8ba   :  { %v2321_v24 = vpack.c.bf16 %v2307_v48, %v2306_v6  ;;  %v2385_v59 = vmul.f32 %v10065_v45, %v12155_v19 }
 0x8bb   :  { %2493 = vmatpush.bf16.msra.mxu0 %v8274_v28  ;;  %v12158_v28 = vmax.f32 %v9905_v3, 0.0 }
 0x8bc   :  { %2330 = vmatpush.bf16.msrb.mxu3 %v2325_v39 }
 0x8bf   :  { %2494 = vmatpush.bf16.msra.mxu0 %v8273_v17  ;;  %v2388_v17 = vmul.f32 %v10065_v45, %v12158_v28 }
 0x8c0   :  { %2331 = vmatpush.bf16.msrb.mxu3 %v2324_v56  ;;  %v2382_v56 = vmul.f32 %v10065_v45, %v12152_v34  ;;  %v8283_v34 = vld [vmem:[#allocation20 + $0xa8] sm:$0xff] }
 0x8c3   :  { %2495 = vmatpush.bf16.msra.mxu0 %v8272_v10  ;;  %v12159_v10 = vmax.f32 %v9898_v21, 0.0 }
 0x8c4   :  { %2332 = vmatpush.bf16.msrb.mxu3 %v2323_v1  ;;  %v12154_v1 = vmax.f32 %v9931_v23, 0.0  ;;  %v2387_v23 = vmul.f32 %v10065_v45, %v12157_v55 }
 0x8c5   :  { %v2389_v54 = vmul.f32 %v10065_v45, %v12159_v10 }
 0x8c6   :  { %v2384_v18 = vmul.f32 %v10065_v45, %v12154_v1 }
 0x8c7   :  { %2496 = vmatpush.bf16.msra.mxu0 %v8271_v57 }
 0x8c8   :  { %2333 = vmatpush.bf16.msrb.mxu3 %v2322_v35 }
 0x8cb   :  { %2497 = vmatpush.bf16.msra.mxu0 %v8270_v16 }
 0x8cc   :  { %2334 = vmatpush.bf16.msrb.mxu3 %v2321_v24  ;;  %v2386_v24 = vmul.f32 %v10065_v45, %v12156_v42 }
 0x8d0   :  { %2335 = vmatpush.bf16.msrb.mxu3 %v2320_v11 }
 0x8d3   :  { %2336 = vmatmul.bf16.vlgmr.msrb.gmra.mxu3 %v10041_v43 }
 0x8e3   :  { %2341 = vmatmul.bf16.gmra.mxu3 %v10044_v29 }
 0x8f3   :  { %2346 = vmatmul.bf16.gmra.mxu3 %v10047_v5 }
 0x903   :  { %2351 = vmatmul.bf16.gmra.mxu3 %v10050_v46 }
 0x913   :  { %2356 = vmatmul.bf16.gmra.mxu3 %v10053_v52 }
 0x923   :  { %2361 = vmatmul.bf16.gmra.mxu3 %v10056_v2 }
 0x933   :  { %2366 = vmatmul.bf16.gmra.mxu3 %v10059_v0 }
 0x943   :  { %2371 = vmatmul.bf16.gmra.mxu3 %v10062_v22 }
 0x956   :  { %v2337_v8 = vpop.f32.mrf.mxu3 }
 0x957   :  { %v2396_v41 = vadd.f32 %v2380_v53, %v2337_v8  ;;  %v12160_v53 = vmax.f32 %v9895_v61, 0.0  ;;  %v12162_v61 = vmax.f32 %v9884_v50, 0.0  ;;  %v12164_v50 = vmax.f32 %v9877_v38, 0.0 }
 0x959   :  { %v2390_v12 = vmul.f32 %v10065_v45, %v12160_v53 }
 0x95e   :  { %v2339_v39 = vpop.f32.mrf.mxu3 }
 0x95f   :  { %v2397_v58 = vadd.f32 %v2381_v13, %v2339_v39  ;;  %v12161_v13 = vmax.f32 %v9888_v60, 0.0  ;;  %v2392_v60 = vmul.f32 %v10065_v45, %v12162_v61  ;;  %v8291_v61 = vld [vmem:[#allocation12 + $0xe8] sm:$0xff] }
 0x961   :  { %v2429_v30 = vpack.c.bf16 %v2397_v58, %v2396_v41  ;;  %v2391_v3 = vmul.f32 %v10065_v45, %v12161_v13  ;;  %v8285_v41 = vld [vmem:[#allocation20 + $0xb8] sm:$0xff] }
 0x962   :  { %2633 = vmatpush.bf16.msra.mxu1 %v8285_v41 }
 0x963   :  { %2498 = vmatmul.bf16.vlgmr.msra.gmra.mxu0 %v2429_v30 }
 0x966   :  { %v2342_v47 = vpop.f32.mrf.mxu3 }
 0x967   :  { %v2398_v20 = vadd.f32 %v2382_v56, %v2342_v47  ;;  %v8284_v47 = vld [vmem:[#allocation20 + $0xb0] sm:$0xff] }
 0x968   :  { %2634 = vmatpush.bf16.msra.mxu1 %v8284_v47 }
 0x96c   :  { %2635 = vmatpush.bf16.msra.mxu1 %v8283_v34  ;;  %v8293_v34 = vld [vmem:[#allocation12 + $0xf8] sm:$0xff] }
 0x96d   :  { %2768 = vmatpush.bf16.msra.mxu2 %v8293_v34  ;;  %v8297_v34 = vld [vmem:[#allocation15 + $0xd8] sm:$0xff] }
 0x96e   :  { %v2344_v25 = vpop.f32.mrf.mxu3 }
 0x96f   :  { %v2399_v62 = vadd.f32 %v2383_v37, %v2344_v25  ;;  %v12163_v37 = vmax.f32 %v9879_v40, 0.0  ;;  %v2394_v40 = vmul.f32 %v10065_v45, %v12164_v50 }
 0x970   :  { %2636 = vmatpush.bf16.msra.mxu1 %v8282_v44  ;;  %v8292_v44 = vld [vmem:[#allocation12 + $0xf0] sm:$0xff] }
 0x971   :  { %v2430_v26 = vpack.c.bf16 %v2399_v62, %v2398_v20  ;;  %v2393_v25 = vmul.f32 %v10065_v45, %v12163_v37  ;;  %v8281_v62 = vld [vmem:[#allocation20 + $0x98] sm:$0xff]  ;;  %2769 = vmatpush.bf16.msra.mxu2 %v8292_v44  ;;  %v10159_v44 = vld [vmem:[#allocation14 + $0x3] ss:$0 sm:$0xff] }
 0x973   :  { %2503 = vmatmul.bf16.gmra.mxu0 %v2430_v26 }
 0x974   :  { %2637 = vmatpush.bf16.msra.mxu1 %v8281_v62 }
 0x975   :  { %2770 = vmatpush.bf16.msra.mxu2 %v8291_v61  ;;  %v8296_v61 = vld [vmem:[#allocation15 + $0xd0] sm:$0xff] }
 0x976   :  { %v2347_v33 = vpop.f32.mrf.mxu3 }
 0x977   :  { %v2400_v48 = vadd.f32 %v2384_v18, %v2347_v33  ;;  %v8280_v18 = vld [vmem:[#allocation20 + $0x90] sm:$0xff] }
 0x978   :  { %2638 = vmatpush.bf16.msra.mxu1 %v8280_v18 }
 0x97e   :  { %v2349_v27 = vpop.f32.mrf.mxu3 }
 0x97f   :  { %v2401_v35 = vadd.f32 %v2385_v59, %v2349_v27  ;;  %v8279_v59 = vld [vmem:[#allocation20 + $0x88] sm:$0xff]  ;;  %v8278_v27 = vld [vmem:[#allocation20 + $0x80] sm:$0xff] }
 0x980   :  { %2639 = vmatpush.bf16.msra.mxu1 %v8279_v59  ;;  %v8287_v59 = vld [vmem:[#allocation12 + $0xc8] sm:$0xff] }
 0x981   :  { %v2431_v15 = vpack.c.bf16 %v2401_v35, %v2400_v48  ;;  %v12165_v48 = vmax.f32 %v9881_v9, 0.0 }
 0x983   :  { %2508 = vmatmul.bf16.gmra.mxu0 %v2431_v15  ;;  %v2395_v35 = vmul.f32 %v10065_v45, %v12165_v48  ;;  %v8286_v48 = vld [vmem:[#allocation12 + $0xc0] sm:$0xff] }
 0x984   :  { %2640 = vmatpush.bf16.msra.mxu1 %v8278_v27 }
 0x986   :  { %v2352_v6 = vpop.f32.mrf.mxu3 }
 0x987   :  { %v2402_v63 = vadd.f32 %v2386_v24, %v2352_v6 }
 0x98e   :  { %v2354_v11 = vpop.f32.mrf.mxu3 }
 0x98f   :  { %v2403_v31 = vadd.f32 %v2387_v23, %v2354_v11  ;;  %v10115_v23 = vld [vmem:[#allocation18 + $0x2] ss:$0 sm:$0xff] }
 0x991   :  { %v2432_v36 = vpack.c.bf16 %v2403_v31, %v2402_v63 }
 0x993   :  { %2513 = vmatmul.bf16.gmra.mxu0 %v2432_v36 }
 0x996   :  { %v2357_v14 = vpop.f32.mrf.mxu3 }
 0x997   :  { %v2404_v16 = vadd.f32 %v2388_v17, %v2357_v14 }
 0x99e   :  { %v2359_v57 = vpop.f32.mrf.mxu3 }
 0x99f   :  { %v2405_v8 = vadd.f32 %v2389_v54, %v2359_v57 }
 0x9a1   :  { %v2433_v7 = vpack.c.bf16 %v2405_v8, %v2404_v16 }
 0x9a3   :  { %2518 = vmatmul.bf16.gmra.mxu0 %v2433_v7 }
 0x9a6   :  { %v2362_v4 = vpop.f32.mrf.mxu3 }
 0x9a7   :  { %v2406_v58 = vadd.f32 %v2390_v12, %v2362_v4 }
 0x9ae   :  { %v2364_v39 = vpop.f32.mrf.mxu3 }
 0x9af   :  { %v2407_v21 = vadd.f32 %v2391_v3, %v2364_v39 }
 0x9b1   :  { %v2434_v30 = vpack.c.bf16 %v2407_v21, %v2406_v58 }
 0x9b3   :  { %2523 = vmatmul.bf16.gmra.mxu0 %v2434_v30 }
 0x9b6   :  { %v2367_v56 = vpop.f32.mrf.mxu3 }
 0x9b7   :  { %v2408_v26 = vadd.f32 %v2392_v60, %v2367_v56 }
 0x9be   :  { %v2369_v20 = vpop.f32.mrf.mxu3 }
 0x9bf   :  { %v2409_v33 = vadd.f32 %v2393_v25, %v2369_v20  ;;  %v8290_v20 = vld [vmem:[#allocation12 + $0xe0] sm:$0xff] }
 0x9c0   :  { %2771 = vmatpush.bf16.msra.mxu2 %v8290_v20 }
 0x9c1   :  { %v2435_v1 = vpack.c.bf16 %v2409_v33, %v2408_v26 }
 0x9c3   :  { %2528 = vmatmul.bf16.gmra.mxu0 %v2435_v1  ;;  %v8289_v1 = vld [vmem:[#allocation12 + $0xd8] sm:$0xff] }
 0x9c4   :  { %2772 = vmatpush.bf16.msra.mxu2 %v8289_v1 }
 0x9c6   :  { %v2372_v19 = vpop.f32.mrf.mxu3 }
 0x9c7   :  { %v2410_v6 = vadd.f32 %v2394_v40, %v2372_v19  ;;  %v8288_v19 = vld [vmem:[#allocation12 + $0xd0] sm:$0xff] }
 0x9c8   :  { %2773 = vmatpush.bf16.msra.mxu2 %v8288_v19 }
 0x9cc   :  { %2774 = vmatpush.bf16.msra.mxu2 %v8287_v59 }
 0x9ce   :  { %v2374_v15 = vpop.f32.mrf.mxu3 }
 0x9cf   :  { %v2411_v42 = vadd.f32 %v2395_v35, %v2374_v15 }
 0x9d0   :  { %2775 = vmatpush.bf16.msra.mxu2 %v8286_v48 }
 0x9d1   :  { %v2436_v24 = vpack.c.bf16 %v2411_v42, %v2410_v6 }
 0x9d3   :  { %2533 = vmatmul.bf16.gmra.mxu0 %v2436_v24  ;;  %2776 = vmatmul.bf16.vlgmr.msra.gmra.mxu2 %v9830_v51 }
 0x9e0   :  { %v2499_v55 = vpop.f32.mrf.mxu0 }
 0x9e1   :  { %v2500_v11 = vadd.f32 %v10115_v23, %v2499_v55 }
 0x9e3   :  { %v2539_v38 = vmax.f32 %v2500_v11, 0.0  ;;  %2781 = vmatmul.bf16.gmra.mxu2 %v9835_v49 }
 0x9e8   :  { %v2501_v63 = vpop.f32.mrf.mxu0 }
 0x9e9   :  { %v2502_v31 = vadd.f32 %v10115_v23, %v2501_v63 }
 0x9eb   :  { %v2540_v36 = vmax.f32 %v2502_v31, 0.0 }
 0x9ed   :  { %v2572_v14 = vpack.c.bf16 %v2540_v36, %v2539_v38 }
 0x9ef   :  { %2641 = vmatmul.bf16.vlgmr.msra.gmra.mxu1 %v2572_v14 }
 0x9f0   :  { %v2504_v9 = vpop.f32.mrf.mxu0 }
 0x9f1   :  { %v2505_v45 = vadd.f32 %v10115_v23, %v2504_v9 }
 0x9f3   :  { %v2541_v10 = vmax.f32 %v2505_v45, 0.0  ;;  %2786 = vmatmul.bf16.gmra.mxu2 %v9840_v32 }
 0x9f8   :  { %v2506_v28 = vpop.f32.mrf.mxu0 }
 0x9f9   :  { %v2507_v17 = vadd.f32 %v10115_v23, %v2506_v28 }
 0x9fb   :  { %v2542_v54 = vmax.f32 %v2507_v17, 0.0 }
 0x9fd   :  { %v2573_v57 = vpack.c.bf16 %v2542_v54, %v2541_v10  ;;  %v12166_v54 = vld [vmem:[#allocation45_spill] sm:$0xff] }
 0x9ff   :  { %2646 = vmatmul.bf16.gmra.mxu1 %v2573_v57 }
 0xa00   :  { %v2509_v16 = vpop.f32.mrf.mxu0 }
 0xa01   :  { %v2510_v8 = vadd.f32 %v10115_v23, %v2509_v16  ;;  %v12167_v16 = vld [vmem:[#allocation46_spill] sm:$0xff] }
 0xa03   :  { %v2543_v53 = vmax.f32 %v2510_v8, 0.0  ;;  %2791 = vmatmul.bf16.gmra.mxu2 %v12166_v54 }
 0xa08   :  { %v2511_v7 = vpop.f32.mrf.mxu0 }
 0xa09   :  { %v2512_v4 = vadd.f32 %v10115_v23, %v2511_v7 }
 0xa0b   :  { %v2544_v12 = vmax.f32 %v2512_v4, 0.0 }
 0xa0d   :  { %v2574_v13 = vpack.c.bf16 %v2544_v12, %v2543_v53  ;;  %v12169_v53 = vld [vmem:[#allocation43_spill] sm:$0xff] }
 0xa0f   :  { %2651 = vmatmul.bf16.gmra.mxu1 %v2574_v13 }
 0xa10   :  { %v2514_v3 = vpop.f32.mrf.mxu0 }
 0xa11   :  { %v2515_v39 = vadd.f32 %v10115_v23, %v2514_v3  ;;  %v12170_v3 = vld [vmem:[#allocation41_spill] sm:$0xff] }
 0xa13   :  { %v2545_v21 = vmax.f32 %v2515_v39, 0.0  ;;  %2796 = vmatmul.bf16.gmra.mxu2 %v12167_v16  ;;  %v8301_v39 = vld [vmem:[#allocation15 + $0xf8] sm:$0xff] }
 0xa14   :  { %2911 = vmatpush.bf16.msra.mxu3 %v8301_v39 }
 0xa18   :  { %v2516_v41 = vpop.f32.mrf.mxu0 }
 0xa19   :  { %v2517_v58 = vadd.f32 %v10115_v23, %v2516_v41  ;;  %v8300_v41 = vld [vmem:[#allocation15 + $0xf0] sm:$0xff] }
 0xa1a   :  { %2912 = vmatpush.bf16.msra.mxu3 %v8300_v41 }
 0xa1b   :  { %v2546_v30 = vmax.f32 %v2517_v58, 0.0 }
 0xa1d   :  { %v2575_v47 = vpack.c.bf16 %v2546_v30, %v2545_v21  ;;  %v8299_v21 = vld [vmem:[#allocation15 + $0xe8] sm:$0xff]  ;;  %v8298_v30 = vld [vmem:[#allocation15 + $0xe0] sm:$0xff] }
 0xa1e   :  { %2913 = vmatpush.bf16.msra.mxu3 %v8299_v21 }
 0xa1f   :  { %2656 = vmatmul.bf16.gmra.mxu1 %v2575_v47 }
 0xa20   :  { %v2519_v56 = vpop.f32.mrf.mxu0 }
 0xa21   :  { %v2520_v60 = vadd.f32 %v10115_v23, %v2519_v56 }
 0xa22   :  { %2914 = vmatpush.bf16.msra.mxu3 %v8298_v30 }
 0xa23   :  { %v2547_v62 = vmax.f32 %v2520_v60, 0.0 }
 0xa26   :  { %2915 = vmatpush.bf16.msra.mxu3 %v8297_v34 }
 0xa28   :  { %v2521_v37 = vpop.f32.mrf.mxu0 }
 0xa29   :  { %v2522_v25 = vadd.f32 %v10115_v23, %v2521_v37 }
 0xa2a   :  { %2916 = vmatpush.bf16.msra.mxu3 %v8296_v61 }
 0xa2b   :  { %v2548_v26 = vmax.f32 %v2522_v25, 0.0  ;;  %v8295_v25 = vld [vmem:[#allocation15 + $0xc8] sm:$0xff] }
 0xa2d   :  { %v2576_v33 = vpack.c.bf16 %v2548_v26, %v2547_v62 }
 0xa2e   :  { %2917 = vmatpush.bf16.msra.mxu3 %v8295_v25 }
 0xa2f   :  { %2661 = vmatmul.bf16.gmra.mxu1 %v2576_v33  ;;  %v8294_v33 = vld [vmem:[#allocation15 + $0xc0] sm:$0xff] }
 0xa30   :  { %v2524_v18 = vpop.f32.mrf.mxu0 }
 0xa31   :  { %v2525_v27 = vadd.f32 %v10115_v23, %v2524_v18 }
 0xa32   :  { %2918 = vmatpush.bf16.msra.mxu3 %v8294_v33 }
 0xa33   :  { %v2549_v35 = vmax.f32 %v2525_v27, 0.0 }
 0xa38   :  { %v2526_v50 = vpop.f32.mrf.mxu0 }
 0xa39   :  { %v2527_v40 = vadd.f32 %v10115_v23, %v2526_v50 }
 0xa3b   :  { %v2550_v15 = vmax.f32 %v2527_v40, 0.0 }
 0xa3d   :  { %v2577_v6 = vpack.c.bf16 %v2550_v15, %v2549_v35 }
 0xa3f   :  { %2666 = vmatmul.bf16.gmra.mxu1 %v2577_v6 }
 0xa40   :  { %v2529_v42 = vpop.f32.mrf.mxu0 }
 0xa41   :  { %v2530_v24 = vadd.f32 %v10115_v23, %v2529_v42 }
 0xa43   :  { %v2551_v63 = vmax.f32 %v2530_v24, 0.0  ;;  %v8506_v24 = vld [vmem:[#allocation21 + $0x2] ss:$0 sm:$0xff] }
 0xa48   :  { %v2531_v55 = vpop.f32.mrf.mxu0 }
 0xa49   :  { %v2532_v11 = vadd.f32 %v10115_v23, %v2531_v55 }
 0xa4b   :  { %v2552_v31 = vmax.f32 %v2532_v11, 0.0 }
 0xa4d   :  { %v2578_v38 = vpack.c.bf16 %v2552_v31, %v2551_v63 }
 0xa4f   :  { %2671 = vmatmul.bf16.gmra.mxu1 %v2578_v38 }
 0xa50   :  { %v2534_v36 = vpop.f32.mrf.mxu0 }
 0xa51   :  { %v2535_v14 = vadd.f32 %v10115_v23, %v2534_v36 }
 0xa53   :  { %v2553_v51 = vmax.f32 %v2535_v14, 0.0 }
 0xa56   :  { %v2777_v56 = vpop.f32.mrf.mxu2 }
 0xa57   :  { %v2778_v37 = vadd.f32 %v10159_v44, %v2777_v56 }
 0xa58   :  { %v2536_v9 = vpop.f32.mrf.mxu0 }
 0xa59   :  { %v2537_v45 = vadd.f32 %v10115_v23, %v2536_v9  ;;  %v12168_v23 = vld [vmem:[#allocation44_spill] sm:$0xff]  ;;  %v2817_v62 = vmax.f32 %v2778_v37, 0.0 }
 0xa5a   :  { %2801 = vmatmul.bf16.gmra.mxu2 %v12168_v23 }
 0xa5b   :  { %v2554_v28 = vmax.f32 %v2537_v45, 0.0 }
 0xa5d   :  { %v2579_v17 = vpack.c.bf16 %v2554_v28, %v2553_v51 }
 0xa5e   :  { %v2779_v20 = vpop.f32.mrf.mxu2 }
 0xa5f   :  { %2676 = vmatmul.bf16.gmra.mxu1 %v2579_v17  ;;  %v2780_v26 = vadd.f32 %v10159_v44, %v2779_v20 }
 0xa61   :  { %v2818_v18 = vmax.f32 %v2780_v26, 0.0 }
 0xa63   :  { %v2850_v19 = vpack.c.bf16 %v2818_v18, %v2817_v62 }
 0xa65   :  { %2919 = vmatmul.bf16.vlgmr.msra.gmra.mxu3 %v2850_v19 }
 0xa66   :  { %v2782_v59 = vpop.f32.mrf.mxu2 }
 0xa67   :  { %v2783_v50 = vadd.f32 %v10159_v44, %v2782_v59 }
 0xa69   :  { %v2819_v48 = vmax.f32 %v2783_v50, 0.0 }
 0xa6a   :  { %2806 = vmatmul.bf16.gmra.mxu2 %v12169_v53 }
 0xa6c   :  { %v10136_v10 = vpop.f32.mrf.mxu1 }
 0xa6e   :  { %v2784_v40 = vpop.f32.mrf.mxu2 }
 0xa6f   :  { %v2785_v35 = vadd.f32 %v10159_v44, %v2784_v40 }
 0xa71   :  { %v2820_v6 = vmax.f32 %v2785_v35, 0.0 }
 0xa73   :  { %v2851_v42 = vpack.c.bf16 %v2820_v6, %v2819_v48  ;;  %v10245_v6 = vadd.f32 %v8506_v24, %v10136_v10 }
 0xa74   :  { %v10139_v57 = vpop.f32.mrf.mxu1 }
 0xa75   :  { %2924 = vmatmul.bf16.gmra.mxu3 %v2851_v42 }
 0xa76   :  { %v2787_v55 = vpop.f32.mrf.mxu2 }
 0xa77   :  { %v2788_v36 = vadd.f32 %v10159_v44, %v2787_v55 }
 0xa79   :  { %v2821_v16 = vmax.f32 %v2788_v36, 0.0 }
 0xa7a   :  { %2811 = vmatmul.bf16.gmra.mxu2 %v12170_v3 }
 0xa7c   :  { %v10141_v49 = vpop.f32.mrf.mxu1 }
 0xa7e   :  { %v2789_v54 = vpop.f32.mrf.mxu2 }
 0xa7f   :  { %v2790_v23 = vadd.f32 %v10159_v44, %v2789_v54 }
 0xa81   :  { %v2822_v39 = vmax.f32 %v2790_v23, 0.0 }
 0xa83   :  { %v2852_v34 = vpack.c.bf16 %v2822_v39, %v2821_v16 }
 0xa84   :  { %v10144_v8 = vpop.f32.mrf.mxu1 }
 0xa85   :  { %2929 = vmatmul.bf16.gmra.mxu3 %v2852_v34 }
 0xa86   :  { %v2792_v37 = vpop.f32.mrf.mxu2 }
 0xa87   :  { %v2793_v26 = vadd.f32 %v10159_v44, %v2792_v37  ;;  %v10264_v37 = vld [vmem:[#allocation8 + $0x8] sm:$0xff] }
 0xa88   :  { %12177 = vst [vmem:[#allocation45_spill] sm:$0xff] %v10264_v37 }
 0xa89   :  { %v2823_v59 = vmax.f32 %v2793_v26, 0.0 }
 0xa8c   :  { %v10146_v7 = vpop.f32.mrf.mxu1 }
 0xa8d   :  { %v10220_v33 = vadd.f32 %v8506_v24, %v10146_v7  ;;  %v10233_v7 = vadd.f32 %v8506_v24, %v10141_v49 }
 0xa8e   :  { %v2794_v19 = vpop.f32.mrf.mxu2 }
 0xa8f   :  { %v11884_v50 = vmax.f32 %v10220_v33, 0.0  ;;  %v11886_v49 = vmax.f32 %v10233_v7, 0.0 }
 0xa94   :  { %v10149_v4 = vpop.f32.mrf.mxu1 }
 0xa95   :  { %v10211_v20 = vadd.f32 %v8506_v24, %v10149_v4 }
 0xa96   :  { %v2797_v55 = vpop.f32.mrf.mxu2 }
 0xa97   :  { %v11883_v4 = vmax.f32 %v10211_v20, 0.0 }
 0xa99   :  { %v2978_v35 = vpack.c.bf16 %v11883_v4, %v11884_v50 }
 0xa9c   :  { %v10151_v32 = vpop.f32.mrf.mxu1 }
 0xa9d   :  { %v10207_v25 = vadd.f32 %v8506_v24, %v10151_v32 }
 0xa9e   :  { %v2799_v36 = vpop.f32.mrf.mxu2 }
 0xa9f   :  { %v11882_v32 = vmax.f32 %v10207_v25, 0.0  ;;  %v2800_v16 = vadd.f32 %v10159_v44, %v2799_v36 }
 0xaa1   :  { %v2826_v23 = vmax.f32 %v2800_v16, 0.0  ;;  %v10274_v16 = vld [vmem:[#allocation8 + $0x18] sm:$0xff] }
 0xaa2   :  { %12179 = vst [vmem:[#allocation44_spill] sm:$0xff] %v10274_v16 }
 0xaa4   :  { %v10154_v12 = vpop.f32.mrf.mxu1 }
 0xaa5   :  { %v10199_v61 = vadd.f32 %v8506_v24, %v10154_v12 }
 0xaa7   :  { %v11881_v12 = vmax.f32 %v10199_v61, 0.0 }
 0xaa9   :  { %v2979_v18 = vpack.c.bf16 %v11881_v12, %v11882_v32 }
 0xaac   :  { %v10156_v13 = vpop.f32.mrf.mxu1 }
 0xaad   :  { %v10195_v56 = vadd.f32 %v8506_v24, %v10156_v13 }
 0xaaf   :  { %v11880_v13 = vmax.f32 %v10195_v56, 0.0 }
 0xab4   :  { %v2664_v58 = vpop.f32.mrf.mxu1 }
 0xab5   :  { %v10187_v41 = vadd.f32 %v8506_v24, %v2664_v58 }
 0xab7   :  { %v11879_v58 = vmax.f32 %v10187_v41, 0.0 }
 0xab9   :  { %v2980_v62 = vpack.c.bf16 %v11879_v58, %v11880_v13 }
 0xabc   :  { %v2667_v47 = vpop.f32.mrf.mxu1 }
 0xabd   :  { %v10184_v53 = vadd.f32 %v8506_v24, %v2667_v47 }
 0xabf   :  { %v11878_v47 = vmax.f32 %v10184_v53, 0.0 }
 0xac4   :  { %v2669_v60 = vpop.f32.mrf.mxu1 }
 0xac5   :  { %v10176_v51 = vadd.f32 %v8506_v24, %v2669_v60 }
 0xac7   :  { %12175 = vst [vmem:[#allocation51_spill] sm:$0xff] %v10176_v51  ;;  %v11877_v21 = vmax.f32 %v10176_v51, 0.0 }
 0xac9   :  { %v2981_v60 = vpack.c.bf16 %v11877_v21, %v11878_v47 }
 0xacc   :  { %v2672_v1 = vpop.f32.mrf.mxu1 }
 0xacd   :  { %v10172_v14 = vadd.f32 %v8506_v24, %v2672_v1  ;;  %v10224_v1 = vadd.f32 %v8506_v24, %v10144_v8  ;;  %v10237_v8 = vadd.f32 %v8506_v24, %v10139_v57 }
 0xacf   :  { %12174 = vst [vmem:[#allocation50_spill] sm:$0xff] %v10172_v14  ;;  %v11876_v3 = vmax.f32 %v10172_v14, 0.0  ;;  %v11885_v48 = vmax.f32 %v10224_v1, 0.0  ;;  %v11887_v42 = vmax.f32 %v10237_v8, 0.0 }
 0xad1   :  { %v2977_v57 = vpack.c.bf16 %v11885_v48, %v11886_v49 }
 0xad4   :  { %v2674_v27 = vpop.f32.mrf.mxu1 }
 0xad5   :  { %v10167_v31 = vadd.f32 %v8506_v24, %v2674_v27  ;;  %v2795_v27 = vadd.f32 %v10159_v44, %v2794_v19 }
 0xad7   :  { %12172 = vst [vmem:[#allocation48_spill] sm:$0xff] %v10167_v31  ;;  %v11875_v28 = vmax.f32 %v10167_v31, 0.0  ;;  %v2824_v40 = vmax.f32 %v2795_v27, 0.0 }
 0xad9   :  { %v2982_v30 = vpack.c.bf16 %v11875_v28, %v11876_v3 }
 0xadc   :  { %v2677_v15 = vpop.f32.mrf.mxu1 }
 0xadd   :  { %v10165_v11 = vadd.f32 %v8506_v24, %v2677_v15  ;;  %v2853_v15 = vpack.c.bf16 %v2824_v40, %v2823_v59 }
 0xadf   :  { %12171 = vst [vmem:[#allocation47_spill] sm:$0xff] %v10165_v11  ;;  %v11874_v9 = vmax.f32 %v10165_v11, 0.0  ;;  %2934 = vmatmul.bf16.gmra.mxu3 %v2853_v15 }
 0xae4   :  { %v2679_v63 = vpop.f32.mrf.mxu1 }
 0xae5   :  { %v10169_v38 = vadd.f32 %v8506_v24, %v2679_v63  ;;  %v11888_v63 = vmax.f32 %v10245_v6, 0.0  ;;  %v2798_v24 = vadd.f32 %v10159_v44, %v2797_v55 }
 0xae7   :  { %12173 = vst [vmem:[#allocation49_spill] sm:$0xff] %v10169_v38  ;;  %v11873_v45 = vmax.f32 %v10169_v38, 0.0  ;;  %v2976_v10 = vpack.c.bf16 %v11887_v42, %v11888_v63  ;;  %v2825_v54 = vmax.f32 %v2798_v24, 0.0 }
 0xae9   :  { %v2983_v17 = vpack.c.bf16 %v11873_v45, %v11874_v9  ;;  %v2854_v39 = vpack.c.bf16 %v2826_v23, %v2825_v54 }
 0xaeb   :  { %2984 = vmatpush.bf16.msrb.mxu0 %v2983_v17  ;;  %v10259_v17 = vld [vmem:[#allocation8] sm:$0xff] }
 0xaec   :  { %12176 = vst [vmem:[#allocation52_spill] sm:$0xff] %v10259_v17 }
 0xaef   :  { %2985 = vmatpush.bf16.msrb.mxu0 %v2982_v30  ;;  %2939 = vmatmul.bf16.gmra.mxu3 %v2854_v39  ;;  %v2802_v30 = vpop.f32.mrf.mxu2 }
 0xaf0   :  { %v2803_v34 = vadd.f32 %v10159_v44, %v2802_v30 }
 0xaf3   :  { %2986 = vmatpush.bf16.msrb.mxu0 %v2981_v60 }
 0xaf7   :  { %2987 = vmatpush.bf16.msrb.mxu0 %v2980_v62  ;;  %v2804_v60 = vpop.f32.mrf.mxu2  ;;  %v2827_v62 = vmax.f32 %v2803_v34, 0.0 }
 0xaf8   :  { %v2805_v26 = vadd.f32 %v10159_v44, %v2804_v60  ;;  %v10278_v60 = vld [vmem:[#allocation8 + $0x20] sm:$0xff] }
 0xaf9   :  { %12180 = vst [vmem:[#allocation43_spill] sm:$0xff] %v10278_v60 }
 0xafb   :  { %2988 = vmatpush.bf16.msrb.mxu0 %v2979_v18  ;;  %v2828_v18 = vmax.f32 %v2805_v26, 0.0  ;;  %v2920_v26 = vpop.f32.mrf.mxu3 }
 0xafd   :  { %v2855_v19 = vpack.c.bf16 %v2828_v18, %v2827_v62  ;;  %v10281_v62 = vld [vmem:[#allocation8 + $0x28] sm:$0xff] }
 0xafe   :  { %12181 = vst [vmem:[#allocation41_spill] sm:$0xff] %v10281_v62  ;;  %v12182_v18 = vld [vmem:[#allocation40_spill] sm:$0xff] }
 0xaff   :  { %2989 = vmatpush.bf16.msrb.mxu0 %v2978_v35  ;;  %2944 = vmatmul.bf16.gmra.mxu3 %v2855_v19  ;;  %v2807_v59 = vpop.f32.mrf.mxu2  ;;  %v10269_v35 = vld [vmem:[#allocation8 + $0x10] sm:$0xff] }
 0xb00   :  { %v2808_v27 = vadd.f32 %v10159_v44, %v2807_v59  ;;  %12178 = vst [vmem:[#allocation46_spill] sm:$0xff] %v10269_v35 }
 0xb02   :  { %v2829_v15 = vmax.f32 %v2808_v27, 0.0  ;;  %v12183_v27 = vld [vmem:[#allocation42_spill] sm:$0xff] }
 0xb03   :  { %2990 = vmatpush.bf16.msrb.mxu0 %v2977_v57  ;;  %v10285_v19 = vpop.f32.mrf.mxu3 }
 0xb07   :  { %2991 = vmatpush.bf16.msrb.mxu0 %v2976_v10  ;;  %v2809_v40 = vpop.f32.mrf.mxu2 }
 0xb08   :  { %v2810_v57 = vadd.f32 %v10159_v44, %v2809_v40 }
 0xb0a   :  { %2992 = vmatmul.bf16.vlgmr.msrb.gmra.mxu0 %v10259_v17  ;;  %v2830_v55 = vmax.f32 %v2810_v57, 0.0 }
 0xb0b   :  { %v2925_v59 = vpop.f32.mrf.mxu3 }
 0xb0c   :  { %v2856_v10 = vpack.c.bf16 %v2830_v55, %v2829_v15 }
 0xb0f   :  { %2949 = vmatmul.bf16.gmra.mxu3 %v2856_v10  ;;  %v2812_v24 = vpop.f32.mrf.mxu2 }
 0xb10   :  { %v2813_v36 = vadd.f32 %v10159_v44, %v2812_v24 }
 0xb12   :  { %v2831_v23 = vmax.f32 %v2813_v36, 0.0 }
 0xb13   :  { %v10293_v40 = vpop.f32.mrf.mxu3 }
 0xb17   :  { %v2814_v54 = vpop.f32.mrf.mxu2 }
 0xb18   :  { %v2815_v39 = vadd.f32 %v10159_v44, %v2814_v54  ;;  %v10291_v44 = vld [vmem:[%s11801_s8 + $0x3] ss:$0 sm:$0xff] }
 0xb19   :  { %v2921_v15 = vadd.f32 %v10291_v44, %v2920_v26  ;;  %v2926_v54 = vadd.f32 %v10291_v44, %v2925_v59 }
 0xb1a   :  { %2997 = vmatmul.bf16.gmra.mxu0 %v10264_v37  ;;  %v2832_v30 = vmax.f32 %v2815_v39, 0.0 }
 0xb1b   :  { %v2960_v57 = vmax.f32 %v2921_v15, 0.0  ;;  %v2930_v24 = vpop.f32.mrf.mxu3  ;;  %v2962_v39 = vmax.f32 %v2926_v54, 0.0 }
 0xb1c   :  { %v2857_v34 = vpack.c.bf16 %v2832_v30, %v2831_v23  ;;  %v2931_v26 = vadd.f32 %v10291_v44, %v2930_v24 }
 0xb1e   :  { %v2964_v15 = vmax.f32 %v2931_v26, 0.0 }
 0xb1f   :  { %2954 = vmatmul.bf16.gmra.mxu3 %v2857_v34 }
 0xb23   :  { %v10301_v23 = vpop.f32.mrf.mxu3 }
 0xb2a   :  { %3002 = vmatmul.bf16.gmra.mxu0 %v10269_v35 }
 0xb3a   :  { %3007 = vmatmul.bf16.gmra.mxu0 %v10274_v16 }
 0xb4a   :  { %3012 = vmatmul.bf16.gmra.mxu0 %v10278_v60 }
 0xb5a   :  { %3017 = vmatmul.bf16.gmra.mxu0 %v10281_v62 }
 0xb6a   :  { %3022 = vmatmul.bf16.gmra.mxu0 %v12182_v18  ;;  %v2935_v18 = vpop.f32.mrf.mxu3 }
 0xb6b   :  { %v2936_v59 = vadd.f32 %v10291_v44, %v2935_v18 }
 0xb6d   :  { %v2966_v3 = vmax.f32 %v2936_v59, 0.0 }
 0xb7a   :  { %3027 = vmatmul.bf16.gmra.mxu0 %v12183_v27 }
 0xb87   :  { %v2993_v55 = vpop.f32.mrf.mxu0 }
 0xb88   :  { %v10296_v10 = vadd.f32 %v2993_v55, %v2960_v57  ;;  %v2937_v57 = vpop.f32.mrf.mxu3 }
 0xb8f   :  { %v10298_v36 = vpop.f32.mrf.mxu0 }
 0xb90   :  { %v2940_v28 = vpop.f32.mrf.mxu3 }
 0xb91   :  { %v2941_v47 = vadd.f32 %v10291_v44, %v2940_v28 }
 0xb93   :  { %v2968_v24 = vmax.f32 %v2941_v47, 0.0 }
 0xb97   :  { %v2998_v30 = vpop.f32.mrf.mxu0 }
 0xb98   :  { %v10303_v34 = vadd.f32 %v2998_v30, %v2962_v39  ;;  %v2942_v39 = vpop.f32.mrf.mxu3 }
 0xb9f   :  { %v10305_v27 = vpop.f32.mrf.mxu0 }
 0xba0   :  { %v2945_v58 = vpop.f32.mrf.mxu3 }
 0xba1   :  { %v2946_v35 = vadd.f32 %v10291_v44, %v2945_v58 }
 0xba3   :  { %v2970_v14 = vmax.f32 %v2946_v35, 0.0 }
 0xba7   :  { %v3003_v45 = vpop.f32.mrf.mxu0 }
 0xba8   :  { %v10308_v55 = vadd.f32 %v3003_v45, %v2964_v15  ;;  %v2947_v12 = vpop.f32.mrf.mxu3 }
 0xbaf   :  { %v10310_v9 = vpop.f32.mrf.mxu0 }
 0xbb0   :  { %v2950_v32 = vpop.f32.mrf.mxu3 }
 0xbb1   :  { %v2951_v47 = vadd.f32 %v10291_v44, %v2950_v32 }
 0xbb3   :  { %v2972_v37 = vmax.f32 %v2951_v47, 0.0 }
 0xbb7   :  { %v3008_v54 = vpop.f32.mrf.mxu0 }
 0xbb8   :  { %v10313_v21 = vadd.f32 %v3008_v54, %v2966_v3  ;;  %v2952_v50 = vpop.f32.mrf.mxu3 }
 0xbb9   :  { %v2953_v42 = vadd.f32 %v10291_v44, %v2952_v50 }
 0xbbb   :  { %v2973_v63 = vmax.f32 %v2953_v42, 0.0 }
 0xbbf   :  { %v3010_v30 = vpop.f32.mrf.mxu0 }
 0xbc0   :  { %v2955_v18 = vpop.f32.mrf.mxu3 }
 0xbc1   :  { %v2956_v54 = vadd.f32 %v10291_v44, %v2955_v18  ;;  %v2943_v18 = vadd.f32 %v10291_v44, %v2942_v39 }
 0xbc3   :  { %v2969_v42 = vmax.f32 %v2943_v18, 0.0 }
 0xbc7   :  { %v3013_v26 = vpop.f32.mrf.mxu0 }
 0xbc8   :  { %v3014_v13 = vadd.f32 %v3013_v26, %v2968_v24  ;;  %v2957_v49 = vpop.f32.mrf.mxu3  ;;  %v2974_v24 = vmax.f32 %v2956_v54, 0.0  ;;  %v2948_v26 = vadd.f32 %v10291_v44, %v2947_v12  ;;  %v2938_v12 = vadd.f32 %v10291_v44, %v2937_v57 }
 0xbc9   :  { %v2958_v28 = vadd.f32 %v10291_v44, %v2957_v49  ;;  %v3039_v57 = vmax.f32 %v10313_v21, 0.0  ;;  %v3033_v21 = vmax.f32 %v10296_v10, 0.0  ;;  %v8307_v10 = vld [vmem:[#allocation17 + $0xe8] sm:$0xff] }
 0xbca   :  { %v2971_v11 = vmax.f32 %v2948_v26, 0.0 }
 0xbcb   :  { %v2975_v62 = vmax.f32 %v2958_v28, 0.0 }
 0xbcf   :  { %v3015_v45 = vpop.f32.mrf.mxu0 }
 0xbd0   :  { %v3016_v58 = vadd.f32 %v3015_v45, %v2969_v42 }
 0xbd7   :  { %v3018_v15 = vpop.f32.mrf.mxu0 }
 0xbdf   :  { %v3020_v4 = vpop.f32.mrf.mxu0 }
 0xbe0   :  { %v3021_v32 = vadd.f32 %v3020_v4, %v2971_v11 }
 0xbe2   :  { %v3044_v47 = vmax.f32 %v3021_v32, 0.0 }
 0xbe7   :  { %v3023_v48 = vpop.f32.mrf.mxu0 }
 0xbe8   :  { %v3024_v50 = vadd.f32 %v3023_v48, %v2972_v37  ;;  %v3042_v37 = vmax.f32 %v3016_v58, 0.0 }
 0xbea   :  { %v3045_v28 = vmax.f32 %v3024_v50, 0.0  ;;  %v12185_v50 = vmax.f32 %v10237_v8, 0.0 }
 0xbef   :  { %v3025_v59 = vpop.f32.mrf.mxu0 }
 0xbf0   :  { %v3026_v17 = vadd.f32 %v3025_v59, %v2973_v63 }
 0xbf2   :  { %v3046_v54 = vmax.f32 %v3026_v17, 0.0  ;;  %v3041_v17 = vmax.f32 %v3014_v13, 0.0 }
 0xbf4   :  { %v3055_v63 = vpack.c.bf16 %v3046_v54, %v3045_v28  ;;  %v3053_v35 = vpack.c.bf16 %v3042_v37, %v3041_v17  ;;  %v12187_v28 = vmax.f32 %v10224_v1, 0.0  ;;  %v12190_v17 = vmax.f32 %v10207_v25, 0.0 }
 0xbf7   :  { %v3028_v3 = vpop.f32.mrf.mxu0 }
 0xbf8   :  { %v3029_v60 = vadd.f32 %v3028_v3, %v2974_v24  ;;  %v3019_v3 = vadd.f32 %v3018_v15, %v2970_v14  ;;  %v3035_v24 = vmax.f32 %v10303_v34, 0.0  ;;  %v8308_v34 = vld [vmem:[#allocation17 + $0xf0] sm:$0xff] }
 0xbfa   :  { %v3047_v31 = vmax.f32 %v3029_v60, 0.0  ;;  %v3043_v48 = vmax.f32 %v3019_v3, 0.0  ;;  %v2923_v60 = vadd.f32 %v10291_v44, %v10285_v19 }
 0xbfc   :  { %v3054_v11 = vpack.c.bf16 %v3044_v47, %v3043_v48  ;;  %v2961_v15 = vmax.f32 %v2923_v60, 0.0 }
 0xbfe   :  { %v2996_v13 = vadd.f32 %v10298_v36, %v2961_v15  ;;  %v8309_v36 = vld [vmem:[#allocation17 + $0xf8] sm:$0xff] }
 0xbff   :  { %v3030_v16 = vpop.f32.mrf.mxu0  ;;  %3219 = vmatpush.bf16.msrb.mxu2 %v8309_v36 }
 0xc00   :  { %v3031_v38 = vadd.f32 %v3030_v16, %v2975_v62  ;;  %v2933_v16 = vadd.f32 %v10291_v44, %v10301_v23  ;;  %v2967_v62 = vmax.f32 %v2938_v12, 0.0  ;;  %v3034_v19 = vmax.f32 %v2996_v13, 0.0 }
 0xc02   :  { %v3048_v49 = vmax.f32 %v3031_v38, 0.0  ;;  %v3011_v38 = vadd.f32 %v3010_v30, %v2967_v62  ;;  %v2965_v4 = vmax.f32 %v2933_v16, 0.0  ;;  %v3049_v26 = vpack.c.bf16 %v3034_v19, %v3033_v21  ;;  %v12195_v19 = vld [vmem:[#allocation51_spill] sm:$0xff] }
 0xc03   :  { %3220 = vmatpush.bf16.msrb.mxu2 %v8308_v34  ;;  %v12188_v62 = vmax.f32 %v10220_v33, 0.0  ;;  %v8317_v34 = vld [vmem:[#allocation20 + $0xf8] sm:$0xff] }
 0xc04   :  { %v3056_v51 = vpack.c.bf16 %v3048_v49, %v3047_v31  ;;  %v2928_v31 = vadd.f32 %v10291_v44, %v10293_v40  ;;  %v3006_v14 = vadd.f32 %v10310_v9, %v2965_v4  ;;  %v3037_v40 = vmax.f32 %v10308_v55, 0.0  ;;  %v8305_v55 = vld [vmem:[#allocation17 + $0xd8] sm:$0xff]  ;;  %3362 = vmatpush.bf16.msrb.mxu3 %v8317_v34 }
 0xc06   :  { %3057 = vmatpush.bf16.msrb.mxu1 %v3056_v51  ;;  %v3040_v51 = vmax.f32 %v3011_v38, 0.0  ;;  %v2963_v23 = vmax.f32 %v2928_v31, 0.0  ;;  %v3038_v30 = vmax.f32 %v3006_v14, 0.0  ;;  %v12189_v38 = vmax.f32 %v10211_v20, 0.0 }
 0xc07   :  { %3221 = vmatpush.bf16.msrb.mxu2 %v8307_v10  ;;  %v8316_v10 = vld [vmem:[#allocation20 + $0xf0] sm:$0xff] }
 0xc08   :  { %v3001_v39 = vadd.f32 %v10305_v27, %v2963_v23  ;;  %v3052_v45 = vpack.c.bf16 %v3040_v51, %v3039_v57  ;;  %v3051_v59 = vpack.c.bf16 %v3038_v30, %v3037_v40  ;;  %v8306_v27 = vld [vmem:[#allocation17 + $0xe0] sm:$0xff]  ;;  %v12191_v51 = vmax.f32 %v10199_v61, 0.0  ;;  %3363 = vmatpush.bf16.msrb.mxu3 %v8316_v10 }
 0xc0a   :  { %3058 = vmatpush.bf16.msrb.mxu1 %v3055_v63  ;;  %v3036_v9 = vmax.f32 %v3001_v39, 0.0  ;;  %v12192_v39 = vmax.f32 %v10195_v56, 0.0 }
 0xc0b   :  { %3222 = vmatpush.bf16.msrb.mxu2 %v8306_v27 }
 0xc0c   :  { %v3050_v44 = vpack.c.bf16 %v3036_v9, %v3035_v24 }
 0xc0e   :  { %3059 = vmatpush.bf16.msrb.mxu1 %v3054_v11 }
 0xc0f   :  { %3223 = vmatpush.bf16.msrb.mxu2 %v8305_v55  ;;  %v8315_v55 = vld [vmem:[#allocation20 + $0xe8] sm:$0xff] }
 0xc10   :  { %3364 = vmatpush.bf16.msrb.mxu3 %v8315_v55  ;;  %v8325_v55 = vld [vmem:[#allocation12 + $0x138] sm:$0xff] }
 0xc11   :  { %3497 = vmatpush.bf16.msra.mxu0 %v8325_v55 }
 0xc12   :  { %3060 = vmatpush.bf16.msrb.mxu1 %v3053_v35 }
 0xc16   :  { %3061 = vmatpush.bf16.msrb.mxu1 %v3052_v45  ;;  %v12193_v45 = vmax.f32 %v10187_v41, 0.0 }
 0xc1a   :  { %3062 = vmatpush.bf16.msrb.mxu1 %v3051_v59  ;;  %v12194_v59 = vmax.f32 %v10184_v53, 0.0 }
 0xc1e   :  { %3063 = vmatpush.bf16.msrb.mxu1 %v3050_v44  ;;  %v12196_v44 = vmax.f32 %v12195_v19, 0.0 }
 0xc22   :  { %3064 = vmatpush.bf16.msrb.mxu1 %v3049_v26 }
 0xc25   :  { %3065 = vmatmul.bf16.vlgmr.msrb.gmra.mxu1 %v10041_v43  ;;  %v8304_v43 = vld [vmem:[#allocation17 + $0xd0] sm:$0xff] }
 0xc26   :  { %3224 = vmatpush.bf16.msrb.mxu2 %v8304_v43  ;;  %v12197_v43 = vld [vmem:[#allocation50_spill] sm:$0xff] }
 0xc35   :  { %3070 = vmatmul.bf16.gmra.mxu1 %v10044_v29  ;;  %v8303_v29 = vld [vmem:[#allocation17 + $0xc8] sm:$0xff] }
 0xc36   :  { %3225 = vmatpush.bf16.msrb.mxu2 %v8303_v29  ;;  %v12198_v29 = vmax.f32 %v12197_v43, 0.0 }
 0xc45   :  { %3075 = vmatmul.bf16.gmra.mxu1 %v10047_v5  ;;  %v8302_v5 = vld [vmem:[#allocation17 + $0xc0] sm:$0xff] }
 0xc46   :  { %3226 = vmatpush.bf16.msrb.mxu2 %v8302_v5  ;;  %v12199_v5 = vld [vmem:[#allocation48_spill] sm:$0xff] }
 0xc55   :  { %3080 = vmatmul.bf16.gmra.mxu1 %v10050_v46 }
 0xc65   :  { %3085 = vmatmul.bf16.gmra.mxu1 %v10053_v52  ;;  %v10345_v52 = vstv %s3107_s11 }
 0xc66   :  { %v3110_v49 = vmul.f32 %v10345_v52, %v12185_v50  ;;  %v3113_v48 = vmul.f32 %v10345_v52, %v12188_v62  ;;  %v3115_v14 = vmul.f32 %v10345_v52, %v12190_v17  ;;  %v3116_v33 = vmul.f32 %v10345_v52, %v12191_v51 }
 0xc67   :  { %v3117_v30 = vmul.f32 %v10345_v52, %v12192_v39  ;;  %v3118_v25 = vmul.f32 %v10345_v52, %v12193_v45  ;;  %v3119_v24 = vmul.f32 %v10345_v52, %v12194_v59  ;;  %v3120_v56 = vmul.f32 %v10345_v52, %v12196_v44 }
 0xc68   :  { %v3121_v53 = vmul.f32 %v10345_v52, %v12198_v29 }
 0xc75   :  { %3090 = vmatmul.bf16.gmra.mxu1 %v10056_v2  ;;  %v12184_v2 = vmax.f32 %v10245_v6, 0.0  ;;  %v3112_v6 = vmul.f32 %v10345_v52, %v12187_v28 }
 0xc77   :  { %v3109_v18 = vmul.f32 %v10345_v52, %v12184_v2 }
 0xc85   :  { %3095 = vmatmul.bf16.gmra.mxu1 %v10059_v0 }
 0xc95   :  { %3100 = vmatmul.bf16.gmra.mxu1 %v10062_v22  ;;  %v12186_v22 = vmax.f32 %v10233_v7, 0.0  ;;  %v3114_v7 = vmul.f32 %v10345_v52, %v12189_v38 }
 0xc97   :  { %v3111_v3 = vmul.f32 %v10345_v52, %v12186_v22  ;;  %v8311_v22 = vld [vmem:[#allocation20 + $0xc8] sm:$0xff] }
 0xca2   :  { %v3066_v46 = vpop.f32.mrf.mxu1 }
 0xca3   :  { %v3125_v0 = vadd.f32 %v3109_v18, %v3066_v46  ;;  %v12200_v46 = vmax.f32 %v12199_v5, 0.0  ;;  %v8314_v18 = vld [vmem:[#allocation20 + $0xe0] sm:$0xff] }
 0xca4   :  { %3365 = vmatpush.bf16.msrb.mxu3 %v8314_v18  ;;  %v8324_v5 = vld [vmem:[#allocation12 + $0x130] sm:$0xff] }
 0xca5   :  { %v3122_v2 = vmul.f32 %v10345_v52, %v12200_v46  ;;  %3498 = vmatpush.bf16.msra.mxu0 %v8324_v5  ;;  %v8510_v5 = vld [vmem:[#allocation21 + $0x3] ss:$0 sm:$0xff] }
 0xcaa   :  { %v3068_v32 = vpop.f32.mrf.mxu1 }
 0xcab   :  { %v3126_v54 = vadd.f32 %v3110_v49, %v3068_v32 }
 0xcad   :  { %v3158_v12 = vpack.c.bf16 %v3126_v54, %v3125_v0  ;;  %v8313_v54 = vld [vmem:[#allocation20 + $0xd8] sm:$0xff] }
 0xcae   :  { %3366 = vmatpush.bf16.msrb.mxu3 %v8313_v54 }
 0xcaf   :  { %3227 = vmatmul.bf16.vlgmr.msrb.gmra.mxu2 %v3158_v12 }
 0xcb2   :  { %v3071_v42 = vpop.f32.mrf.mxu1 }
 0xcb3   :  { %v3127_v47 = vadd.f32 %v3111_v3, %v3071_v42  ;;  %v8312_v42 = vld [vmem:[#allocation20 + $0xd0] sm:$0xff]  ;;  %v12201_v3 = vld [vmem:[#allocation47_spill] sm:$0xff] }
 0xcb4   :  { %3367 = vmatpush.bf16.msrb.mxu3 %v8312_v42  ;;  %v12202_v28 = vmax.f32 %v12201_v3, 0.0 }
 0xcb8   :  { %3368 = vmatpush.bf16.msrb.mxu3 %v8311_v22 }
 0xcba   :  { %v3073_v58 = vpop.f32.mrf.mxu1 }
 0xcbb   :  { %v3128_v63 = vadd.f32 %v3112_v6, %v3073_v58  ;;  %v3123_v6 = vmul.f32 %v10345_v52, %v12202_v28  ;;  %v12203_v58 = vld [vmem:[#allocation49_spill] sm:$0xff] }
 0xcbd   :  { %v3159_v8 = vpack.c.bf16 %v3128_v63, %v3127_v47  ;;  %v12204_v47 = vmax.f32 %v12203_v58, 0.0 }
 0xcbf   :  { %3232 = vmatmul.bf16.gmra.mxu2 %v3159_v8  ;;  %v3124_v63 = vmul.f32 %v10345_v52, %v12204_v47 }
 0xcc2   :  { %v3076_v16 = vpop.f32.mrf.mxu1 }
 0xcc3   :  { %v3129_v11 = vadd.f32 %v3113_v48, %v3076_v16  ;;  %v8310_v48 = vld [vmem:[#allocation20 + $0xc0] sm:$0xff] }
 0xcc4   :  { %3369 = vmatpush.bf16.msrb.mxu3 %v8310_v48 }
 0xcca   :  { %v3078_v37 = vpop.f32.mrf.mxu1 }
 0xccb   :  { %v3130_v31 = vadd.f32 %v3114_v7, %v3078_v37  ;;  %v10395_v37 = vld [vmem:[#allocation18 + $0x3] ss:$0 sm:$0xff] }
 0xccd   :  { %v3160_v1 = vpack.c.bf16 %v3130_v31, %v3129_v11 }
 0xccf   :  { %3237 = vmatmul.bf16.gmra.mxu2 %v3160_v1 }
 0xcd2   :  { %v3081_v4 = vpop.f32.mrf.mxu1 }
 0xcd3   :  { %v3131_v60 = vadd.f32 %v3115_v14, %v3081_v4 }
 0xcda   :  { %v3083_v35 = vpop.f32.mrf.mxu1 }
 0xcdb   :  { %v3132_v23 = vadd.f32 %v3116_v33, %v3083_v35 }
 0xcdd   :  { %v3161_v20 = vpack.c.bf16 %v3132_v23, %v3131_v60 }
 0xcdf   :  { %3242 = vmatmul.bf16.gmra.mxu2 %v3161_v20 }
 0xce2   :  { %v3086_v57 = vpop.f32.mrf.mxu1 }
 0xce3   :  { %v3133_v40 = vadd.f32 %v3117_v30, %v3086_v57 }
 0xcea   :  { %v3088_v15 = vpop.f32.mrf.mxu1 }
 0xceb   :  { %v3134_v13 = vadd.f32 %v3118_v25, %v3088_v15 }
 0xced   :  { %v3162_v61 = vpack.c.bf16 %v3134_v13, %v3133_v40 }
 0xcef   :  { %3247 = vmatmul.bf16.gmra.mxu2 %v3162_v61 }
 0xcf2   :  { %v3091_v9 = vpop.f32.mrf.mxu1 }
 0xcf3   :  { %v3135_v26 = vadd.f32 %v3119_v24, %v3091_v9 }
 0xcfa   :  { %v3093_v21 = vpop.f32.mrf.mxu1 }
 0xcfb   :  { %v3136_v36 = vadd.f32 %v3120_v56, %v3093_v21 }
 0xcfd   :  { %v3163_v41 = vpack.c.bf16 %v3136_v36, %v3135_v26 }
 0xcff   :  { %3252 = vmatmul.bf16.gmra.mxu2 %v3163_v41 }
 0xd02   :  { %v3096_v27 = vpop.f32.mrf.mxu1 }
 0xd03   :  { %v3137_v49 = vadd.f32 %v3121_v53, %v3096_v27 }
 0xd0a   :  { %v3098_v50 = vpop.f32.mrf.mxu1 }
 0xd0b   :  { %v3138_v32 = vadd.f32 %v3122_v2, %v3098_v50  ;;  %v8323_v50 = vld [vmem:[#allocation12 + $0x128] sm:$0xff] }
 0xd0c   :  { %3499 = vmatpush.bf16.msra.mxu0 %v8323_v50 }
 0xd0d   :  { %v3164_v0 = vpack.c.bf16 %v3138_v32, %v3137_v49  ;;  %v8322_v49 = vld [vmem:[#allocation12 + $0x120] sm:$0xff] }
 0xd0f   :  { %3257 = vmatmul.bf16.gmra.mxu2 %v3164_v0  ;;  %v8321_v0 = vld [vmem:[#allocation12 + $0x118] sm:$0xff] }
 0xd10   :  { %3500 = vmatpush.bf16.msra.mxu0 %v8322_v49 }
 0xd12   :  { %v3101_v12 = vpop.f32.mrf.mxu1 }
 0xd13   :  { %v3139_v16 = vadd.f32 %v3123_v6, %v3101_v12  ;;  %v8320_v12 = vld [vmem:[#allocation12 + $0x110] sm:$0xff]  ;;  %v8319_v6 = vld [vmem:[#allocation12 + $0x108] sm:$0xff] }
 0xd14   :  { %3501 = vmatpush.bf16.msra.mxu0 %v8321_v0 }
 0xd18   :  { %3502 = vmatpush.bf16.msra.mxu0 %v8320_v12 }
 0xd1a   :  { %v3103_v8 = vpop.f32.mrf.mxu1 }
 0xd1b   :  { %v3140_v62 = vadd.f32 %v3124_v63, %v3103_v8  ;;  %v8318_v63 = vld [vmem:[#allocation12 + $0x100] sm:$0xff]  ;;  %v10411_v8 = vld [vmem:[#allocation6] sm:$0xff] }
 0xd1c   :  { %3503 = vmatpush.bf16.msra.mxu0 %v8319_v6 }
 0xd1d   :  { %v3165_v38 = vpack.c.bf16 %v3140_v62, %v3139_v16 }
 0xd1f   :  { %3262 = vmatmul.bf16.gmra.mxu2 %v3165_v38 }
 0xd20   :  { %3504 = vmatpush.bf16.msra.mxu0 %v8318_v63 }
 0xd23   :  { %3505 = vmatmul.bf16.vlgmr.msra.gmra.mxu0 %v10411_v8 }
 0xd32   :  { %v3228_v7 = vpop.f32.mrf.mxu2 }
 0xd33   :  { %v3229_v11 = vadd.f32 %v10395_v37, %v3228_v7 }
 0xd35   :  { %v3268_v4 = vmax.f32 %v3229_v11, 0.0 }
 0xd3a   :  { %v3230_v31 = vpop.f32.mrf.mxu2 }
 0xd3b   :  { %v3231_v1 = vadd.f32 %v10395_v37, %v3230_v31  ;;  %v10416_v31 = vld [vmem:[#allocation6 + $0x8] sm:$0xff] }
 0xd3c   :  { %3510 = vmatmul.bf16.gmra.mxu0 %v10416_v31 }
 0xd3d   :  { %v3269_v17 = vmax.f32 %v3231_v1, 0.0 }
 0xd3f   :  { %v3301_v14 = vpack.c.bf16 %v3269_v17, %v3268_v4  ;;  %v10421_v4 = vld [vmem:[#allocation6 + $0x10] sm:$0xff] }
 0xd41   :  { %3370 = vmatmul.bf16.vlgmr.msrb.gmra.mxu3 %v3301_v14 }
 0xd42   :  { %v3233_v52 = vpop.f32.mrf.mxu2 }
 0xd43   :  { %v3234_v51 = vadd.f32 %v10395_v37, %v3233_v52  ;;  %v10428_v52 = vld [vmem:[#allocation6 + $0x18] sm:$0xff] }
 0xd44   :  { %12205 = vst [vmem:[#allocation40_spill] sm:$0xff] %v10428_v52 }
 0xd45   :  { %v3270_v60 = vmax.f32 %v3234_v51, 0.0 }
 0xd4a   :  { %v3235_v33 = vpop.f32.mrf.mxu2 }
 0xd4b   :  { %v3236_v35 = vadd.f32 %v10395_v37, %v3235_v33  ;;  %v10435_v33 = vld [vmem:[#allocation6 + $0x20] sm:$0xff] }
 0xd4c   :  { %3515 = vmatmul.bf16.gmra.mxu0 %v10421_v4  ;;  %12206 = vst [vmem:[#allocation42_spill] sm:$0xff] %v10435_v33 }
 0xd4d   :  { %v3271_v23 = vmax.f32 %v3236_v35, 0.0 }
 0xd4f   :  { %v3302_v20 = vpack.c.bf16 %v3271_v23, %v3270_v60  ;;  %v10442_v23 = vld [vmem:[#allocation6 + $0x28] sm:$0xff] }
 0xd50   :  { %12207 = vst [vmem:[#allocation51_spill] sm:$0xff] %v10442_v23 }
 0xd51   :  { %3375 = vmatmul.bf16.gmra.mxu3 %v3302_v20 }
 0xd52   :  { %v3238_v57 = vpop.f32.mrf.mxu2 }
 0xd53   :  { %v3239_v39 = vadd.f32 %v10395_v37, %v3238_v57 }
 0xd55   :  { %v3272_v25 = vmax.f32 %v3239_v39, 0.0  ;;  %v10447_v39 = vld [vmem:[#allocation6 + $0x30] sm:$0xff] }
 0xd56   :  { %12208 = vst [vmem:[#allocation50_spill] sm:$0xff] %v10447_v39 }
 0xd5a   :  { %v3240_v30 = vpop.f32.mrf.mxu2 }
 0xd5b   :  { %v3241_v45 = vadd.f32 %v10395_v37, %v3240_v30 }
 0xd5c   :  { %3520 = vmatmul.bf16.gmra.mxu0 %v10428_v52 }
 0xd5d   :  { %v3273_v15 = vmax.f32 %v3241_v45, 0.0  ;;  %v8333_v45 = vld [vmem:[#allocation15 + $0x138] sm:$0xff] }
 0xd5e   :  { %3640 = vmatpush.bf16.msra.mxu1 %v8333_v45 }
 0xd5f   :  { %v3303_v40 = vpack.c.bf16 %v3273_v15, %v3272_v25  ;;  %v8332_v15 = vld [vmem:[#allocation15 + $0x130] sm:$0xff] }
 0xd61   :  { %3380 = vmatmul.bf16.gmra.mxu3 %v3303_v40  ;;  %v10450_v40 = vld [vmem:[#allocation6 + $0x38] sm:$0xff] }
 0xd62   :  { %v3243_v13 = vpop.f32.mrf.mxu2  ;;  %12209 = vst [vmem:[#allocation48_spill] sm:$0xff] %v10450_v40  ;;  %3641 = vmatpush.bf16.msra.mxu1 %v8332_v15 }
 0xd63   :  { %v3244_v61 = vadd.f32 %v10395_v37, %v3243_v13  ;;  %v8331_v13 = vld [vmem:[#allocation15 + $0x128] sm:$0xff] }
 0xd65   :  { %v3274_v24 = vmax.f32 %v3244_v61, 0.0 }
 0xd66   :  { %3642 = vmatpush.bf16.msra.mxu1 %v8331_v13 }
 0xd6a   :  { %v3245_v9 = vpop.f32.mrf.mxu2 }
 0xd6b   :  { %v3246_v59 = vadd.f32 %v10395_v37, %v3245_v9  ;;  %v8330_v9 = vld [vmem:[#allocation15 + $0x120] sm:$0xff] }
 0xd6c   :  { %3525 = vmatmul.bf16.gmra.mxu0 %v10435_v33  ;;  %3643 = vmatpush.bf16.msra.mxu1 %v8330_v9 }
 0xd6d   :  { %v3275_v19 = vmax.f32 %v3246_v59, 0.0  ;;  %v8329_v59 = vld [vmem:[#allocation15 + $0x118] sm:$0xff] }
 0xd6f   :  { %v3304_v44 = vpack.c.bf16 %v3275_v19, %v3274_v24 }
 0xd70   :  { %3644 = vmatpush.bf16.msra.mxu1 %v8329_v59 }
 0xd71   :  { %3385 = vmatmul.bf16.gmra.mxu3 %v3304_v44  ;;  %v10453_v44 = vld [vmem:[#allocation14 + $0x4] ss:$0 sm:$0xff] }
 0xd72   :  { %v3248_v56 = vpop.f32.mrf.mxu2 }
 0xd73   :  { %v3249_v21 = vadd.f32 %v10395_v37, %v3248_v56  ;;  %v8328_v56 = vld [vmem:[#allocation15 + $0x110] sm:$0xff] }
 0xd74   :  { %3645 = vmatpush.bf16.msra.mxu1 %v8328_v56 }
 0xd75   :  { %v3276_v41 = vmax.f32 %v3249_v21, 0.0 }
 0xd7a   :  { %v3250_v26 = vpop.f32.mrf.mxu2 }
 0xd7b   :  { %v3251_v36 = vadd.f32 %v10395_v37, %v3250_v26  ;;  %v8327_v26 = vld [vmem:[#allocation15 + $0x108] sm:$0xff] }
 0xd7c   :  { %3530 = vmatmul.bf16.gmra.mxu0 %v10442_v23  ;;  %3646 = vmatpush.bf16.msra.mxu1 %v8327_v26 }
 0xd7d   :  { %v3277_v34 = vmax.f32 %v3251_v36, 0.0 }
 0xd7f   :  { %v3305_v10 = vpack.c.bf16 %v3277_v34, %v3276_v41 }
 0xd81   :  { %3390 = vmatmul.bf16.gmra.mxu3 %v3305_v10 }
 0xd82   :  { %v3253_v27 = vpop.f32.mrf.mxu2 }
 0xd83   :  { %v3254_v43 = vadd.f32 %v10395_v37, %v3253_v27  ;;  %v8326_v27 = vld [vmem:[#allocation15 + $0x100] sm:$0xff] }
 0xd84   :  { %3647 = vmatpush.bf16.msra.mxu1 %v8326_v27 }
 0xd85   :  { %v3278_v46 = vmax.f32 %v3254_v43, 0.0 }
 0xd8a   :  { %v3255_v29 = vpop.f32.mrf.mxu2 }
 0xd8b   :  { %v3256_v53 = vadd.f32 %v10395_v37, %v3255_v29 }
 0xd8c   :  { %3535 = vmatmul.bf16.gmra.mxu0 %v10447_v39 }
 0xd8d   :  { %v3279_v2 = vmax.f32 %v3256_v53, 0.0 }
 0xd8f   :  { %v3306_v18 = vpack.c.bf16 %v3279_v2, %v3278_v46 }
 0xd91   :  { %3395 = vmatmul.bf16.gmra.mxu3 %v3306_v18 }
 0xd92   :  { %v3258_v32 = vpop.f32.mrf.mxu2 }
 0xd93   :  { %v3259_v54 = vadd.f32 %v10395_v37, %v3258_v32 }
 0xd95   :  { %v3280_v3 = vmax.f32 %v3259_v54, 0.0 }
 0xd9a   :  { %v3260_v42 = vpop.f32.mrf.mxu2 }
 0xd9b   :  { %v3261_v22 = vadd.f32 %v10395_v37, %v3260_v42 }
 0xd9c   :  { %3540 = vmatmul.bf16.gmra.mxu0 %v10450_v40 }
 0xd9d   :  { %v3281_v28 = vmax.f32 %v3261_v22, 0.0 }
 0xd9f   :  { %v3307_v58 = vpack.c.bf16 %v3281_v28, %v3280_v3 }
 0xda0   :  { %v3506_v19 = vpop.f32.mrf.mxu0 }
 0xda1   :  { %3400 = vmatmul.bf16.gmra.mxu3 %v3307_v58  ;;  %v3507_v21 = vadd.f32 %v10453_v44, %v3506_v19 }
 0xda2   :  { %v3263_v47 = vpop.f32.mrf.mxu2 }
 0xda3   :  { %v3264_v16 = vadd.f32 %v10395_v37, %v3263_v47  ;;  %v3546_v34 = vmax.f32 %v3507_v21, 0.0 }
 0xda5   :  { %v3282_v38 = vmax.f32 %v3264_v16, 0.0 }
 0xda8   :  { %v3508_v41 = vpop.f32.mrf.mxu0 }
 0xda9   :  { %v3509_v10 = vadd.f32 %v10453_v44, %v3508_v41 }
 0xdaa   :  { %v3265_v62 = vpop.f32.mrf.mxu2 }
 0xdab   :  { %v3266_v48 = vadd.f32 %v10395_v37, %v3265_v62  ;;  %v3547_v55 = vmax.f32 %v3509_v10, 0.0 }
 0xdad   :  { %v3283_v7 = vmax.f32 %v3266_v48, 0.0  ;;  %v3579_v43 = vpack.c.bf16 %v3547_v55, %v3546_v34 }
 0xdaf   :  { %v3308_v11 = vpack.c.bf16 %v3283_v7, %v3282_v38  ;;  %3648 = vmatmul.bf16.vlgmr.msra.gmra.mxu1 %v3579_v43 }
 0xdb1   :  { %3405 = vmatmul.bf16.gmra.mxu3 %v3308_v11 }
 0xdb9   :  { %v3511_v53 = vpop.f32.mrf.mxu0 }
 0xdba   :  { %v3512_v46 = vadd.f32 %v10453_v44, %v3511_v53 }
 0xdbc   :  { %v3548_v0 = vmax.f32 %v3512_v46, 0.0 }
 0xdc1   :  { %v3513_v32 = vpop.f32.mrf.mxu0 }
 0xdc2   :  { %v3514_v54 = vadd.f32 %v10453_v44, %v3513_v32 }
 0xdc4   :  { %v10419_v1 = vpop.f32.mrf.mxu3  ;;  %v3549_v3 = vmax.f32 %v3514_v54, 0.0 }
 0xdc6   :  { %v3580_v47 = vpack.c.bf16 %v3549_v3, %v3548_v0  ;;  %v12210_v3 = vld [vmem:[#allocation52_spill] sm:$0xff] }
 0xdc8   :  { %3653 = vmatmul.bf16.gmra.mxu1 %v3580_v47 }
 0xdc9   :  { %v3516_v7 = vpop.f32.mrf.mxu0 }
 0xdca   :  { %v3517_v13 = vadd.f32 %v10453_v44, %v3516_v7 }
 0xdcc   :  { %v10424_v17 = vpop.f32.mrf.mxu3  ;;  %v3550_v19 = vmax.f32 %v3517_v13, 0.0 }
 0xdcd   :  { %v10528_v27 = vadd.f32 %v8510_v5, %v10424_v17 }
 0xdcf   :  { %v11914_v53 = vmax.f32 %v10528_v27, 0.0 }
 0xdd4   :  { %v10426_v14 = vpop.f32.mrf.mxu3 }
 0xdd5   :  { %v10524_v10 = vadd.f32 %v8510_v5, %v10426_v14 }
 0xdd7   :  { %v11913_v14 = vmax.f32 %v10524_v10, 0.0 }
 0xddc   :  { %v10431_v37 = vpop.f32.mrf.mxu3 }
 0xde4   :  { %v10433_v51 = vpop.f32.mrf.mxu3 }
 0xdec   :  { %v10438_v35 = vpop.f32.mrf.mxu3 }
 0xded   :  { %v10503_v9 = vadd.f32 %v8510_v5, %v10438_v35  ;;  %v10516_v35 = vadd.f32 %v8510_v5, %v10431_v37 }
 0xdef   :  { %v11912_v37 = vmax.f32 %v10516_v35, 0.0 }
 0xdf1   :  { %v3706_v17 = vpack.c.bf16 %v11912_v37, %v11913_v14 }
 0xdf4   :  { %v10440_v60 = vpop.f32.mrf.mxu3 }
 0xdfc   :  { %v10445_v20 = vpop.f32.mrf.mxu3 }
 0xe04   :  { %v3391_v57 = vpop.f32.mrf.mxu3 }
 0xe05   :  { %v10486_v11 = vadd.f32 %v8510_v5, %v3391_v57 }
 0xe07   :  { %v11907_v57 = vmax.f32 %v10486_v11, 0.0 }
 0xe0c   :  { %v3393_v30 = vpop.f32.mrf.mxu3 }
 0xe0d   :  { %v10479_v62 = vadd.f32 %v8510_v5, %v3393_v30 }
 0xe0f   :  { %v11906_v15 = vmax.f32 %v10479_v62, 0.0 }
 0xe11   :  { %v3709_v59 = vpack.c.bf16 %v11906_v15, %v11907_v57 }
 0xe14   :  { %v3396_v25 = vpop.f32.mrf.mxu3 }
 0xe15   :  { %v10476_v63 = vadd.f32 %v8510_v5, %v3396_v25  ;;  %v10490_v25 = vadd.f32 %v8510_v5, %v10445_v20 }
 0xe17   :  { %v11905_v45 = vmax.f32 %v10476_v63, 0.0  ;;  %v11908_v20 = vmax.f32 %v10490_v25, 0.0 }
 0xe1c   :  { %v3398_v61 = vpop.f32.mrf.mxu3 }
 0xe1d   :  { %v10469_v28 = vadd.f32 %v8510_v5, %v3398_v61  ;;  %v10499_v61 = vadd.f32 %v8510_v5, %v10440_v60  ;;  %v10512_v60 = vadd.f32 %v8510_v5, %v10433_v51 }
 0xe1f   :  { %v11904_v48 = vmax.f32 %v10469_v28, 0.0  ;;  %v11909_v21 = vmax.f32 %v10499_v61, 0.0  ;;  %v11911_v51 = vmax.f32 %v10512_v60, 0.0 }
 0xe21   :  { %v3710_v30 = vpack.c.bf16 %v11904_v48, %v11905_v45  ;;  %v3708_v41 = vpack.c.bf16 %v11908_v20, %v11909_v21 }
 0xe24   :  { %v3401_v24 = vpop.f32.mrf.mxu3 }
 0xe25   :  { %v10465_v12 = vadd.f32 %v8510_v5, %v3401_v24  ;;  %v3518_v24 = vpop.f32.mrf.mxu0 }
 0xe26   :  { %v3519_v56 = vadd.f32 %v10453_v44, %v3518_v24  ;;  %v12211_v24 = vld [vmem:[#allocation45_spill] sm:$0xff] }
 0xe27   :  { %v11903_v16 = vmax.f32 %v10465_v12, 0.0 }
 0xe28   :  { %v3551_v26 = vmax.f32 %v3519_v56, 0.0 }
 0xe2a   :  { %v3581_v34 = vpack.c.bf16 %v3551_v26, %v3550_v19 }
 0xe2c   :  { %v3403_v36 = vpop.f32.mrf.mxu3  ;;  %3658 = vmatmul.bf16.gmra.mxu1 %v3581_v34 }
 0xe2d   :  { %v10460_v50 = vadd.f32 %v8510_v5, %v3403_v36  ;;  %v11910_v36 = vmax.f32 %v10503_v9, 0.0  ;;  %v3521_v43 = vpop.f32.mrf.mxu0 }
 0xe2e   :  { %v3522_v46 = vadd.f32 %v10453_v44, %v3521_v43 }
 0xe2f   :  { %v11902_v6 = vmax.f32 %v10460_v50, 0.0  ;;  %v3707_v55 = vpack.c.bf16 %v11910_v36, %v11911_v51 }
 0xe30   :  { %v3552_v32 = vmax.f32 %v3522_v46, 0.0 }
 0xe31   :  { %v3711_v38 = vpack.c.bf16 %v11902_v6, %v11903_v16 }
 0xe34   :  { %v3406_v29 = vpop.f32.mrf.mxu3 }
 0xe35   :  { %v10458_v2 = vadd.f32 %v8510_v5, %v3406_v29  ;;  %v10536_v29 = vadd.f32 %v8510_v5, %v10419_v1 }
 0xe37   :  { %v11901_v42 = vmax.f32 %v10458_v2, 0.0 }
 0xe3c   :  { %v3408_v18 = vpop.f32.mrf.mxu3 }
 0xe3d   :  { %v10462_v49 = vadd.f32 %v8510_v5, %v3408_v18  ;;  %v11915_v18 = vmax.f32 %v10536_v29, 0.0  ;;  %v3523_v5 = vpop.f32.mrf.mxu0 }
 0xe3e   :  { %v3524_v0 = vadd.f32 %v10453_v44, %v3523_v5 }
 0xe3f   :  { %v11900_v22 = vmax.f32 %v10462_v49, 0.0  ;;  %v3705_v1 = vpack.c.bf16 %v11914_v53, %v11915_v18 }
 0xe40   :  { %v3553_v54 = vmax.f32 %v3524_v0, 0.0 }
 0xe41   :  { %v3712_v58 = vpack.c.bf16 %v11900_v22, %v11901_v42 }
 0xe43   :  { %3713 = vmatpush.bf16.msra.mxu2 %v3712_v58  ;;  %v3582_v58 = vpack.c.bf16 %v3553_v54, %v3552_v32 }
 0xe45   :  { %3663 = vmatmul.bf16.gmra.mxu1 %v3582_v58  ;;  %v3526_v47 = vpop.f32.mrf.mxu0  ;;  %v12213_v58 = vld [vmem:[#allocation44_spill] sm:$0xff] }
 0xe47   :  { %3714 = vmatpush.bf16.msra.mxu2 %v3711_v38  ;;  %v3527_v38 = vadd.f32 %v10453_v44, %v3526_v47 }
 0xe4b   :  { %3715 = vmatpush.bf16.msra.mxu2 %v3710_v30  ;;  %v3554_v30 = vmax.f32 %v3527_v38, 0.0 }
 0xe4d   :  { %v3528_v7 = vpop.f32.mrf.mxu0 }
 0xe4e   :  { %v3529_v13 = vadd.f32 %v10453_v44, %v3528_v7 }
 0xe4f   :  { %3716 = vmatpush.bf16.msra.mxu2 %v3709_v59 }
 0xe50   :  { %v3555_v59 = vmax.f32 %v3529_v13, 0.0 }
 0xe52   :  { %v3583_v19 = vpack.c.bf16 %v3555_v59, %v3554_v30 }
 0xe53   :  { %3717 = vmatpush.bf16.msra.mxu2 %v3708_v41 }
 0xe55   :  { %3668 = vmatmul.bf16.gmra.mxu1 %v3583_v19  ;;  %v3531_v56 = vpop.f32.mrf.mxu0  ;;  %v12214_v19 = vld [vmem:[#allocation43_spill] sm:$0xff] }
 0xe56   :  { %v3532_v26 = vadd.f32 %v10453_v44, %v3531_v56 }
 0xe57   :  { %3718 = vmatpush.bf16.msra.mxu2 %v3707_v55 }
 0xe58   :  { %v3556_v34 = vmax.f32 %v3532_v26, 0.0  ;;  %v12215_v26 = vld [vmem:[#allocation41_spill] sm:$0xff] }
 0xe5b   :  { %3719 = vmatpush.bf16.msra.mxu2 %v3706_v17  ;;  %v12212_v17 = vld [vmem:[#allocation46_spill] sm:$0xff] }
 0xe5d   :  { %v3533_v41 = vpop.f32.mrf.mxu0 }
 0xe5e   :  { %v3534_v55 = vadd.f32 %v10453_v44, %v3533_v41  ;;  %v3649_v41 = vpop.f32.mrf.mxu1 }
 0xe5f   :  { %3720 = vmatpush.bf16.msra.mxu2 %v3705_v1 }
 0xe60   :  { %v3557_v43 = vmax.f32 %v3534_v55, 0.0 }
 0xe62   :  { %3721 = vmatmul.bf16.vlgmr.msra.gmra.mxu2 %v12210_v3  ;;  %v3584_v46 = vpack.c.bf16 %v3557_v43, %v3556_v34  ;;  %v10565_v34 = vld [vmem:[#allocation8 + $0x30] sm:$0xff]  ;;  %v10570_v43 = vld [vmem:[#allocation8 + $0x38] sm:$0xff] }
 0xe63   :  { %12216 = vst [vmem:[#allocation47_spill] sm:$0xff] %v10565_v34 }
 0xe64   :  { %12217 = vst [vmem:[#allocation49_spill] sm:$0xff] %v10570_v43 }
 0xe65   :  { %3673 = vmatmul.bf16.gmra.mxu1 %v3584_v46  ;;  %v3536_v1 = vpop.f32.mrf.mxu0 }
 0xe66   :  { %v3537_v5 = vadd.f32 %v10453_v44, %v3536_v1  ;;  %v10568_v55 = vpop.f32.mrf.mxu1 }
 0xe68   :  { %v3558_v0 = vmax.f32 %v3537_v5, 0.0 }
 0xe6d   :  { %v3538_v32 = vpop.f32.mrf.mxu0 }
 0xe6e   :  { %v3539_v54 = vadd.f32 %v10453_v44, %v3538_v32 }
 0xe70   :  { %v3559_v3 = vmax.f32 %v3539_v54, 0.0 }
 0xe72   :  { %3726 = vmatmul.bf16.gmra.mxu2 %v12211_v24  ;;  %v3585_v47 = vpack.c.bf16 %v3559_v3, %v3558_v0 }
 0xe75   :  { %3678 = vmatmul.bf16.gmra.mxu1 %v3585_v47  ;;  %v3541_v38 = vpop.f32.mrf.mxu0 }
 0xe76   :  { %v3542_v7 = vadd.f32 %v10453_v44, %v3541_v38 }
 0xe78   :  { %v3560_v13 = vmax.f32 %v3542_v7, 0.0 }
 0xe7d   :  { %v3543_v30 = vpop.f32.mrf.mxu0 }
 0xe7e   :  { %v3544_v59 = vadd.f32 %v10453_v44, %v3543_v30  ;;  %v10576_v44 = vld [vmem:[%s11801_s8 + $0x4] ss:$0 sm:$0xff] }
 0xe7f   :  { %v3650_v1 = vadd.f32 %v10576_v44, %v3649_v41 }
 0xe80   :  { %v3561_v24 = vmax.f32 %v3544_v59, 0.0 }
 0xe81   :  { %v3689_v5 = vmax.f32 %v3650_v1, 0.0 }
 0xe82   :  { %3731 = vmatmul.bf16.gmra.mxu2 %v12212_v17  ;;  %v3586_v56 = vpack.c.bf16 %v3561_v24, %v3560_v13  ;;  %v3654_v17 = vpop.f32.mrf.mxu1 }
 0xe85   :  { %3683 = vmatmul.bf16.gmra.mxu1 %v3586_v56 }
 0xe8a   :  { %v10578_v46 = vpop.f32.mrf.mxu1 }
 0xe92   :  { %3736 = vmatmul.bf16.gmra.mxu2 %v12213_v58  ;;  %v3655_v58 = vadd.f32 %v10576_v44, %v3654_v17 }
 0xe94   :  { %v3691_v38 = vmax.f32 %v3655_v58, 0.0 }
 0xea2   :  { %3741 = vmatmul.bf16.gmra.mxu2 %v12214_v19 }
 0xea9   :  { %v3659_v54 = vpop.f32.mrf.mxu1 }
 0xeaa   :  { %v3660_v24 = vadd.f32 %v10576_v44, %v3659_v54 }
 0xeac   :  { %v3693_v19 = vmax.f32 %v3660_v24, 0.0 }
 0xeb1   :  { %v10586_v47 = vpop.f32.mrf.mxu1 }
 0xeb2   :  { %3746 = vmatmul.bf16.gmra.mxu2 %v12215_v26 }
 0xec2   :  { %3751 = vmatmul.bf16.gmra.mxu2 %v10565_v34  ;;  %v3664_v13 = vpop.f32.mrf.mxu1 }
 0xec3   :  { %v3665_v17 = vadd.f32 %v10576_v44, %v3664_v13 }
 0xeca   :  { %v3666_v26 = vpop.f32.mrf.mxu1 }
 0xed2   :  { %3756 = vmatmul.bf16.gmra.mxu2 %v10570_v43 }
 0xee5   :  { %v3722_v32 = vpop.f32.mrf.mxu2 }
 0xee6   :  { %v10581_v0 = vadd.f32 %v3722_v32, %v3689_v5  ;;  %v3669_v5 = vpop.f32.mrf.mxu1  ;;  %v3695_v32 = vmax.f32 %v3665_v17, 0.0 }
 0xee7   :  { %v3670_v42 = vadd.f32 %v10576_v44, %v3669_v5 }
 0xee9   :  { %v3697_v54 = vmax.f32 %v3670_v42, 0.0 }
 0xeed   :  { %v10583_v3 = vpop.f32.mrf.mxu2 }
 0xef5   :  { %v3727_v7 = vpop.f32.mrf.mxu2 }
 0xef6   :  { %v10588_v30 = vadd.f32 %v3727_v7, %v3691_v38  ;;  %v3671_v38 = vpop.f32.mrf.mxu1 }
 0xefd   :  { %v10590_v59 = vpop.f32.mrf.mxu2 }
 0xefe   :  { %v3674_v6 = vpop.f32.mrf.mxu1 }
 0xeff   :  { %v3675_v18 = vadd.f32 %v10576_v44, %v3674_v6 }
 0xf01   :  { %v3699_v33 = vmax.f32 %v3675_v18, 0.0 }
 0xf05   :  { %v3732_v56 = vpop.f32.mrf.mxu2 }
 0xf06   :  { %v10593_v41 = vadd.f32 %v3732_v56, %v3693_v19  ;;  %v3676_v48 = vpop.f32.mrf.mxu1 }
 0xf0d   :  { %v10595_v1 = vpop.f32.mrf.mxu2 }
 0xf0e   :  { %v3679_v45 = vpop.f32.mrf.mxu1 }
 0xf0f   :  { %v3680_v42 = vadd.f32 %v10576_v44, %v3679_v45 }
 0xf11   :  { %v3701_v43 = vmax.f32 %v3680_v42, 0.0 }
 0xf15   :  { %v3737_v58 = vpop.f32.mrf.mxu2 }
 0xf16   :  { %v10598_v22 = vadd.f32 %v3737_v58, %v3695_v32  ;;  %v3681_v57 = vpop.f32.mrf.mxu1 }
 0xf17   :  { %v3682_v36 = vadd.f32 %v10576_v44, %v3681_v57 }
 0xf19   :  { %v3702_v51 = vmax.f32 %v3682_v36, 0.0 }
 0xf1d   :  { %v3739_v7 = vpop.f32.mrf.mxu2 }
 0xf1e   :  { %v3684_v13 = vpop.f32.mrf.mxu1 }
 0xf1f   :  { %v3685_v58 = vadd.f32 %v10576_v44, %v3684_v13  ;;  %v3672_v13 = vadd.f32 %v10576_v44, %v3671_v38 }
 0xf21   :  { %v3698_v36 = vmax.f32 %v3672_v13, 0.0  ;;  %v8341_v13 = vld [vmem:[#allocation17 + $0x138] sm:$0xff] }
 0xf22   :  { %3948 = vmatpush.bf16.msrb.mxu0 %v8341_v13 }
 0xf25   :  { %v3742_v24 = vpop.f32.mrf.mxu2 }
 0xf26   :  { %v3743_v16 = vadd.f32 %v3742_v24, %v3697_v54  ;;  %v3686_v21 = vpop.f32.mrf.mxu1  ;;  %v3703_v54 = vmax.f32 %v3685_v58, 0.0  ;;  %v3677_v24 = vadd.f32 %v10576_v44, %v3676_v48  ;;  %v3667_v48 = vadd.f32 %v10576_v44, %v3666_v26 }
 0xf27   :  { %v3687_v5 = vadd.f32 %v10576_v44, %v3686_v21  ;;  %v3768_v26 = vmax.f32 %v10598_v22, 0.0  ;;  %v3762_v22 = vmax.f32 %v10581_v0, 0.0  ;;  %v10634_v0 = vld [vmem:[#allocation9 + $0x20] sm:$0xff] }
 0xf28   :  { %v3700_v39 = vmax.f32 %v3677_v24, 0.0  ;;  %v3770_v18 = vmax.f32 %v3743_v16, 0.0 }
 0xf29   :  { %v3704_v37 = vmax.f32 %v3687_v5, 0.0 }
 0xf2d   :  { %v3744_v19 = vpop.f32.mrf.mxu2 }
 0xf2e   :  { %v3745_v6 = vadd.f32 %v3744_v19, %v3698_v36  ;;  %v10640_v36 = vld [vmem:[#allocation9 + $0x30] sm:$0xff] }
 0xf35   :  { %v3747_v56 = vpop.f32.mrf.mxu2 }
 0xf3d   :  { %v3749_v15 = vpop.f32.mrf.mxu2 }
 0xf3e   :  { %v3750_v45 = vadd.f32 %v3749_v15, %v3700_v39 }
 0xf40   :  { %v3773_v42 = vmax.f32 %v3750_v45, 0.0  ;;  %v8339_v45 = vld [vmem:[#allocation17 + $0x128] sm:$0xff] }
 0xf45   :  { %v3752_v20 = vpop.f32.mrf.mxu2 }
 0xf46   :  { %v3753_v57 = vadd.f32 %v3752_v20, %v3701_v43  ;;  %v3652_v43 = vadd.f32 %v10576_v44, %v10568_v55 }
 0xf48   :  { %v3774_v5 = vmax.f32 %v3753_v57, 0.0  ;;  %v10637_v57 = vld [vmem:[#allocation9 + $0x28] sm:$0xff] }
 0xf4d   :  { %v3754_v17 = vpop.f32.mrf.mxu2 }
 0xf4e   :  { %v3755_v34 = vadd.f32 %v3754_v17, %v3702_v51 }
 0xf50   :  { %v3775_v58 = vmax.f32 %v3755_v34, 0.0 }
 0xf52   :  { %v3784_v51 = vpack.c.bf16 %v3775_v58, %v3774_v5  ;;  %v8338_v58 = vld [vmem:[#allocation17 + $0x120] sm:$0xff]  ;;  %v8335_v5 = vld [vmem:[#allocation17 + $0x108] sm:$0xff] }
 0xf55   :  { %v3757_v32 = vpop.f32.mrf.mxu2 }
 0xf56   :  { %v3758_v14 = vadd.f32 %v3757_v32, %v3703_v54  ;;  %v3748_v32 = vadd.f32 %v3747_v56, %v3699_v33  ;;  %v3690_v56 = vmax.f32 %v3652_v43, 0.0  ;;  %v3764_v54 = vmax.f32 %v10588_v30, 0.0  ;;  %v10631_v30 = vld [vmem:[#allocation9 + $0x18] sm:$0xff] }
 0xf57   :  { %v12221_v43 = vmax.f32 %v10516_v35, 0.0 }
 0xf58   :  { %v3776_v23 = vmax.f32 %v3758_v14, 0.0  ;;  %v3772_v20 = vmax.f32 %v3748_v32, 0.0  ;;  %v3771_v14 = vmax.f32 %v3745_v6, 0.0  ;;  %v3725_v16 = vadd.f32 %v10583_v3, %v3690_v56  ;;  %v10628_v3 = vld [vmem:[#allocation9 + $0x10] sm:$0xff]  ;;  %v8336_v32 = vld [vmem:[#allocation17 + $0x110] sm:$0xff] }
 0xf59   :  { %v8334_v6 = vld [vmem:[#allocation17 + $0x100] sm:$0xff] }
 0xf5a   :  { %v3783_v39 = vpack.c.bf16 %v3773_v42, %v3772_v20  ;;  %v3782_v34 = vpack.c.bf16 %v3771_v14, %v3770_v18  ;;  %v3763_v55 = vmax.f32 %v3725_v16, 0.0  ;;  %v10643_v42 = vld [vmem:[#allocation9 + $0x38] sm:$0xff] }
 0xf5c   :  { %v3778_v24 = vpack.c.bf16 %v3763_v55, %v3762_v22  ;;  %v12224_v55 = vmax.f32 %v10499_v61, 0.0  ;;  %v12225_v22 = vmax.f32 %v10490_v25, 0.0 }
 0xf5d   :  { %v3759_v53 = vpop.f32.mrf.mxu2 }
 0xf5e   :  { %v3760_v40 = vadd.f32 %v3759_v53, %v3704_v37  ;;  %v3662_v37 = vadd.f32 %v10576_v44, %v10586_v47  ;;  %v3696_v53 = vmax.f32 %v3667_v48, 0.0  ;;  %v8337_v48 = vld [vmem:[#allocation17 + $0x118] sm:$0xff] }
 0xf60   :  { %v3777_v21 = vmax.f32 %v3760_v40, 0.0  ;;  %v3740_v40 = vadd.f32 %v3739_v7, %v3696_v53  ;;  %v3694_v15 = vmax.f32 %v3662_v37, 0.0  ;;  %v10646_v37 = vstv %s3836_s0 }
 0xf61   :  { %v12218_v53 = vmax.f32 %v10536_v29, 0.0  ;;  %v3841_v29 = vmul.f32 %v10646_v37, %v12221_v43  ;;  %v8346_v43 = vld [vmem:[#allocation20 + $0x120] sm:$0xff] }
 0xf62   :  { %v3785_v52 = vpack.c.bf16 %v3777_v21, %v3776_v23  ;;  %v3657_v23 = vadd.f32 %v10576_v44, %v10578_v46  ;;  %v3769_v33 = vmax.f32 %v3740_v40, 0.0  ;;  %v3766_v46 = vmax.f32 %v10593_v41, 0.0  ;;  %v10625_v41 = vld [vmem:[#allocation9 + $0x8] sm:$0xff]  ;;  %v8340_v21 = vld [vmem:[#allocation17 + $0x130] sm:$0xff] }
 0xf63   :  { %3949 = vmatpush.bf16.msrb.mxu0 %v8340_v21  ;;  %v3838_v20 = vmul.f32 %v10646_v37, %v12218_v53  ;;  %v12219_v40 = vmax.f32 %v10528_v27, 0.0 }
 0xf64   :  { %3786 = vmatpush.bf16.msra.mxu3 %v3785_v52  ;;  %v3735_v52 = vadd.f32 %v10595_v1, %v3694_v15  ;;  %v3692_v47 = vmax.f32 %v3657_v23, 0.0  ;;  %v3781_v19 = vpack.c.bf16 %v3769_v33, %v3768_v26  ;;  %v12220_v33 = vmax.f32 %v10524_v10, 0.0 }
 0xf65   :  { %v3839_v14 = vmul.f32 %v10646_v37, %v12219_v40 }
 0xf66   :  { %v3730_v38 = vadd.f32 %v10590_v59, %v3692_v47  ;;  %v3767_v7 = vmax.f32 %v3735_v52, 0.0  ;;  %v10622_v59 = vld [vmem:[#allocation9] sm:$0xff] }
 0xf67   :  { %3950 = vmatpush.bf16.msrb.mxu0 %v8339_v45 }
 0xf68   :  { %3787 = vmatpush.bf16.msra.mxu3 %v3784_v51  ;;  %v3765_v1 = vmax.f32 %v3730_v38, 0.0  ;;  %v3780_v17 = vpack.c.bf16 %v3767_v7, %v3766_v46  ;;  %v12223_v46 = vmax.f32 %v10503_v9, 0.0 }
 0xf6a   :  { %v3779_v44 = vpack.c.bf16 %v3765_v1, %v3764_v54  ;;  %v3843_v10 = vmul.f32 %v10646_v37, %v12223_v46 }
 0xf6b   :  { %3951 = vmatpush.bf16.msrb.mxu0 %v8338_v58  ;;  %v12226_v58 = vmax.f32 %v10486_v11, 0.0 }
 0xf6c   :  { %3788 = vmatpush.bf16.msra.mxu3 %v3783_v39 }
 0xf6f   :  { %3952 = vmatpush.bf16.msrb.mxu0 %v8337_v48  ;;  %v3846_v48 = vmul.f32 %v10646_v37, %v12226_v58 }
 0xf70   :  { %3789 = vmatpush.bf16.msra.mxu3 %v3782_v34  ;;  %v3840_v34 = vmul.f32 %v10646_v37, %v12220_v33  ;;  %v8347_v33 = vld [vmem:[#allocation20 + $0x128] sm:$0xff] }
 0xf73   :  { %3953 = vmatpush.bf16.msrb.mxu0 %v8336_v32  ;;  %v12227_v32 = vmax.f32 %v10479_v62, 0.0 }
 0xf74   :  { %3790 = vmatpush.bf16.msra.mxu3 %v3781_v19  ;;  %v12222_v19 = vmax.f32 %v10512_v60, 0.0  ;;  %v3845_v60 = vmul.f32 %v10646_v37, %v12225_v22 }
 0xf75   :  { %v3847_v61 = vmul.f32 %v10646_v37, %v12227_v32 }
 0xf76   :  { %v3842_v56 = vmul.f32 %v10646_v37, %v12222_v19 }
 0xf77   :  { %3954 = vmatpush.bf16.msrb.mxu0 %v8335_v5 }
 0xf78   :  { %3791 = vmatpush.bf16.msra.mxu3 %v3780_v17 }
 0xf7b   :  { %3955 = vmatpush.bf16.msrb.mxu0 %v8334_v6 }
 0xf7c   :  { %3792 = vmatpush.bf16.msra.mxu3 %v3779_v44  ;;  %v3844_v44 = vmul.f32 %v10646_v37, %v12224_v55 }
 0xf80   :  { %3793 = vmatpush.bf16.msra.mxu3 %v3778_v24 }
 0xf83   :  { %3794 = vmatmul.bf16.vlgmr.msra.gmra.mxu3 %v10622_v59 }
 0xf93   :  { %3799 = vmatmul.bf16.gmra.mxu3 %v10625_v41 }
 0xfa3   :  { %3804 = vmatmul.bf16.gmra.mxu3 %v10628_v3 }
 0xfb3   :  { %3809 = vmatmul.bf16.gmra.mxu3 %v10631_v30 }
 0xfc3   :  { %3814 = vmatmul.bf16.gmra.mxu3 %v10634_v0 }
 0xfd3   :  { %3819 = vmatmul.bf16.gmra.mxu3 %v10637_v57 }
 0xfe3   :  { %3824 = vmatmul.bf16.gmra.mxu3 %v10640_v36 }
 0xff3   :  { %3829 = vmatmul.bf16.gmra.mxu3 %v10643_v42 }
0x1006   :  { %v3795_v51 = vpop.f32.mrf.mxu3 }
0x1007   :  { %v3854_v23 = vadd.f32 %v3838_v20, %v3795_v51  ;;  %v12228_v20 = vmax.f32 %v10476_v63, 0.0  ;;  %v12230_v63 = vmax.f32 %v10465_v12, 0.0  ;;  %v12232_v12 = vmax.f32 %v10458_v2, 0.0 }
0x1009   :  { %v3848_v40 = vmul.f32 %v10646_v37, %v12228_v20 }
0x100e   :  { %v3797_v39 = vpop.f32.mrf.mxu3 }
0x100f   :  { %v3855_v15 = vadd.f32 %v3839_v14, %v3797_v39  ;;  %v12229_v14 = vmax.f32 %v10469_v28, 0.0  ;;  %v3850_v28 = vmul.f32 %v10646_v37, %v12230_v63  ;;  %v8355_v63 = vld [vmem:[#allocation12 + $0x168] sm:$0xff] }
0x1011   :  { %v3887_v18 = vpack.c.bf16 %v3855_v15, %v3854_v23  ;;  %v3849_v11 = vmul.f32 %v10646_v37, %v12229_v14  ;;  %v8349_v23 = vld [vmem:[#allocation20 + $0x138] sm:$0xff] }
0x1012   :  { %4091 = vmatpush.bf16.msrb.mxu1 %v8349_v23 }
0x1013   :  { %3956 = vmatmul.bf16.vlgmr.msrb.gmra.mxu0 %v3887_v18 }
0x1016   :  { %v3800_v52 = vpop.f32.mrf.mxu3 }
0x1017   :  { %v3856_v26 = vadd.f32 %v3840_v34, %v3800_v52  ;;  %v8348_v52 = vld [vmem:[#allocation20 + $0x130] sm:$0xff] }
0x1018   :  { %4092 = vmatpush.bf16.msrb.mxu1 %v8348_v52 }
0x101c   :  { %4093 = vmatpush.bf16.msrb.mxu1 %v8347_v33  ;;  %v8357_v33 = vld [vmem:[#allocation12 + $0x178] sm:$0xff] }
0x101d   :  { %4226 = vmatpush.bf16.msrb.mxu2 %v8357_v33  ;;  %v8361_v33 = vld [vmem:[#allocation15 + $0x158] sm:$0xff] }
0x101e   :  { %v3802_v47 = vpop.f32.mrf.mxu3 }
0x101f   :  { %v3857_v38 = vadd.f32 %v3841_v29, %v3802_v47  ;;  %v12231_v29 = vmax.f32 %v10460_v50, 0.0  ;;  %v3852_v50 = vmul.f32 %v10646_v37, %v12232_v12 }
0x1020   :  { %4094 = vmatpush.bf16.msrb.mxu1 %v8346_v43  ;;  %v8356_v43 = vld [vmem:[#allocation12 + $0x170] sm:$0xff] }
0x1021   :  { %v3888_v27 = vpack.c.bf16 %v3857_v38, %v3856_v26  ;;  %v3851_v47 = vmul.f32 %v10646_v37, %v12231_v29  ;;  %v8345_v38 = vld [vmem:[#allocation20 + $0x118] sm:$0xff]  ;;  %4227 = vmatpush.bf16.msrb.mxu2 %v8356_v43 }
0x1022   :  { %v10740_v43 = vld [vmem:[#allocation14 + $0x5] ss:$0 sm:$0xff] }
0x1023   :  { %3961 = vmatmul.bf16.gmra.mxu0 %v3888_v27 }
0x1024   :  { %4095 = vmatpush.bf16.msrb.mxu1 %v8345_v38 }
0x1025   :  { %4228 = vmatpush.bf16.msrb.mxu2 %v8355_v63  ;;  %v8360_v63 = vld [vmem:[#allocation15 + $0x150] sm:$0xff] }
0x1026   :  { %v3805_v7 = vpop.f32.mrf.mxu3 }
0x1027   :  { %v3858_v1 = vadd.f32 %v3842_v56, %v3805_v7  ;;  %v8344_v56 = vld [vmem:[#allocation20 + $0x110] sm:$0xff] }
0x1028   :  { %4096 = vmatpush.bf16.msrb.mxu1 %v8344_v56 }
0x102e   :  { %v3807_v16 = vpop.f32.mrf.mxu3 }
0x102f   :  { %v3859_v17 = vadd.f32 %v3843_v10, %v3807_v16  ;;  %v8343_v10 = vld [vmem:[#allocation20 + $0x108] sm:$0xff]  ;;  %v8342_v16 = vld [vmem:[#allocation20 + $0x100] sm:$0xff] }
0x1030   :  { %4097 = vmatpush.bf16.msrb.mxu1 %v8343_v10  ;;  %v8351_v10 = vld [vmem:[#allocation12 + $0x148] sm:$0xff] }
0x1031   :  { %v3889_v35 = vpack.c.bf16 %v3859_v17, %v3858_v1  ;;  %v12233_v1 = vmax.f32 %v10462_v49, 0.0 }
0x1033   :  { %3966 = vmatmul.bf16.gmra.mxu0 %v3889_v35  ;;  %v3853_v17 = vmul.f32 %v10646_v37, %v12233_v1  ;;  %v8350_v1 = vld [vmem:[#allocation12 + $0x140] sm:$0xff] }
0x1034   :  { %4098 = vmatpush.bf16.msrb.mxu1 %v8342_v16 }
0x1036   :  { %v3810_v54 = vpop.f32.mrf.mxu3 }
0x1037   :  { %v3860_v13 = vadd.f32 %v3844_v44, %v3810_v54 }
0x103e   :  { %v3812_v24 = vpop.f32.mrf.mxu3 }
0x103f   :  { %v3861_v21 = vadd.f32 %v3845_v60, %v3812_v24  ;;  %v10696_v60 = vld [vmem:[#allocation18 + $0x4] ss:$0 sm:$0xff] }
0x1041   :  { %v3890_v9 = vpack.c.bf16 %v3861_v21, %v3860_v13 }
0x1043   :  { %3971 = vmatmul.bf16.gmra.mxu0 %v3890_v9 }
0x1046   :  { %v3815_v45 = vpop.f32.mrf.mxu3 }
0x1047   :  { %v3862_v6 = vadd.f32 %v3846_v48, %v3815_v45 }
0x104e   :  { %v3817_v5 = vpop.f32.mrf.mxu3 }
0x104f   :  { %v3863_v51 = vadd.f32 %v3847_v61, %v3817_v5 }
0x1051   :  { %v3891_v25 = vpack.c.bf16 %v3863_v51, %v3862_v6 }
0x1053   :  { %3976 = vmatmul.bf16.gmra.mxu0 %v3891_v25 }
0x1056   :  { %v3820_v53 = vpop.f32.mrf.mxu3 }
0x1057   :  { %v3864_v15 = vadd.f32 %v3848_v40, %v3820_v53 }
0x105e   :  { %v3822_v39 = vpop.f32.mrf.mxu3 }
0x105f   :  { %v3865_v62 = vadd.f32 %v3849_v11, %v3822_v39 }
0x1061   :  { %v3892_v18 = vpack.c.bf16 %v3865_v62, %v3864_v15 }
0x1063   :  { %3981 = vmatmul.bf16.gmra.mxu0 %v3892_v18 }
0x1066   :  { %v3825_v34 = vpop.f32.mrf.mxu3 }
0x1067   :  { %v3866_v27 = vadd.f32 %v3850_v28, %v3825_v34 }
0x106e   :  { %v3827_v26 = vpop.f32.mrf.mxu3 }
0x106f   :  { %v3867_v7 = vadd.f32 %v3851_v47, %v3827_v26  ;;  %v8354_v26 = vld [vmem:[#allocation12 + $0x160] sm:$0xff] }
0x1070   :  { %4229 = vmatpush.bf16.msrb.mxu2 %v8354_v26 }
0x1071   :  { %v3893_v19 = vpack.c.bf16 %v3867_v7, %v3866_v27 }
0x1073   :  { %3986 = vmatmul.bf16.gmra.mxu0 %v3893_v19  ;;  %v8353_v19 = vld [vmem:[#allocation12 + $0x158] sm:$0xff] }
0x1074   :  { %4230 = vmatpush.bf16.msrb.mxu2 %v8353_v19 }
0x1076   :  { %v3830_v46 = vpop.f32.mrf.mxu3 }
0x1077   :  { %v3868_v54 = vadd.f32 %v3852_v50, %v3830_v46  ;;  %v8352_v46 = vld [vmem:[#allocation12 + $0x150] sm:$0xff] }
0x1078   :  { %4231 = vmatpush.bf16.msrb.mxu2 %v8352_v46 }
0x107c   :  { %4232 = vmatpush.bf16.msrb.mxu2 %v8351_v10 }
0x107e   :  { %v3832_v35 = vpop.f32.mrf.mxu3 }
0x107f   :  { %v3869_v55 = vadd.f32 %v3853_v17, %v3832_v35 }
0x1080   :  { %4233 = vmatpush.bf16.msrb.mxu2 %v8350_v1 }
0x1081   :  { %v3894_v44 = vpack.c.bf16 %v3869_v55, %v3868_v54 }
0x1083   :  { %3991 = vmatmul.bf16.gmra.mxu0 %v3894_v44  ;;  %4234 = vmatmul.bf16.vlgmr.msrb.gmra.mxu2 %v10411_v8 }
0x1090   :  { %v3957_v22 = vpop.f32.mrf.mxu0 }
0x1091   :  { %v3958_v24 = vadd.f32 %v10696_v60, %v3957_v22 }
0x1093   :  { %v3997_v2 = vmax.f32 %v3958_v24, 0.0  ;;  %4239 = vmatmul.bf16.gmra.mxu2 %v10416_v31 }
0x1098   :  { %v3959_v13 = vpop.f32.mrf.mxu0 }
0x1099   :  { %v3960_v21 = vadd.f32 %v10696_v60, %v3959_v13 }
0x109b   :  { %v3998_v9 = vmax.f32 %v3960_v21, 0.0 }
0x109d   :  { %v4030_v45 = vpack.c.bf16 %v3998_v9, %v3997_v2 }
0x109f   :  { %4099 = vmatmul.bf16.vlgmr.msrb.gmra.mxu1 %v4030_v45 }
0x10a0   :  { %v3962_v49 = vpop.f32.mrf.mxu0 }
0x10a1   :  { %v3963_v37 = vadd.f32 %v10696_v60, %v3962_v49 }
0x10a3   :  { %v3999_v32 = vmax.f32 %v3963_v37, 0.0  ;;  %4244 = vmatmul.bf16.gmra.mxu2 %v10421_v4 }
0x10a8   :  { %v3964_v58 = vpop.f32.mrf.mxu0 }
0x10a9   :  { %v3965_v48 = vadd.f32 %v10696_v60, %v3964_v58 }
0x10ab   :  { %v4000_v61 = vmax.f32 %v3965_v48, 0.0 }
0x10ad   :  { %v4031_v5 = vpack.c.bf16 %v4000_v61, %v3999_v32  ;;  %v12234_v61 = vld [vmem:[#allocation40_spill] sm:$0xff] }
0x10af   :  { %4104 = vmatmul.bf16.gmra.mxu1 %v4031_v5 }
0x10b0   :  { %v3967_v6 = vpop.f32.mrf.mxu0 }
0x10b1   :  { %v3968_v51 = vadd.f32 %v10696_v60, %v3967_v6  ;;  %v12235_v6 = vld [vmem:[#allocation42_spill] sm:$0xff] }
0x10b3   :  { %v4001_v20 = vmax.f32 %v3968_v51, 0.0  ;;  %4249 = vmatmul.bf16.gmra.mxu2 %v12234_v61 }
0x10b8   :  { %v3969_v25 = vpop.f32.mrf.mxu0 }
0x10b9   :  { %v3970_v53 = vadd.f32 %v10696_v60, %v3969_v25 }
0x10bb   :  { %v4002_v40 = vmax.f32 %v3970_v53, 0.0 }
0x10bd   :  { %v4032_v14 = vpack.c.bf16 %v4002_v40, %v4001_v20  ;;  %v12237_v20 = vld [vmem:[#allocation50_spill] sm:$0xff] }
0x10bf   :  { %4109 = vmatmul.bf16.gmra.mxu1 %v4032_v14 }
0x10c0   :  { %v3972_v11 = vpop.f32.mrf.mxu0 }
0x10c1   :  { %v3973_v39 = vadd.f32 %v10696_v60, %v3972_v11  ;;  %v12238_v11 = vld [vmem:[#allocation48_spill] sm:$0xff] }
0x10c3   :  { %v4003_v62 = vmax.f32 %v3973_v39, 0.0  ;;  %4254 = vmatmul.bf16.gmra.mxu2 %v12235_v6  ;;  %v8365_v39 = vld [vmem:[#allocation15 + $0x178] sm:$0xff] }
0x10c4   :  { %4369 = vmatpush.bf16.msrb.mxu3 %v8365_v39 }
0x10c8   :  { %v3974_v23 = vpop.f32.mrf.mxu0 }
0x10c9   :  { %v3975_v15 = vadd.f32 %v10696_v60, %v3974_v23  ;;  %v8364_v23 = vld [vmem:[#allocation15 + $0x170] sm:$0xff] }
0x10ca   :  { %4370 = vmatpush.bf16.msrb.mxu3 %v8364_v23 }
0x10cb   :  { %v4004_v18 = vmax.f32 %v3975_v15, 0.0 }
0x10cd   :  { %v4033_v52 = vpack.c.bf16 %v4004_v18, %v4003_v62  ;;  %v8363_v62 = vld [vmem:[#allocation15 + $0x168] sm:$0xff]  ;;  %v8362_v18 = vld [vmem:[#allocation15 + $0x160] sm:$0xff] }
0x10ce   :  { %4371 = vmatpush.bf16.msrb.mxu3 %v8363_v62 }
0x10cf   :  { %4114 = vmatmul.bf16.gmra.mxu1 %v4033_v52 }
0x10d0   :  { %v3977_v34 = vpop.f32.mrf.mxu0 }
0x10d1   :  { %v3978_v28 = vadd.f32 %v10696_v60, %v3977_v34 }
0x10d2   :  { %4372 = vmatpush.bf16.msrb.mxu3 %v8362_v18 }
0x10d3   :  { %v4005_v38 = vmax.f32 %v3978_v28, 0.0 }
0x10d6   :  { %4373 = vmatpush.bf16.msrb.mxu3 %v8361_v33 }
0x10d8   :  { %v3979_v29 = vpop.f32.mrf.mxu0 }
0x10d9   :  { %v3980_v47 = vadd.f32 %v10696_v60, %v3979_v29 }
0x10da   :  { %4374 = vmatpush.bf16.msrb.mxu3 %v8360_v63 }
0x10db   :  { %v4006_v27 = vmax.f32 %v3980_v47, 0.0  ;;  %v8359_v47 = vld [vmem:[#allocation15 + $0x148] sm:$0xff] }
0x10dd   :  { %v4034_v7 = vpack.c.bf16 %v4006_v27, %v4005_v38 }
0x10de   :  { %4375 = vmatpush.bf16.msrb.mxu3 %v8359_v47 }
0x10df   :  { %4119 = vmatmul.bf16.gmra.mxu1 %v4034_v7  ;;  %v8358_v7 = vld [vmem:[#allocation15 + $0x140] sm:$0xff] }
0x10e0   :  { %v3982_v56 = vpop.f32.mrf.mxu0 }
0x10e1   :  { %v3983_v16 = vadd.f32 %v10696_v60, %v3982_v56 }
0x10e2   :  { %4376 = vmatpush.bf16.msrb.mxu3 %v8358_v7 }
0x10e3   :  { %v4007_v17 = vmax.f32 %v3983_v16, 0.0 }
0x10e8   :  { %v3984_v12 = vpop.f32.mrf.mxu0 }
0x10e9   :  { %v3985_v50 = vadd.f32 %v10696_v60, %v3984_v12 }
0x10eb   :  { %v4008_v35 = vmax.f32 %v3985_v50, 0.0 }
0x10ed   :  { %v4035_v54 = vpack.c.bf16 %v4008_v35, %v4007_v17 }
0x10ef   :  { %4124 = vmatmul.bf16.gmra.mxu1 %v4035_v54 }
0x10f0   :  { %v3987_v55 = vpop.f32.mrf.mxu0 }
0x10f1   :  { %v3988_v44 = vadd.f32 %v10696_v60, %v3987_v55 }
0x10f3   :  { %v4009_v13 = vmax.f32 %v3988_v44, 0.0  ;;  %v8514_v44 = vld [vmem:[#allocation21 + $0x4] ss:$0 sm:$0xff] }
0x10f8   :  { %v3989_v22 = vpop.f32.mrf.mxu0 }
0x10f9   :  { %v3990_v24 = vadd.f32 %v10696_v60, %v3989_v22 }
0x10fb   :  { %v4010_v21 = vmax.f32 %v3990_v24, 0.0 }
0x10fd   :  { %v4036_v2 = vpack.c.bf16 %v4010_v21, %v4009_v13 }
0x10ff   :  { %4129 = vmatmul.bf16.gmra.mxu1 %v4036_v2 }
0x1100   :  { %v3992_v9 = vpop.f32.mrf.mxu0 }
0x1101   :  { %v3993_v45 = vadd.f32 %v10696_v60, %v3992_v9 }
0x1103   :  { %v4011_v8 = vmax.f32 %v3993_v45, 0.0 }
0x1106   :  { %v4235_v34 = vpop.f32.mrf.mxu2 }
0x1107   :  { %v4236_v29 = vadd.f32 %v10740_v43, %v4235_v34 }
0x1108   :  { %v3994_v49 = vpop.f32.mrf.mxu0 }
0x1109   :  { %v3995_v37 = vadd.f32 %v10696_v60, %v3994_v49  ;;  %v12236_v60 = vld [vmem:[#allocation51_spill] sm:$0xff]  ;;  %v4275_v38 = vmax.f32 %v4236_v29, 0.0 }
0x110a   :  { %4259 = vmatmul.bf16.gmra.mxu2 %v12236_v60 }
0x110b   :  { %v4012_v58 = vmax.f32 %v3995_v37, 0.0 }
0x110d   :  { %v4037_v48 = vpack.c.bf16 %v4012_v58, %v4011_v8 }
0x110e   :  { %v4237_v26 = vpop.f32.mrf.mxu2 }
0x110f   :  { %4134 = vmatmul.bf16.gmra.mxu1 %v4037_v48  ;;  %v4238_v27 = vadd.f32 %v10740_v43, %v4237_v26 }
0x1111   :  { %v4276_v56 = vmax.f32 %v4238_v27, 0.0 }
0x1113   :  { %v4308_v46 = vpack.c.bf16 %v4276_v56, %v4275_v38 }
0x1115   :  { %4377 = vmatmul.bf16.vlgmr.msrb.gmra.mxu3 %v4308_v46 }
0x1116   :  { %v4240_v10 = vpop.f32.mrf.mxu2 }
0x1117   :  { %v4241_v12 = vadd.f32 %v10740_v43, %v4240_v10 }
0x1119   :  { %v4277_v1 = vmax.f32 %v4241_v12, 0.0 }
0x111a   :  { %4264 = vmatmul.bf16.gmra.mxu2 %v12237_v20 }
0x111c   :  { %v10717_v32 = vpop.f32.mrf.mxu1 }
0x111e   :  { %v4242_v50 = vpop.f32.mrf.mxu2 }
0x111f   :  { %v4243_v17 = vadd.f32 %v10740_v43, %v4242_v50 }
0x1121   :  { %v4278_v54 = vmax.f32 %v4243_v17, 0.0 }
0x1123   :  { %v4309_v55 = vpack.c.bf16 %v4278_v54, %v4277_v1  ;;  %v10826_v54 = vadd.f32 %v8514_v44, %v10717_v32 }
0x1124   :  { %v10720_v5 = vpop.f32.mrf.mxu1 }
0x1125   :  { %4382 = vmatmul.bf16.gmra.mxu3 %v4309_v55 }
0x1126   :  { %v4245_v22 = vpop.f32.mrf.mxu2 }
0x1127   :  { %v4246_v9 = vadd.f32 %v10740_v43, %v4245_v22 }
0x1129   :  { %v4279_v6 = vmax.f32 %v4246_v9, 0.0 }
0x112a   :  { %4269 = vmatmul.bf16.gmra.mxu2 %v12238_v11 }
0x112c   :  { %v10722_v31 = vpop.f32.mrf.mxu1 }
0x112e   :  { %v4247_v61 = vpop.f32.mrf.mxu2 }
0x112f   :  { %v4248_v60 = vadd.f32 %v10740_v43, %v4247_v61 }
0x1131   :  { %v4280_v39 = vmax.f32 %v4248_v60, 0.0 }
0x1133   :  { %v4310_v33 = vpack.c.bf16 %v4280_v39, %v4279_v6 }
0x1134   :  { %v10725_v51 = vpop.f32.mrf.mxu1 }
0x1135   :  { %4387 = vmatmul.bf16.gmra.mxu3 %v4310_v33 }
0x1136   :  { %v4250_v29 = vpop.f32.mrf.mxu2 }
0x1137   :  { %v4251_v27 = vadd.f32 %v10740_v43, %v4250_v29  ;;  %v8690_v29 = vld [vmem:[#allocation8 + $0x8] sm:$0xff] }
0x1139   :  { %v4281_v10 = vmax.f32 %v4251_v27, 0.0 }
0x113c   :  { %v10727_v25 = vpop.f32.mrf.mxu1 }
0x113d   :  { %v10801_v7 = vadd.f32 %v8514_v44, %v10727_v25  ;;  %v10814_v25 = vadd.f32 %v8514_v44, %v10722_v31 }
0x113e   :  { %v4252_v46 = vpop.f32.mrf.mxu2 }
0x113f   :  { %v11934_v12 = vmax.f32 %v10801_v7, 0.0  ;;  %v11936_v31 = vmax.f32 %v10814_v25, 0.0 }
0x1144   :  { %v10730_v53 = vpop.f32.mrf.mxu1 }
0x1145   :  { %v10792_v26 = vadd.f32 %v8514_v44, %v10730_v53 }
0x1146   :  { %v4255_v22 = vpop.f32.mrf.mxu2 }
0x1147   :  { %v11933_v53 = vmax.f32 %v10792_v26, 0.0 }
0x1149   :  { %v4436_v17 = vpack.c.bf16 %v11933_v53, %v11934_v12 }
0x114c   :  { %v10732_v4 = vpop.f32.mrf.mxu1 }
0x114d   :  { %v10788_v47 = vadd.f32 %v8514_v44, %v10732_v4 }
0x114e   :  { %v4257_v9 = vpop.f32.mrf.mxu2 }
0x114f   :  { %v11932_v4 = vmax.f32 %v10788_v47, 0.0  ;;  %v4258_v6 = vadd.f32 %v10740_v43, %v4257_v9 }
0x1151   :  { %v4284_v60 = vmax.f32 %v4258_v6, 0.0 }
0x1154   :  { %v10735_v40 = vpop.f32.mrf.mxu1 }
0x1155   :  { %v10780_v63 = vadd.f32 %v8514_v44, %v10735_v40 }
0x1157   :  { %v11931_v40 = vmax.f32 %v10780_v63, 0.0 }
0x1159   :  { %v4437_v56 = vpack.c.bf16 %v11931_v40, %v11932_v4 }
0x115c   :  { %v10737_v14 = vpop.f32.mrf.mxu1 }
0x115d   :  { %v10776_v34 = vadd.f32 %v8514_v44, %v10737_v14 }
0x115f   :  { %v11930_v14 = vmax.f32 %v10776_v34, 0.0 }
0x1164   :  { %v4122_v15 = vpop.f32.mrf.mxu1 }
0x1165   :  { %v10768_v23 = vadd.f32 %v8514_v44, %v4122_v15 }
0x1167   :  { %v11929_v15 = vmax.f32 %v10768_v23, 0.0 }
0x1169   :  { %v4438_v38 = vpack.c.bf16 %v11929_v15, %v11930_v14 }
0x116c   :  { %v4125_v52 = vpop.f32.mrf.mxu1 }
0x116d   :  { %v10765_v20 = vadd.f32 %v8514_v44, %v4125_v52 }
0x116f   :  { %v11928_v52 = vmax.f32 %v10765_v20, 0.0 }
0x1174   :  { %v4127_v28 = vpop.f32.mrf.mxu1 }
0x1175   :  { %v10757_v8 = vadd.f32 %v8514_v44, %v4127_v28 }
0x1177   :  { %12243 = vst [vmem:[#allocation43_spill] sm:$0xff] %v10757_v8  ;;  %v11927_v62 = vmax.f32 %v10757_v8, 0.0 }
0x1179   :  { %v4439_v28 = vpack.c.bf16 %v11927_v62, %v11928_v52 }
0x117c   :  { %v4130_v19 = vpop.f32.mrf.mxu1 }
0x117d   :  { %v10753_v45 = vadd.f32 %v8514_v44, %v4130_v19  ;;  %v10805_v19 = vadd.f32 %v8514_v44, %v10725_v51  ;;  %v10818_v51 = vadd.f32 %v8514_v44, %v10720_v5 }
0x117f   :  { %12242 = vst [vmem:[#allocation44_spill] sm:$0xff] %v10753_v45  ;;  %v11926_v11 = vmax.f32 %v10753_v45, 0.0  ;;  %v11935_v1 = vmax.f32 %v10805_v19, 0.0  ;;  %v11937_v55 = vmax.f32 %v10818_v51, 0.0 }
0x1181   :  { %v4435_v5 = vpack.c.bf16 %v11935_v1, %v11936_v31 }
0x1184   :  { %v4132_v16 = vpop.f32.mrf.mxu1 }
0x1185   :  { %v10748_v21 = vadd.f32 %v8514_v44, %v4132_v16  ;;  %v4253_v16 = vadd.f32 %v10740_v43, %v4252_v46 }
0x1187   :  { %12240 = vst [vmem:[#allocation45_spill] sm:$0xff] %v10748_v21  ;;  %v11925_v58 = vmax.f32 %v10748_v21, 0.0  ;;  %v4282_v50 = vmax.f32 %v4253_v16, 0.0 }
0x1189   :  { %v4440_v18 = vpack.c.bf16 %v11925_v58, %v11926_v11 }
0x118c   :  { %v4135_v35 = vpop.f32.mrf.mxu1 }
0x118d   :  { %v10746_v24 = vadd.f32 %v8514_v44, %v4135_v35  ;;  %v4311_v35 = vpack.c.bf16 %v4282_v50, %v4281_v10 }
0x118f   :  { %12239 = vst [vmem:[#allocation52_spill] sm:$0xff] %v10746_v24  ;;  %v11924_v49 = vmax.f32 %v10746_v24, 0.0  ;;  %4392 = vmatmul.bf16.gmra.mxu3 %v4311_v35 }
0x1194   :  { %v4137_v13 = vpop.f32.mrf.mxu1 }
0x1195   :  { %v10750_v2 = vadd.f32 %v8514_v44, %v4137_v13  ;;  %v11938_v13 = vmax.f32 %v10826_v54, 0.0  ;;  %v4256_v44 = vadd.f32 %v10740_v43, %v4255_v22 }
0x1197   :  { %12241 = vst [vmem:[#allocation46_spill] sm:$0xff] %v10750_v2  ;;  %v11923_v37 = vmax.f32 %v10750_v2, 0.0  ;;  %v4434_v32 = vpack.c.bf16 %v11937_v55, %v11938_v13  ;;  %v4283_v61 = vmax.f32 %v4256_v44, 0.0 }
0x1199   :  { %v4441_v48 = vpack.c.bf16 %v11923_v37, %v11924_v49  ;;  %v4312_v39 = vpack.c.bf16 %v4284_v60, %v4283_v61  ;;  %v8692_v61 = vld [vmem:[#allocation8 + $0x18] sm:$0xff] }
0x119b   :  { %4442 = vmatpush.bf16.msra.mxu0 %v4441_v48  ;;  %v8689_v48 = vld [vmem:[#allocation8] sm:$0xff] }
0x119f   :  { %4443 = vmatpush.bf16.msra.mxu0 %v4440_v18  ;;  %4397 = vmatmul.bf16.gmra.mxu3 %v4312_v39  ;;  %v4260_v18 = vpop.f32.mrf.mxu2 }
0x11a0   :  { %v4261_v33 = vadd.f32 %v10740_v43, %v4260_v18 }
0x11a3   :  { %4444 = vmatpush.bf16.msra.mxu0 %v4439_v28 }
0x11a7   :  { %4445 = vmatpush.bf16.msra.mxu0 %v4438_v38  ;;  %v4262_v28 = vpop.f32.mrf.mxu2  ;;  %v4285_v38 = vmax.f32 %v4261_v33, 0.0  ;;  %v8693_v33 = vld [vmem:[#allocation8 + $0x20] sm:$0xff] }
0x11a8   :  { %v4263_v27 = vadd.f32 %v10740_v43, %v4262_v28  ;;  %v8694_v28 = vld [vmem:[#allocation8 + $0x28] sm:$0xff] }
0x11ab   :  { %4446 = vmatpush.bf16.msra.mxu0 %v4437_v56  ;;  %v4286_v56 = vmax.f32 %v4263_v27, 0.0 }
0x11ad   :  { %v4313_v46 = vpack.c.bf16 %v4286_v56, %v4285_v38  ;;  %v12244_v38 = vld [vmem:[#allocation47_spill] sm:$0xff] }
0x11af   :  { %4447 = vmatpush.bf16.msra.mxu0 %v4436_v17  ;;  %4402 = vmatmul.bf16.gmra.mxu3 %v4313_v46  ;;  %v4265_v10 = vpop.f32.mrf.mxu2  ;;  %v8691_v17 = vld [vmem:[#allocation8 + $0x10] sm:$0xff] }
0x11b0   :  { %v4266_v16 = vadd.f32 %v10740_v43, %v4265_v10  ;;  %v12245_v46 = vld [vmem:[#allocation49_spill] sm:$0xff]  ;;  %v10854_v10 = vld [vmem:[%s11801_s8 + $0x5] ss:$0 sm:$0xff]  ;;  %s7731_s8 = sld [smem:[#allocation23 + $0x5]] }
0x11b2   :  { %v4287_v35 = vmax.f32 %v4266_v16, 0.0 }
0x11b3   :  { %4448 = vmatpush.bf16.msra.mxu0 %v4435_v5 }
0x11b6   :  { %s4565_s3 = sadd.f32 1.0, %s7731_s8 }
0x11b7   :  { %4449 = vmatpush.bf16.msra.mxu0 %v4434_v32  ;;  %v4267_v50 = vpop.f32.mrf.mxu2 }
0x11b8   :  { %v4268_v5 = vadd.f32 %v10740_v43, %v4267_v50 }
0x11ba   :  { %4450 = vmatmul.bf16.vlgmr.msra.gmra.mxu0 %v8689_v48  ;;  %v4288_v22 = vmax.f32 %v4268_v5, 0.0 }
0x11bc   :  { %v4314_v32 = vpack.c.bf16 %v4288_v22, %v4287_v35 }
0x11bf   :  { %4407 = vmatmul.bf16.gmra.mxu3 %v4314_v32  ;;  %v4270_v44 = vpop.f32.mrf.mxu2 }
0x11c0   :  { %v4271_v9 = vadd.f32 %v10740_v43, %v4270_v44 }
0x11c2   :  { %v4289_v6 = vmax.f32 %v4271_v9, 0.0 }
0x11c7   :  { %v4272_v48 = vpop.f32.mrf.mxu2 }
0x11c8   :  { %v4273_v60 = vadd.f32 %v10740_v43, %v4272_v48 }
0x11ca   :  { %4455 = vmatmul.bf16.gmra.mxu0 %v8690_v29  ;;  %v4290_v39 = vmax.f32 %v4273_v60, 0.0  ;;  %v4378_v29 = vpop.f32.mrf.mxu3 }
0x11cb   :  { %v4379_v16 = vadd.f32 %v10854_v10, %v4378_v29 }
0x11cc   :  { %v4315_v18 = vpack.c.bf16 %v4290_v39, %v4289_v6 }
0x11cd   :  { %v4418_v50 = vmax.f32 %v4379_v16, 0.0 }
0x11cf   :  { %4412 = vmatmul.bf16.gmra.mxu3 %v4315_v18 }
0x11d2   :  { %v10848_v27 = vpop.f32.mrf.mxu3 }
0x11da   :  { %4460 = vmatmul.bf16.gmra.mxu0 %v8691_v17  ;;  %v4383_v56 = vpop.f32.mrf.mxu3 }
0x11db   :  { %v4384_v32 = vadd.f32 %v10854_v10, %v4383_v56 }
0x11dd   :  { %v4420_v9 = vmax.f32 %v4384_v32, 0.0 }
0x11e2   :  { %v10856_v43 = vpop.f32.mrf.mxu3 }
0x11ea   :  { %4465 = vmatmul.bf16.gmra.mxu0 %v8692_v61  ;;  %v4388_v5 = vpop.f32.mrf.mxu3 }
0x11eb   :  { %v4389_v39 = vadd.f32 %v10854_v10, %v4388_v5 }
0x11ed   :  { %v4422_v18 = vmax.f32 %v4389_v39, 0.0 }
0x11f2   :  { %v10864_v44 = vpop.f32.mrf.mxu3 }
0x11fa   :  { %4470 = vmatmul.bf16.gmra.mxu0 %v8693_v33 }
0x120a   :  { %4475 = vmatmul.bf16.gmra.mxu0 %v8694_v28 }
0x1212   :  { %v4393_v6 = vpop.f32.mrf.mxu3 }
0x1213   :  { %v4394_v56 = vadd.f32 %v10854_v10, %v4393_v6 }
0x1215   :  { %v4424_v16 = vmax.f32 %v4394_v56, 0.0 }
0x121a   :  { %4480 = vmatmul.bf16.gmra.mxu0 %v12244_v38  ;;  %v4395_v28 = vpop.f32.mrf.mxu3 }
0x122a   :  { %4485 = vmatmul.bf16.gmra.mxu0 %v12245_v46  ;;  %v4398_v46 = vpop.f32.mrf.mxu3 }
0x1232   :  { %v4400_v32 = vpop.f32.mrf.mxu3 }
0x1237   :  { %v4451_v17 = vpop.f32.mrf.mxu0 }
0x1238   :  { %v10859_v35 = vadd.f32 %v4451_v17, %v4418_v50 }
0x123a   :  { %v4403_v37 = vpop.f32.mrf.mxu3 }
0x123b   :  { %v4404_v31 = vadd.f32 %v10854_v10, %v4403_v37 }
0x123d   :  { %v4428_v45 = vmax.f32 %v4404_v31, 0.0 }
0x123f   :  { %v10861_v22 = vpop.f32.mrf.mxu0 }
0x1242   :  { %v4405_v58 = vpop.f32.mrf.mxu3 }
0x1247   :  { %v4456_v48 = vpop.f32.mrf.mxu0 }
0x1248   :  { %v10866_v61 = vadd.f32 %v4456_v48, %v4420_v9  ;;  %v4399_v48 = vadd.f32 %v10854_v10, %v4398_v46 }
0x124a   :  { %v4426_v5 = vmax.f32 %v4399_v48, 0.0  ;;  %v4408_v11 = vpop.f32.mrf.mxu3 }
0x124b   :  { %v4409_v48 = vadd.f32 %v10854_v10, %v4408_v11 }
0x124d   :  { %v4430_v55 = vmax.f32 %v4409_v48, 0.0 }
0x124f   :  { %v10868_v60 = vpop.f32.mrf.mxu0 }
0x1252   :  { %v4410_v52 = vpop.f32.mrf.mxu3 }
0x1253   :  { %v4411_v40 = vadd.f32 %v10854_v10, %v4410_v52 }
0x1255   :  { %v4431_v4 = vmax.f32 %v4411_v40, 0.0 }
0x1257   :  { %v4461_v33 = vpop.f32.mrf.mxu0 }
0x1258   :  { %v10871_v29 = vadd.f32 %v4461_v33, %v4422_v18 }
0x125a   :  { %v4413_v6 = vpop.f32.mrf.mxu3 }
0x125f   :  { %v10873_v38 = vpop.f32.mrf.mxu0 }
0x1262   :  { %v4415_v14 = vpop.f32.mrf.mxu3 }
0x1263   :  { %v4416_v46 = vadd.f32 %v10854_v10, %v4415_v14 }
0x1265   :  { %v4433_v53 = vmax.f32 %v4416_v46, 0.0 }
0x1267   :  { %v4466_v50 = vpop.f32.mrf.mxu0 }
0x1268   :  { %v10876_v17 = vadd.f32 %v4466_v50, %v4424_v16  ;;  %v4414_v50 = vadd.f32 %v10854_v10, %v4413_v6  ;;  %v4401_v6 = vadd.f32 %v10854_v10, %v4400_v32 }
0x126a   :  { %v4427_v40 = vmax.f32 %v4401_v6, 0.0 }
0x126f   :  { %v4468_v9 = vpop.f32.mrf.mxu0 }
0x1277   :  { %v4471_v39 = vpop.f32.mrf.mxu0 }
0x1278   :  { %v4472_v49 = vadd.f32 %v4471_v39, %v4426_v5  ;;  %v4432_v5 = vmax.f32 %v4414_v50, 0.0  ;;  %v4406_v39 = vadd.f32 %v10854_v10, %v4405_v58  ;;  %v4396_v58 = vadd.f32 %v10854_v10, %v4395_v28 }
0x1279   :  { %v4497_v28 = vmax.f32 %v10876_v17, 0.0  ;;  %v4491_v17 = vmax.f32 %v10859_v35, 0.0  ;;  %v8371_v35 = vld [vmem:[#allocation17 + $0x168] sm:$0xff] }
0x127a   :  { %v4429_v24 = vmax.f32 %v4406_v39, 0.0  ;;  %v4499_v31 = vmax.f32 %v4472_v49, 0.0 }
0x127f   :  { %v4473_v18 = vpop.f32.mrf.mxu0 }
0x1280   :  { %v4474_v37 = vadd.f32 %v4473_v18, %v4427_v40 }
0x1287   :  { %v4476_v33 = vpop.f32.mrf.mxu0 }
0x128f   :  { %v4478_v62 = vpop.f32.mrf.mxu0 }
0x1290   :  { %v4479_v11 = vadd.f32 %v4478_v62, %v4429_v24 }
0x1292   :  { %v4502_v48 = vmax.f32 %v4479_v11, 0.0 }
0x1297   :  { %v4481_v15 = vpop.f32.mrf.mxu0 }
0x1298   :  { %v4482_v52 = vadd.f32 %v4481_v15, %v4430_v55 }
0x129a   :  { %v4503_v46 = vmax.f32 %v4482_v52, 0.0  ;;  %v12247_v52 = vmax.f32 %v10818_v51, 0.0 }
0x129f   :  { %v4483_v56 = vpop.f32.mrf.mxu0 }
0x12a0   :  { %v4484_v13 = vadd.f32 %v4483_v56, %v4431_v4 }
0x12a2   :  { %v4504_v50 = vmax.f32 %v4484_v13, 0.0  ;;  %v4381_v13 = vadd.f32 %v10854_v10, %v10848_v27 }
0x12a4   :  { %v4513_v4 = vpack.c.bf16 %v4504_v50, %v4503_v46  ;;  %v12249_v46 = vmax.f32 %v10805_v19, 0.0 }
0x12a7   :  { %v4486_v16 = vpop.f32.mrf.mxu0 }
0x12a8   :  { %v4487_v12 = vadd.f32 %v4486_v16, %v4432_v5  ;;  %v4477_v16 = vadd.f32 %v4476_v33, %v4428_v45  ;;  %v4419_v33 = vmax.f32 %v4381_v13, 0.0  ;;  %v4493_v5 = vmax.f32 %v10866_v61, 0.0  ;;  %v8372_v61 = vld [vmem:[#allocation17 + $0x170] sm:$0xff] }
0x12aa   :  { %v4505_v21 = vmax.f32 %v4487_v12, 0.0  ;;  %v4501_v15 = vmax.f32 %v4477_v16, 0.0  ;;  %v4500_v12 = vmax.f32 %v4474_v37, 0.0  ;;  %v4454_v49 = vadd.f32 %v10861_v22, %v4419_v33  ;;  %v8373_v22 = vld [vmem:[#allocation17 + $0x178] sm:$0xff] }
0x12ab   :  { %4677 = vmatpush.bf16.msra.mxu2 %v8373_v22 }
0x12ac   :  { %v4512_v24 = vpack.c.bf16 %v4502_v48, %v4501_v15  ;;  %v4511_v55 = vpack.c.bf16 %v4500_v12, %v4499_v31  ;;  %v4492_v27 = vmax.f32 %v4454_v49, 0.0  ;;  %v12252_v31 = vmax.f32 %v10788_v47, 0.0 }
0x12ae   :  { %v4507_v39 = vpack.c.bf16 %v4492_v27, %v4491_v17  ;;  %v12257_v27 = vld [vmem:[#allocation43_spill] sm:$0xff] }
0x12af   :  { %v4488_v1 = vpop.f32.mrf.mxu0  ;;  %4678 = vmatpush.bf16.msra.mxu2 %v8372_v61  ;;  %v8381_v61 = vld [vmem:[#allocation20 + $0x178] sm:$0xff] }
0x12b0   :  { %v4489_v2 = vadd.f32 %v4488_v1, %v4433_v53  ;;  %v4391_v53 = vadd.f32 %v10854_v10, %v10864_v44  ;;  %v4425_v1 = vmax.f32 %v4396_v58, 0.0  ;;  %4820 = vmatpush.bf16.msra.mxu3 %v8381_v61 }
0x12b2   :  { %v4506_v14 = vmax.f32 %v4489_v2, 0.0  ;;  %v4469_v2 = vadd.f32 %v4468_v9, %v4425_v1  ;;  %v4423_v62 = vmax.f32 %v4391_v53, 0.0  ;;  %v12250_v1 = vmax.f32 %v10801_v7, 0.0 }
0x12b3   :  { %4679 = vmatpush.bf16.msra.mxu2 %v8371_v35  ;;  %v8380_v35 = vld [vmem:[#allocation20 + $0x170] sm:$0xff] }
0x12b4   :  { %v4514_v8 = vpack.c.bf16 %v4506_v14, %v4505_v21  ;;  %v4386_v21 = vadd.f32 %v10854_v10, %v10856_v43  ;;  %v4464_v45 = vadd.f32 %v10873_v38, %v4423_v62  ;;  %v4495_v43 = vmax.f32 %v10871_v29, 0.0  ;;  %v8369_v29 = vld [vmem:[#allocation17 + $0x158] sm:$0xff]  ;;  %4821 = vmatpush.bf16.msra.mxu3 %v8380_v35 }
0x12b6   :  { %4515 = vmatpush.bf16.msra.mxu1 %v4514_v8  ;;  %v4498_v8 = vmax.f32 %v4469_v2, 0.0  ;;  %v4421_v44 = vmax.f32 %v4386_v21, 0.0  ;;  %v4496_v9 = vmax.f32 %v4464_v45, 0.0  ;;  %v12251_v2 = vmax.f32 %v10792_v26, 0.0 }
0x12b8   :  { %v4459_v32 = vadd.f32 %v10868_v60, %v4421_v44  ;;  %v4510_v18 = vpack.c.bf16 %v4498_v8, %v4497_v28  ;;  %v4509_v56 = vpack.c.bf16 %v4496_v9, %v4495_v43  ;;  %v8370_v60 = vld [vmem:[#allocation17 + $0x160] sm:$0xff]  ;;  %v12253_v8 = vmax.f32 %v10780_v63, 0.0 }
0x12b9   :  { %4680 = vmatpush.bf16.msra.mxu2 %v8370_v60 }
0x12ba   :  { %4516 = vmatpush.bf16.msra.mxu1 %v4513_v4  ;;  %v4494_v38 = vmax.f32 %v4459_v32, 0.0  ;;  %v12254_v32 = vmax.f32 %v10776_v34, 0.0 }
0x12bc   :  { %v4508_v10 = vpack.c.bf16 %v4494_v38, %v4493_v5 }
0x12bd   :  { %4681 = vmatpush.bf16.msra.mxu2 %v8369_v29  ;;  %v8379_v29 = vld [vmem:[#allocation20 + $0x168] sm:$0xff] }
0x12be   :  { %4517 = vmatpush.bf16.msra.mxu1 %v4512_v24  ;;  %4822 = vmatpush.bf16.msra.mxu3 %v8379_v29 }
0x12c2   :  { %4518 = vmatpush.bf16.msra.mxu1 %v4511_v55 }
0x12c6   :  { %4519 = vmatpush.bf16.msra.mxu1 %v4510_v18  ;;  %v12255_v18 = vmax.f32 %v10768_v23, 0.0 }
0x12ca   :  { %4520 = vmatpush.bf16.msra.mxu1 %v4509_v56  ;;  %v12256_v56 = vmax.f32 %v10765_v20, 0.0 }
0x12ce   :  { %4521 = vmatpush.bf16.msra.mxu1 %v4508_v10  ;;  %v12258_v10 = vmax.f32 %v12257_v27, 0.0 }
0x12d2   :  { %4522 = vmatpush.bf16.msra.mxu1 %v4507_v39 }
0x12d5   :  { %4523 = vmatmul.bf16.vlgmr.msra.gmra.mxu1 %v10622_v59  ;;  %v8368_v59 = vld [vmem:[#allocation17 + $0x150] sm:$0xff] }
0x12d6   :  { %4682 = vmatpush.bf16.msra.mxu2 %v8368_v59  ;;  %v12259_v59 = vld [vmem:[#allocation44_spill] sm:$0xff] }
0x12e5   :  { %4528 = vmatmul.bf16.gmra.mxu1 %v10625_v41  ;;  %v8367_v41 = vld [vmem:[#allocation17 + $0x148] sm:$0xff] }
0x12e6   :  { %4683 = vmatpush.bf16.msra.mxu2 %v8367_v41  ;;  %v12260_v41 = vmax.f32 %v12259_v59, 0.0 }
0x12f5   :  { %4533 = vmatmul.bf16.gmra.mxu1 %v10628_v3  ;;  %v8366_v3 = vld [vmem:[#allocation17 + $0x140] sm:$0xff] }
0x12f6   :  { %4684 = vmatpush.bf16.msra.mxu2 %v8366_v3  ;;  %v12261_v3 = vld [vmem:[#allocation45_spill] sm:$0xff] }
0x1305   :  { %4538 = vmatmul.bf16.gmra.mxu1 %v10631_v30 }
0x1315   :  { %4543 = vmatmul.bf16.gmra.mxu1 %v10634_v0  ;;  %v10908_v0 = vstv %s4565_s3 }
0x1316   :  { %v4568_v14 = vmul.f32 %v10908_v0, %v12247_v52  ;;  %v4571_v15 = vmul.f32 %v10908_v0, %v12250_v1  ;;  %v4573_v45 = vmul.f32 %v10908_v0, %v12252_v31  ;;  %v4574_v7 = vmul.f32 %v10908_v0, %v12253_v8 }
0x1317   :  { %v4575_v9 = vmul.f32 %v10908_v0, %v12254_v32  ;;  %v4576_v47 = vmul.f32 %v10908_v0, %v12255_v18  ;;  %v4577_v5 = vmul.f32 %v10908_v0, %v12256_v56  ;;  %v4578_v34 = vmul.f32 %v10908_v0, %v12258_v10 }
0x1318   :  { %v4579_v20 = vmul.f32 %v10908_v0, %v12260_v41 }
0x1325   :  { %4548 = vmatmul.bf16.gmra.mxu1 %v10637_v57  ;;  %v12246_v57 = vmax.f32 %v10826_v54, 0.0  ;;  %v4570_v54 = vmul.f32 %v10908_v0, %v12249_v46 }
0x1327   :  { %v4567_v6 = vmul.f32 %v10908_v0, %v12246_v57 }
0x1335   :  { %4553 = vmatmul.bf16.gmra.mxu1 %v10640_v36 }
0x1345   :  { %4558 = vmatmul.bf16.gmra.mxu1 %v10643_v42  ;;  %v12248_v42 = vmax.f32 %v10814_v25, 0.0  ;;  %v4572_v25 = vmul.f32 %v10908_v0, %v12251_v2 }
0x1347   :  { %v4569_v16 = vmul.f32 %v10908_v0, %v12248_v42  ;;  %v8375_v42 = vld [vmem:[#allocation20 + $0x148] sm:$0xff] }
0x1352   :  { %v4524_v30 = vpop.f32.mrf.mxu1 }
0x1353   :  { %v4583_v36 = vadd.f32 %v4567_v6, %v4524_v30  ;;  %v12262_v30 = vmax.f32 %v12261_v3, 0.0  ;;  %v8378_v6 = vld [vmem:[#allocation20 + $0x160] sm:$0xff] }
0x1354   :  { %4823 = vmatpush.bf16.msra.mxu3 %v8378_v6 }
0x1355   :  { %v4580_v57 = vmul.f32 %v10908_v0, %v12262_v30 }
0x135a   :  { %v4526_v11 = vpop.f32.mrf.mxu1 }
0x135b   :  { %v4584_v50 = vadd.f32 %v4568_v14, %v4526_v11 }
0x135d   :  { %v4616_v58 = vpack.c.bf16 %v4584_v50, %v4583_v36  ;;  %v8377_v50 = vld [vmem:[#allocation20 + $0x158] sm:$0xff] }
0x135e   :  { %4824 = vmatpush.bf16.msra.mxu3 %v8377_v50 }
0x135f   :  { %4685 = vmatmul.bf16.vlgmr.msra.gmra.mxu2 %v4616_v58 }
0x1362   :  { %v4529_v40 = vpop.f32.mrf.mxu1 }
0x1363   :  { %v4585_v48 = vadd.f32 %v4569_v16, %v4529_v40  ;;  %v8376_v40 = vld [vmem:[#allocation20 + $0x150] sm:$0xff] }
0x1364   :  { %4825 = vmatpush.bf16.msra.mxu3 %v8376_v40  ;;  %v12263_v16 = vld [vmem:[#allocation52_spill] sm:$0xff] }
0x1365   :  { %v12264_v46 = vmax.f32 %v12263_v16, 0.0 }
0x1368   :  { %4826 = vmatpush.bf16.msra.mxu3 %v8375_v42 }
0x136a   :  { %v4531_v37 = vpop.f32.mrf.mxu1 }
0x136b   :  { %v4586_v4 = vadd.f32 %v4570_v54, %v4531_v37  ;;  %v4581_v54 = vmul.f32 %v10908_v0, %v12264_v46  ;;  %v12265_v37 = vld [vmem:[#allocation46_spill] sm:$0xff] }
0x136d   :  { %v4617_v51 = vpack.c.bf16 %v4586_v4, %v4585_v48  ;;  %v12266_v48 = vmax.f32 %v12265_v37, 0.0 }
0x136f   :  { %4690 = vmatmul.bf16.gmra.mxu2 %v4617_v51  ;;  %v4582_v4 = vmul.f32 %v10908_v0, %v12266_v48  ;;  %v10958_v48 = vld [vmem:[#allocation21 + $0x5] ss:$0 sm:$0xff] }
0x1372   :  { %v4534_v53 = vpop.f32.mrf.mxu1 }
0x1373   :  { %v4587_v24 = vadd.f32 %v4571_v15, %v4534_v53  ;;  %v8374_v15 = vld [vmem:[#allocation20 + $0x140] sm:$0xff] }
0x1374   :  { %4827 = vmatpush.bf16.msra.mxu3 %v8374_v15 }
0x137a   :  { %v4536_v12 = vpop.f32.mrf.mxu1 }
0x137b   :  { %v4588_v21 = vadd.f32 %v4572_v25, %v4536_v12  ;;  %v8517_v12 = vld [vmem:[#allocation18 + $0x5] ss:$0 sm:$0xff] }
0x137d   :  { %v4618_v19 = vpack.c.bf16 %v4588_v21, %v4587_v24 }
0x137f   :  { %4695 = vmatmul.bf16.gmra.mxu2 %v4618_v19 }
0x1382   :  { %v4539_v62 = vpop.f32.mrf.mxu1 }
0x1383   :  { %v4589_v13 = vadd.f32 %v4573_v45, %v4539_v62 }
0x138a   :  { %v4541_v55 = vpop.f32.mrf.mxu1 }
0x138b   :  { %v4590_v44 = vadd.f32 %v4574_v7, %v4541_v55 }
0x138d   :  { %v4619_v26 = vpack.c.bf16 %v4590_v44, %v4589_v13 }
0x138f   :  { %4700 = vmatmul.bf16.gmra.mxu2 %v4619_v26 }
0x1392   :  { %v4544_v28 = vpop.f32.mrf.mxu1 }
0x1393   :  { %v4591_v43 = vadd.f32 %v4575_v9, %v4544_v28 }
0x139a   :  { %v4546_v33 = vpop.f32.mrf.mxu1 }
0x139b   :  { %v4592_v49 = vadd.f32 %v4576_v47, %v4546_v33 }
0x139d   :  { %v4620_v63 = vpack.c.bf16 %v4592_v49, %v4591_v43 }
0x139f   :  { %4705 = vmatmul.bf16.gmra.mxu2 %v4620_v63 }
0x13a2   :  { %v4549_v38 = vpop.f32.mrf.mxu1 }
0x13a3   :  { %v4593_v39 = vadd.f32 %v4577_v5, %v4549_v38 }
0x13aa   :  { %v4551_v17 = vpop.f32.mrf.mxu1 }
0x13ab   :  { %v4594_v22 = vadd.f32 %v4578_v34, %v4551_v17 }
0x13ad   :  { %v4621_v23 = vpack.c.bf16 %v4594_v22, %v4593_v39 }
0x13af   :  { %4710 = vmatmul.bf16.gmra.mxu2 %v4621_v23 }
0x13b2   :  { %v4554_v60 = vpop.f32.mrf.mxu1 }
0x13b3   :  { %v4595_v14 = vadd.f32 %v4579_v20, %v4554_v60 }
0x13ba   :  { %v4556_v52 = vpop.f32.mrf.mxu1 }
0x13bb   :  { %v4596_v11 = vadd.f32 %v4580_v57, %v4556_v52 }
0x13bd   :  { %v4622_v36 = vpack.c.bf16 %v4596_v11, %v4595_v14 }
0x13bf   :  { %4715 = vmatmul.bf16.gmra.mxu2 %v4622_v36 }
0x13c2   :  { %v4559_v58 = vpop.f32.mrf.mxu1 }
0x13c3   :  { %v4597_v53 = vadd.f32 %v4581_v54, %v4559_v58 }
0x13ca   :  { %v4561_v51 = vpop.f32.mrf.mxu1 }
0x13cb   :  { %v4598_v1 = vadd.f32 %v4582_v4, %v4561_v51 }
0x13cd   :  { %v4623_v2 = vpack.c.bf16 %v4598_v1, %v4597_v53 }
0x13cf   :  { %4720 = vmatmul.bf16.gmra.mxu2 %v4623_v2 }
0x13e2   :  { %v4686_v25 = vpop.f32.mrf.mxu2 }
0x13e3   :  { %v4687_v24 = vadd.f32 %v8517_v12, %v4686_v25 }
0x13e5   :  { %v4726_v62 = vmax.f32 %v4687_v24, 0.0 }
0x13ea   :  { %v4688_v21 = vpop.f32.mrf.mxu2 }
0x13eb   :  { %v4689_v19 = vadd.f32 %v8517_v12, %v4688_v21  ;;  %v8410_v21 = vld [vmem:[#allocation24 + $0xe4] sm:$0xf] }
0x13ed   :  { %v4727_v31 = vmax.f32 %v4689_v19, 0.0  ;;  %v7912_v19 = vld [vmem:[#allocation24 + $0xf0] sm:$0xf0] }
0x13ef   :  { %v4759_v45 = vpack.c.bf16 %v4727_v31, %v4726_v62  ;;  %v10965_v31 = vor.u32 %v8410_v21, %v7912_v19  ;;  %v8404_v21 = vld [vmem:[#allocation24 + $0xac] sm:$0xf0]  ;;  %v8386_v19 = vld [vmem:[#allocation24 + $0x24] sm:$0xf] }
0x13f1   :  { %4828 = vmatmul.bf16.vlgmr.msra.gmra.mxu3 %v4759_v45  ;;  %v8442_v45 = vld [vmem:[#allocation24 + $0x1e4] sm:$0xf]  ;;  %5354 = vmatpush.bf16.msrb.mxu2 %v10965_v31 }
0x13f2   :  { %v4691_v8 = vpop.f32.mrf.mxu2 }
0x13f3   :  { %v4692_v7 = vadd.f32 %v8517_v12, %v4691_v8  ;;  %v8040_v8 = vld [vmem:[#allocation24 + $0x1f0] sm:$0xf0] }
0x13f5   :  { %v4728_v13 = vmax.f32 %v4692_v7, 0.0  ;;  %v10968_v7 = vor.u32 %v8442_v45, %v8040_v8  ;;  %v7816_v8 = vld [vmem:[#allocation24 + $0x30] sm:$0xf0] }
0x13f7   :  { %12268 = vst [vmem:[#allocation40_spill] sm:$0xff] %v10968_v7  ;;  %5367 = vmatpush.bf16.msrb.mxu3 %v10968_v7 }
0x13fa   :  { %v4693_v0 = vpop.f32.mrf.mxu2 }
0x13fb   :  { %v4694_v55 = vadd.f32 %v8517_v12, %v4693_v0  ;;  %v8406_v0 = vld [vmem:[#allocation24 + $0xc4] sm:$0xf] }
0x13fd   :  { %v4729_v44 = vmax.f32 %v4694_v55, 0.0  ;;  %v7896_v55 = vld [vmem:[#allocation24 + $0xd0] sm:$0xf0] }
0x13ff   :  { %v4760_v26 = vpack.c.bf16 %v4729_v44, %v4728_v13  ;;  %v10971_v13 = vor.u32 %v8406_v0, %v7896_v55  ;;  %v11022_v0 = vor.u32 %v8386_v19, %v7816_v8  ;;  %v8418_v55 = vld [vmem:[#allocation24 + $0x124] sm:$0xf]  ;;  %v7830_v19 = vld [vmem:[#allocation24 + $0x40] sm:$0xf]  ;;  %v8392_v8 = vld [vmem:[#allocation24 + $0x4c] sm:$0xf0] }
0x1401   :  { %4833 = vmatmul.bf16.gmra.mxu3 %v4760_v26  ;;  %v8438_v26 = vld [vmem:[#allocation24 + $0x1c4] sm:$0xf]  ;;  %5355 = vmatpush.bf16.msrb.mxu2 %v10971_v13 }
0x1402   :  { %v4696_v28 = vpop.f32.mrf.mxu2 }
0x1403   :  { %v4697_v32 = vadd.f32 %v8517_v12, %v4696_v28  ;;  %v8024_v28 = vld [vmem:[#allocation24 + $0x1d0] sm:$0xf0] }
0x1405   :  { %v4730_v47 = vmax.f32 %v4697_v32, 0.0 }
0x140a   :  { %v4698_v9 = vpop.f32.mrf.mxu2 }
0x140b   :  { %v4699_v18 = vadd.f32 %v8517_v12, %v4698_v9  ;;  %v10975_v9 = vor.u32 %v8438_v26, %v8024_v28 }
0x140d   :  { %v4731_v33 = vmax.f32 %v4699_v18, 0.0  ;;  %12269 = vst [vmem:[#allocation42_spill] sm:$0xff] %v10975_v9  ;;  %v8402_v18 = vld [vmem:[#allocation24 + $0xa4] sm:$0xf]  ;;  %5368 = vmatpush.bf16.msrb.mxu3 %v10975_v9 }
0x140f   :  { %v4761_v43 = vpack.c.bf16 %v4731_v33, %v4730_v47  ;;  %v7880_v47 = vld [vmem:[#allocation24 + $0xb0] sm:$0xf0] }
0x1411   :  { %4838 = vmatmul.bf16.gmra.mxu3 %v4761_v43  ;;  %v10978_v43 = vor.u32 %v8402_v18, %v7880_v47  ;;  %v8432_v18 = vld [vmem:[#allocation24 + $0x18c] sm:$0xf0]  ;;  %v7862_v47 = vld [vmem:[#allocation24 + $0x80] sm:$0xf] }
0x1412   :  { %v4701_v49 = vpop.f32.mrf.mxu2 }
0x1413   :  { %v4702_v63 = vadd.f32 %v8517_v12, %v4701_v49  ;;  %v8434_v49 = vld [vmem:[#allocation24 + $0x1a4] sm:$0xf]  ;;  %5356 = vmatpush.bf16.msrb.mxu2 %v10978_v43 }
0x1415   :  { %v4732_v5 = vmax.f32 %v4702_v63, 0.0  ;;  %v8008_v63 = vld [vmem:[#allocation24 + $0x1b0] sm:$0xf0] }
0x141a   :  { %v4703_v38 = vpop.f32.mrf.mxu2 }
0x141b   :  { %v4704_v56 = vadd.f32 %v8517_v12, %v4703_v38 }
0x141d   :  { %v4733_v27 = vmax.f32 %v4704_v56, 0.0  ;;  %v10983_v56 = vor.u32 %v8434_v49, %v8008_v63  ;;  %v8400_v49 = vld [vmem:[#allocation24 + $0x8c] sm:$0xf0]  ;;  %v8382_v63 = vld [vmem:[#allocation24 + $0x4] sm:$0xf] }
0x141f   :  { %v4762_v10 = vpack.c.bf16 %v4733_v27, %v4732_v5  ;;  %12271 = vst [vmem:[#allocation50_spill] sm:$0xff] %v10983_v56  ;;  %v8398_v5 = vld [vmem:[#allocation24 + $0x84] sm:$0xf]  ;;  %v7864_v27 = vld [vmem:[#allocation24 + $0x90] sm:$0xf0]  ;;  %5369 = vmatpush.bf16.msrb.mxu3 %v10983_v56 }
0x1421   :  { %4843 = vmatmul.bf16.gmra.mxu3 %v4762_v10  ;;  %v10986_v10 = vor.u32 %v8398_v5, %v7864_v27  ;;  %v7800_v5 = vld [vmem:[#allocation24 + $0x10] sm:$0xf0] }
0x1422   :  { %v4706_v34 = vpop.f32.mrf.mxu2 }
0x1423   :  { %v4707_v17 = vadd.f32 %v8517_v12, %v4706_v34  ;;  %5357 = vmatpush.bf16.msrb.mxu2 %v10986_v10 }
0x1425   :  { %v4734_v23 = vmax.f32 %v4707_v17, 0.0  ;;  %v8430_v17 = vld [vmem:[#allocation24 + $0x184] sm:$0xf] }
0x142a   :  { %v4708_v39 = vpop.f32.mrf.mxu2 }
0x142b   :  { %v4709_v22 = vadd.f32 %v8517_v12, %v4708_v39  ;;  %v7992_v39 = vld [vmem:[#allocation24 + $0x190] sm:$0xf0] }
0x142d   :  { %v4735_v61 = vmax.f32 %v4709_v22, 0.0 }
0x142f   :  { %v4763_v35 = vpack.c.bf16 %v4735_v61, %v4734_v23  ;;  %v10990_v23 = vor.u32 %v8430_v17, %v7992_v39  ;;  %v8038_v61 = vld [vmem:[#allocation24 + $0x1e0] sm:$0xf]  ;;  %v11036_v17 = vor.u32 %v8382_v63, %v7800_v5  ;;  %v8411_v39 = vld [vmem:[#allocation24 + $0xec] sm:$0xf]  ;;  %v8420_v5 = vld [vmem:[#allocation24 + $0x12c] sm:$0xf0] }
0x1430   :  { %v7942_v63 = vld [vmem:[#allocation24 + $0x120] sm:$0xf] }
0x1431   :  { %4848 = vmatmul.bf16.gmra.mxu3 %v4763_v35  ;;  %12272 = vst [vmem:[#allocation48_spill] sm:$0xff] %v10990_v23  ;;  %v8444_v35 = vld [vmem:[#allocation24 + $0x1ec] sm:$0xf0] }
0x1432   :  { %v4711_v60 = vpop.f32.mrf.mxu2  ;;  %5370 = vmatpush.bf16.msrb.mxu3 %v10990_v23  ;;  %12283 = vst [vmem:[#allocation56_spill] sm:$0xff] %v11036_v17 }
0x1433   :  { %v4712_v29 = vadd.f32 %v8517_v12, %v4711_v60  ;;  %v7910_v60 = vld [vmem:[#allocation24 + $0xe0] sm:$0xf] }
0x1435   :  { %v4736_v20 = vmax.f32 %v4712_v29, 0.0 }
0x143a   :  { %v4713_v59 = vpop.f32.mrf.mxu2 }
0x143b   :  { %v4714_v41 = vadd.f32 %v8517_v12, %v4713_v59  ;;  %v10992_v59 = vor.u32 %v8444_v35, %v8038_v61  ;;  %v8414_v61 = vld [vmem:[#allocation24 + $0x104] sm:$0xf] }
0x143d   :  { %v4737_v3 = vmax.f32 %v4714_v41, 0.0  ;;  %12273 = vst [vmem:[#allocation47_spill] sm:$0xff] %v10992_v59  ;;  %v8412_v41 = vld [vmem:[#allocation24 + $0xec] sm:$0xf0]  ;;  %5341 = vmatpush.bf16.msrb.mxu1 %v10992_v59 }
0x143f   :  { %v4764_v30 = vpack.c.bf16 %v4737_v3, %v4736_v20  ;;  %v8394_v20 = vld [vmem:[#allocation24 + $0x64] sm:$0xf]  ;;  %v10995_v3 = vor.u32 %v8412_v41, %v7910_v60  ;;  %v8443_v41 = vld [vmem:[#allocation24 + $0x1ec] sm:$0xf] }
0x1441   :  { %4853 = vmatmul.bf16.gmra.mxu3 %v4764_v30  ;;  %12274 = vst [vmem:[#allocation49_spill] sm:$0xff] %v10995_v3  ;;  %v7848_v30 = vld [vmem:[#allocation24 + $0x70] sm:$0xf0]  ;;  %5328 = vmatpush.bf16.msrb.mxu0 %v10995_v3 }
0x1442   :  { %v4716_v57 = vpop.f32.mrf.mxu2 }
0x1443   :  { %v4717_v6 = vadd.f32 %v8517_v12, %v4716_v57  ;;  %v8426_v57 = vld [vmem:[#allocation24 + $0x164] sm:$0xf] }
0x1445   :  { %v4738_v11 = vmax.f32 %v4717_v6, 0.0  ;;  %v7976_v6 = vld [vmem:[#allocation24 + $0x170] sm:$0xf0] }
0x144a   :  { %v4718_v52 = vpop.f32.mrf.mxu2 }
0x144b   :  { %v4719_v14 = vadd.f32 %v8517_v12, %v4718_v52  ;;  %v10998_v52 = vor.u32 %v8394_v20, %v7848_v30  ;;  %v8048_v20 = vld [vmem:[#allocation24 + $0x1f8] sm:$0xf0]  ;;  %v7974_v30 = vld [vmem:[#allocation24 + $0x160] sm:$0xf] }
0x144d   :  { %v4739_v36 = vmax.f32 %v4719_v14, 0.0  ;;  %v11000_v14 = vor.u32 %v8426_v57, %v7976_v6  ;;  %5358 = vmatpush.bf16.msrb.mxu2 %v10998_v52  ;;  %v8428_v57 = vld [vmem:[#allocation24 + $0x16c] sm:$0xf0] }
0x144f   :  { %v4765_v50 = vpack.c.bf16 %v4739_v36, %v4738_v11  ;;  %12275 = vst [vmem:[#allocation43_spill] sm:$0xff] %v11000_v14  ;;  %v8022_v11 = vld [vmem:[#allocation24 + $0x1c0] sm:$0xf]  ;;  %v8440_v36 = vld [vmem:[#allocation24 + $0x1cc] sm:$0xf0]  ;;  %5371 = vmatpush.bf16.msrb.mxu3 %v11000_v14 }
0x1451   :  { %4858 = vmatmul.bf16.gmra.mxu3 %v4765_v50  ;;  %v7894_v50 = vld [vmem:[#allocation24 + $0xc0] sm:$0xf] }
0x1452   :  { %v4721_v58 = vpop.f32.mrf.mxu2 }
0x1453   :  { %v4722_v40 = vadd.f32 %v8517_v12, %v4721_v58  ;;  %v11003_v58 = vor.u32 %v8440_v36, %v8022_v11  ;;  %v11045_v11 = vor.u32 %v8443_v41, %v8048_v20  ;;  %v7846_v36 = vld [vmem:[#allocation24 + $0x60] sm:$0xf] }
0x1455   :  { %v4740_v46 = vmax.f32 %v4722_v40, 0.0  ;;  %12276 = vst [vmem:[#allocation44_spill] sm:$0xff] %v11003_v58  ;;  %v8408_v40 = vld [vmem:[#allocation24 + $0xcc] sm:$0xf0]  ;;  %5342 = vmatpush.bf16.msrb.mxu1 %v11003_v58 }
0x1456   :  { %12285 = vst [vmem:[#allocation58_spill] sm:$0xff] %v11045_v11 }
0x145a   :  { %v4723_v42 = vpop.f32.mrf.mxu2 }
0x145b   :  { %v4724_v16 = vadd.f32 %v8517_v12, %v4723_v42  ;;  %v8390_v42 = vld [vmem:[#allocation24 + $0x44] sm:$0xf] }
0x145d   :  { %v4741_v54 = vmax.f32 %v4724_v16, 0.0  ;;  %v7832_v16 = vld [vmem:[#allocation24 + $0x50] sm:$0xf0] }
0x145f   :  { %v4766_v37 = vpack.c.bf16 %v4741_v54, %v4740_v46  ;;  %v11007_v54 = vor.u32 %v8408_v40, %v7894_v50  ;;  %v11047_v40 = vor.u32 %v8428_v57, %v7974_v30  ;;  %v8399_v30 = vld [vmem:[#allocation24 + $0x8c] sm:$0xf]  ;;  %v7872_v57 = vld [vmem:[#allocation24 + $0x98] sm:$0xf0] }
0x1461   :  { %4863 = vmatmul.bf16.gmra.mxu3 %v4766_v37  ;;  %12277 = vst [vmem:[#allocation45_spill] sm:$0xff] %v11007_v54  ;;  %v11009_v37 = vor.u32 %v8390_v42, %v7832_v16  ;;  %5329 = vmatpush.bf16.msrb.mxu0 %v11007_v54  ;;  %v8396_v42 = vld [vmem:[#allocation24 + $0x6c] sm:$0xf0]  ;;  %v8407_v16 = vld [vmem:[#allocation24 + $0xcc] sm:$0xf] }
0x1462   :  { %12286 = vst [vmem:[#allocation59_spill] sm:$0xff] %v11047_v40 }
0x1463   :  { %5359 = vmatpush.bf16.msrb.mxu2 %v11009_v37 }
0x1467   :  { %5360 = vmatpush.bf16.msrb.mxu2 %v11022_v0 }
0x146b   :  { %5361 = vmatpush.bf16.msrb.mxu2 %v11036_v17 }
0x1474   :  { %v4829_v4 = vpop.f32.mrf.mxu3 }
0x1475   :  { %v4830_v51 = vadd.f32 %v10958_v48, %v4829_v4  ;;  %v8422_v4 = vld [vmem:[#allocation24 + $0x144] sm:$0xf] }
0x1477   :  { %v4869_v53 = vmax.f32 %v4830_v51, 0.0  ;;  %v7960_v51 = vld [vmem:[#allocation24 + $0x150] sm:$0xf0] }
0x1479   :  { %4893 = vxpose.xlu0.b32.start [1/16] %v4869_v53, 128 }
0x147c   :  { %v4831_v1 = vpop.f32.mrf.mxu3 }
0x147d   :  { %v4832_v15 = vadd.f32 %v10958_v48, %v4831_v1  ;;  %v8006_v1 = vld [vmem:[#allocation24 + $0x1a0] sm:$0xf] }
0x147f   :  { %v4870_v2 = vmax.f32 %v4832_v15, 0.0  ;;  %v8436_v15 = vld [vmem:[#allocation24 + $0x1ac] sm:$0xf0] }
0x1481   :  { %4894 = vxpose.xlu0.b32.cont [2/16] %v4870_v2, 128  ;;  %v10962_v25 = vpack.c.bf16 %v4870_v2, %v4869_v53  ;;  %v11013_v2 = vor.u32 %v8422_v4, %v7960_v51  ;;  %v7904_v4 = vld [vmem:[#allocation24 + $0xd8] sm:$0xf0] }
0x1482   :  { %v11055_v51 = vor.u32 %v8407_v16, %v7904_v4  ;;  %v8431_v16 = vld [vmem:[#allocation24 + $0x18c] sm:$0xf]  ;;  %v8000_v4 = vld [vmem:[#allocation24 + $0x198] sm:$0xf0] }
0x1483   :  { %12267 = vst [vmem:[#allocation41_spill] sm:$0xff] %v10962_v25  ;;  %5372 = vmatpush.bf16.msrb.mxu3 %v11013_v2 }
0x1484   :  { %v4834_v24 = vpop.f32.mrf.mxu3  ;;  %12278 = vst [vmem:[#allocation52_spill] sm:$0xff] %v11013_v2 }
0x1485   :  { %v4835_v12 = vadd.f32 %v10958_v48, %v4834_v24  ;;  %v11015_v24 = vor.u32 %v8436_v15, %v8006_v1  ;;  %v8032_v1 = vld [vmem:[#allocation24 + $0x1d8] sm:$0xf0]  ;;  %v7958_v15 = vld [vmem:[#allocation24 + $0x140] sm:$0xf] }
0x1487   :  { %v4871_v62 = vmax.f32 %v4835_v12, 0.0  ;;  %12279 = vst [vmem:[#allocation46_spill] sm:$0xff] %v11015_v24  ;;  %v7878_v12 = vld [vmem:[#allocation24 + $0xa0] sm:$0xf]  ;;  %5343 = vmatpush.bf16.msrb.mxu1 %v11015_v24 }
0x1488   :  { %v11020_v45 = vor.u32 %v8404_v21, %v7878_v12  ;;  %v8424_v12 = vld [vmem:[#allocation24 + $0x14c] sm:$0xf0] }
0x1489   :  { %4895 = vxpose.xlu0.b32.cont [3/16] %v4871_v62, 128 }
0x148a   :  { %5330 = vmatpush.bf16.msrb.mxu0 %v11020_v45 }
0x148c   :  { %v4836_v44 = vpop.f32.mrf.mxu3 }
0x148d   :  { %v4837_v32 = vadd.f32 %v10958_v48, %v4836_v44  ;;  %v7944_v44 = vld [vmem:[#allocation24 + $0x130] sm:$0xf0] }
0x148e   :  { %v11027_v28 = vor.u32 %v8418_v55, %v7944_v44  ;;  %v8403_v55 = vld [vmem:[#allocation24 + $0xac] sm:$0xf]  ;;  %v7888_v44 = vld [vmem:[#allocation24 + $0xb8] sm:$0xf0] }
0x148f   :  { %v4872_v33 = vmax.f32 %v4837_v32, 0.0  ;;  %v7990_v32 = vld [vmem:[#allocation24 + $0x180] sm:$0xf] }
0x1490   :  { %12281 = vst [vmem:[#allocation54_spill] sm:$0xff] %v11027_v28  ;;  %5373 = vmatpush.bf16.msrb.mxu3 %v11027_v28 }
0x1491   :  { %4896 = vxpose.xlu0.b32.cont [4/16] %v4872_v33, 128  ;;  %v10980_v38 = vpack.c.bf16 %v4872_v33, %v4871_v62  ;;  %v11030_v33 = vor.u32 %v8432_v18, %v7990_v32  ;;  %v11064_v18 = vor.u32 %v8392_v8, %v7830_v19  ;;  %v8046_v8 = vld [vmem:[#allocation24 + $0x1e8] sm:$0xf] }
0x1493   :  { %12270 = vst [vmem:[#allocation51_spill] sm:$0xff] %v10980_v38  ;;  %5344 = vmatpush.bf16.msrb.mxu1 %v11030_v33 }
0x1494   :  { %v4839_v34 = vpop.f32.mrf.mxu3  ;;  %12282 = vst [vmem:[#allocation55_spill] sm:$0xff] %v11030_v33 }
0x1495   :  { %v4840_v22 = vadd.f32 %v10958_v48, %v4839_v34  ;;  %v11034_v34 = vor.u32 %v8400_v49, %v7862_v47  ;;  %v11066_v47 = vor.u32 %v8403_v55, %v7888_v44  ;;  %v8445_v55 = vld [vmem:[#allocation24 + $0x1f4] sm:$0xf0]  ;;  %v8384_v44 = vld [vmem:[#allocation24 + $0xc] sm:$0xf0] }
0x1497   :  { %v4873_v29 = vmax.f32 %v4840_v22, 0.0  ;;  %v7920_v22 = vld [vmem:[#allocation24 + $0xf8] sm:$0xf0]  ;;  %5331 = vmatpush.bf16.msrb.mxu0 %v11034_v34  ;;  %5345 = vmatpush.bf16.msrb.mxu1 %v11047_v40  ;;  %12289 = vst [vmem:[#allocation62_spill] sm:$0xff] %v11066_v47 }
0x1498   :  { %v11040_v60 = vor.u32 %v8411_v39, %v7920_v22  ;;  %v11070_v39 = vor.u32 %v8420_v5, %v7942_v63  ;;  %v8016_v22 = vld [vmem:[#allocation24 + $0x1b8] sm:$0xf0]  ;;  %v7918_v63 = vld [vmem:[#allocation24 + $0xe8] sm:$0xf]  ;;  %v8413_v5 = vld [vmem:[#allocation24 + $0xf4] sm:$0xf0] }
0x1499   :  { %4897 = vxpose.xlu0.b32.cont [5/16] %v4873_v29, 128 }
0x149a   :  { %5406 = vmatpush.bf16.msra.mxu2 %v11040_v60  ;;  %12290 = vst [vmem:[#allocation63_spill] sm:$0xff] %v11070_v39 }
0x149c   :  { %v4841_v46 = vpop.f32.mrf.mxu3 }
0x149d   :  { %v4842_v53 = vadd.f32 %v10958_v48, %v4841_v46  ;;  %v11052_v46 = vor.u32 %v8396_v42, %v7846_v36  ;;  %v11079_v36 = vor.u32 %v8399_v30, %v7872_v57  ;;  %v8427_v30 = vld [vmem:[#allocation24 + $0x16c] sm:$0xf] }
0x149e   :  { %5407 = vmatpush.bf16.msra.mxu2 %v11055_v51 }
0x149f   :  { %v4874_v62 = vmax.f32 %v4842_v53, 0.0  ;;  %v8439_v53 = vld [vmem:[#allocation24 + $0x1cc] sm:$0xf]  ;;  %5332 = vmatpush.bf16.msrb.mxu0 %v11052_v46  ;;  %12292 = vst [vmem:[#allocation65_spill] sm:$0xff] %v11079_v36 }
0x14a0   :  { %v11059_v21 = vor.u32 %v8439_v53, %v8032_v1  ;;  %v7926_v53 = vld [vmem:[#allocation24 + $0x100] sm:$0xf]  ;;  %v8416_v1 = vld [vmem:[#allocation24 + $0x10c] sm:$0xf0] }
0x14a1   :  { %4898 = vxpose.xlu0.b32.cont [6/16] %v4874_v62, 128  ;;  %v11024_v26 = vpack.c.bf16 %v4874_v62, %v4873_v29  ;;  %v7928_v29 = vld [vmem:[#allocation24 + $0x110] sm:$0xf0]  ;;  %v11061_v62 = vor.u32 %v8424_v12, %v7958_v15  ;;  %v11086_v15 = vor.u32 %v8431_v16, %v8000_v4  ;;  %v7798_v12 = vld [vmem:[#allocation24] sm:$0xf]  ;;  %v11088_v19 = vor.u32 %v8416_v1, %v7926_v53  ;;  %v7984_v16 = vld [vmem:[#allocation24 + $0x178] sm:$0xf0] }
0x14a2   :  { %v11043_v6 = vor.u32 %v8414_v61, %v7928_v29  ;;  %12287 = vst [vmem:[#allocation60_spill] sm:$0xff] %v11059_v21  ;;  %v7814_v61 = vld [vmem:[#allocation24 + $0x20] sm:$0xf]  ;;  %5408 = vmatpush.bf16.msra.mxu2 %v11066_v47  ;;  %v8030_v53 = vld [vmem:[#allocation24 + $0x1c8] sm:$0xf] }
0x14a3   :  { %12280 = vst [vmem:[#allocation53_spill] sm:$0xff] %v11024_v26  ;;  %5346 = vmatpush.bf16.msrb.mxu1 %v11061_v62  ;;  %5333 = vmatpush.bf16.msrb.mxu0 %v11064_v18  ;;  %v8441_v1 = vld [vmem:[#allocation24 + $0x1d4] sm:$0xf0] }
0x14a4   :  { %v4844_v27 = vpop.f32.mrf.mxu3  ;;  %12284 = vst [vmem:[#allocation57_spill] sm:$0xff] %v11043_v6  ;;  %5374 = vmatpush.bf16.msrb.mxu3 %v11043_v6 }
0x14a5   :  { %v4845_v35 = vadd.f32 %v10958_v48, %v4844_v27  ;;  %12288 = vst [vmem:[#allocation61_spill] sm:$0xff] %v11061_v62  ;;  %v8435_v27 = vld [vmem:[#allocation24 + $0x1ac] sm:$0xf] }
0x14a6   :  { %v11074_v41 = vor.u32 %v8435_v27, %v8016_v22  ;;  %12294 = vst [vmem:[#allocation67_spill] sm:$0xff] %v11086_v15  ;;  %5409 = vmatpush.bf16.msra.mxu2 %v11079_v36  ;;  %v11953_v22 = vmov 0  }
0x14a7   :  { %v4875_v50 = vmax.f32 %v4845_v35, 0.0  ;;  %v8388_v35 = vld [vmem:[#allocation24 + $0x2c] sm:$0xf0]  ;;  %5347 = vmatpush.bf16.msrb.mxu1 %v11070_v39  ;;  %12295 = vst [vmem:[#allocation68_spill] sm:$0xff] %v11088_v19  ;;  %5362 = vmatmul.bf16.vlgmr.msrb.gmra.mxu2 %v11953_v22 }
0x14a8   :  { %5419 = vmatpush.bf16.msra.mxu3 %v11045_v11  ;;  %12291 = vst [vmem:[#allocation64_spill] sm:$0xff] %v11074_v41  ;;  %v11076_v20 = vor.u32 %v8388_v35, %v7814_v61  ;;  %v11100_v61 = vor.u32 %v8413_v5, %v7918_v63  ;;  %v8395_v35 = vld [vmem:[#allocation24 + $0x6c] sm:$0xf]  ;;  %v7840_v5 = vld [vmem:[#allocation24 + $0x58] sm:$0xf0] }
0x14a9   :  { %4899 = vxpose.xlu0.b32.cont [7/16] %v4875_v50, 128  ;;  %5375 = vmatmul.bf16.vlgmr.msrb.gmra.mxu3 %v11953_v22  ;;  %v8433_v11 = vld [vmem:[#allocation24 + $0x194] sm:$0xf0] }
0x14aa   :  { %5334 = vmatpush.bf16.msrb.mxu0 %v11076_v20  ;;  %12298 = vst [vmem:[#allocation71_spill] sm:$0xff] %v11100_v61 }
0x14ab   :  { %5348 = vmatpush.bf16.msrb.mxu1 %v11088_v19 }
0x14ac   :  { %v4846_v32 = vpop.f32.mrf.mxu3  ;;  %5420 = vmatpush.bf16.msra.mxu3 %v11059_v21  ;;  %v7824_v21 = vld [vmem:[#allocation24 + $0x38] sm:$0xf0] }
0x14ad   :  { %v4847_v49 = vadd.f32 %v10958_v48, %v4846_v32  ;;  %v11090_v32 = vor.u32 %v8445_v55, %v8046_v8  ;;  %v11111_v8 = vor.u32 %v8441_v1, %v8030_v53  ;;  %v7902_v55 = vld [vmem:[#allocation24 + $0xc8] sm:$0xf]  ;;  %v8437_v1 = vld [vmem:[#allocation24 + $0x1b4] sm:$0xf0] }
0x14ae   :  { %5349 = vmatmul.bf16.vlgmr.msrb.gmra.mxu1 %v11953_v22  ;;  %v8014_v53 = vld [vmem:[#allocation24 + $0x1a8] sm:$0xf] }
0x14af   :  { %v4876_v29 = vmax.f32 %v4847_v49, 0.0  ;;  %12296 = vst [vmem:[#allocation69_spill] sm:$0xff] %v11090_v32  ;;  %v11093_v49 = vor.u32 %v8384_v44, %v7798_v12  ;;  %5393 = vmatpush.bf16.msra.mxu1 %v11090_v32  ;;  %v11109_v12 = vor.u32 %v8427_v30, %v7984_v16  ;;  %v8409_v44 = vld [vmem:[#allocation24 + $0xd4] sm:$0xf0] }
0x14b0   :  { %5421 = vmatpush.bf16.msra.mxu3 %v11074_v41  ;;  %12301 = vst [vmem:[#allocation74_spill] sm:$0xff] %v11111_v8  ;;  %v11117_v63 = vor.u32 %v8409_v44, %v7902_v55  ;;  %v11127_v44 = vor.u32 %v8437_v1, %v8014_v53  ;;  %v8387_v41 = vld [vmem:[#allocation24 + $0x2c] sm:$0xf] }
0x14b1   :  { %4900 = vxpose.xlu0.b32.cont [8/16] %v4876_v29, 128  ;;  %v11081_v42 = vpack.c.bf16 %v4876_v29, %v4875_v50  ;;  %12297 = vst [vmem:[#allocation70_spill] sm:$0xff] %v11093_v49  ;;  %v7856_v29 = vld [vmem:[#allocation24 + $0x78] sm:$0xf0]  ;;  %5335 = vmatpush.bf16.msrb.mxu0 %v11093_v49 }
0x14b2   :  { %v11104_v57 = vor.u32 %v8395_v35, %v7856_v29  ;;  %12300 = vst [vmem:[#allocation73_spill] sm:$0xff] %v11109_v12  ;;  %v8423_v35 = vld [vmem:[#allocation24 + $0x14c] sm:$0xf]  ;;  %v7968_v29 = vld [vmem:[#allocation24 + $0x158] sm:$0xf0] }
0x14b3   :  { %12293 = vst [vmem:[#allocation66_spill] sm:$0xff] %v11081_v42  ;;  %5394 = vmatpush.bf16.msra.mxu1 %v11111_v8  ;;  %v11124_v16 = vor.u32 %v8423_v35, %v7968_v29  ;;  %v11136_v35 = vor.u32 %v8387_v41, %v7824_v21  ;;  %v8419_v29 = vld [vmem:[#allocation24 + $0x12c] sm:$0xf]  ;;  %v7870_v21 = vld [vmem:[#allocation24 + $0x88] sm:$0xf] }
0x14b4   :  { %v4849_v50 = vpop.f32.mrf.mxu3  ;;  %5422 = vmatpush.bf16.msra.mxu3 %v11086_v15  ;;  %12299 = vst [vmem:[#allocation72_spill] sm:$0xff] %v11104_v57  ;;  %5410 = vmatpush.bf16.msra.mxu2 %v11104_v57  ;;  %v7886_v15 = vld [vmem:[#allocation24 + $0xa8] sm:$0xf]  ;;  %v8401_v41 = vld [vmem:[#allocation24 + $0x94] sm:$0xf0] }
0x14b5   :  { %v11096_v27 = vadd.f32 %v10958_v48, %v4849_v50  ;;  %5380 = vmatpush.bf16.msra.mxu0 %v11100_v61  ;;  %v8391_v50 = vld [vmem:[#allocation24 + $0x4c] sm:$0xf]  ;;  %12302 = vst [vmem:[#allocation75_spill] sm:$0xff] %v11117_v63  ;;  %v7854_v57 = vld [vmem:[#allocation24 + $0x68] sm:$0xf] }
0x14b6   :  { %v11122_v30 = vor.u32 %v8391_v50, %v7840_v5  ;;  %12304 = vst [vmem:[#allocation77_spill] sm:$0xff] %v11124_v16  ;;  %5336 = vmatmul.bf16.vlgmr.msrb.gmra.mxu0 %v11953_v22  ;;  %v7998_v22 = vld [vmem:[#allocation24 + $0x188] sm:$0xf] }
0x14b7   :  { %v11946_v4 = vmax.f32 %v11096_v27, 0.0  ;;  %12305 = vst [vmem:[#allocation78_spill] sm:$0xff] %v11127_v44  ;;  %5395 = vmatpush.bf16.msra.mxu1 %v11127_v44 }
0x14b8   :  { %5423 = vmatpush.bf16.msra.mxu3 %v11109_v12  ;;  %12303 = vst [vmem:[#allocation76_spill] sm:$0xff] %v11122_v30  ;;  %5411 = vmatpush.bf16.msra.mxu2 %v11122_v30  ;;  %v7952_v12 = vld [vmem:[#allocation24 + $0x138] sm:$0xf0]  ;;  %v11143_v30 = vor.u32 %v8433_v11, %v7998_v22 }
0x14b9   :  { %4901 = vxpose.xlu0.b32.cont [9/16] %v11946_v4, 128  ;;  %5381 = vmatpush.bf16.msra.mxu0 %v11117_v63  ;;  %v8405_v4 = vld [vmem:[#allocation24 + $0xb4] sm:$0xf0]  ;;  %12307 = vst [vmem:[#allocation80_spill] sm:$0xff] %v11136_v35  ;;  %v11140_v53 = vor.u32 %v8419_v29, %v7952_v12  ;;  %v7808_v12 = vld [vmem:[#allocation24 + $0x18] sm:$0xf0] }
0x14ba   :  { %v11134_v5 = vor.u32 %v8405_v4, %v7886_v15  ;;  %12309 = vst [vmem:[#allocation82_spill] sm:$0xff] %v11143_v30  ;;  %v8383_v15 = vld [vmem:[#allocation24 + $0xc] sm:$0xf]  ;;  %v11149_v4 = vor.u32 %v8401_v41, %v7870_v21  ;;  %v7936_v29 = vld [vmem:[#allocation24 + $0x118] sm:$0xf0] }
0x14bb   :  { %12308 = vst [vmem:[#allocation81_spill] sm:$0xff] %v11140_v53  ;;  %5396 = vmatpush.bf16.msra.mxu1 %v11143_v30  ;;  %v11153_v11 = vor.u32 %v8383_v15, %v7808_v12  ;;  %v8397_v21 = vld [vmem:[#allocation24 + $0x74] sm:$0xf0]  ;;  %v12315_v12 = vmov 0  }
0x14bc   :  { %v4851_v55 = vpop.f32.mrf.mxu3  ;;  %12306 = vst [vmem:[#allocation79_spill] sm:$0xff] %v11134_v5  ;;  %5424 = vmatpush.bf16.msra.mxu3 %v11124_v16  ;;  %5412 = vmatpush.bf16.msra.mxu2 %v11136_v35  ;;  %v7982_v16 = vld [vmem:[#allocation24 + $0x168] sm:$0xf]  ;;  %v8429_v35 = vld [vmem:[#allocation24 + $0x174] sm:$0xf0] }
0x14bd   :  { %v11132_v50 = vadd.f32 %v10958_v48, %v4851_v55  ;;  %5382 = vmatpush.bf16.msra.mxu0 %v11134_v5  ;;  %12310 = vst [vmem:[#allocation83_spill] sm:$0xff] %v11149_v4  ;;  %v8415_v55 = vld [vmem:[#allocation24 + $0x10c] sm:$0xf]  ;;  %v11157_v47 = vor.u32 %v8429_v35, %v7982_v16  ;;  %v7966_v16 = vld [vmem:[#allocation24 + $0x148] sm:$0xf] }
0x14be   :  { %12311 = vst [vmem:[#allocation84_spill] sm:$0xff] %v11153_v11  ;;  %v11155_v22 = vor.u32 %v8415_v55, %v7936_v29  ;;  %v8425_v35 = vld [vmem:[#allocation24 + $0x154] sm:$0xf0] }
0x14bf   :  { %v11969_v1 = vmax.f32 %v11132_v50, 0.0  ;;  %12313 = vst [vmem:[#allocation86_spill] sm:$0xff] %v11157_v47  ;;  %5397 = vmatpush.bf16.msra.mxu1 %v11157_v47  ;;  %v11172_v55 = vor.u32 %v8425_v35, %v7966_v16 }
0x14c0   :  { %5425 = vmatpush.bf16.msra.mxu3 %v11140_v53  ;;  %12312 = vst [vmem:[#allocation85_spill] sm:$0xff] %v11155_v22  ;;  %5413 = vmatpush.bf16.msra.mxu2 %v11153_v11  ;;  %v8389_v53 = vld [vmem:[#allocation24 + $0x34] sm:$0xf0] }
0x14c1   :  { %4902 = vxpose.xlu0.b32.cont [10/16] %v11969_v1, 128  ;;  %5383 = vmatpush.bf16.msra.mxu0 %v11149_v4  ;;  %v11164_v1 = vor.u32 %v8397_v21, %v7854_v57  ;;  %12316 = vst [vmem:[#allocation88_spill] sm:$0xff] %v11172_v55  ;;  %v8393_v57 = vld [vmem:[#allocation24 + $0x54] sm:$0xf0]  ;;  %v7950_v21 = vld [vmem:[#allocation24 + $0x128] sm:$0xf] }
0x14c3   :  { %12314 = vst [vmem:[#allocation87_spill] sm:$0xff] %v11164_v1  ;;  %5414 = vmatmul.bf16.vlgmr.msra.gmra.mxu2 %v12315_v12  ;;  %5398 = vmatpush.bf16.msra.mxu1 %v11172_v55 }
0x14c4   :  { %v4854_v36 = vpop.f32.mrf.mxu3  ;;  %5550 = vmatpush.bf16.msrb.mxu2 %v10995_v3  ;;  %5426 = vmatpush.bf16.msra.mxu3 %v11155_v22  ;;  %v8421_v22 = vld [vmem:[#allocation24 + $0x134] sm:$0xf0] }
0x14c5   :  { %v11162_v41 = vadd.f32 %v10958_v48, %v4854_v36  ;;  %5384 = vmatpush.bf16.msra.mxu0 %v11164_v1  ;;  %v7838_v36 = vld [vmem:[#allocation24 + $0x48] sm:$0xf]  ;;  %v11183_v35 = vor.u32 %v8421_v22, %v7950_v21  ;;  %v8385_v21 = vld [vmem:[#allocation24 + $0x14] sm:$0xf0] }
0x14c6   :  { %v11178_v29 = vor.u32 %v8393_v57, %v7838_v36  ;;  %v7934_v57 = vld [vmem:[#allocation24 + $0x108] sm:$0xf] }
0x14c7   :  { %v11976_v15 = vmax.f32 %v11162_v41, 0.0  ;;  %5427 = vmatmul.bf16.vlgmr.msra.gmra.mxu3 %v12315_v12  ;;  %12318 = vst [vmem:[#allocation90_spill] sm:$0xff] %v11183_v35  ;;  %5399 = vmatpush.bf16.msra.mxu1 %v11183_v35  ;;  %v7806_v22 = vld [vmem:[#allocation24 + $0x8] sm:$0xf] }
0x14c8   :  { %5563 = vmatpush.bf16.msrb.mxu3 %v10992_v59  ;;  %12317 = vst [vmem:[#allocation89_spill] sm:$0xff] %v11178_v29  ;;  %5551 = vmatpush.bf16.msrb.mxu2 %v11007_v54  ;;  %v7822_v59 = vld [vmem:[#allocation24 + $0x28] sm:$0xf]  ;;  %v8417_v54 = vld [vmem:[#allocation24 + $0x114] sm:$0xf0]  ;;  %v11195_v11 = vor.u32 %v8385_v21, %v7806_v22 }
0x14c9   :  { %4903 = vxpose.xlu0.b32.cont [11/16] %v11976_v15, 128  ;;  %5385 = vmatpush.bf16.msra.mxu0 %v11178_v29  ;;  %v11187_v3 = vor.u32 %v8389_v53, %v7822_v59 }
0x14ca   :  { %12321 = vst [vmem:[#allocation93_spill] sm:$0xff] %v11195_v11 }
0x14cb   :  { %12319 = vst [vmem:[#allocation91_spill] sm:$0xff] %v11187_v3 }
0x14cc   :  { %5564 = vmatpush.bf16.msrb.mxu3 %v11003_v58  ;;  %v4856_v16 = vpop.f32.mrf.mxu3  ;;  %5552 = vmatpush.bf16.msrb.mxu2 %v11020_v45  ;;  %v11192_v58 = vor.u32 %v8417_v54, %v7934_v57 }
0x14cd   :  { %v4857_v15 = vadd.f32 %v10958_v48, %v4856_v16  ;;  %5386 = vmatpush.bf16.msra.mxu0 %v11187_v3 }
0x14ce   :  { %12320 = vst [vmem:[#allocation92_spill] sm:$0xff] %v11192_v58  ;;  %5400 = vmatpush.bf16.msra.mxu1 %v11192_v58 }
0x14cf   :  { %v4880_v36 = vmax.f32 %v4857_v15, 0.0 }
0x14d0   :  { %5565 = vmatpush.bf16.msrb.mxu3 %v11015_v24  ;;  %5553 = vmatpush.bf16.msrb.mxu2 %v11034_v34 }
0x14d1   :  { %4904 = vxpose.xlu0.b32.cont [12/16] %v4880_v36, 128  ;;  %5387 = vmatpush.bf16.msra.mxu0 %v11195_v11 }
0x14d2   :  { %5401 = vmatmul.bf16.vlgmr.msra.gmra.mxu1 %v12315_v12 }
0x14d4   :  { %5566 = vmatpush.bf16.msrb.mxu3 %v11030_v33  ;;  %v4859_v59 = vpop.f32.mrf.mxu3  ;;  %5554 = vmatpush.bf16.msrb.mxu2 %v11052_v46 }
0x14d5   :  { %v4860_v53 = vadd.f32 %v10958_v48, %v4859_v59  ;;  %5388 = vmatmul.bf16.vlgmr.msra.gmra.mxu0 %v12315_v12 }
0x14d7   :  { %v4881_v54 = vmax.f32 %v4860_v53, 0.0 }
0x14d8   :  { %5567 = vmatpush.bf16.msrb.mxu3 %v11047_v40  ;;  %5555 = vmatpush.bf16.msrb.mxu2 %v11064_v18 }
0x14d9   :  { %4905 = vxpose.xlu0.b32.cont [13/16] %v4881_v54, 128 }
0x14dc   :  { %5568 = vmatpush.bf16.msrb.mxu3 %v11061_v62  ;;  %v4861_v15 = vpop.f32.mrf.mxu3  ;;  %5556 = vmatpush.bf16.msrb.mxu2 %v11076_v20 }
0x14dd   :  { %v4862_v16 = vadd.f32 %v10958_v48, %v4861_v15 }
0x14df   :  { %v4882_v57 = vmax.f32 %v4862_v16, 0.0 }
0x14e0   :  { %5569 = vmatpush.bf16.msrb.mxu3 %v11070_v39  ;;  %5557 = vmatpush.bf16.msrb.mxu2 %v11093_v49 }
0x14e1   :  { %4906 = vxpose.xlu0.b32.cont [14/16] %v4882_v57, 128 }
0x14e4   :  { %5602 = vmatpush.bf16.msra.mxu2 %v11100_v61  ;;  %5570 = vmatpush.bf16.msrb.mxu3 %v11088_v19  ;;  %v4864_v12 = vpop.f32.mrf.mxu3 }
0x14e5   :  { %v4865_v22 = vadd.f32 %v10958_v48, %v4864_v12  ;;  %v11228_v12 = vpack.c.bf16 %v4882_v57, %v4881_v54  ;;  %v12327_v54 = vmax.f32 %v11132_v50, 0.0 }
0x14e7   :  { %v4883_v21 = vmax.f32 %v4865_v22, 0.0  ;;  %12323 = vst [vmem:[#allocation95_spill] sm:$0xff] %v11228_v12 }
0x14e8   :  { %5615 = vmatpush.bf16.msra.mxu3 %v11090_v32  ;;  %5603 = vmatpush.bf16.msra.mxu2 %v11117_v63 }
0x14e9   :  { %4907 = vxpose.xlu0.b32.cont [15/16] %v4883_v21, 128 }
0x14ec   :  { %5616 = vmatpush.bf16.msra.mxu3 %v11111_v8  ;;  %5604 = vmatpush.bf16.msra.mxu2 %v11134_v5  ;;  %v4866_v59 = vpop.f32.mrf.mxu3 }
0x14ed   :  { %v4867_v53 = vadd.f32 %v10958_v48, %v4866_v59  ;;  %v12324_v48 = vmax.f32 %v11162_v41, 0.0 }
0x14ef   :  { %v4884_v15 = vmax.f32 %v4867_v53, 0.0  ;;  %v11235_v22 = vpack.c.bf16 %v4880_v36, %v12324_v48 }
0x14f0   :  { %5617 = vmatpush.bf16.msra.mxu3 %v11127_v44  ;;  %5605 = vmatpush.bf16.msra.mxu2 %v11149_v4 }
0x14f1   :  { %4908 = vxpose.xlu0.b32.end [16/16] %v4884_v15, 128  ;;  %v11223_v16 = vpack.c.bf16 %v4884_v15, %v4883_v21  ;;  %12325 = vst [vmem:[#allocation96_spill] sm:$0xff] %v11235_v22  ;;  %v12326_v21 = vmax.f32 %v11096_v27, 0.0 }
0x14f3   :  { %12322 = vst [vmem:[#allocation94_spill] sm:$0xff] %v11223_v16  ;;  %5536 = vmatpush.bf16.msrb.mxu1 %v11223_v16  ;;  %v11244_v57 = vpack.c.bf16 %v12327_v54, %v12326_v21  ;;  %v4998_v21 = vld [vmem:[%s11808_s15] sm:$0xf] }
0x14f4   :  { %5618 = vmatpush.bf16.msra.mxu3 %v11143_v30  ;;  %5606 = vmatpush.bf16.msra.mxu2 %v11164_v1  ;;  %v11268_v54 = vperm.slane %v4998_v21, 1 }
0x14f5   :  { %12328 = vst [vmem:[#allocation97_spill] sm:$0xff] %v11244_v57 }
0x14f6   :  { %12329 = vst [vmem:[#allocation98_spill] sm:$0xff] %v11268_v54 }
0x14f7   :  { %5537 = vmatpush.bf16.msrb.mxu1 %v11228_v12 }
0x14f8   :  { %5619 = vmatpush.bf16.msra.mxu3 %v11157_v47  ;;  %5607 = vmatpush.bf16.msra.mxu2 %v11178_v29 }
0x14fb   :  { %5538 = vmatpush.bf16.msrb.mxu1 %v11235_v22 }
0x14fc   :  { %5620 = vmatpush.bf16.msra.mxu3 %v11172_v55  ;;  %5608 = vmatpush.bf16.msra.mxu2 %v11187_v3 }
0x14ff   :  { %5539 = vmatpush.bf16.msrb.mxu1 %v11244_v57 }
0x1500   :  { %5621 = vmatpush.bf16.msra.mxu3 %v11183_v35  ;;  %5609 = vmatpush.bf16.msra.mxu2 %v11195_v11 }
0x1503   :  { %5540 = vmatpush.bf16.msrb.mxu1 %v11081_v42 }
0x1504   :  { %5622 = vmatpush.bf16.msra.mxu3 %v11192_v58  ;;  %v11270_v58 = vperm.slane %v4998_v21, 0 }
0x1506   :  { %12330 = vst [vmem:[#allocation99_spill] sm:$0xff] %v11270_v58 }
0x1507   :  { %5541 = vmatpush.bf16.msrb.mxu1 %v11024_v26 }
0x150b   :  { %5542 = vmatpush.bf16.msrb.mxu1 %v10980_v38 }
0x150f   :  { %5543 = vmatpush.bf16.msrb.mxu1 %v10962_v25 }
0x1513   :  { %5589 = vmatpush.bf16.msra.mxu1 %v10968_v7 }
0x1517   :  { %5590 = vmatpush.bf16.msra.mxu1 %v10975_v9 }
0x151b   :  { %5591 = vmatpush.bf16.msra.mxu1 %v10983_v56  ;;  %v11276_v56 = vperm.slane %v4998_v21, 3 }
0x151d   :  { %v4909_v27 = vpop.trf.xlu0  ;;  %12331 = vst [vmem:[#allocation100_spill] sm:$0xff] %v11276_v56 }
0x151f   :  { %5592 = vmatpush.bf16.msra.mxu1 %v10990_v23 }
0x1523   :  { %5593 = vmatpush.bf16.msra.mxu1 %v11000_v14 }
0x1525   :  { %v4910_v50 = vpop.trf.xlu0 }
0x1526   :  { %v11259_v41 = vpack.c.bf16 %v4910_v50, %v4909_v27 }
0x1527   :  { %5594 = vmatpush.bf16.msra.mxu1 %v11013_v2 }
0x152a   :  { %v5363_v15 = vpop.f32.mrf.mxu2 }
0x152b   :  { %5595 = vmatpush.bf16.msra.mxu1 %v11027_v28  ;;  %v5364_v35 = vadd.f32 %v5363_v15, %v11268_v54  ;;  %v5350_v28 = vpop.f32.mrf.mxu1 }
0x152c   :  { %v5376_v48 = vpop.f32.mrf.mxu3 }
0x152d   :  { %v4911_v36 = vpop.trf.xlu0  ;;  %v5377_v55 = vadd.f32 %v5376_v48, %v5364_v35 }
0x152f   :  { %5596 = vmatpush.bf16.msra.mxu1 %v11043_v6  ;;  %v8053_v2 = vmul.f32 -1.442695, %v5377_v55 }
0x1531   :  { %8521 = vpow2.f32 %v8053_v2 }
0x1533   :  { %v5337_v50 = vpop.f32.mrf.mxu0  ;;  %v5352_v8 = vpop.f32.mrf.mxu1 }
0x1534   :  { %v5338_v6 = vadd.f32 %v5337_v50, %v11270_v58  ;;  %v5378_v14 = vpop.f32.mrf.mxu3 }
0x1535   :  { %v4912_v59 = vpop.trf.xlu0 }
0x1536   :  { %v11263_v53 = vpack.c.bf16 %v4912_v59, %v4911_v36  ;;  %v5351_v36 = vadd.f32 %v5350_v28, %v5338_v6  ;;  %v5365_v59 = vpop.f32.mrf.mxu2 }
0x1537   :  { %v8522_v9 = vpop.eup %8521 }
0x1538   :  { %v8052_v47 = vmul.f32 -1.442695, %v5351_v36  ;;  %v5454_v50 = vadd.f32 1.0, %v8522_v9 }
0x153a   :  { %8523 = vpow2.f32 %v8052_v47  ;;  %vm5460_vm0 = vweird.f32 %v5454_v50 }
0x153b   :  { %v5339_v23 = vpop.f32.mrf.mxu0  ;;  %8525 = vrcp.f32 %v5454_v50 }
0x153c   :  { %v11279_v23 = vperm.slane %v4998_v21, 2  ;;  %v5466_v21 = vand.u32 2147483648, %v5454_v50 }
0x153d   :  { %v4913_v27 = vpop.trf.xlu0 }
0x153e   :  { %12332 = vst [vmem:[#allocation101_spill] sm:$0xff] %v11279_v23 }
0x1540   :  { %v8524_v54 = vpop.eup %8523 }
0x1541   :  { %v5435_v28 = vadd.f32 1.0, %v8524_v54 }
0x1543   :  { %8527 = vrcp.f32 %v5435_v28  ;;  %v5447_v7 = vand.u32 2147483648, %v5435_v28  ;;  %vm5441_vm1 = vweird.f32 %v5435_v28  ;;  %v5445_v25 = vand.u32 2147483647, %v5435_v28 }
0x1545   :  { %v4914_v30 = vpop.trf.xlu0  ;;  %vm5446_vm5 = vcmp.eq.f32.partialorder %v5445_v25, 8.507059e+37 }
0x1546   :  { %v11274_v44 = vpack.c.bf16 %v4914_v30, %v4913_v27  ;;  %v5415_v15 = vpop.f32.mrf.mxu2  ;;  %v8526_v30 = vpop.eup %8525 }
0x1547   :  { %v5416_v35 = vadd.f32 %v5415_v15, %v11276_v56  ;;  %v5456_v8 = vmul.f32 %v8526_v30, %v5454_v50  ;;  %vm5461_vm4 = vweird.f32 %v8526_v30 }
0x1548   :  { %vm5462_vm6 = vmor %vm5460_vm0, %vm5461_vm4 }
0x1549   :  { %v8528_v48 = vpop.eup %8527  ;;  %v5457_v58 = vsub.f32 1.0, %v5456_v8 }
0x154a   :  { %v5428_v6 = vpop.f32.mrf.mxu3  ;;  %v5437_v9 = vmul.f32 %v8528_v48, %v5435_v28  ;;  %vm5442_vm2 = vweird.f32 %v8528_v48 }
0x154b   :  { %v5429_v14 = vadd.f32 %v5428_v6, %v5416_v35  ;;  %vm5443_vm3 = vmor %vm5441_vm1, %vm5442_vm2 }
0x154c   :  { %v5438_v6 = vsub.f32 1.0, %v5437_v9 }
0x154d   :  { %v4915_v55 = vpop.trf.xlu0  ;;  %v8054_v2 = vmul.f32 -1.442695, %v5429_v14 }
0x154e   :  { %v5417_v47 = vpop.f32.mrf.mxu2 }
0x154f   :  { %8529 = vpow2.f32 %v8054_v2  ;;  %v5402_v36 = vpop.f32.mrf.mxu1  ;;  %v5458_v2 = vmul.f32 %v8526_v30, %v5457_v58  ;;  %v5439_v47 = vmul.f32 %v8528_v48, %v5438_v6 }
0x1551   :  { %v5440_v19 = vadd.f32 %v8528_v48, %v5439_v47 }
0x1552   :  { %v5389_v27 = vpop.f32.mrf.mxu0  ;;  %v5430_v54 = vpop.f32.mrf.mxu3 }
0x1553   :  { %v5390_v15 = vadd.f32 %v5389_v27, %v11279_v23  ;;  %v5467_v27 = vor.u32 1.1754944e-38, %v5466_v21  ;;  %v5444_v58 = vsel %vm5443_vm3, %v8528_v48, %v5440_v19 }
0x1555   :  { %v4916_v59 = vpop.trf.xlu0  ;;  %v8530_v35 = vpop.eup %8529  ;;  %v5403_v14 = vadd.f32 %v5402_v36, %v5390_v15  ;;  %v5464_v15 = vand.u32 2147483647, %v5454_v50 }
0x1556   :  { %v11282_v56 = vpack.c.bf16 %v4916_v59, %v4915_v55  ;;  %v5474_v32 = vadd.f32 1.0, %v8530_v35  ;;  %v5448_v55 = vor.u32 1.1754944e-38, %v5447_v7  ;;  %v5459_v59 = vadd.f32 %v8526_v30, %v5458_v2 }
0x1557   :  { %8531 = vtanh.f32 %v5403_v14  ;;  %v5404_v9 = vpop.f32.mrf.mxu1  ;;  %vm5465_vm7 = vcmp.eq.f32.partialorder %v5464_v15, 8.507059e+37 }
0x1558   :  { %8533 = vrcp.f32 %v5474_v32  ;;  %v5449_v54 = vsel %vm5446_vm5, %v5448_v55, %v5444_v58  ;;  %v5463_v35 = vsel %vm5462_vm6, %v8526_v30, %v5459_v59  ;;  %vm5480_vm8 = vweird.f32 %v5474_v32 }
0x1559   :  { %v5468_v47 = vsel %vm5465_vm7, %v5467_v27, %v5463_v35  ;;  %v5486_v7 = vand.u32 2147483648, %v5474_v32 }
0x155a   :  { %v5391_v8 = vpop.f32.mrf.mxu0  ;;  %v5490_v23 = vmul.f32 0.0, %v5468_v47 }
0x155b   :  { %v5484_v8 = vand.u32 2147483647, %v5474_v32  ;;  %v5487_v50 = vor.u32 1.1754944e-38, %v5486_v7  ;;  %v12334_v7 = vld [vmem:[#allocation65_spill] sm:$0xff] }
0x155d   :  { %v4917_v36 = vpop.trf.xlu0  ;;  %v8532_v6 = vpop.eup %8531  ;;  %vm5485_vm11 = vcmp.eq.f32.partialorder %v5484_v8, 8.507059e+37  ;;  %v12336_v8 = vld [vmem:[#allocation76_spill] sm:$0xff] }
0x155e   :  { %v8534_v14 = vpop.eup %8533  ;;  %v5491_v28 = vmul.f32 %v8532_v6, %v5449_v54 }
0x155f   :  { %v5476_v21 = vmul.f32 %v8534_v14, %v5474_v32  ;;  %vm5481_vm9 = vweird.f32 %v8534_v14 }
0x1560   :  { %v11285_v9 = vadd.f32 %v5491_v28, %v5490_v23  ;;  %vm5482_vm10 = vmor %vm5480_vm8, %vm5481_vm9 }
0x1561   :  { %v5477_v2 = vsub.f32 1.0, %v5476_v21 }
0x1562   :  { %8535 = vtanh.f32 %v11285_v9 }
0x1563   :  { %v5478_v19 = vmul.f32 %v8534_v14, %v5477_v2  ;;  %v12335_v2 = vld [vmem:[#allocation72_spill] sm:$0xff] }
0x1565   :  { %v4918_v25 = vpop.trf.xlu0  ;;  %v5479_v30 = vadd.f32 %v8534_v14, %v5478_v19  ;;  %v12338_v19 = vld [vmem:[#allocation84_spill] sm:$0xff] }
0x1566   :  { %v11300_v21 = vpack.c.bf16 %v4918_v25, %v4917_v36  ;;  %v12333_v36 = vld [vmem:[#allocation62_spill] sm:$0xff]  ;;  %v12337_v25 = vld [vmem:[#allocation80_spill] sm:$0xff] }
0x1567   :  { %v5483_v48 = vsel %vm5482_vm10, %v8534_v14, %v5479_v30 }
0x1568   :  { %v5488_v27 = vsel %vm5485_vm11, %v5487_v50, %v5483_v48  ;;  %v8536_v55 = vpop.eup %8535  ;;  %v12339_v50 = vld [vmem:[#allocation49_spill] sm:$0xff] }
0x1569   :  { %v5494_v59 = vmul.f32 %v8536_v55, %v5488_v27  ;;  %v12340_v48 = vld [vmem:[#allocation45_spill] sm:$0xff] }
0x156b   :  { %v5495_v15 = vpack.c.bf16 %v5494_v59, %v5494_v59 }
0x156d   :  { %v4919_v58 = vpop.trf.xlu0  ;;  %5558 = vmatmul.bf16.vlgmr.msrb.gmra.mxu2 %v5495_v15 }
0x1575   :  { %v4920_v54 = vpop.trf.xlu0 }
0x1576   :  { %v11296_v14 = vpack.c.bf16 %v4920_v54, %v4919_v58  ;;  %v11356_v58 = vld [vmem:[#allocation11] sm:$0xff] }
0x1577   :  { %12341 = vst [vmem:[#allocation62_spill] sm:$0xff] %v11356_v58  ;;  %vm5509_vm12 = vcmp.gt.f32.partialorder %v11356_v58, 0.5 }
0x157d   :  { %v4921_v35 = vpop.trf.xlu0  ;;  %5610 = vmatmul.bf16.vlgmr.msra.gmra.mxu2 %v5495_v15 }
0x1585   :  { %v4922_v32 = vpop.trf.xlu0 }
0x1586   :  { %v11292_v28 = vpack.c.bf16 %v4922_v32, %v4921_v35 }
0x158d   :  { %v4923_v23 = vpop.trf.xlu0 }
0x1595   :  { %v4924_v6 = vpop.trf.xlu0 }
0x1596   :  { %v11288_v47 = vpack.c.bf16 %v4924_v6, %v4923_v23 }
0x1598   :  { %5496 = vmatpush.bf16.msrb.mxu0 %v11288_v47  ;;  %5718 = vmatpush.bf16.msrb.mxu2 %v11288_v47 }
0x159c   :  { %5497 = vmatpush.bf16.msrb.mxu0 %v11292_v28  ;;  %5719 = vmatpush.bf16.msrb.mxu2 %v11292_v28 }
0x15a0   :  { %5498 = vmatpush.bf16.msrb.mxu0 %v11296_v14  ;;  %5720 = vmatpush.bf16.msrb.mxu2 %v11296_v14 }
0x15a4   :  { %5499 = vmatpush.bf16.msrb.mxu0 %v11300_v21  ;;  %5721 = vmatpush.bf16.msrb.mxu2 %v11300_v21 }
0x15a8   :  { %5500 = vmatpush.bf16.msrb.mxu0 %v11282_v56  ;;  %5722 = vmatpush.bf16.msrb.mxu2 %v11282_v56 }
0x15ac   :  { %5501 = vmatpush.bf16.msrb.mxu0 %v11274_v44  ;;  %5723 = vmatpush.bf16.msrb.mxu2 %v11274_v44 }
0x15b0   :  { %5502 = vmatpush.bf16.msrb.mxu0 %v11263_v53  ;;  %5724 = vmatpush.bf16.msrb.mxu2 %v11263_v53 }
0x15b4   :  { %5503 = vmatpush.bf16.msrb.mxu0 %v11259_v41  ;;  %5725 = vmatpush.bf16.msrb.mxu2 %v11259_v41 }
0x15b7   :  { %5504 = vmatmul.bf16.vlgmr.msrb.gmra.mxu0 %v5495_v15 }
0x15b8   :  { %5576 = vmatpush.bf16.msra.mxu0 %v10965_v31  ;;  %5797 = vmatpush.bf16.msra.mxu2 %v10965_v31 }
0x15bc   :  { %5577 = vmatpush.bf16.msra.mxu0 %v10971_v13  ;;  %5798 = vmatpush.bf16.msra.mxu2 %v10971_v13 }
0x15c0   :  { %5578 = vmatpush.bf16.msra.mxu0 %v10978_v43  ;;  %5799 = vmatpush.bf16.msra.mxu2 %v10978_v43 }
0x15c4   :  { %5579 = vmatpush.bf16.msra.mxu0 %v10986_v10  ;;  %5800 = vmatpush.bf16.msra.mxu2 %v10986_v10 }
0x15c8   :  { %5580 = vmatpush.bf16.msra.mxu0 %v10998_v52  ;;  %5801 = vmatpush.bf16.msra.mxu2 %v10998_v52 }
0x15cc   :  { %5581 = vmatpush.bf16.msra.mxu0 %v11009_v37  ;;  %5802 = vmatpush.bf16.msra.mxu2 %v11009_v37 }
0x15d0   :  { %5582 = vmatpush.bf16.msra.mxu0 %v11022_v0  ;;  %5803 = vmatpush.bf16.msra.mxu2 %v11022_v0 }
0x15d4   :  { %5583 = vmatpush.bf16.msra.mxu0 %v11036_v17  ;;  %5804 = vmatpush.bf16.msra.mxu2 %v11036_v17 }
0x15d7   :  { %5584 = vmatmul.bf16.vlgmr.msra.gmra.mxu0 %v5495_v15 }
0x15d8   :  { %5628 = vmatpush.bf16.msrb.mxu0 %v11040_v60 }
0x15dc   :  { %5629 = vmatpush.bf16.msrb.mxu0 %v11055_v51 }
0x15e0   :  { %5630 = vmatpush.bf16.msrb.mxu0 %v12333_v36 }
0x15e4   :  { %5631 = vmatpush.bf16.msrb.mxu0 %v12334_v7 }
0x15e8   :  { %5632 = vmatpush.bf16.msrb.mxu0 %v12335_v2 }
0x15ec   :  { %5633 = vmatpush.bf16.msrb.mxu0 %v12336_v8 }
0x15f0   :  { %5634 = vmatpush.bf16.msrb.mxu0 %v12337_v25  ;;  %v11337_v30 = vpop.f32.mrf.mxu2 }
0x15f4   :  { %5635 = vmatpush.bf16.msrb.mxu0 %v12338_v19 }
0x15f7   :  { %5636 = vmatmul.bf16.vlgmr.msrb.gmra.mxu0 %v5495_v15 }
0x15f8   :  { %5771 = vmatpush.bf16.msra.mxu0 %v12339_v50  ;;  %v5561_v27 = vpop.f32.mrf.mxu2 }
0x15fc   :  { %5772 = vmatpush.bf16.msra.mxu0 %v12340_v48 }
0x1600   :  { %5773 = vmatpush.bf16.msra.mxu0 %v11020_v45  ;;  %v11343_v55 = vpop.f32.mrf.mxu2 }
0x1604   :  { %5774 = vmatpush.bf16.msra.mxu0 %v11034_v34 }
0x1608   :  { %5775 = vmatpush.bf16.msra.mxu0 %v11052_v46  ;;  %v5613_v59 = vpop.f32.mrf.mxu2 }
0x160c   :  { %5776 = vmatpush.bf16.msra.mxu0 %v11064_v18 }
0x1610   :  { %5777 = vmatpush.bf16.msra.mxu0 %v11076_v20 }
0x1614   :  { %5778 = vmatpush.bf16.msra.mxu0 %v11093_v49 }
0x1618   :  { %5823 = vmatpush.bf16.msrb.mxu0 %v11100_v61 }
0x161c   :  { %5824 = vmatpush.bf16.msrb.mxu0 %v11117_v63 }
0x1620   :  { %5825 = vmatpush.bf16.msrb.mxu0 %v11134_v5 }
0x1624   :  { %5826 = vmatpush.bf16.msrb.mxu0 %v11149_v4 }
0x1628   :  { %5827 = vmatpush.bf16.msrb.mxu0 %v11164_v1 }
0x162c   :  { %5828 = vmatpush.bf16.msrb.mxu0 %v11178_v29 }
0x1630   :  { %5829 = vmatpush.bf16.msrb.mxu0 %v11187_v3 }
0x1634   :  { %5830 = vmatpush.bf16.msrb.mxu0 %v11195_v11  ;;  %v5505_v15 = vpop.f32.mrf.mxu0 }
0x1635   :  { %v5510_v54 = vsel %vm5509_vm12, %v5505_v15, -1e+30 }
0x1636   :  { %5511 = vmax.xlane.f32.xlu1 %v5510_v54 }
0x163c   :  { %v5507_v35 = vpop.f32.mrf.mxu0 }
0x1654   :  { %v11361_v32 = vpop.f32.mrf.mxu0 }
0x165c   :  { %v5587_v23 = vpop.f32.mrf.mxu0 }
0x1674   :  { %v11363_v6 = vpop.f32.mrf.mxu0 }
0x167c   :  { %v5639_v27 = vpop.f32.mrf.mxu0 }
0x16a9   :  { %v5512_v59 = vpop.xlane.xlu1 %5511 }
0x16aa   :  { %v5513_v3 = vsub.f32 %v5510_v54, %v5512_v59  ;;  %v12342_v59 = vld [vmem:[#allocation58_spill] sm:$0xff] }
0x16ac   :  { %v5514_v29 = vmul.f32 1.442695, %v5513_v3 }
0x16ae   :  { %8537 = vpow2.f32 %v5514_v29 }
0x16b4   :  { %v8538_v11 = vpop.eup %8537 }
0x16b5   :  { %v5516_v1 = vmul.f32 %v8538_v11, %v11356_v58  ;;  %v12344_v58 = vld [vmem:[#allocation64_spill] sm:$0xff] }
0x16b7   :  { %5517 = vadd.xlane.f32.xlu1 %v5516_v1 }
0x172a   :  { %v5518_v4 = vpop.xlane.xlu1 %5517 }
0x172b   :  { %v5519_v5 = vmax.f32 %v5518_v4, 1e-20  ;;  %v12343_v4 = vld [vmem:[#allocation60_spill] sm:$0xff] }
0x172d   :  { %8539 = vrcp.f32 %v5519_v5  ;;  %v5531_v61 = vand.u32 2147483648, %v5519_v5  ;;  %v5529_v23 = vand.u32 2147483647, %v5519_v5  ;;  %vm5525_vm14 = vweird.f32 %v5519_v5 }
0x172f   :  { %v5532_v54 = vor.u32 1.1754944e-38, %v5531_v61  ;;  %vm5530_vm0 = vcmp.eq.f32.partialorder %v5529_v23, 8.507059e+37  ;;  %v12349_v61 = vld [vmem:[#allocation85_spill] sm:$0xff] }
0x1733   :  { %v8540_v15 = vpop.eup %8539 }
0x1734   :  { %v5521_v63 = vmul.f32 %v8540_v15, %v5519_v5  ;;  %vm5526_vm13 = vweird.f32 %v8540_v15  ;;  %v12348_v5 = vld [vmem:[#allocation81_spill] sm:$0xff] }
0x1735   :  { %vm5527_vm15 = vmor %vm5525_vm14, %vm5526_vm13 }
0x1736   :  { %v5522_v35 = vsub.f32 1.0, %v5521_v63  ;;  %v12345_v63 = vld [vmem:[#allocation67_spill] sm:$0xff] }
0x1738   :  { %v5523_v17 = vmul.f32 %v8540_v15, %v5522_v35  ;;  %v12346_v35 = vld [vmem:[#allocation73_spill] sm:$0xff] }
0x173a   :  { %v5524_v49 = vadd.f32 %v8540_v15, %v5523_v17  ;;  %v12347_v17 = vld [vmem:[#allocation77_spill] sm:$0xff] }
0x173c   :  { %v5528_v3 = vsel %vm5527_vm15, %v8540_v15, %v5524_v49  ;;  %v12350_v15 = vld [vmem:[#allocation47_spill] sm:$0xff] }
0x173d   :  { %v5533_v29 = vsel %vm5530_vm0, %v5532_v54, %v5528_v3  ;;  %v12351_v54 = vld [vmem:[#allocation44_spill] sm:$0xff]  ;;  %v12352_v3 = vld [vmem:[#allocation41_spill] sm:$0xff] }
0x173e   :  { %v5534_v27 = vmul.f32 %v5533_v29, %v5516_v1  ;;  %v12353_v29 = vld [vmem:[#allocation68_spill] sm:$0xff] }
0x1740   :  { %v5535_v11 = vpack.c.bf16 %v5534_v27, %v5534_v27  ;;  %v12354_v27 = vld [vmem:[#allocation40_spill] sm:$0xff] }
0x1742   :  { %5544 = vmatmul.bf16.vlgmr.msrb.gmra.mxu1 %v5535_v11  ;;  %v12355_v11 = vld [vmem:[#allocation69_spill] sm:$0xff] }
0x1743   :  { %5641 = vmatpush.bf16.msrb.mxu1 %v12342_v59 }
0x1747   :  { %5642 = vmatpush.bf16.msrb.mxu1 %v12343_v4 }
0x174b   :  { %5643 = vmatpush.bf16.msrb.mxu1 %v12344_v58 }
0x174f   :  { %5644 = vmatpush.bf16.msrb.mxu1 %v12345_v63 }
0x1753   :  { %5645 = vmatpush.bf16.msrb.mxu1 %v12346_v35 }
0x1757   :  { %5646 = vmatpush.bf16.msrb.mxu1 %v12347_v17 }
0x175b   :  { %5647 = vmatpush.bf16.msrb.mxu1 %v12348_v5 }
0x175f   :  { %5648 = vmatpush.bf16.msrb.mxu1 %v12349_v61 }
0x17bf   :  { %v5545_v49 = vpop.f32.mrf.mxu1 }
0x17c0   :  { %v5549_v1 = vpack.c.bf16 %v5545_v49, %v5545_v49  ;;  %v12356_v49 = vld [vmem:[#allocation42_spill] sm:$0xff] }
0x17c2   :  { %5571 = vmatmul.bf16.vlgmr.msrb.gmra.mxu3 %v5549_v1  ;;  %5597 = vmatmul.bf16.vlgmr.msra.gmra.mxu1 %v5549_v1 }
0x17c3   :  { %5757 = vmatpush.bf16.msrb.mxu3 %v11223_v16  ;;  %5784 = vmatpush.bf16.msra.mxu1 %v12350_v15 }
0x17c7   :  { %5758 = vmatpush.bf16.msrb.mxu3 %v11228_v12  ;;  %v5547_v23 = vpop.f32.mrf.mxu1  ;;  %5785 = vmatpush.bf16.msra.mxu1 %v12351_v54 }
0x17c8   :  { %v12358_v23 = vld [vmem:[#allocation50_spill] sm:$0xff] }
0x17cb   :  { %5759 = vmatpush.bf16.msrb.mxu3 %v11235_v22  ;;  %5786 = vmatpush.bf16.msra.mxu1 %v11015_v24 }
0x17cf   :  { %5760 = vmatpush.bf16.msrb.mxu3 %v11244_v57  ;;  %5787 = vmatpush.bf16.msra.mxu1 %v11030_v33 }
0x17d2   :  { %5623 = vmatmul.bf16.vlgmr.msra.gmra.mxu3 %v5549_v1  ;;  %5649 = vmatmul.bf16.vlgmr.msrb.gmra.mxu1 %v5549_v1  ;;  %v12357_v1 = vld [vmem:[#allocation74_spill] sm:$0xff] }
0x17d3   :  { %5761 = vmatpush.bf16.msrb.mxu3 %v11081_v42  ;;  %5788 = vmatpush.bf16.msra.mxu1 %v11047_v40  ;;  %v12371_v42 = vld [vmem:[#allocation99_spill] sm:$0xff] }
0x17d7   :  { %5762 = vmatpush.bf16.msrb.mxu3 %v11024_v26  ;;  %5789 = vmatpush.bf16.msra.mxu1 %v11061_v62  ;;  %v12359_v26 = vld [vmem:[#allocation78_spill] sm:$0xff]  ;;  %v12360_v62 = vld [vmem:[#allocation48_spill] sm:$0xff] }
0x17db   :  { %5763 = vmatpush.bf16.msrb.mxu3 %v10980_v38  ;;  %5790 = vmatpush.bf16.msra.mxu1 %v11070_v39  ;;  %v12361_v38 = vld [vmem:[#allocation82_spill] sm:$0xff]  ;;  %v12362_v39 = vld [vmem:[#allocation43_spill] sm:$0xff] }
0x17df   :  { %5764 = vmatpush.bf16.msrb.mxu3 %v12352_v3  ;;  %5791 = vmatpush.bf16.msra.mxu1 %v12353_v29  ;;  %v12363_v3 = vld [vmem:[#allocation86_spill] sm:$0xff]  ;;  %v12364_v29 = vld [vmem:[#allocation52_spill] sm:$0xff] }
0x17e3   :  { %5810 = vmatpush.bf16.msra.mxu3 %v12354_v27  ;;  %5836 = vmatpush.bf16.msrb.mxu1 %v12355_v11  ;;  %v12365_v27 = vld [vmem:[#allocation88_spill] sm:$0xff]  ;;  %v12366_v11 = vld [vmem:[#allocation54_spill] sm:$0xff] }
0x17e7   :  { %5811 = vmatpush.bf16.msra.mxu3 %v12356_v49  ;;  %5837 = vmatpush.bf16.msrb.mxu1 %v12357_v1  ;;  %v12367_v49 = vld [vmem:[#allocation90_spill] sm:$0xff]  ;;  %v12368_v1 = vld [vmem:[#allocation57_spill] sm:$0xff] }
0x17eb   :  { %5812 = vmatpush.bf16.msra.mxu3 %v12358_v23  ;;  %5838 = vmatpush.bf16.msrb.mxu1 %v12359_v26  ;;  %v12369_v23 = vld [vmem:[#allocation92_spill] sm:$0xff]  ;;  %v12370_v26 = vld [vmem:[#allocation98_spill] sm:$0xff] }
0x17ef   :  { %5813 = vmatpush.bf16.msra.mxu3 %v12360_v62  ;;  %5839 = vmatpush.bf16.msrb.mxu1 %v12361_v38  ;;  %v5586_v62 = vadd.f32 %v11361_v32, %v12370_v26 }
0x17f3   :  { %5814 = vmatpush.bf16.msra.mxu3 %v12362_v39  ;;  %5840 = vmatpush.bf16.msrb.mxu1 %v12363_v3  ;;  %v5560_v3 = vadd.f32 %v11337_v30, %v12371_v42 }
0x17f7   :  { %5815 = vmatpush.bf16.msra.mxu3 %v12364_v29  ;;  %5841 = vmatpush.bf16.msrb.mxu1 %v12365_v27 }
0x17fb   :  { %5816 = vmatpush.bf16.msra.mxu3 %v12366_v11  ;;  %5842 = vmatpush.bf16.msrb.mxu1 %v12367_v49 }
0x17ff   :  { %5817 = vmatpush.bf16.msra.mxu3 %v12368_v1  ;;  %5843 = vmatpush.bf16.msrb.mxu1 %v12369_v23  ;;  %v12372_v23 = vld [vmem:[#allocation100_spill] sm:$0xff] }
0x1800   :  { %v5638_v24 = vadd.f32 %v11363_v6, %v12372_v23 }
0x183f   :  { %v5598_v38 = vpop.f32.mrf.mxu1 }
0x1840   :  { %v5599_v40 = vadd.f32 %v5598_v38, %v5586_v62 }
0x1842   :  { %v8056_v39 = vmul.f32 -1.442695, %v5599_v40 }
0x1844   :  { %8541 = vpow2.f32 %v8056_v39 }
0x1845   :  { %v5572_v29 = vpop.f32.mrf.mxu3 }
0x1846   :  { %v5573_v27 = vadd.f32 %v5572_v29, %v5560_v3 }
0x1847   :  { %v5600_v33 = vpop.f32.mrf.mxu1 }
0x1848   :  { %v8055_v11 = vmul.f32 -1.442695, %v5573_v27  ;;  %v12373_v33 = vld [vmem:[#allocation101_spill] sm:$0xff] }
0x1849   :  { %v5612_v3 = vadd.f32 %v11343_v55, %v12373_v33 }
0x184a   :  { %v8542_v57 = vpop.eup %8541  ;;  %8543 = vpow2.f32 %v8055_v11 }
0x184b   :  { %v5676_v49 = vadd.f32 1.0, %v8542_v57 }
0x184d   :  { %8545 = vrcp.f32 %v5676_v49  ;;  %v5574_v1 = vpop.f32.mrf.mxu3  ;;  %vm5682_vm2 = vweird.f32 %v5676_v49 }
0x184f   :  { %v5650_v32 = vpop.f32.mrf.mxu1 }
0x1850   :  { %v8544_v26 = vpop.eup %8543  ;;  %v5651_v38 = vadd.f32 %v5650_v32, %v5638_v24  ;;  %v5688_v24 = vand.u32 2147483648, %v5676_v49 }
0x1851   :  { %v5657_v40 = vadd.f32 1.0, %v8544_v26 }
0x1852   :  { %v8057_v62 = vmul.f32 -1.442695, %v5651_v38  ;;  %v5686_v38 = vand.u32 2147483647, %v5676_v49 }
0x1853   :  { %v8546_v22 = vpop.eup %8545  ;;  %8547 = vrcp.f32 %v5657_v40  ;;  %vm5663_vm5 = vweird.f32 %v5657_v40 }
0x1854   :  { %v5678_v39 = vmul.f32 %v8546_v22, %v5676_v49  ;;  %8549 = vpow2.f32 %v8057_v62  ;;  %vm5683_vm1 = vweird.f32 %v8546_v22  ;;  %v5669_v62 = vand.u32 2147483648, %v5657_v40 }
0x1855   :  { %v5624_v30 = vpop.f32.mrf.mxu3  ;;  %vm5684_vm3 = vmor %vm5682_vm2, %vm5683_vm1  ;;  %vm5687_vm6 = vcmp.eq.f32.partialorder %v5686_v38, 8.507059e+37 }
0x1856   :  { %v5679_v29 = vsub.f32 1.0, %v5678_v39  ;;  %v5625_v11 = vadd.f32 %v5624_v30, %v5612_v3  ;;  %v5667_v39 = vand.u32 2147483647, %v5657_v40  ;;  %v5689_v30 = vor.u32 1.1754944e-38, %v5688_v24 }
0x1857   :  { %v5652_v57 = vpop.f32.mrf.mxu1 }
0x1858   :  { %v5680_v27 = vmul.f32 %v8546_v22, %v5679_v29  ;;  %8551 = vtanh.f32 %v5625_v11  ;;  %v5670_v57 = vor.u32 1.1754944e-38, %v5669_v62  ;;  %vm5668_vm8 = vcmp.eq.f32.partialorder %v5667_v39, 8.507059e+37  ;;  %v12376_v39 = vld [vmem:[#allocation71_spill] sm:$0xff] }
0x1859   :  { %v8548_v1 = vpop.eup %8547 }
0x185a   :  { %v8550_v42 = vpop.eup %8549  ;;  %v5659_v6 = vmul.f32 %v8548_v1, %v5657_v40  ;;  %v5681_v23 = vadd.f32 %v8546_v22, %v5680_v27  ;;  %vm5664_vm4 = vweird.f32 %v8548_v1 }
0x185b   :  { %v5696_v26 = vadd.f32 1.0, %v8550_v42  ;;  %vm5665_vm7 = vmor %vm5663_vm5, %vm5664_vm4 }
0x185c   :  { %v5660_v32 = vsub.f32 1.0, %v5659_v6  ;;  %v5685_v29 = vsel %vm5684_vm3, %v8546_v22, %v5681_v23 }
0x185d   :  { %8553 = vrcp.f32 %v5696_v26  ;;  %v5626_v54 = vpop.f32.mrf.mxu3  ;;  %v5690_v27 = vsel %vm5687_vm6, %v5689_v30, %v5685_v29  ;;  %v5708_v22 = vand.u32 2147483648, %v5696_v26  ;;  %v5706_v40 = vand.u32 2147483647, %v5696_v26  ;;  %v12377_v29 = vld [vmem:[#allocation75_spill] sm:$0xff] }
0x185e   :  { %v5661_v55 = vmul.f32 %v8548_v1, %v5660_v32  ;;  %v8552_v42 = vpop.eup %8551  ;;  %v5712_v12 = vmul.f32 %v5690_v27, %v11285_v9  ;;  %vm5702_vm10 = vweird.f32 %v5696_v26  ;;  %v12378_v30 = vld [vmem:[#allocation79_spill] sm:$0xff]  ;;  %v12381_v27 = vld [vmem:[#allocation89_spill] sm:$0xff] }
0x185f   :  { %vm5707_vm13 = vcmp.eq.f32.partialorder %v5706_v40, 8.507059e+37 }
0x1860   :  { %v5662_v3 = vadd.f32 %v8548_v1, %v5661_v55 }
0x1862   :  { %v5666_v33 = vsel %vm5665_vm7, %v8548_v1, %v5662_v3  ;;  %v5709_v1 = vor.u32 1.1754944e-38, %v5708_v22  ;;  %v12379_v3 = vld [vmem:[#allocation83_spill] sm:$0xff] }
0x1863   :  { %v8554_v49 = vpop.eup %8553  ;;  %v5671_v11 = vsel %vm5668_vm8, %v5670_v57, %v5666_v33  ;;  %v12380_v57 = vld [vmem:[#allocation87_spill] sm:$0xff] }
0x1864   :  { %v5698_v6 = vmul.f32 %v8554_v49, %v5696_v26  ;;  %v5713_v54 = vmul.f32 %v8552_v42, %v5671_v11  ;;  %vm5703_vm9 = vweird.f32 %v8554_v49  ;;  %v12375_v26 = vld [vmem:[#allocation56_spill] sm:$0xff]  ;;  %v12382_v42 = vld [vmem:[#allocation91_spill] sm:$0xff] }
0x1865   :  { %vm5704_vm11 = vmor %vm5702_vm10, %vm5703_vm9 }
0x1866   :  { %v5699_v32 = vsub.f32 1.0, %v5698_v6  ;;  %v11415_v15 = vadd.f32 %v5713_v54, %v5712_v12  ;;  %v12374_v12 = vld [vmem:[#allocation70_spill] sm:$0xff] }
0x1867   :  { %v12384_v54 = vld [vmem:[#allocation62_spill] sm:$0xff] }
0x1868   :  { %v5700_v23 = vmul.f32 %v8554_v49, %v5699_v32  ;;  %8555 = vtanh.f32 %v11415_v15 }
0x186a   :  { %v5701_v24 = vadd.f32 %v8554_v49, %v5700_v23 }
0x186c   :  { %v5705_v38 = vsel %vm5704_vm11, %v8554_v49, %v5701_v24  ;;  %v12383_v49 = vld [vmem:[#allocation93_spill] sm:$0xff] }
0x186d   :  { %v5710_v33 = vsel %vm5707_vm13, %v5709_v1, %v5705_v38 }
0x186e   :  { %v8556_v62 = vpop.eup %8555 }
0x186f   :  { %v5716_v55 = vmul.f32 %v8556_v62, %v5710_v33 }
0x1871   :  { %v5717_v9 = vpack.c.bf16 %v5716_v55, %v5716_v55 }
0x1873   :  { %5726 = vmatmul.bf16.vlgmr.msrb.gmra.mxu2 %v5717_v9  ;;  %5779 = vmatmul.bf16.vlgmr.msra.gmra.mxu0 %v5717_v9 }
0x1874   :  { %5939 = vmatpush.bf16.msra.mxu0 %v11288_v47  ;;  %5849 = vmatpush.bf16.msrb.mxu2 %v11040_v60 }
0x1878   :  { %5940 = vmatpush.bf16.msra.mxu0 %v11292_v28  ;;  %5850 = vmatpush.bf16.msrb.mxu2 %v11055_v51 }
0x187c   :  { %5941 = vmatpush.bf16.msra.mxu0 %v11296_v14  ;;  %5851 = vmatpush.bf16.msrb.mxu2 %v12333_v36 }
0x1880   :  { %5942 = vmatpush.bf16.msra.mxu0 %v11300_v21  ;;  %5852 = vmatpush.bf16.msrb.mxu2 %v12334_v7 }
0x1883   :  { %5805 = vmatmul.bf16.vlgmr.msra.gmra.mxu2 %v5717_v9  ;;  %5831 = vmatmul.bf16.vlgmr.msrb.gmra.mxu0 %v5717_v9 }
0x1884   :  { %5943 = vmatpush.bf16.msra.mxu0 %v11282_v56  ;;  %5853 = vmatpush.bf16.msrb.mxu2 %v12335_v2 }
0x1888   :  { %5944 = vmatpush.bf16.msra.mxu0 %v11274_v44  ;;  %5854 = vmatpush.bf16.msrb.mxu2 %v12336_v8 }
0x188c   :  { %5945 = vmatpush.bf16.msra.mxu0 %v11263_v53  ;;  %5855 = vmatpush.bf16.msrb.mxu2 %v12337_v25 }
0x1890   :  { %5946 = vmatpush.bf16.msra.mxu0 %v11259_v41  ;;  %5856 = vmatpush.bf16.msrb.mxu2 %v12338_v19 }
0x1893   :  { %5857 = vmatmul.bf16.vlgmr.msrb.gmra.mxu2 %v5717_v9 }
0x1894   :  { %5992 = vmatpush.bf16.msra.mxu2 %v12339_v50  ;;  %6018 = vmatpush.bf16.msrb.mxu0 %v10965_v31 }
0x1898   :  { %5993 = vmatpush.bf16.msra.mxu2 %v12340_v48  ;;  %6019 = vmatpush.bf16.msrb.mxu0 %v10971_v13 }
0x189c   :  { %5994 = vmatpush.bf16.msra.mxu2 %v11020_v45  ;;  %6020 = vmatpush.bf16.msrb.mxu0 %v10978_v43 }
0x18a0   :  { %5995 = vmatpush.bf16.msra.mxu2 %v11034_v34  ;;  %6021 = vmatpush.bf16.msrb.mxu0 %v10986_v10 }
0x18a4   :  { %5996 = vmatpush.bf16.msra.mxu2 %v11052_v46  ;;  %6022 = vmatpush.bf16.msrb.mxu0 %v10998_v52 }
0x18a8   :  { %5997 = vmatpush.bf16.msra.mxu2 %v11064_v18  ;;  %6023 = vmatpush.bf16.msrb.mxu0 %v11009_v37 }
0x18ac   :  { %5998 = vmatpush.bf16.msra.mxu2 %v11076_v20  ;;  %6024 = vmatpush.bf16.msrb.mxu0 %v11022_v0 }
0x18b0   :  { %5999 = vmatpush.bf16.msra.mxu2 %v12374_v12  ;;  %6025 = vmatpush.bf16.msrb.mxu0 %v12375_v26 }
0x18b4   :  { %6044 = vmatpush.bf16.msrb.mxu2 %v12376_v39 }
0x18b8   :  { %6045 = vmatpush.bf16.msrb.mxu2 %v12377_v29 }
0x18bc   :  { %6046 = vmatpush.bf16.msrb.mxu2 %v12378_v30 }
0x18c0   :  { %6047 = vmatpush.bf16.msrb.mxu2 %v12379_v3 }
0x18c4   :  { %6048 = vmatpush.bf16.msrb.mxu2 %v12380_v57 }
0x18c8   :  { %6049 = vmatpush.bf16.msrb.mxu2 %v12381_v27 }
0x18cc   :  { %6050 = vmatpush.bf16.msrb.mxu2 %v12382_v42 }
0x18d0   :  { %6051 = vmatpush.bf16.msrb.mxu2 %v12383_v49 }
0x18f0   :  { %v11458_v11 = vpop.f32.mrf.mxu0 }
0x18f6   :  { %v5727_v6 = vpop.f32.mrf.mxu2 }
0x18f7   :  { %v5731_v32 = vsel %vm5509_vm12, %v5727_v6, -1e+30 }
0x18f8   :  { %v5782_v22 = vpop.f32.mrf.mxu0  ;;  %5732 = vmax.xlane.f32.xlu2 %v5731_v32 }
0x18fe   :  { %v5729_v23 = vpop.f32.mrf.mxu2 }
0x1900   :  { %v11462_v40 = vpop.f32.mrf.mxu0 }
0x1906   :  { %v11464_v24 = vpop.f32.mrf.mxu2 }
0x1908   :  { %v5834_v1 = vpop.f32.mrf.mxu0 }
0x190e   :  { %v5808_v38 = vpop.f32.mrf.mxu2 }
0x1916   :  { %v11466_v33 = vpop.f32.mrf.mxu2 }
0x191e   :  { %v5860_v62 = vpop.f32.mrf.mxu2 }
0x196b   :  { %v5733_v55 = vpop.xlane.xlu2 %5732 }
0x196c   :  { %v5734_v9 = vsub.f32 %v5731_v32, %v5733_v55 }
0x196e   :  { %v5735_v49 = vmul.f32 1.442695, %v5734_v9  ;;  %v12387_v9 = vld [vmem:[#allocation44_spill] sm:$0xff] }
0x1970   :  { %8557 = vpow2.f32 %v5735_v49 }
0x1976   :  { %v8558_v42 = vpop.eup %8557 }
0x1977   :  { %v5737_v27 = vmul.f32 %v8558_v42, %v12384_v54 }
0x1979   :  { %5738 = vadd.xlane.f32.xlu2 %v5737_v27 }
0x19ec   :  { %v5739_v6 = vpop.xlane.xlu2 %5738 }
0x19ed   :  { %v5740_v22 = vmax.f32 %v5739_v6, 1e-20  ;;  %v12388_v6 = vld [vmem:[#allocation96_spill] sm:$0xff] }
0x19ef   :  { %8559 = vrcp.f32 %v5740_v22  ;;  %v5752_v30 = vand.u32 2147483648, %v5740_v22  ;;  %v5750_v38 = vand.u32 2147483647, %v5740_v22  ;;  %vm5746_vm15 = vweird.f32 %v5740_v22 }
0x19f1   :  { %v5753_v32 = vor.u32 1.1754944e-38, %v5752_v30  ;;  %vm5751_vm1 = vcmp.eq.f32.partialorder %v5750_v38, 8.507059e+37  ;;  %v12392_v38 = vld [vmem:[#allocation66_spill] sm:$0xff] }
0x19f5   :  { %v8560_v23 = vpop.eup %8559 }
0x19f6   :  { %v5742_v57 = vmul.f32 %v8560_v23, %v5740_v22  ;;  %vm5747_vm14 = vweird.f32 %v8560_v23  ;;  %v12389_v22 = vld [vmem:[#allocation46_spill] sm:$0xff] }
0x19f7   :  { %vm5748_vm0 = vmor %vm5746_vm15, %vm5747_vm14 }
0x19f8   :  { %v5743_v3 = vsub.f32 1.0, %v5742_v57  ;;  %v12386_v57 = vld [vmem:[#allocation95_spill] sm:$0xff] }
0x19fa   :  { %v5744_v1 = vmul.f32 %v8560_v23, %v5743_v3  ;;  %v12385_v3 = vld [vmem:[#allocation47_spill] sm:$0xff] }
0x19fc   :  { %v5745_v29 = vadd.f32 %v8560_v23, %v5744_v1  ;;  %v12391_v1 = vld [vmem:[#allocation55_spill] sm:$0xff] }
0x19fe   :  { %v5749_v49 = vsel %vm5748_vm0, %v8560_v23, %v5745_v29  ;;  %v12390_v23 = vld [vmem:[#allocation97_spill] sm:$0xff] }
0x19ff   :  { %v5754_v62 = vsel %vm5751_vm1, %v5753_v32, %v5749_v49  ;;  %v12393_v32 = vld [vmem:[#allocation59_spill] sm:$0xff]  ;;  %v12394_v49 = vld [vmem:[#allocation53_spill] sm:$0xff] }
0x1a00   :  { %v5755_v55 = vmul.f32 %v5754_v62, %v5737_v27  ;;  %v12395_v62 = vld [vmem:[#allocation61_spill] sm:$0xff] }
0x1a02   :  { %v5756_v42 = vpack.c.bf16 %v5755_v55, %v5755_v55  ;;  %v12396_v55 = vld [vmem:[#allocation51_spill] sm:$0xff] }
0x1a04   :  { %5765 = vmatmul.bf16.vlgmr.msrb.gmra.mxu3 %v5756_v42  ;;  %v12397_v42 = vld [vmem:[#allocation63_spill] sm:$0xff] }
0x1a05   :  { %5862 = vmatpush.bf16.msrb.mxu3 %v12342_v59 }
0x1a09   :  { %5863 = vmatpush.bf16.msrb.mxu3 %v12343_v4 }
0x1a0d   :  { %5864 = vmatpush.bf16.msrb.mxu3 %v12344_v58 }
0x1a11   :  { %5865 = vmatpush.bf16.msrb.mxu3 %v12345_v63 }
0x1a15   :  { %5866 = vmatpush.bf16.msrb.mxu3 %v12346_v35 }
0x1a19   :  { %5867 = vmatpush.bf16.msrb.mxu3 %v12347_v17 }
0x1a1d   :  { %5868 = vmatpush.bf16.msrb.mxu3 %v12348_v5 }
0x1a21   :  { %5869 = vmatpush.bf16.msrb.mxu3 %v12349_v61 }
0x1a87   :  { %v5766_v29 = vpop.f32.mrf.mxu3 }
0x1a88   :  { %v5770_v30 = vpack.c.bf16 %v5766_v29, %v5766_v29  ;;  %v12398_v29 = vld [vmem:[#allocation41_spill] sm:$0xff] }
0x1a8a   :  { %5792 = vmatmul.bf16.vlgmr.msra.gmra.mxu1 %v5770_v30  ;;  %5818 = vmatmul.bf16.vlgmr.msra.gmra.mxu3 %v5770_v30 }
0x1a8b   :  { %5978 = vmatpush.bf16.msra.mxu1 %v11223_v16  ;;  %6005 = vmatpush.bf16.msra.mxu3 %v12385_v3  ;;  %v12418_v16 = vld [vmem:[#allocation101_spill] sm:$0xff] }
0x1a8f   :  { %5979 = vmatpush.bf16.msra.mxu1 %v12386_v57  ;;  %v5768_v27 = vpop.f32.mrf.mxu3  ;;  %6006 = vmatpush.bf16.msra.mxu3 %v12387_v9 }
0x1a90   :  { %v12399_v27 = vld [vmem:[#allocation68_spill] sm:$0xff] }
0x1a93   :  { %5980 = vmatpush.bf16.msra.mxu1 %v12388_v6  ;;  %6007 = vmatpush.bf16.msra.mxu3 %v12389_v22  ;;  %v12417_v6 = vld [vmem:[#allocation98_spill] sm:$0xff] }
0x1a97   :  { %5981 = vmatpush.bf16.msra.mxu1 %v12390_v23  ;;  %6008 = vmatpush.bf16.msra.mxu3 %v12391_v1  ;;  %v12400_v23 = vld [vmem:[#allocation40_spill] sm:$0xff]  ;;  %v12401_v1 = vld [vmem:[#allocation69_spill] sm:$0xff] }
0x1a9a   :  { %5844 = vmatmul.bf16.vlgmr.msrb.gmra.mxu1 %v5770_v30  ;;  %5870 = vmatmul.bf16.vlgmr.msrb.gmra.mxu3 %v5770_v30  ;;  %v12402_v30 = vld [vmem:[#allocation42_spill] sm:$0xff] }
0x1a9b   :  { %5982 = vmatpush.bf16.msra.mxu1 %v12392_v38  ;;  %6009 = vmatpush.bf16.msra.mxu3 %v12393_v32  ;;  %v12403_v38 = vld [vmem:[#allocation74_spill] sm:$0xff] }
0x1a9c   :  { %v12404_v32 = vld [vmem:[#allocation50_spill] sm:$0xff] }
0x1a9f   :  { %5983 = vmatpush.bf16.msra.mxu1 %v12394_v49  ;;  %6010 = vmatpush.bf16.msra.mxu3 %v12395_v62  ;;  %v12405_v49 = vld [vmem:[#allocation78_spill] sm:$0xff]  ;;  %v12406_v62 = vld [vmem:[#allocation48_spill] sm:$0xff] }
0x1aa3   :  { %5984 = vmatpush.bf16.msra.mxu1 %v12396_v55  ;;  %6011 = vmatpush.bf16.msra.mxu3 %v12397_v42  ;;  %v12407_v55 = vld [vmem:[#allocation82_spill] sm:$0xff]  ;;  %v12408_v42 = vld [vmem:[#allocation43_spill] sm:$0xff] }
0x1aa7   :  { %5985 = vmatpush.bf16.msra.mxu1 %v12398_v29  ;;  %6012 = vmatpush.bf16.msra.mxu3 %v12399_v27  ;;  %v12409_v29 = vld [vmem:[#allocation86_spill] sm:$0xff]  ;;  %v12410_v27 = vld [vmem:[#allocation52_spill] sm:$0xff] }
0x1aab   :  { %6031 = vmatpush.bf16.msrb.mxu1 %v12400_v23  ;;  %6057 = vmatpush.bf16.msrb.mxu3 %v12401_v1  ;;  %v12411_v23 = vld [vmem:[#allocation88_spill] sm:$0xff]  ;;  %v12412_v1 = vld [vmem:[#allocation54_spill] sm:$0xff] }
0x1aaf   :  { %6032 = vmatpush.bf16.msrb.mxu1 %v12402_v30  ;;  %6058 = vmatpush.bf16.msrb.mxu3 %v12403_v38  ;;  %v12413_v30 = vld [vmem:[#allocation90_spill] sm:$0xff]  ;;  %v12414_v38 = vld [vmem:[#allocation57_spill] sm:$0xff] }
0x1ab3   :  { %6033 = vmatpush.bf16.msrb.mxu1 %v12404_v32  ;;  %6059 = vmatpush.bf16.msrb.mxu3 %v12405_v49  ;;  %v12415_v32 = vld [vmem:[#allocation92_spill] sm:$0xff]  ;;  %v12416_v49 = vld [vmem:[#allocation99_spill] sm:$0xff] }
0x1ab7   :  { %6034 = vmatpush.bf16.msrb.mxu1 %v12406_v62  ;;  %6060 = vmatpush.bf16.msrb.mxu3 %v12407_v55  ;;  %v5781_v62 = vadd.f32 %v11458_v11, %v12416_v49  ;;  %v5833_v11 = vadd.f32 %v11462_v40, %v12418_v16 }
0x1abb   :  { %6035 = vmatpush.bf16.msrb.mxu1 %v12408_v42  ;;  %6061 = vmatpush.bf16.msrb.mxu3 %v12409_v29  ;;  %v5807_v29 = vadd.f32 %v11464_v24, %v12417_v6  ;;  %v12419_v24 = vld [vmem:[#allocation100_spill] sm:$0xff] }
0x1abf   :  { %6036 = vmatpush.bf16.msrb.mxu1 %v12410_v27  ;;  %6062 = vmatpush.bf16.msrb.mxu3 %v12411_v23 }
0x1ac3   :  { %6037 = vmatpush.bf16.msrb.mxu1 %v12412_v1  ;;  %6063 = vmatpush.bf16.msrb.mxu3 %v12413_v30 }
0x1ac7   :  { %6038 = vmatpush.bf16.msrb.mxu1 %v12414_v38  ;;  %6064 = vmatpush.bf16.msrb.mxu3 %v12415_v32 }
0x1b07   :  { %v5793_v55 = vpop.f32.mrf.mxu1 }
0x1b08   :  { %v5794_v22 = vadd.f32 %v5793_v55, %v5781_v62 }
0x1b0a   :  { %v8058_v42 = vmul.f32 -1.442695, %v5794_v22 }
0x1b0c   :  { %8561 = vpow2.f32 %v8058_v42  ;;  %v5859_v42 = vadd.f32 %v11466_v33, %v12419_v24 }
0x1b0d   :  { %v5819_v27 = vpop.f32.mrf.mxu3 }
0x1b0e   :  { %v5820_v23 = vadd.f32 %v5819_v27, %v5807_v29 }
0x1b0f   :  { %v5795_v9 = vpop.f32.mrf.mxu1 }
0x1b10   :  { %v8059_v1 = vmul.f32 -1.442695, %v5820_v23 }
0x1b12   :  { %v8562_v57 = vpop.eup %8561  ;;  %8563 = vpow2.f32 %v8059_v1 }
0x1b13   :  { %v5878_v30 = vadd.f32 1.0, %v8562_v57 }
0x1b15   :  { %8565 = vrcp.f32 %v5878_v30  ;;  %v5821_v38 = vpop.f32.mrf.mxu3  ;;  %v5890_v1 = vand.u32 2147483648, %v5878_v30  ;;  %v5888_v49 = vand.u32 2147483647, %v5878_v30  ;;  %vm5884_vm3 = vweird.f32 %v5878_v30 }
0x1b17   :  { %v5845_v32 = vpop.f32.mrf.mxu1  ;;  %vm5889_vm5 = vcmp.eq.f32.partialorder %v5888_v49, 8.507059e+37 }
0x1b18   :  { %v8564_v3 = vpop.eup %8563  ;;  %v5846_v55 = vadd.f32 %v5845_v32, %v5833_v11  ;;  %v5891_v32 = vor.u32 1.1754944e-38, %v5890_v1 }
0x1b19   :  { %v5897_v62 = vadd.f32 1.0, %v8564_v3 }
0x1b1b   :  { %v8566_v22 = vpop.eup %8565  ;;  %8567 = vrcp.f32 %v5897_v62  ;;  %vm5903_vm7 = vweird.f32 %v5897_v62 }
0x1b1c   :  { %v5880_v29 = vmul.f32 %v8566_v22, %v5878_v30  ;;  %8569 = vtanh.f32 %v5846_v55  ;;  %vm5885_vm2 = vweird.f32 %v8566_v22 }
0x1b1d   :  { %v5871_v9 = vpop.f32.mrf.mxu3  ;;  %vm5886_vm4 = vmor %vm5884_vm3, %vm5885_vm2 }
0x1b1e   :  { %v5881_v23 = vsub.f32 1.0, %v5880_v29  ;;  %v5872_v27 = vadd.f32 %v5871_v9, %v5859_v42  ;;  %v5909_v29 = vand.u32 2147483648, %v5897_v62 }
0x1b1f   :  { %v5847_v57 = vpop.f32.mrf.mxu1 }
0x1b20   :  { %v5882_v38 = vmul.f32 %v8566_v22, %v5881_v23  ;;  %v8060_v6 = vmul.f32 -1.442695, %v5872_v27  ;;  %v5907_v23 = vand.u32 2147483647, %v5897_v62 }
0x1b21   :  { %v8568_v61 = vpop.eup %8567 }
0x1b22   :  { %v5899_v40 = vmul.f32 %v8568_v61, %v5897_v62  ;;  %v5883_v3 = vadd.f32 %v8566_v22, %v5882_v38  ;;  %8571 = vpow2.f32 %v8060_v6  ;;  %v8570_v16 = vpop.eup %8569  ;;  %vm5904_vm6 = vweird.f32 %v8568_v61 }
0x1b23   :  { %vm5905_vm8 = vmor %vm5903_vm7, %vm5904_vm6  ;;  %v5910_v38 = vor.u32 1.1754944e-38, %v5909_v29  ;;  %vm5908_vm9 = vcmp.eq.f32.partialorder %v5907_v23, 8.507059e+37  ;;  %v12421_v23 = vld [vmem:[#allocation79_spill] sm:$0xff] }
0x1b24   :  { %v5900_v11 = vsub.f32 1.0, %v5899_v40  ;;  %v5887_v33 = vsel %vm5886_vm4, %v8566_v22, %v5883_v3 }
0x1b25   :  { %v5892_v42 = vsel %vm5889_vm5, %v5891_v32, %v5887_v33  ;;  %v5873_v9 = vpop.f32.mrf.mxu3 }
0x1b26   :  { %v5901_v55 = vmul.f32 %v8568_v61, %v5900_v11  ;;  %v5934_v57 = vmul.f32 %v8570_v16, %v5892_v42 }
0x1b28   :  { %v8572_v24 = vpop.eup %8571  ;;  %v5902_v27 = vadd.f32 %v8568_v61, %v5901_v55  ;;  %v12420_v55 = vld [vmem:[#allocation75_spill] sm:$0xff] }
0x1b29   :  { %v5917_v30 = vadd.f32 1.0, %v8572_v24 }
0x1b2a   :  { %v5906_v6 = vsel %vm5905_vm8, %v8568_v61, %v5902_v27  ;;  %v12423_v27 = vld [vmem:[#allocation87_spill] sm:$0xff] }
0x1b2b   :  { %v5911_v1 = vsel %vm5908_vm9, %v5910_v38, %v5906_v6  ;;  %8573 = vrcp.f32 %v5917_v30  ;;  %v5929_v16 = vand.u32 2147483648, %v5917_v30  ;;  %v5927_v62 = vand.u32 2147483647, %v5917_v30  ;;  %v12424_v38 = vld [vmem:[#allocation89_spill] sm:$0xff] }
0x1b2c   :  { %v5933_v49 = vmul.f32 %v5911_v1, %v11415_v15  ;;  %vm5923_vm11 = vweird.f32 %v5917_v30  ;;  %v12426_v6 = vld [vmem:[#allocation93_spill] sm:$0xff] }
0x1b2d   :  { %v5930_v61 = vor.u32 1.1754944e-38, %v5929_v16  ;;  %vm5928_vm14 = vcmp.eq.f32.partialorder %v5927_v62, 8.507059e+37 }
0x1b2e   :  { %v11518_v22 = vadd.f32 %v5934_v57, %v5933_v49  ;;  %v12422_v57 = vld [vmem:[#allocation83_spill] sm:$0xff] }
0x1b30   :  { %8575 = vtanh.f32 %v11518_v22 }
0x1b31   :  { %v8574_v40 = vpop.eup %8573 }
0x1b32   :  { %v5919_v3 = vmul.f32 %v8574_v40, %v5917_v30  ;;  %vm5924_vm10 = vweird.f32 %v8574_v40  ;;  %v12425_v30 = vld [vmem:[#allocation91_spill] sm:$0xff] }
0x1b33   :  { %vm5925_vm13 = vmor %vm5923_vm11, %vm5924_vm10 }
0x1b34   :  { %v5920_v32 = vsub.f32 1.0, %v5919_v3 }
0x1b36   :  { %v5921_v11 = vmul.f32 %v8574_v40, %v5920_v32  ;;  %v8576_v29 = vpop.eup %8575 }
0x1b38   :  { %v5922_v33 = vadd.f32 %v8574_v40, %v5921_v11 }
0x1b3a   :  { %v5926_v24 = vsel %vm5925_vm13, %v8574_v40, %v5922_v33 }
0x1b3b   :  { %v5931_v42 = vsel %vm5928_vm14, %v5930_v61, %v5926_v24 }
0x1b3c   :  { %v5937_v15 = vmul.f32 %v8576_v29, %v5931_v42 }
0x1b3e   :  { %v5938_v9 = vpack.c.bf16 %v5937_v15, %v5937_v15 }
0x1b40   :  { %5947 = vmatmul.bf16.vlgmr.msra.gmra.mxu0 %v5938_v9  ;;  %6000 = vmatmul.bf16.vlgmr.msra.gmra.mxu2 %v5938_v9 }
0x1b41   :  { %6160 = vmatpush.bf16.msra.mxu2 %v11288_v47  ;;  %6070 = vmatpush.bf16.msra.mxu0 %v11040_v60 }
0x1b45   :  { %6161 = vmatpush.bf16.msra.mxu2 %v11292_v28  ;;  %6071 = vmatpush.bf16.msra.mxu0 %v11055_v51 }
0x1b49   :  { %6162 = vmatpush.bf16.msra.mxu2 %v11296_v14  ;;  %6072 = vmatpush.bf16.msra.mxu0 %v12333_v36 }
0x1b4d   :  { %6163 = vmatpush.bf16.msra.mxu2 %v11300_v21  ;;  %6073 = vmatpush.bf16.msra.mxu0 %v12334_v7 }
0x1b50   :  { %6026 = vmatmul.bf16.vlgmr.msrb.gmra.mxu0 %v5938_v9  ;;  %6052 = vmatmul.bf16.vlgmr.msrb.gmra.mxu2 %v5938_v9 }
0x1b51   :  { %6164 = vmatpush.bf16.msra.mxu2 %v11282_v56  ;;  %6074 = vmatpush.bf16.msra.mxu0 %v12335_v2 }
0x1b55   :  { %6165 = vmatpush.bf16.msra.mxu2 %v11274_v44  ;;  %6075 = vmatpush.bf16.msra.mxu0 %v12336_v8 }
0x1b59   :  { %6166 = vmatpush.bf16.msra.mxu2 %v11263_v53  ;;  %6076 = vmatpush.bf16.msra.mxu0 %v12337_v25 }
0x1b5d   :  { %6167 = vmatpush.bf16.msra.mxu2 %v11259_v41  ;;  %6077 = vmatpush.bf16.msra.mxu0 %v12338_v19 }
0x1b60   :  { %6078 = vmatmul.bf16.vlgmr.msra.gmra.mxu0 %v5938_v9 }
0x1b61   :  { %6213 = vmatpush.bf16.msrb.mxu0 %v12339_v50  ;;  %6239 = vmatpush.bf16.msrb.mxu2 %v10965_v31 }
0x1b65   :  { %6214 = vmatpush.bf16.msrb.mxu0 %v12340_v48  ;;  %6240 = vmatpush.bf16.msrb.mxu2 %v10971_v13 }
0x1b69   :  { %6215 = vmatpush.bf16.msrb.mxu0 %v11020_v45  ;;  %6241 = vmatpush.bf16.msrb.mxu2 %v10978_v43 }
0x1b6d   :  { %6216 = vmatpush.bf16.msrb.mxu0 %v11034_v34  ;;  %6242 = vmatpush.bf16.msrb.mxu2 %v10986_v10 }
0x1b71   :  { %6217 = vmatpush.bf16.msrb.mxu0 %v11052_v46  ;;  %6243 = vmatpush.bf16.msrb.mxu2 %v10998_v52 }
0x1b75   :  { %6218 = vmatpush.bf16.msrb.mxu0 %v11064_v18  ;;  %6244 = vmatpush.bf16.msrb.mxu2 %v11009_v37 }
0x1b79   :  { %6219 = vmatpush.bf16.msrb.mxu0 %v11076_v20  ;;  %6245 = vmatpush.bf16.msrb.mxu2 %v11022_v0 }
0x1b7d   :  { %6220 = vmatpush.bf16.msrb.mxu0 %v12374_v12  ;;  %6246 = vmatpush.bf16.msrb.mxu2 %v12375_v26 }
0x1b81   :  { %6265 = vmatpush.bf16.msra.mxu0 %v12376_v39 }
0x1b85   :  { %6266 = vmatpush.bf16.msra.mxu0 %v12420_v55 }
0x1b89   :  { %6267 = vmatpush.bf16.msra.mxu0 %v12421_v23 }
0x1b8d   :  { %6268 = vmatpush.bf16.msra.mxu0 %v12422_v57 }
0x1b91   :  { %6269 = vmatpush.bf16.msra.mxu0 %v12423_v27 }
0x1b95   :  { %6270 = vmatpush.bf16.msra.mxu0 %v12424_v38 }
0x1b99   :  { %6271 = vmatpush.bf16.msra.mxu0 %v12425_v30 }
0x1b9d   :  { %6272 = vmatpush.bf16.msra.mxu0 %v12426_v6 }
0x1bbd   :  { %v5948_v1 = vpop.f32.mrf.mxu0 }
0x1bbe   :  { %v5952_v49 = vsel %vm5509_vm12, %v5948_v1, -1e+30 }
0x1bbf   :  { %5953 = vmax.xlane.f32.xlu1 %v5952_v49 }
0x1bc3   :  { %v11563_v40 = vpop.f32.mrf.mxu2 }
0x1bc5   :  { %v5950_v3 = vpop.f32.mrf.mxu0 }
0x1bcb   :  { %v6003_v32 = vpop.f32.mrf.mxu2 }
0x1bcd   :  { %v11565_v16 = vpop.f32.mrf.mxu0 }
0x1bd3   :  { %v11567_v11 = vpop.f32.mrf.mxu2 }
0x1bd5   :  { %v6029_v62 = vpop.f32.mrf.mxu0 }
0x1bdb   :  { %v6055_v33 = vpop.f32.mrf.mxu2 }
0x1bdd   :  { %v11569_v61 = vpop.f32.mrf.mxu0 }
0x1be5   :  { %v6081_v24 = vpop.f32.mrf.mxu0 }
0x1c32   :  { %v5954_v29 = vpop.xlane.xlu1 %5953 }
0x1c33   :  { %v5955_v42 = vsub.f32 %v5952_v49, %v5954_v29 }
0x1c35   :  { %v5956_v15 = vmul.f32 1.442695, %v5955_v42 }
0x1c37   :  { %8577 = vpow2.f32 %v5956_v15 }
0x1c3d   :  { %v8578_v9 = vpop.eup %8577 }
0x1c3e   :  { %v5958_v1 = vmul.f32 %v8578_v9, %v12384_v54  ;;  %v12430_v9 = vld [vmem:[#allocation95_spill] sm:$0xff] }
0x1c3f   :  { %v8458_v54 = vld [vmem:[#allocation25 + $0x60] sm:$0xff] }
0x1c40   :  { %5959 = vadd.xlane.f32.xlu2 %v5958_v1 }
0x1cb3   :  { %v5960_v6 = vpop.xlane.xlu2 %5959 }
0x1cb4   :  { %v5961_v3 = vmax.f32 %v5960_v6, 1e-20  ;;  %v12429_v6 = vld [vmem:[#allocation47_spill] sm:$0xff] }
0x1cb6   :  { %8579 = vrcp.f32 %v5961_v3  ;;  %v5973_v27 = vand.u32 2147483648, %v5961_v3  ;;  %v5971_v33 = vand.u32 2147483647, %v5961_v3  ;;  %vm5967_vm0 = vweird.f32 %v5961_v3 }
0x1cb8   :  { %v5974_v49 = vor.u32 1.1754944e-38, %v5973_v27  ;;  %vm5972_vm2 = vcmp.eq.f32.partialorder %v5971_v33, 8.507059e+37  ;;  %v12427_v27 = vld [vmem:[#allocation85_spill] sm:$0xff] }
0x1cb9   :  { %v12434_v33 = vld [vmem:[#allocation97_spill] sm:$0xff] }
0x1cbc   :  { %v8580_v32 = vpop.eup %8579 }
0x1cbd   :  { %v5963_v30 = vmul.f32 %v8580_v32, %v5961_v3  ;;  %vm5968_vm15 = vweird.f32 %v8580_v32  ;;  %v12431_v3 = vld [vmem:[#allocation44_spill] sm:$0xff] }
0x1cbe   :  { %vm5969_vm1 = vmor %vm5967_vm0, %vm5968_vm15 }
0x1cbf   :  { %v5964_v38 = vsub.f32 1.0, %v5963_v30  ;;  %v12428_v30 = vld [vmem:[#allocation94_spill] sm:$0xff] }
0x1cc1   :  { %v5965_v62 = vmul.f32 %v8580_v32, %v5964_v38 }
0x1cc3   :  { %v5966_v57 = vadd.f32 %v8580_v32, %v5965_v62  ;;  %v12433_v62 = vld [vmem:[#allocation46_spill] sm:$0xff] }
0x1cc5   :  { %v5970_v24 = vsel %vm5969_vm1, %v8580_v32, %v5966_v57  ;;  %v12432_v32 = vld [vmem:[#allocation96_spill] sm:$0xff] }
0x1cc6   :  { %v5975_v29 = vsel %vm5972_vm2, %v5974_v49, %v5970_v24  ;;  %v12435_v49 = vld [vmem:[#allocation55_spill] sm:$0xff]  ;;  %v12436_v24 = vld [vmem:[#allocation66_spill] sm:$0xff] }
0x1cc7   :  { %v5976_v42 = vmul.f32 %v5975_v29, %v5958_v1  ;;  %v12437_v29 = vld [vmem:[#allocation59_spill] sm:$0xff] }
0x1cc9   :  { %v5977_v15 = vpack.c.bf16 %v5976_v42, %v5976_v42  ;;  %v12438_v42 = vld [vmem:[#allocation53_spill] sm:$0xff] }
0x1ccb   :  { %5986 = vmatmul.bf16.vlgmr.msra.gmra.mxu1 %v5977_v15  ;;  %v12439_v15 = vld [vmem:[#allocation61_spill] sm:$0xff] }
0x1ccc   :  { %6083 = vmatpush.bf16.msra.mxu1 %v12342_v59 }
0x1cd0   :  { %6084 = vmatpush.bf16.msra.mxu1 %v12343_v4 }
0x1cd4   :  { %6085 = vmatpush.bf16.msra.mxu1 %v12344_v58 }
0x1cd8   :  { %6086 = vmatpush.bf16.msra.mxu1 %v12345_v63 }
0x1cdc   :  { %6087 = vmatpush.bf16.msra.mxu1 %v12346_v35 }
0x1ce0   :  { %6088 = vmatpush.bf16.msra.mxu1 %v12347_v17 }
0x1ce4   :  { %6089 = vmatpush.bf16.msra.mxu1 %v12348_v5 }
0x1ce8   :  { %6090 = vmatpush.bf16.msra.mxu1 %v12427_v27 }
0x1d48   :  { %v5987_v57 = vpop.f32.mrf.mxu1 }
0x1d49   :  { %v5991_v38 = vpack.c.bf16 %v5987_v57, %v5987_v57  ;;  %v12440_v57 = vld [vmem:[#allocation51_spill] sm:$0xff] }
0x1d4b   :  { %6013 = vmatmul.bf16.vlgmr.msra.gmra.mxu3 %v5991_v38  ;;  %6039 = vmatmul.bf16.vlgmr.msrb.gmra.mxu1 %v5991_v38 }
0x1d4c   :  { %6199 = vmatpush.bf16.msra.mxu3 %v12428_v30  ;;  %6226 = vmatpush.bf16.msrb.mxu1 %v12429_v6 }
0x1d50   :  { %6200 = vmatpush.bf16.msra.mxu3 %v12430_v9  ;;  %v5989_v1 = vpop.f32.mrf.mxu1  ;;  %6227 = vmatpush.bf16.msrb.mxu1 %v12431_v3  ;;  %v12461_v9 = vld [vmem:[#allocation99_spill] sm:$0xff] }
0x1d51   :  { %v12441_v1 = vld [vmem:[#allocation63_spill] sm:$0xff] }
0x1d54   :  { %6201 = vmatpush.bf16.msra.mxu3 %v12432_v32  ;;  %6228 = vmatpush.bf16.msrb.mxu1 %v12433_v62  ;;  %v12442_v32 = vld [vmem:[#allocation41_spill] sm:$0xff]  ;;  %v12443_v62 = vld [vmem:[#allocation68_spill] sm:$0xff] }
0x1d58   :  { %6202 = vmatpush.bf16.msra.mxu3 %v12434_v33  ;;  %6229 = vmatpush.bf16.msrb.mxu1 %v12435_v49  ;;  %v12444_v33 = vld [vmem:[#allocation40_spill] sm:$0xff]  ;;  %v12445_v49 = vld [vmem:[#allocation69_spill] sm:$0xff] }
0x1d5b   :  { %6065 = vmatmul.bf16.vlgmr.msrb.gmra.mxu3 %v5991_v38  ;;  %6091 = vmatmul.bf16.vlgmr.msra.gmra.mxu1 %v5991_v38  ;;  %v12446_v38 = vld [vmem:[#allocation42_spill] sm:$0xff] }
0x1d5c   :  { %6203 = vmatpush.bf16.msra.mxu3 %v12436_v24  ;;  %6230 = vmatpush.bf16.msrb.mxu1 %v12437_v29  ;;  %v12447_v24 = vld [vmem:[#allocation74_spill] sm:$0xff] }
0x1d5d   :  { %v12448_v29 = vld [vmem:[#allocation50_spill] sm:$0xff] }
0x1d60   :  { %6204 = vmatpush.bf16.msra.mxu3 %v12438_v42  ;;  %6231 = vmatpush.bf16.msrb.mxu1 %v12439_v15  ;;  %v12449_v42 = vld [vmem:[#allocation78_spill] sm:$0xff]  ;;  %v12450_v15 = vld [vmem:[#allocation48_spill] sm:$0xff] }
0x1d64   :  { %6205 = vmatpush.bf16.msra.mxu3 %v12440_v57  ;;  %6232 = vmatpush.bf16.msrb.mxu1 %v12441_v1  ;;  %v12451_v57 = vld [vmem:[#allocation82_spill] sm:$0xff]  ;;  %v12452_v1 = vld [vmem:[#allocation43_spill] sm:$0xff] }
0x1d68   :  { %6206 = vmatpush.bf16.msra.mxu3 %v12442_v32  ;;  %6233 = vmatpush.bf16.msrb.mxu1 %v12443_v62  ;;  %v12453_v32 = vld [vmem:[#allocation86_spill] sm:$0xff]  ;;  %v12454_v62 = vld [vmem:[#allocation52_spill] sm:$0xff] }
0x1d6c   :  { %6252 = vmatpush.bf16.msrb.mxu3 %v12444_v33  ;;  %6278 = vmatpush.bf16.msra.mxu1 %v12445_v49  ;;  %v12455_v33 = vld [vmem:[#allocation88_spill] sm:$0xff]  ;;  %v12456_v49 = vld [vmem:[#allocation54_spill] sm:$0xff] }
0x1d70   :  { %6253 = vmatpush.bf16.msrb.mxu3 %v12446_v38  ;;  %6279 = vmatpush.bf16.msra.mxu1 %v12447_v24  ;;  %v12457_v38 = vld [vmem:[#allocation90_spill] sm:$0xff]  ;;  %v12458_v24 = vld [vmem:[#allocation57_spill] sm:$0xff] }
0x1d74   :  { %6254 = vmatpush.bf16.msrb.mxu3 %v12448_v29  ;;  %6280 = vmatpush.bf16.msra.mxu1 %v12449_v42  ;;  %v12459_v29 = vld [vmem:[#allocation92_spill] sm:$0xff]  ;;  %v12460_v42 = vld [vmem:[#allocation98_spill] sm:$0xff] }
0x1d78   :  { %6255 = vmatpush.bf16.msrb.mxu3 %v12450_v15  ;;  %6281 = vmatpush.bf16.msra.mxu1 %v12451_v57  ;;  %v6028_v15 = vadd.f32 %v11565_v16, %v12460_v42 }
0x1d7c   :  { %6256 = vmatpush.bf16.msrb.mxu3 %v12452_v1  ;;  %6282 = vmatpush.bf16.msra.mxu1 %v12453_v32  ;;  %v6002_v32 = vadd.f32 %v11563_v40, %v12461_v9 }
0x1d80   :  { %6257 = vmatpush.bf16.msrb.mxu3 %v12454_v62  ;;  %6283 = vmatpush.bf16.msra.mxu1 %v12455_v33 }
0x1d84   :  { %6258 = vmatpush.bf16.msrb.mxu3 %v12456_v49  ;;  %6284 = vmatpush.bf16.msra.mxu1 %v12457_v38 }
0x1d88   :  { %6259 = vmatpush.bf16.msrb.mxu3 %v12458_v24  ;;  %6285 = vmatpush.bf16.msra.mxu1 %v12459_v29  ;;  %v12462_v29 = vld [vmem:[#allocation100_spill] sm:$0xff] }
0x1d89   :  { %v6080_v27 = vadd.f32 %v11569_v61, %v12462_v29 }
0x1dc8   :  { %v6040_v57 = vpop.f32.mrf.mxu1 }
0x1dc9   :  { %v6041_v3 = vadd.f32 %v6040_v57, %v6028_v15 }
0x1dcb   :  { %v8062_v1 = vmul.f32 -1.442695, %v6041_v3 }
0x1dcd   :  { %8581 = vpow2.f32 %v8062_v1 }
0x1dce   :  { %v6014_v62 = vpop.f32.mrf.mxu3 }
0x1dcf   :  { %v6015_v33 = vadd.f32 %v6014_v62, %v6002_v32 }
0x1dd0   :  { %v6042_v6 = vpop.f32.mrf.mxu1 }
0x1dd1   :  { %v8061_v49 = vmul.f32 -1.442695, %v6015_v33  ;;  %v12463_v6 = vld [vmem:[#allocation101_spill] sm:$0xff] }
0x1dd2   :  { %v6054_v62 = vadd.f32 %v11567_v11, %v12463_v6 }
0x1dd3   :  { %v8582_v30 = vpop.eup %8581  ;;  %8583 = vpow2.f32 %v8061_v49 }
0x1dd4   :  { %v6118_v38 = vadd.f32 1.0, %v8582_v30 }
0x1dd6   :  { %8585 = vrcp.f32 %v6118_v38  ;;  %v6016_v24 = vpop.f32.mrf.mxu3  ;;  %vm6124_vm4 = vweird.f32 %v6118_v38 }
0x1dd8   :  { %v6092_v16 = vpop.f32.mrf.mxu1 }
0x1dd9   :  { %v8584_v42 = vpop.eup %8583  ;;  %v6093_v15 = vadd.f32 %v6092_v16, %v6080_v27  ;;  %v6130_v27 = vand.u32 2147483648, %v6118_v38 }
0x1dda   :  { %v6099_v3 = vadd.f32 1.0, %v8584_v42 }
0x1ddb   :  { %v8063_v57 = vmul.f32 -1.442695, %v6093_v15  ;;  %v6128_v15 = vand.u32 2147483647, %v6118_v38 }
0x1ddc   :  { %v8586_v5 = vpop.eup %8585  ;;  %8587 = vrcp.f32 %v6099_v3  ;;  %vm6105_vm7 = vweird.f32 %v6099_v3 }
0x1ddd   :  { %v6120_v40 = vmul.f32 %v8586_v5, %v6118_v38  ;;  %8589 = vpow2.f32 %v8063_v57  ;;  %vm6125_vm3 = vweird.f32 %v8586_v5  ;;  %v6111_v57 = vand.u32 2147483648, %v6099_v3 }
0x1dde   :  { %v6066_v32 = vpop.f32.mrf.mxu3  ;;  %vm6126_vm5 = vmor %vm6124_vm4, %vm6125_vm3  ;;  %vm6129_vm8 = vcmp.eq.f32.partialorder %v6128_v15, 8.507059e+37 }
0x1ddf   :  { %v6121_v33 = vsub.f32 1.0, %v6120_v40  ;;  %v6067_v24 = vadd.f32 %v6066_v32, %v6054_v62  ;;  %v6109_v40 = vand.u32 2147483647, %v6099_v3  ;;  %v6131_v32 = vor.u32 1.1754944e-38, %v6130_v27 }
0x1de0   :  { %v6094_v30 = vpop.f32.mrf.mxu1 }
0x1de1   :  { %v6122_v49 = vmul.f32 %v8586_v5, %v6121_v33  ;;  %8591 = vtanh.f32 %v6067_v24  ;;  %v6112_v30 = vor.u32 1.1754944e-38, %v6111_v57  ;;  %vm6110_vm10 = vcmp.eq.f32.partialorder %v6109_v40, 8.507059e+37 }
0x1de2   :  { %v8588_v1 = vpop.eup %8587 }
0x1de3   :  { %v8590_v9 = vpop.eup %8589  ;;  %v6101_v61 = vmul.f32 %v8588_v1, %v6099_v3  ;;  %v6123_v29 = vadd.f32 %v8586_v5, %v6122_v49  ;;  %vm6106_vm6 = vweird.f32 %v8588_v1 }
0x1de4   :  { %v6138_v42 = vadd.f32 1.0, %v8590_v9  ;;  %vm6107_vm9 = vmor %vm6105_vm7, %vm6106_vm6 }
0x1de5   :  { %v6102_v16 = vsub.f32 1.0, %v6101_v61  ;;  %v6127_v33 = vsel %vm6126_vm5, %v8586_v5, %v6123_v29 }
0x1de6   :  { %8593 = vrcp.f32 %v6138_v42  ;;  %v6068_v17 = vpop.f32.mrf.mxu3  ;;  %v6132_v49 = vsel %vm6129_vm8, %v6131_v32, %v6127_v33  ;;  %v6150_v5 = vand.u32 2147483648, %v6138_v42  ;;  %v6148_v3 = vand.u32 2147483647, %v6138_v42 }
0x1de7   :  { %v6103_v11 = vmul.f32 %v8588_v1, %v6102_v16  ;;  %v8592_v9 = vpop.eup %8591  ;;  %v6154_v35 = vmul.f32 %v6132_v49, %v11518_v22  ;;  %vm6144_vm13 = vweird.f32 %v6138_v42 }
0x1de8   :  { %vm6149_vm15 = vcmp.eq.f32.partialorder %v6148_v3, 8.507059e+37 }
0x1de9   :  { %v6104_v62 = vadd.f32 %v8588_v1, %v6103_v11 }
0x1deb   :  { %v6108_v6 = vsel %vm6107_vm9, %v8588_v1, %v6104_v62  ;;  %v6151_v1 = vor.u32 1.1754944e-38, %v6150_v5 }
0x1dec   :  { %v8594_v38 = vpop.eup %8593  ;;  %v6113_v24 = vsel %vm6110_vm10, %v6112_v30, %v6108_v6 }
0x1ded   :  { %v6140_v61 = vmul.f32 %v8594_v38, %v6138_v42  ;;  %v6155_v17 = vmul.f32 %v8592_v9, %v6113_v24  ;;  %vm6145_vm11 = vweird.f32 %v8594_v38  ;;  %v11674_v42 = vld [vmem:[#allocation11] sm:$0xff] }
0x1dee   :  { %vm6146_vm14 = vmor %vm6144_vm13, %vm6145_vm11 }
0x1def   :  { %v6141_v16 = vsub.f32 1.0, %v6140_v61  ;;  %v11621_v63 = vadd.f32 %v6155_v17, %v6154_v35 }
0x1df1   :  { %v6142_v29 = vmul.f32 %v8594_v38, %v6141_v16  ;;  %8595 = vtanh.f32 %v11621_v63 }
0x1df3   :  { %v6143_v27 = vadd.f32 %v8594_v38, %v6142_v29 }
0x1df5   :  { %v6147_v15 = vsel %vm6146_vm14, %v8594_v38, %v6143_v27  ;;  %v12469_v27 = vld [vmem:[#allocation67_spill] sm:$0xff] }
0x1df6   :  { %v6152_v6 = vsel %vm6149_vm15, %v6151_v1, %v6147_v15  ;;  %v12470_v1 = vld [vmem:[#allocation73_spill] sm:$0xff] }
0x1df7   :  { %v8596_v57 = vpop.eup %8595  ;;  %v12471_v15 = vld [vmem:[#allocation77_spill] sm:$0xff] }
0x1df8   :  { %v6158_v11 = vmul.f32 %v8596_v57, %v6152_v6  ;;  %v12472_v6 = vld [vmem:[#allocation81_spill] sm:$0xff] }
0x1df9   :  { %v12473_v57 = vld [vmem:[#allocation85_spill] sm:$0xff] }
0x1dfa   :  { %v6159_v22 = vpack.c.bf16 %v6158_v11, %v6158_v11 }
0x1dfc   :  { %6168 = vmatmul.bf16.vlgmr.msra.gmra.mxu2 %v6159_v22  ;;  %6221 = vmatmul.bf16.vlgmr.msrb.gmra.mxu0 %v6159_v22 }
0x1dfd   :  { %6381 = vmatpush.bf16.msrb.mxu0 %v11288_v47  ;;  %6291 = vmatpush.bf16.msra.mxu2 %v11040_v60 }
0x1e01   :  { %6382 = vmatpush.bf16.msrb.mxu0 %v11292_v28  ;;  %6292 = vmatpush.bf16.msra.mxu2 %v11055_v51 }
0x1e05   :  { %6383 = vmatpush.bf16.msrb.mxu0 %v11296_v14  ;;  %6293 = vmatpush.bf16.msra.mxu2 %v12333_v36 }
0x1e09   :  { %6384 = vmatpush.bf16.msrb.mxu0 %v11300_v21  ;;  %6294 = vmatpush.bf16.msra.mxu2 %v12334_v7 }
0x1e0c   :  { %6247 = vmatmul.bf16.vlgmr.msrb.gmra.mxu2 %v6159_v22  ;;  %6273 = vmatmul.bf16.vlgmr.msra.gmra.mxu0 %v6159_v22 }
0x1e0d   :  { %6385 = vmatpush.bf16.msrb.mxu0 %v11282_v56  ;;  %6295 = vmatpush.bf16.msra.mxu2 %v12335_v2 }
0x1e11   :  { %6386 = vmatpush.bf16.msrb.mxu0 %v11274_v44  ;;  %6296 = vmatpush.bf16.msra.mxu2 %v12336_v8 }
0x1e15   :  { %6387 = vmatpush.bf16.msrb.mxu0 %v11263_v53  ;;  %6297 = vmatpush.bf16.msra.mxu2 %v12337_v25 }
0x1e19   :  { %6388 = vmatpush.bf16.msrb.mxu0 %v11259_v41  ;;  %6298 = vmatpush.bf16.msra.mxu2 %v12338_v19 }
0x1e1c   :  { %6299 = vmatmul.bf16.vlgmr.msra.gmra.mxu2 %v6159_v22 }
0x1e1d   :  { %6434 = vmatpush.bf16.msrb.mxu2 %v12339_v50  ;;  %6460 = vmatpush.bf16.msra.mxu0 %v10965_v31  ;;  %v12464_v31 = vld [vmem:[#allocation83_spill] sm:$0xff] }
0x1e21   :  { %6435 = vmatpush.bf16.msrb.mxu2 %v12340_v48  ;;  %6461 = vmatpush.bf16.msra.mxu0 %v10971_v13  ;;  %v12465_v13 = vld [vmem:[#allocation87_spill] sm:$0xff] }
0x1e25   :  { %6436 = vmatpush.bf16.msrb.mxu2 %v11020_v45  ;;  %6462 = vmatpush.bf16.msra.mxu0 %v10978_v43  ;;  %v12466_v43 = vld [vmem:[#allocation89_spill] sm:$0xff] }
0x1e29   :  { %6437 = vmatpush.bf16.msrb.mxu2 %v11034_v34  ;;  %6463 = vmatpush.bf16.msra.mxu0 %v10986_v10  ;;  %v12467_v10 = vld [vmem:[#allocation91_spill] sm:$0xff] }
0x1e2d   :  { %6438 = vmatpush.bf16.msrb.mxu2 %v11052_v46  ;;  %6464 = vmatpush.bf16.msra.mxu0 %v10998_v52  ;;  %v12468_v52 = vld [vmem:[#allocation93_spill] sm:$0xff] }
0x1e31   :  { %6439 = vmatpush.bf16.msrb.mxu2 %v11064_v18  ;;  %6465 = vmatpush.bf16.msra.mxu0 %v11009_v37 }
0x1e35   :  { %6440 = vmatpush.bf16.msrb.mxu2 %v11076_v20  ;;  %6466 = vmatpush.bf16.msra.mxu0 %v11022_v0 }
0x1e39   :  { %6441 = vmatpush.bf16.msrb.mxu2 %v12374_v12  ;;  %6467 = vmatpush.bf16.msra.mxu0 %v12375_v26 }
0x1e3d   :  { %6486 = vmatpush.bf16.msra.mxu2 %v12376_v39 }
0x1e41   :  { %6487 = vmatpush.bf16.msra.mxu2 %v12420_v55 }
0x1e45   :  { %6488 = vmatpush.bf16.msra.mxu2 %v12421_v23 }
0x1e49   :  { %6489 = vmatpush.bf16.msra.mxu2 %v12464_v31  ;;  %v12474_v31 = vld [vmem:[#allocation94_spill] sm:$0xff] }
0x1e4d   :  { %6490 = vmatpush.bf16.msra.mxu2 %v12465_v13  ;;  %v12475_v13 = vld [vmem:[#allocation47_spill] sm:$0xff] }
0x1e51   :  { %6491 = vmatpush.bf16.msra.mxu2 %v12466_v43  ;;  %v12476_v43 = vld [vmem:[#allocation95_spill] sm:$0xff] }
0x1e55   :  { %6492 = vmatpush.bf16.msra.mxu2 %v12467_v10 }
0x1e59   :  { %6493 = vmatpush.bf16.msra.mxu2 %v12468_v52  ;;  %v12477_v52 = vld [vmem:[#allocation44_spill] sm:$0xff] }
0x1e79   :  { %v11664_v37 = vpop.f32.mrf.mxu0 }
0x1e7f   :  { %v6169_v45 = vpop.f32.mrf.mxu2 }
0x1e80   :  { %v6173_v0 = vsel %vm5509_vm12, %v6169_v45, -1e+30  ;;  %v12478_v45 = vld [vmem:[#allocation96_spill] sm:$0xff] }
0x1e81   :  { %v6224_v34 = vpop.f32.mrf.mxu0  ;;  %6174 = vmax.xlane.f32.xlu1 %v6173_v0 }
0x1e82   :  { %v12480_v34 = vld [vmem:[#allocation97_spill] sm:$0xff] }
0x1e87   :  { %v6171_v46 = vpop.f32.mrf.mxu2 }
0x1e88   :  { %v12481_v46 = vld [vmem:[#allocation55_spill] sm:$0xff] }
0x1e89   :  { %v11668_v18 = vpop.f32.mrf.mxu0 }
0x1e8f   :  { %v11670_v20 = vpop.f32.mrf.mxu2 }
0x1e91   :  { %v6276_v50 = vpop.f32.mrf.mxu0 }
0x1e92   :  { %v12482_v50 = vld [vmem:[#allocation66_spill] sm:$0xff] }
0x1e97   :  { %v6250_v48 = vpop.f32.mrf.mxu2 }
0x1e98   :  { %v12483_v48 = vld [vmem:[#allocation59_spill] sm:$0xff] }
0x1e9f   :  { %v11672_v35 = vpop.f32.mrf.mxu2 }
0x1ea7   :  { %v6302_v12 = vpop.f32.mrf.mxu2 }
0x1ea8   :  { %v12484_v12 = vld [vmem:[#allocation53_spill] sm:$0xff] }
0x1ef4   :  { %v6175_v26 = vpop.xlane.xlu1 %6174 }
0x1ef5   :  { %v6176_v39 = vsub.f32 %v6173_v0, %v6175_v26  ;;  %v12479_v0 = vld [vmem:[#allocation46_spill] sm:$0xff]  ;;  %v12485_v26 = vld [vmem:[#allocation61_spill] sm:$0xff] }
0x1ef7   :  { %v6177_v55 = vmul.f32 1.442695, %v6176_v39  ;;  %v12486_v39 = vld [vmem:[#allocation51_spill] sm:$0xff] }
0x1ef9   :  { %8597 = vpow2.f32 %v6177_v55  ;;  %v12487_v55 = vld [vmem:[#allocation63_spill] sm:$0xff] }
0x1eff   :  { %v8598_v23 = vpop.eup %8597 }
0x1f00   :  { %v6179_v40 = vmul.f32 %v11674_v42, %v8598_v23  ;;  %v12488_v23 = vld [vmem:[#allocation41_spill] sm:$0xff] }
0x1f02   :  { %6180 = vadd.xlane.f32.xlu2 %v6179_v40 }
0x1f75   :  { %v6181_v33 = vpop.xlane.xlu2 %6180 }
0x1f76   :  { %v6182_v32 = vmax.f32 %v6181_v33, 1e-20  ;;  %v12490_v33 = vld [vmem:[#allocation40_spill] sm:$0xff] }
0x1f78   :  { %8599 = vrcp.f32 %v6182_v32  ;;  %v6194_v9 = vand.u32 2147483648, %v6182_v32  ;;  %v6192_v24 = vand.u32 2147483647, %v6182_v32  ;;  %vm6188_vm1 = vweird.f32 %v6182_v32 }
0x1f7a   :  { %v6195_v17 = vor.u32 1.1754944e-38, %v6194_v9  ;;  %vm6193_vm3 = vcmp.eq.f32.partialorder %v6192_v24, 8.507059e+37  ;;  %v12495_v9 = vld [vmem:[#allocation78_spill] sm:$0xff] }
0x1f7b   :  { %v12497_v24 = vld [vmem:[#allocation82_spill] sm:$0xff] }
0x1f7e   :  { %v8600_v62 = vpop.eup %8599 }
0x1f7f   :  { %v6184_v30 = vmul.f32 %v8600_v62, %v6182_v32  ;;  %vm6189_vm0 = vweird.f32 %v8600_v62  ;;  %v12491_v32 = vld [vmem:[#allocation69_spill] sm:$0xff] }
0x1f80   :  { %vm6190_vm2 = vmor %vm6188_vm1, %vm6189_vm0 }
0x1f81   :  { %v6185_v49 = vsub.f32 1.0, %v6184_v30  ;;  %v12493_v30 = vld [vmem:[#allocation74_spill] sm:$0xff] }
0x1f83   :  { %v6186_v38 = vmul.f32 %v8600_v62, %v6185_v49  ;;  %v12494_v49 = vld [vmem:[#allocation50_spill] sm:$0xff] }
0x1f85   :  { %v6187_v61 = vadd.f32 %v8600_v62, %v6186_v38  ;;  %v12496_v38 = vld [vmem:[#allocation48_spill] sm:$0xff] }
0x1f87   :  { %v6191_v16 = vsel %vm6190_vm2, %v8600_v62, %v6187_v61  ;;  %v12492_v62 = vld [vmem:[#allocation42_spill] sm:$0xff]  ;;  %v12498_v61 = vld [vmem:[#allocation43_spill] sm:$0xff] }
0x1f88   :  { %v6196_v5 = vsel %vm6193_vm3, %v6195_v17, %v6191_v16  ;;  %v12499_v17 = vld [vmem:[#allocation86_spill] sm:$0xff]  ;;  %v12500_v16 = vld [vmem:[#allocation52_spill] sm:$0xff] }
0x1f89   :  { %v6197_v29 = vmul.f32 %v6196_v5, %v6179_v40  ;;  %v12489_v40 = vld [vmem:[#allocation68_spill] sm:$0xff] }
0x1f8a   :  { %v12501_v5 = vld [vmem:[#allocation88_spill] sm:$0xff] }
0x1f8b   :  { %v6198_v3 = vpack.c.bf16 %v6197_v29, %v6197_v29  ;;  %v12502_v29 = vld [vmem:[#allocation54_spill] sm:$0xff] }
0x1f8d   :  { %6207 = vmatmul.bf16.vlgmr.msra.gmra.mxu3 %v6198_v3  ;;  %v12503_v3 = vld [vmem:[#allocation90_spill] sm:$0xff] }
0x1f8e   :  { %6304 = vmatpush.bf16.msra.mxu3 %v12342_v59 }
0x1f92   :  { %6305 = vmatpush.bf16.msra.mxu3 %v12343_v4 }
0x1f96   :  { %6306 = vmatpush.bf16.msra.mxu3 %v12344_v58 }
0x1f9a   :  { %6307 = vmatpush.bf16.msra.mxu3 %v12469_v27 }
0x1f9e   :  { %6308 = vmatpush.bf16.msra.mxu3 %v12470_v1 }
0x1fa2   :  { %6309 = vmatpush.bf16.msra.mxu3 %v12471_v15 }
0x1fa6   :  { %6310 = vmatpush.bf16.msra.mxu3 %v12472_v6 }
0x1faa   :  { %6311 = vmatpush.bf16.msra.mxu3 %v12473_v57 }
0x2010   :  { %v6208_v11 = vpop.f32.mrf.mxu3 }
0x2011   :  { %v6212_v22 = vpack.c.bf16 %v6208_v11, %v6208_v11  ;;  %v12504_v11 = vld [vmem:[#allocation57_spill] sm:$0xff] }
0x2013   :  { %6234 = vmatmul.bf16.vlgmr.msrb.gmra.mxu1 %v6212_v22  ;;  %6260 = vmatmul.bf16.vlgmr.msrb.gmra.mxu3 %v6212_v22 }
0x2014   :  { %6420 = vmatpush.bf16.msrb.mxu1 %v12474_v31  ;;  %6447 = vmatpush.bf16.msrb.mxu3 %v12475_v13  ;;  %v12506_v13 = vld [vmem:[#allocation99_spill] sm:$0xff] }
0x2018   :  { %6421 = vmatpush.bf16.msrb.mxu1 %v12476_v43  ;;  %v6210_v10 = vpop.f32.mrf.mxu3  ;;  %6448 = vmatpush.bf16.msrb.mxu3 %v12477_v52 }
0x2019   :  { %v6223_v10 = vadd.f32 %v11664_v37, %v12506_v13 }
0x201c   :  { %6422 = vmatpush.bf16.msrb.mxu1 %v12478_v45  ;;  %6449 = vmatpush.bf16.msrb.mxu3 %v12479_v0 }
0x2020   :  { %6423 = vmatpush.bf16.msrb.mxu1 %v12480_v34  ;;  %6450 = vmatpush.bf16.msrb.mxu3 %v12481_v46 }
0x2023   :  { %6286 = vmatmul.bf16.vlgmr.msra.gmra.mxu1 %v6212_v22  ;;  %6312 = vmatmul.bf16.vlgmr.msra.gmra.mxu3 %v6212_v22  ;;  %v12505_v22 = vld [vmem:[#allocation92_spill] sm:$0xff] }
0x2024   :  { %6424 = vmatpush.bf16.msrb.mxu1 %v12482_v50  ;;  %6451 = vmatpush.bf16.msrb.mxu3 %v12483_v48  ;;  %v12507_v48 = vld [vmem:[#allocation98_spill] sm:$0xff] }
0x2028   :  { %6425 = vmatpush.bf16.msrb.mxu1 %v12484_v12  ;;  %6452 = vmatpush.bf16.msrb.mxu3 %v12485_v26  ;;  %v6249_v26 = vadd.f32 %v11670_v20, %v12507_v48  ;;  %v12509_v20 = vld [vmem:[#allocation100_spill] sm:$0xff] }
0x202c   :  { %6426 = vmatpush.bf16.msrb.mxu1 %v12486_v39  ;;  %6453 = vmatpush.bf16.msrb.mxu3 %v12487_v55 }
0x2030   :  { %6427 = vmatpush.bf16.msrb.mxu1 %v12488_v23  ;;  %6454 = vmatpush.bf16.msrb.mxu3 %v12489_v40 }
0x2034   :  { %6473 = vmatpush.bf16.msra.mxu1 %v12490_v33  ;;  %6499 = vmatpush.bf16.msra.mxu3 %v12491_v32 }
0x2038   :  { %6474 = vmatpush.bf16.msra.mxu1 %v12492_v62  ;;  %6500 = vmatpush.bf16.msra.mxu3 %v12493_v30 }
0x203c   :  { %6475 = vmatpush.bf16.msra.mxu1 %v12494_v49  ;;  %6501 = vmatpush.bf16.msra.mxu3 %v12495_v9 }
0x2040   :  { %6476 = vmatpush.bf16.msra.mxu1 %v12496_v38  ;;  %6502 = vmatpush.bf16.msra.mxu3 %v12497_v24  ;;  %v12508_v24 = vld [vmem:[#allocation101_spill] sm:$0xff] }
0x2041   :  { %v6275_v37 = vadd.f32 %v11668_v18, %v12508_v24 }
0x2044   :  { %6477 = vmatpush.bf16.msra.mxu1 %v12498_v61  ;;  %6503 = vmatpush.bf16.msra.mxu3 %v12499_v17 }
0x2048   :  { %6478 = vmatpush.bf16.msra.mxu1 %v12500_v16  ;;  %6504 = vmatpush.bf16.msra.mxu3 %v12501_v5  ;;  %v6301_v5 = vadd.f32 %v11672_v35, %v12509_v20 }
0x204c   :  { %6479 = vmatpush.bf16.msra.mxu1 %v12502_v29  ;;  %6505 = vmatpush.bf16.msra.mxu3 %v12503_v3 }
0x2050   :  { %6480 = vmatpush.bf16.msra.mxu1 %v12504_v11  ;;  %6506 = vmatpush.bf16.msra.mxu3 %v12505_v22 }
0x2090   :  { %v6235_v52 = vpop.f32.mrf.mxu1 }
0x2091   :  { %v6236_v0 = vadd.f32 %v6235_v52, %v6223_v10 }
0x2093   :  { %v8064_v46 = vmul.f32 -1.442695, %v6236_v0 }
0x2095   :  { %8601 = vpow2.f32 %v8064_v46 }
0x2096   :  { %v6261_v55 = vpop.f32.mrf.mxu3 }
0x2097   :  { %v6262_v40 = vadd.f32 %v6261_v55, %v6249_v26 }
0x2098   :  { %v6237_v33 = vpop.f32.mrf.mxu1 }
0x2099   :  { %v8065_v32 = vmul.f32 -1.442695, %v6262_v40 }
0x209b   :  { %v8602_v62 = vpop.eup %8601  ;;  %8603 = vpow2.f32 %v8065_v32 }
0x209c   :  { %v6320_v30 = vadd.f32 1.0, %v8602_v62 }
0x209e   :  { %8605 = vrcp.f32 %v6320_v30  ;;  %v6263_v49 = vpop.f32.mrf.mxu3  ;;  %v6332_v10 = vand.u32 2147483648, %v6320_v30  ;;  %v6330_v46 = vand.u32 2147483647, %v6320_v30  ;;  %vm6326_vm5 = vweird.f32 %v6320_v30 }
0x20a0   :  { %v6287_v9 = vpop.f32.mrf.mxu1  ;;  %v6333_v33 = vor.u32 1.1754944e-38, %v6332_v10  ;;  %vm6331_vm7 = vcmp.eq.f32.partialorder %v6330_v46, 8.507059e+37 }
0x20a1   :  { %v8604_v38 = vpop.eup %8603  ;;  %v6288_v16 = vadd.f32 %v6287_v9, %v6275_v37 }
0x20a2   :  { %v6339_v61 = vadd.f32 1.0, %v8604_v38 }
0x20a4   :  { %v8606_v17 = vpop.eup %8605  ;;  %8607 = vrcp.f32 %v6339_v61  ;;  %v6351_v49 = vand.u32 2147483648, %v6339_v61  ;;  %vm6345_vm9 = vweird.f32 %v6339_v61 }
0x20a5   :  { %v6322_v29 = vmul.f32 %v8606_v17, %v6320_v30  ;;  %8609 = vtanh.f32 %v6288_v16  ;;  %vm6327_vm4 = vweird.f32 %v8606_v17  ;;  %v6349_v16 = vand.u32 2147483647, %v6339_v61 }
0x20a6   :  { %v6313_v3 = vpop.f32.mrf.mxu3  ;;  %vm6328_vm6 = vmor %vm6326_vm5, %vm6327_vm4 }
0x20a7   :  { %v6323_v11 = vsub.f32 1.0, %v6322_v29  ;;  %v6314_v22 = vadd.f32 %v6313_v3, %v6301_v5  ;;  %vm6350_vm11 = vcmp.eq.f32.partialorder %v6349_v16, 8.507059e+37 }
0x20a8   :  { %v6289_v52 = vpop.f32.mrf.mxu1 }
0x20a9   :  { %v6324_v0 = vmul.f32 %v8606_v17, %v6323_v11  ;;  %v8066_v26 = vmul.f32 -1.442695, %v6314_v22  ;;  %v6352_v11 = vor.u32 1.1754944e-38, %v6351_v49 }
0x20aa   :  { %v8608_v55 = vpop.eup %8607 }
0x20ab   :  { %v6341_v18 = vmul.f32 %v8608_v55, %v6339_v61  ;;  %v6325_v40 = vadd.f32 %v8606_v17, %v6324_v0  ;;  %8611 = vpow2.f32 %v8066_v26  ;;  %v8610_v62 = vpop.eup %8609  ;;  %vm6346_vm8 = vweird.f32 %v8608_v55 }
0x20ac   :  { %vm6347_vm10 = vmor %vm6345_vm9, %vm6346_vm8 }
0x20ad   :  { %v6342_v32 = vsub.f32 1.0, %v6341_v18  ;;  %v6329_v35 = vsel %vm6328_vm6, %v8606_v17, %v6325_v40 }
0x20ae   :  { %v6334_v9 = vsel %vm6331_vm7, %v6333_v33, %v6329_v35  ;;  %v6315_v38 = vpop.f32.mrf.mxu3 }
0x20af   :  { %v6343_v37 = vmul.f32 %v8608_v55, %v6342_v32  ;;  %v6376_v5 = vmul.f32 %v8610_v62, %v6334_v9 }
0x20b1   :  { %v8612_v29 = vpop.eup %8611  ;;  %v6344_v3 = vadd.f32 %v8608_v55, %v6343_v37 }
0x20b2   :  { %v6359_v30 = vadd.f32 1.0, %v8612_v29 }
0x20b3   :  { %v6348_v22 = vsel %vm6347_vm10, %v8608_v55, %v6344_v3 }
0x20b4   :  { %v6353_v10 = vsel %vm6350_vm11, %v6352_v11, %v6348_v22  ;;  %8613 = vrcp.f32 %v6359_v30  ;;  %v6371_v18 = vand.u32 2147483648, %v6359_v30  ;;  %v6369_v61 = vand.u32 2147483647, %v6359_v30 }
0x20b5   :  { %v6375_v17 = vmul.f32 %v6353_v10, %v11621_v63  ;;  %vm6365_vm14 = vweird.f32 %v6359_v30 }
0x20b6   :  { %v6372_v55 = vor.u32 1.1754944e-38, %v6371_v18  ;;  %vm6370_vm0 = vcmp.eq.f32.partialorder %v6369_v61, 8.507059e+37 }
0x20b7   :  { %v11726_v52 = vadd.f32 %v6376_v5, %v6375_v17 }
0x20b9   :  { %8615 = vtanh.f32 %v11726_v52 }
0x20ba   :  { %v8614_v0 = vpop.eup %8613 }
0x20bb   :  { %v6361_v46 = vmul.f32 %v8614_v0, %v6359_v30  ;;  %vm6366_vm13 = vweird.f32 %v8614_v0 }
0x20bc   :  { %vm6367_vm15 = vmor %vm6365_vm14, %vm6366_vm13 }
0x20bd   :  { %v6362_v26 = vsub.f32 1.0, %v6361_v46 }
0x20bf   :  { %v6363_v40 = vmul.f32 %v8614_v0, %v6362_v26  ;;  %v8616_v35 = vpop.eup %8615 }
0x20c1   :  { %v6364_v33 = vadd.f32 %v8614_v0, %v6363_v40  ;;  %v8447_v40 = vld [vmem:[#allocation25 + $0x8] sm:$0xff] }
0x20c3   :  { %v6368_v32 = vsel %vm6367_vm15, %v8614_v0, %v6364_v33 }
0x20c4   :  { %v6373_v62 = vsel %vm6370_vm0, %v6372_v55, %v6368_v32  ;;  %v8446_v55 = vld [vmem:[#allocation25] sm:$0xff] }
0x20c5   :  { %v6379_v63 = vmul.f32 %v8616_v35, %v6373_v62 }
0x20c7   :  { %v6380_v49 = vpack.c.bf16 %v6379_v63, %v6379_v63 }
0x20c9   :  { %6389 = vmatmul.bf16.vlgmr.msrb.gmra.mxu0 %v6380_v49  ;;  %6442 = vmatmul.bf16.vlgmr.msrb.gmra.mxu2 %v6380_v49 }
0x20ca   :  { %6602 = vmatpush.bf16.msrb.mxu2 %v11288_v47  ;;  %6512 = vmatpush.bf16.msrb.mxu0 %v11040_v60 }
0x20ce   :  { %6603 = vmatpush.bf16.msrb.mxu2 %v11292_v28  ;;  %6513 = vmatpush.bf16.msrb.mxu0 %v11055_v51 }
0x20d2   :  { %6604 = vmatpush.bf16.msrb.mxu2 %v11296_v14  ;;  %6514 = vmatpush.bf16.msrb.mxu0 %v12333_v36 }
0x20d6   :  { %6605 = vmatpush.bf16.msrb.mxu2 %v11300_v21  ;;  %6515 = vmatpush.bf16.msrb.mxu0 %v12334_v7 }
0x20d9   :  { %6468 = vmatmul.bf16.vlgmr.msra.gmra.mxu0 %v6380_v49  ;;  %6494 = vmatmul.bf16.vlgmr.msra.gmra.mxu2 %v6380_v49 }
0x20da   :  { %6606 = vmatpush.bf16.msrb.mxu2 %v11282_v56  ;;  %6516 = vmatpush.bf16.msrb.mxu0 %v12335_v2 }
0x20de   :  { %6607 = vmatpush.bf16.msrb.mxu2 %v11274_v44  ;;  %6517 = vmatpush.bf16.msrb.mxu0 %v12336_v8 }
0x20e2   :  { %6608 = vmatpush.bf16.msrb.mxu2 %v11263_v53  ;;  %6518 = vmatpush.bf16.msrb.mxu0 %v12337_v25 }
0x20e6   :  { %6609 = vmatpush.bf16.msrb.mxu2 %v11259_v41  ;;  %6519 = vmatpush.bf16.msrb.mxu0 %v12338_v19 }
0x20e9   :  { %6520 = vmatmul.bf16.vlgmr.msrb.gmra.mxu0 %v6380_v49 }
0x2146   :  { %v6390_v60 = vpop.f32.mrf.mxu0 }
0x2147   :  { %v6394_v51 = vsel %vm5509_vm12, %v6390_v60, -1e+30 }
0x2148   :  { %6395 = vmax.xlane.f32.xlu1 %v6394_v51 }
0x214c   :  { %v11747_v56 = vpop.f32.mrf.mxu2 }
0x214e   :  { %v6392_v47 = vpop.f32.mrf.mxu0 }
0x2154   :  { %v6445_v44 = vpop.f32.mrf.mxu2 }
0x2156   :  { %v6469_v28 = vpop.f32.mrf.mxu0 }
0x215c   :  { %v11749_v14 = vpop.f32.mrf.mxu2 }
0x215d   :  { %v6496_v47 = vadd.f32 %v11749_v14, %v12508_v24 }
0x215e   :  { %v6471_v53 = vpop.f32.mrf.mxu0 }
0x2164   :  { %v6497_v21 = vpop.f32.mrf.mxu2 }
0x2166   :  { %v11751_v36 = vpop.f32.mrf.mxu0 }
0x2167   :  { %v6522_v32 = vadd.f32 %v11751_v36, %v12509_v20 }
0x216e   :  { %v6523_v41 = vpop.f32.mrf.mxu0 }
0x21bb   :  { %v6396_v7 = vpop.xlane.xlu1 %6395 }
0x21bc   :  { %v6397_v2 = vsub.f32 %v6394_v51, %v6396_v7 }
0x21be   :  { %v6398_v8 = vmul.f32 1.442695, %v6397_v2 }
0x21c0   :  { %8617 = vpow2.f32 %v6398_v8 }
0x21c6   :  { %v8618_v25 = vpop.eup %8617 }
0x21c7   :  { %v6400_v19 = vmul.f32 %v11674_v42, %v8618_v25 }
0x21c9   :  { %6401 = vadd.xlane.f32.xlu2 %v6400_v19 }
0x223c   :  { %v6402_v9 = vpop.xlane.xlu2 %6401 }
0x223d   :  { %v6403_v38 = vmax.f32 %v6402_v9, 1e-20 }
0x223f   :  { %8619 = vrcp.f32 %v6403_v38  ;;  %v6415_v29 = vand.u32 2147483648, %v6403_v38  ;;  %v6413_v11 = vand.u32 2147483647, %v6403_v38  ;;  %vm6409_vm2 = vweird.f32 %v6403_v38 }
0x2241   :  { %v6416_v22 = vor.u32 1.1754944e-38, %v6415_v29  ;;  %vm6414_vm4 = vcmp.eq.f32.partialorder %v6413_v11, 8.507059e+37 }
0x2245   :  { %v8620_v37 = vpop.eup %8619 }
0x2246   :  { %v6405_v16 = vmul.f32 %v8620_v37, %v6403_v38  ;;  %vm6410_vm1 = vweird.f32 %v8620_v37 }
0x2247   :  { %vm6411_vm3 = vmor %vm6409_vm2, %vm6410_vm1 }
0x2248   :  { %v6406_v5 = vsub.f32 1.0, %v6405_v16 }
0x224a   :  { %v6407_v3 = vmul.f32 %v8620_v37, %v6406_v5 }
0x224c   :  { %v6408_v30 = vadd.f32 %v8620_v37, %v6407_v3 }
0x224e   :  { %v6412_v10 = vsel %vm6411_vm3, %v8620_v37, %v6408_v30 }
0x224f   :  { %v6417_v17 = vsel %vm6414_vm4, %v6416_v22, %v6412_v10 }
0x2250   :  { %v6418_v0 = vmul.f32 %v6417_v17, %v6400_v19 }
0x2252   :  { %v6419_v46 = vpack.c.bf16 %v6418_v0, %v6418_v0 }
0x2254   :  { %6428 = vmatmul.bf16.vlgmr.msrb.gmra.mxu1 %v6419_v46 }
0x2255   :  { %6525 = vmatpush.bf16.msrb.mxu1 %v12342_v59 }
0x2259   :  { %6526 = vmatpush.bf16.msrb.mxu1 %v12343_v4  ;;  %v8452_v4 = vld [vmem:[#allocation25 + $0x30] sm:$0xff] }
0x225d   :  { %6527 = vmatpush.bf16.msrb.mxu1 %v12344_v58  ;;  %v8453_v58 = vld [vmem:[#allocation25 + $0x38] sm:$0xff] }
0x225e   :  { %6787 = vmatpush.bf16.msra.mxu0 %v8453_v58 }
0x2261   :  { %6528 = vmatpush.bf16.msrb.mxu1 %v12469_v27  ;;  %v8451_v27 = vld [vmem:[#allocation25 + $0x28] sm:$0xff] }
0x2262   :  { %6788 = vmatpush.bf16.msra.mxu0 %v8452_v4 }
0x2265   :  { %6529 = vmatpush.bf16.msrb.mxu1 %v12470_v1  ;;  %v6470_v1 = vadd.f32 %v6469_v28, %v12507_v48 }
0x2266   :  { %6789 = vmatpush.bf16.msra.mxu0 %v8451_v27 }
0x2269   :  { %6530 = vmatpush.bf16.msrb.mxu1 %v12471_v15 }
0x226d   :  { %6531 = vmatpush.bf16.msrb.mxu1 %v12472_v6  ;;  %v8450_v6 = vld [vmem:[#allocation25 + $0x20] sm:$0xff] }
0x226e   :  { %6790 = vmatpush.bf16.msra.mxu0 %v8450_v6 }
0x2271   :  { %6532 = vmatpush.bf16.msrb.mxu1 %v12473_v57 }
0x22d1   :  { %v6429_v26 = vpop.f32.mrf.mxu1 }
0x22d2   :  { %v6433_v18 = vpack.c.bf16 %v6429_v26, %v6429_v26 }
0x22d4   :  { %6455 = vmatmul.bf16.vlgmr.msrb.gmra.mxu3 %v6433_v18  ;;  %6481 = vmatmul.bf16.vlgmr.msra.gmra.mxu1 %v6433_v18 }
0x22d5   :  { %6641 = vmatpush.bf16.msrb.mxu3 %v12474_v31 }
0x22d9   :  { %6642 = vmatpush.bf16.msrb.mxu3 %v12476_v43  ;;  %v6431_v59 = vpop.f32.mrf.mxu1  ;;  %v8449_v43 = vld [vmem:[#allocation25 + $0x18] sm:$0xff] }
0x22da   :  { %6791 = vmatpush.bf16.msra.mxu0 %v8449_v43 }
0x22dd   :  { %6643 = vmatpush.bf16.msrb.mxu3 %v12478_v45  ;;  %v6444_v45 = vadd.f32 %v11747_v56, %v12506_v13 }
0x22e1   :  { %6644 = vmatpush.bf16.msrb.mxu3 %v12480_v34 }
0x22e4   :  { %6507 = vmatmul.bf16.vlgmr.msra.gmra.mxu3 %v6433_v18  ;;  %6533 = vmatmul.bf16.vlgmr.msrb.gmra.mxu1 %v6433_v18 }
0x22e5   :  { %6645 = vmatpush.bf16.msrb.mxu3 %v12482_v50 }
0x22e9   :  { %6646 = vmatpush.bf16.msrb.mxu3 %v12484_v12 }
0x22ed   :  { %6647 = vmatpush.bf16.msrb.mxu3 %v12486_v39  ;;  %v8448_v39 = vld [vmem:[#allocation25 + $0x10] sm:$0xff] }
0x22ee   :  { %6792 = vmatpush.bf16.msra.mxu0 %v8448_v39 }
0x22f1   :  { %6648 = vmatpush.bf16.msrb.mxu3 %v12488_v23 }
0x22f2   :  { %6793 = vmatpush.bf16.msra.mxu0 %v8447_v40 }
0x22f6   :  { %6794 = vmatpush.bf16.msra.mxu0 %v8446_v55  ;;  %v8460_v55 = vld [vmem:[#allocation25 + $0x70] sm:$0xff] }
0x2351   :  { %v6482_v15 = vpop.f32.mrf.mxu1 }
0x2352   :  { %v6483_v57 = vadd.f32 %v6482_v15, %v6470_v1 }
0x2354   :  { %v8068_v31 = vmul.f32 -1.442695, %v6483_v57 }
0x2356   :  { %8621 = vpow2.f32 %v8068_v31 }
0x2357   :  { %v6456_v34 = vpop.f32.mrf.mxu3 }
0x2358   :  { %v6457_v50 = vadd.f32 %v6456_v34, %v6444_v45 }
0x2359   :  { %v6484_v12 = vpop.f32.mrf.mxu1 }
0x235a   :  { %v8067_v23 = vmul.f32 -1.442695, %v6457_v50 }
0x235c   :  { %v8622_v61 = vpop.eup %8621  ;;  %8623 = vpow2.f32 %v8067_v23 }
0x235d   :  { %v6560_v48 = vadd.f32 1.0, %v8622_v61 }
0x235f   :  { %8625 = vrcp.f32 %v6560_v48  ;;  %v6458_v33 = vpop.f32.mrf.mxu3  ;;  %v6572_v2 = vand.u32 2147483648, %v6560_v48  ;;  %vm6566_vm6 = vweird.f32 %v6560_v48  ;;  %v6570_v19 = vand.u32 2147483647, %v6560_v48 }
0x2360   :  { %v8461_v33 = vld [vmem:[#allocation25 + $0x78] sm:$0xff] }
0x2361   :  { %v6534_v13 = vpop.f32.mrf.mxu1  ;;  %v6573_v16 = vor.u32 1.1754944e-38, %v6572_v2  ;;  %vm6571_vm10 = vcmp.eq.f32.partialorder %v6570_v19, 8.507059e+37  ;;  %6800 = vmatpush.bf16.msra.mxu1 %v8461_v33  ;;  %v8469_v2 = vld [vmem:[#allocation27 + $0x38] sm:$0xff]  ;;  %v8466_v19 = vld [vmem:[#allocation27 + $0x20] sm:$0xff] }
0x2362   :  { %v8624_v35 = vpop.eup %8623  ;;  %v6535_v62 = vadd.f32 %v6534_v13, %v6522_v32  ;;  %v8459_v32 = vld [vmem:[#allocation25 + $0x68] sm:$0xff]  ;;  %6883 = vmatpush.bf16.msra.mxu2 %v8469_v2 }
0x2363   :  { %v6541_v63 = vadd.f32 1.0, %v8624_v35 }
0x2364   :  { %v8069_v49 = vmul.f32 -1.442695, %v6535_v62  ;;  %v8457_v62 = vld [vmem:[#allocation25 + $0x58] sm:$0xff] }
0x2365   :  { %v8626_v60 = vpop.eup %8625  ;;  %8627 = vrcp.f32 %v6541_v63  ;;  %v6553_v9 = vand.u32 2147483648, %v6541_v63  ;;  %v6551_v14 = vand.u32 2147483647, %v6541_v63  ;;  %vm6547_vm9 = vweird.f32 %v6541_v63  ;;  %6801 = vmatpush.bf16.msra.mxu1 %v8460_v55 }
0x2366   :  { %v6562_v51 = vmul.f32 %v8626_v60, %v6560_v48  ;;  %8629 = vpow2.f32 %v8069_v49  ;;  %vm6567_vm5 = vweird.f32 %v8626_v60 }
0x2367   :  { %v6508_v56 = vpop.f32.mrf.mxu3  ;;  %vm6568_vm7 = vmor %vm6566_vm6, %vm6567_vm5  ;;  %v6554_v29 = vor.u32 1.1754944e-38, %v6553_v9  ;;  %vm6552_vm13 = vcmp.eq.f32.partialorder %v6551_v14, 8.507059e+37  ;;  %v8465_v9 = vld [vmem:[#allocation27 + $0x18] sm:$0xff] }
0x2368   :  { %v6563_v44 = vsub.f32 1.0, %v6562_v51  ;;  %v6509_v21 = vadd.f32 %v6508_v56, %v6496_v47 }
0x2369   :  { %v6536_v28 = vpop.f32.mrf.mxu1  ;;  %6802 = vmatpush.bf16.msra.mxu1 %v8459_v32 }
0x236a   :  { %v6564_v53 = vmul.f32 %v8626_v60, %v6563_v44  ;;  %8631 = vtanh.f32 %v6509_v21  ;;  %v8455_v44 = vld [vmem:[#allocation25 + $0x48] sm:$0xff] }
0x236b   :  { %v8628_v41 = vpop.eup %8627 }
0x236c   :  { %v8630_v20 = vpop.eup %8629  ;;  %v6543_v36 = vmul.f32 %v8628_v41, %v6541_v63  ;;  %v6565_v7 = vadd.f32 %v8626_v60, %v6564_v53  ;;  %vm6548_vm8 = vweird.f32 %v8628_v41 }
0x236d   :  { %v6580_v8 = vadd.f32 1.0, %v8630_v20  ;;  %vm6549_vm11 = vmor %vm6547_vm9, %vm6548_vm8  ;;  %6803 = vmatpush.bf16.msra.mxu1 %v8458_v54 }
0x236e   :  { %v6544_v25 = vsub.f32 1.0, %v6543_v36  ;;  %v6569_v37 = vsel %vm6568_vm7, %v8626_v60, %v6565_v7  ;;  %v8456_v60 = vld [vmem:[#allocation25 + $0x50] sm:$0xff]  ;;  %v8454_v7 = vld [vmem:[#allocation25 + $0x40] sm:$0xff] }
0x236f   :  { %8633 = vrcp.f32 %v6580_v8  ;;  %v6510_v38 = vpop.f32.mrf.mxu3  ;;  %v6574_v3 = vsel %vm6571_vm10, %v6573_v16, %v6569_v37  ;;  %v6592_v59 = vand.u32 2147483648, %v6580_v8  ;;  %v6590_v4 = vand.u32 2147483647, %v6580_v8  ;;  %v8463_v16 = vld [vmem:[#allocation27 + $0x8] sm:$0xff] }
0x2370   :  { %v6545_v24 = vmul.f32 %v8628_v41, %v6544_v25  ;;  %v8632_v11 = vpop.eup %8631  ;;  %v6596_v0 = vmul.f32 %v6574_v3, %v11726_v52  ;;  %vm6586_vm15 = vweird.f32 %v6580_v8  ;;  %v8467_v25 = vld [vmem:[#allocation27 + $0x28] sm:$0xff]  ;;  %v8464_v38 = vld [vmem:[#allocation27 + $0x10] sm:$0xff] }
0x2371   :  { %v6593_v1 = vor.u32 1.1754944e-38, %v6592_v59  ;;  %vm6591_vm1 = vcmp.eq.f32.partialorder %v6590_v4, 8.507059e+37  ;;  %6804 = vmatpush.bf16.msra.mxu1 %v8457_v62 }
0x2372   :  { %v6546_v5 = vadd.f32 %v8628_v41, %v6545_v24 }
0x2374   :  { %v6550_v30 = vsel %vm6549_vm11, %v8628_v41, %v6546_v5  ;;  %v8462_v5 = vld [vmem:[#allocation27] sm:$0xff] }
0x2375   :  { %v8634_v22 = vpop.eup %8633  ;;  %v6555_v10 = vsel %vm6552_vm13, %v6554_v29, %v6550_v30  ;;  %6805 = vmatpush.bf16.msra.mxu1 %v8456_v60  ;;  %v8519_v29 = vld [vmem:[%s11810_s17] ss:$0 sm:$0xff] }
0x2376   :  { %v6582_v17 = vmul.f32 %v8634_v22, %v6580_v8  ;;  %v6597_v46 = vmul.f32 %v8632_v11, %v6555_v10  ;;  %vm6587_vm14 = vweird.f32 %v8634_v22  ;;  %v8468_v8 = vld [vmem:[#allocation27 + $0x30] sm:$0xff] }
0x2377   :  { %vm6588_vm0 = vmor %vm6586_vm15, %vm6587_vm14  ;;  %6884 = vmatpush.bf16.msra.mxu2 %v8468_v8 }
0x2378   :  { %v6583_v26 = vsub.f32 1.0, %v6582_v17  ;;  %v6598_v18 = vadd.f32 %v6597_v46, %v6596_v0  ;;  %v8520_v0 = vld [vmem:[%s11812_s19] ss:$0 sm:$0xff] }
0x2379   :  { %6806 = vmatpush.bf16.msra.mxu1 %v8455_v44 }
0x237a   :  { %v6584_v58 = vmul.f32 %v8634_v22, %v6583_v26  ;;  %8635 = vtanh.f32 %v6598_v18 }
0x237b   :  { %6885 = vmatpush.bf16.msra.mxu2 %v8467_v25 }
0x237c   :  { %v6585_v27 = vadd.f32 %v8634_v22, %v6584_v58 }
0x237d   :  { %6807 = vmatpush.bf16.msra.mxu1 %v8454_v7 }
0x237e   :  { %v6589_v15 = vsel %vm6588_vm0, %v8634_v22, %v6585_v27 }
0x237f   :  { %v6594_v6 = vsel %vm6591_vm1, %v6593_v1, %v6589_v15  ;;  %6886 = vmatpush.bf16.msra.mxu2 %v8466_v19 }
0x2380   :  { %v8636_v57 = vpop.eup %8635 }
0x2381   :  { %v6600_v31 = vmul.f32 %v8636_v57, %v6594_v6 }
0x2383   :  { %v6601_v43 = vpack.c.bf16 %v6600_v31, %v6600_v31  ;;  %6887 = vmatpush.bf16.msra.mxu2 %v8465_v9 }
0x2385   :  { %6610 = vmatmul.bf16.vlgmr.msrb.gmra.mxu2 %v6601_v43  ;;  %6795 = vmatmul.bf16.vlgmr.msra.gmra.mxu0 %v6601_v43 }
0x2387   :  { %6888 = vmatpush.bf16.msra.mxu2 %v8464_v38 }
0x238b   :  { %6889 = vmatpush.bf16.msra.mxu2 %v8463_v16 }
0x238f   :  { %6890 = vmatpush.bf16.msra.mxu2 %v8462_v5 }
0x2402   :  { %v11778_v52 = vpop.f32.mrf.mxu0 }
0x2403   :  { %v6797_v3 = vadd.f32 %v8519_v29, %v11778_v52 }
0x2408   :  { %v6611_v45 = vpop.f32.mrf.mxu2 }
0x2409   :  { %v6615_v34 = vsel %vm5509_vm12, %v6611_v45, -1e+30 }
0x240a   :  { %v6798_v50 = vpop.f32.mrf.mxu0  ;;  %6616 = vmax.xlane.f32.xlu1 %v6615_v34 }
0x2410   :  { %v6613_v12 = vpop.f32.mrf.mxu2 }
0x247d   :  { %v6617_v39 = vpop.xlane.xlu1 %6616 }
0x247e   :  { %v6618_v23 = vsub.f32 %v6615_v34, %v6617_v39 }
0x2480   :  { %v6619_v40 = vmul.f32 1.442695, %v6618_v23 }
0x2482   :  { %8637 = vpow2.f32 %v6619_v40 }
0x2488   :  { %v8638_v61 = vpop.eup %8637 }
0x2489   :  { %v6621_v48 = vmul.f32 %v11674_v42, %v8638_v61 }
0x248b   :  { %6622 = vadd.xlane.f32.xlu2 %v6621_v48 }
0x24fe   :  { %v6623_v13 = vpop.xlane.xlu2 %6622 }
0x24ff   :  { %v6624_v35 = vmax.f32 %v6623_v13, 1e-20 }
0x2501   :  { %8639 = vrcp.f32 %v6624_v35  ;;  %v6636_v56 = vand.u32 2147483648, %v6624_v35  ;;  %v6634_v47 = vand.u32 2147483647, %v6624_v35  ;;  %vm6630_vm2 = vweird.f32 %v6624_v35 }
0x2503   :  { %v6637_v53 = vor.u32 1.1754944e-38, %v6636_v56  ;;  %vm6635_vm4 = vcmp.eq.f32.partialorder %v6634_v47, 8.507059e+37 }
0x2507   :  { %v8640_v63 = vpop.eup %8639 }
0x2508   :  { %v6626_v49 = vmul.f32 %v8640_v63, %v6624_v35  ;;  %vm6631_vm12 = vweird.f32 %v8640_v63 }
0x2509   :  { %vm6632_vm3 = vmor %vm6630_vm2, %vm6631_vm12 }
0x250a   :  { %v6627_v51 = vsub.f32 1.0, %v6626_v49 }
0x250c   :  { %v6628_v42 = vmul.f32 %v8640_v63, %v6627_v51 }
0x250e   :  { %v6629_v28 = vadd.f32 %v8640_v63, %v6628_v42 }
0x2510   :  { %v6633_v21 = vsel %vm6632_vm3, %v8640_v63, %v6629_v28 }
0x2511   :  { %v6638_v41 = vsel %vm6635_vm4, %v6637_v53, %v6633_v21 }
0x2512   :  { %v6639_v20 = vmul.f32 %v6638_v41, %v6621_v48 }
0x2514   :  { %v6640_v36 = vpack.c.bf16 %v6639_v20, %v6639_v20 }
0x2516   :  { %6649 = vmatmul.bf16.vlgmr.msrb.gmra.mxu3 %v6640_v36 }
0x2599   :  { %v6650_v24 = vpop.f32.mrf.mxu3 }
0x259a   :  { %v6686_v14 = vpack.c.bf16 %v6650_v24, %v6650_v24 }
0x259c   :  { %6808 = vmatmul.bf16.vlgmr.msra.gmra.mxu1 %v6686_v14 }
0x25a1   :  { %v6652_v37 = vpop.f32.mrf.mxu3 }
0x2619   :  { %v6809_v11 = vpop.f32.mrf.mxu1 }
0x261a   :  { %v6810_v30 = vadd.f32 %v6809_v11, %v6797_v3 }
0x261c   :  { %v6813_v22 = vmax.f32 %v6810_v30, 0.0 }
0x261e   :  { %v6830_v10 = vpack.c.bf16 %v6813_v22, %v6813_v22 }
0x2620   :  { %6891 = vmatmul.bf16.vlgmr.msra.gmra.mxu2 %v6830_v10 }
0x2621   :  { %v6811_v17 = vpop.f32.mrf.mxu1 }
0x26a3   :  { %v6892_v46 = vpop.f32.mrf.mxu2 }
0x26a4   :  { %v6893_v26 = vadd.f32 %v8520_v0, %v6892_v46 }
0x26a6   :  { %6896 = vst [vmem:[#allocation28] sm:$0xff] %v6893_v26 }
0x26a7   :  { %6907 = dma.vmem_to_hbm [thread:$0]  %s6903_s29, 128, %s6905_s5, [#allocation4]  }
0x26ab   :  { %v6894_v18 = vpop.f32.mrf.mxu2 }
0x26ac   :  { %9112 = dma.done.wait [#allocation4], 128  }
0x26ad   :  { %9113 = vsyncadd [#allocation4], 4294967168 }
0x26ae   :  { %6912 = vsyncpa [#allocation3], 1 }
0x26af   :  { %6913 = vsyncpa [#allocation7], 1 }
0x26b0   :  { %6914 = vsyncpa [#allocation10], 1 }
0x26b1   :  { %6915 = vsyncpa [#allocation13], 1 }
0x26b2   :  { %6916 = vsyncpa [#allocation16], 1 }
0x26b3   :  { %6917 = vsyncpa [#allocation19], 1 }
0x26b4   :  { %6918 = vsyncpa [#allocation22], 1 }
0x26b5   :  { %6919 = vsyncpa [#allocation26], 1 }
0x26b6   :  { %6920 = vsyncpa [#allocation4], 1 }
0x26b7   :  { %6921 = vsyncpa [#allocation5], 1 }

</bundles_post_ra>
